<compile_context>
chip_gen: v5e
topology: v5e:2x2
jax: 0.10.0
libtpu: 0.0.40
codegen_flags: <defaults>
</compile_context>

<pallas_src>
import functools

import jax
import jax.numpy as jnp
from jax import lax
from jax.experimental import pallas as pl
from jax.experimental.pallas import tpu as pltpu

EPS = 1e-8


# --------------------------------------------------------------------------
# fused matmul + bias (input-gate projection for both directions & sequences)
# --------------------------------------------------------------------------
def _matmul_bias_kernel(x_ref, w_ref, b_ref, o_ref):
    o_ref[...] = (jnp.dot(x_ref[...], w_ref[...],
                          preferred_element_type=jnp.float32) + b_ref[...])


def matmul_bias(x, w, b):
    M = x.shape[0]
    N = w.shape[1]
    return pl.pallas_call(
        _matmul_bias_kernel,
        out_shape=jax.ShapeDtypeStruct((M, N), jnp.float32),
    )(x, w, b.reshape(1, N))


# --------------------------------------------------------------------------
# shared LSTM recurrence body: all 4 direction/sequence chains in one loop
# gx_ref: (T, 4B, 4H) time-major gate pre-activations (bias folded in, bw
#         rows already time-reversed).  whh_ref: (H, 8H) = [W_hh_fw|W_hh_bw].
# rows [0, num_fw) use the fw weights, rows [num_fw, 4B) the bw weights.
# --------------------------------------------------------------------------
def _lstm_recurrence(gx_ref, whh_ref, num_fw, out_ref=None):
    T, R, G = gx_ref.shape          # G = 4H
    H = whh_ref.shape[0]

    row_ids = lax.broadcasted_iota(jnp.int32, (R, G), 0)
    is_fw = row_ids < num_fw        # loop-invariant fw/bw selection mask

    def step(t, carry):
        h_prev, c_prev = carry
        gall = jnp.dot(h_prev, whh_ref[...],
                       preferred_element_type=jnp.float32)        # (R, 8H)
        grec = jnp.where(is_fw, gall[:, :G], gall[:, G:])          # (R, 4H)
        gates = gx_ref[t] + grec
        i = jax.nn.sigmoid(gates[:, 0:H])
        f = jax.nn.sigmoid(gates[:, H:2 * H])
        g = jnp.tanh(gates[:, 2 * H:3 * H])
        o = jax.nn.sigmoid(gates[:, 3 * H:4 * H])
        c = f * c_prev + i * g
        h = o * jnp.tanh(c)
        if out_ref is not None:
            out_ref[t] = h
        return (h, c)

    h0 = jnp.zeros((R, H), jnp.float32)
    # T is small & static: full unroll -> static gx/out indices, scheduler
    # visibility across steps.
    return lax.fori_loop(0, T, step, (h0, h0), unroll=True)


def _lstm_all_kernel(gx_ref, whh_ref, out_ref, *, num_fw):
    _lstm_recurrence(gx_ref, whh_ref, num_fw, out_ref=out_ref)


def _gate_preacts(xp, xh, p):
    """One fused input-gate projection for both sequences & both directions.
    Returns gx (T, 4B, 4H) in processing-time order (bw rows time-reversed)
    and the concatenated hidden weights (H, 8H)."""
    B, T, D = xp.shape
    H = p['w_hh_f'].shape[0]

    x = jnp.concatenate([xp, xh], axis=0).reshape(2 * B * T, D)
    w_ih = jnp.concatenate([p['w_ih_f'], p['w_ih_b']], axis=1)       # (D, 8H)
    bias = jnp.concatenate([p['b_ih_f'] + p['b_hh_f'],
                            p['b_ih_b'] + p['b_hh_b']], axis=0)      # (8H,)
    proj = matmul_bias(x, w_ih, bias).reshape(2 * B, T, 8 * H)

    gx_fw = proj[:, :, :4 * H]                     # (2B, T, 4H)
    gx_bw = proj[:, ::-1, 4 * H:]                  # (2B, T, 4H) time-reversed
    gx = jnp.transpose(jnp.concatenate([gx_fw, gx_bw], axis=0),
                       (1, 0, 2))                  # (T, 4B, 4H)

    w_hh = jnp.concatenate([p['w_hh_f'], p['w_hh_b']], axis=1)       # (H, 8H)
    return gx, w_hh


def bilstm_context(xp, xh, p):
    """Context BiLSTM over two sequences with shared weights, fully fused:
    one input-projection matmul + one recurrence kernel for all 4 chains.
    Returns (T, 4B, H) in processing-time order, rows =
    [p_fw(B), h_fw(B), p_bw(B), h_bw(B)] (bw rows over reversed time)."""
    B = xp.shape[0]
    gx, w_hh = _gate_preacts(xp, xh, p)
    T, R, _ = gx.shape
    H = w_hh.shape[0]
    return pl.pallas_call(
        functools.partial(_lstm_all_kernel, num_fw=2 * B),
        out_shape=jax.ShapeDtypeStruct((T, R, H), jnp.float32),
    )(gx, w_hh)


# --------------------------------------------------------------------------
# aggregation BiLSTM (final hidden only) fused with the prediction head
# --------------------------------------------------------------------------
def _agg_pred_kernel(gx_ref, whh_ref, w1_ref, b1_ref, w2_ref, b2_ref,
                     logits_ref, probs_ref, *, num_fw, batch):
    (h_fin, _) = _lstm_recurrence(gx_ref, whh_ref, num_fw, out_ref=None)

    B = batch
    # rows of h_fin: [p_fw(B), h_fw(B), p_bw(B), h_bw(B)]
    # x = [p_fw | p_bw | h_fw | h_bw]  -> (B, 4H)
    x = jnp.concatenate([h_fin[0:B], h_fin[2 * B:3 * B],
                         h_fin[B:2 * B], h_fin[3 * B:4 * B]], axis=1)

    hmid = jnp.tanh(jnp.dot(x, w1_ref[...],
                            preferred_element_type=jnp.float32) + b1_ref[...])
    logits = jnp.dot(hmid, w2_ref[...],
                     preferred_element_type=jnp.float32) + b2_ref[...]
    logits_ref[...] = logits
    m = jnp.max(logits, axis=-1, keepdims=True)
    e = jnp.exp(logits - m)
    probs_ref[...] = e / jnp.sum(e, axis=-1, keepdims=True)


def bilstm_agg_pred(mv_p, mv_h, p, fc1_w, fc1_b, fc2_w, fc2_b):
    B = mv_p.shape[0]
    gx, w_hh = _gate_preacts(mv_p, mv_h, p)
    C = fc2_w.shape[1]
    return pl.pallas_call(
        functools.partial(_agg_pred_kernel, num_fw=2 * B, batch=B),
        out_shape=(jax.ShapeDtypeStruct((B, C), jnp.float32),
                   jax.ShapeDtypeStruct((B, C), jnp.float32)),
    )(gx, w_hh, fc1_w, fc1_b.reshape(1, -1), fc2_w, fc2_b.reshape(1, -1))


# --------------------------------------------------------------------------
# fused matching stage: one grid=(B,) kernel producing mv_p/mv_h (B, T, 8L)
# --------------------------------------------------------------------------
def _mp_cos(a, b, w2):
    """Multi-perspective cosine between aligned rows. a,b:(T,H), w2:(L,H)."""
    cross = jnp.einsum('th,lh->tl', a * b, w2,
                       preferred_element_type=jnp.float32)
    n1 = jnp.einsum('th,lh->tl', a * a, w2,
                    preferred_element_type=jnp.float32)
    n2 = jnp.einsum('th,lh->tl', b * b, w2,
                    preferred_element_type=jnp.float32)
    return cross / jnp.maximum(jnp.sqrt(n1 * n2), EPS)


def _mp_pair_max(v1, v2, w2):
    """Pairwise multi-perspective cosine with the max reductions fused.
    v1:(T1,H), v2:(T2,H) -> (max over T2 -> (T1,L), max over T1 -> (T2,L))."""
    tmp = v1[:, None, :] * v2[None, :, :]                            # (T1,T2,H)
    cross = jnp.einsum('pqh,lh->pql', tmp, w2,
                       preferred_element_type=jnp.float32)           # (T1,T2,L)
    n1 = jnp.sqrt(jnp.einsum('ph,lh->pl', v1 * v1, w2,
                             preferred_element_type=jnp.float32))    # (T1,L)
    n2 = jnp.sqrt(jnp.einsum('qh,lh->ql', v2 * v2, w2,
                             preferred_element_type=jnp.float32))    # (T2,L)
    d = n1[:, None, :] * n2[None, :, :]
    m = cross / jnp.where(d > EPS, d, EPS)
    return jnp.max(m, axis=1), jnp.max(m, axis=0)


def _att_pool(pm, hm):
    """Cosine attention + attentive mean / max pooling. pm:(T1,H), hm:(T2,H)."""
    pn2 = jnp.sum(pm * pm, axis=1, keepdims=True)                    # (T1,1)
    hn2 = jnp.sum(hm * hm, axis=1, keepdims=True)                    # (T2,1)
    a = jnp.einsum('ph,qh->pq', pm, hm, preferred_element_type=jnp.float32)
    d = jnp.sqrt(jnp.einsum('pi,qi->pq', pn2, hn2,
                            preferred_element_type=jnp.float32))
    att = a / jnp.where(d > EPS, d, EPS)                             # (T1,T2)
    att_t = att.T

    sum_h = jnp.dot(att, hm, preferred_element_type=jnp.float32)     # (T1,H)
    den_h = jnp.sum(att, axis=1, keepdims=True)
    mean_h = sum_h / jnp.where(den_h > EPS, den_h, EPS)

    sum_p = jnp.dot(att_t, pm, preferred_element_type=jnp.float32)   # (T2,H)
    den_p = jnp.sum(att_t, axis=1, keepdims=True)
    mean_p = sum_p / jnp.where(den_p > EPS, den_p, EPS)

    att_h = hm[None, :, :] * att[:, :, None]                         # (T1,T2,H)
    max_h = jnp.max(att_h, axis=1)                                   # (T1,H)
    att_p = pm[:, None, :] * att[:, :, None]
    max_p = jnp.max(att_p, axis=0)                                   # (T2,H)
    return mean_h, mean_p, max_h, max_p


def _match_kernel(pfw_ref, pbw_ref, hfw_ref, hbw_ref, w2_ref,
                  mvp_ref, mvh_ref):
    p_fw = pfw_ref[0]
    p_bw = pbw_ref[0]
    h_fw = hfw_ref[0]
    h_bw = hbw_ref[0]
    T1 = p_fw.shape[0]
    T2 = h_fw.shape[0]

    w2 = [w2_ref[i] for i in range(8)]   # squared perspective weights (L,H)

    # 1. full matching (broadcast of the single hidden state happens in VMEM)
    mv_p_full_fw = _mp_cos(p_fw, jnp.broadcast_to(h_fw[T2 - 1:T2, :], p_fw.shape), w2[0])
    mv_p_full_bw = _mp_cos(p_bw, jnp.broadcast_to(h_bw[0:1, :], p_bw.shape), w2[1])
    mv_h_full_fw = _mp_cos(h_fw, jnp.broadcast_to(p_fw[T1 - 1:T1, :], h_fw.shape), w2[0])
    mv_h_full_bw = _mp_cos(h_bw, jnp.broadcast_to(p_bw[0:1, :], h_bw.shape), w2[1])

    # 2. max-pooling matching (pairwise cosine + max reductions, fused)
    mv_p_max_fw, mv_h_max_fw = _mp_pair_max(p_fw, h_fw, w2[2])
    mv_p_max_bw, mv_h_max_bw = _mp_pair_max(p_bw, h_bw, w2[3])

    # 3./4. attentive mean & max matching
    am_h_fw, am_p_fw, ax_h_fw, ax_p_fw = _att_pool(p_fw, h_fw)
    am_h_bw, am_p_bw, ax_h_bw, ax_p_bw = _att_pool(p_bw, h_bw)

    mv_p_am_fw = _mp_cos(p_fw, am_h_fw, w2[4])
    mv_p_am_bw = _mp_cos(p_bw, am_h_bw, w2[5])
    mv_h_am_fw = _mp_cos(h_fw, am_p_fw, w2[4])
    mv_h_am_bw = _mp_cos(h_bw, am_p_bw, w2[5])

    mv_p_ax_fw = _mp_cos(p_fw, ax_h_fw, w2[6])
    mv_p_ax_bw = _mp_cos(p_bw, ax_h_bw, w2[7])
    mv_h_ax_fw = _mp_cos(h_fw, ax_p_fw, w2[6])
    mv_h_ax_bw = _mp_cos(h_bw, ax_p_bw, w2[7])

    # lane-dense (T, 8L) stores (single concatenated slab per output)
    mvp_ref[0] = jnp.concatenate(
        [mv_p_full_fw, mv_p_max_fw, mv_p_am_fw, mv_p_ax_fw,
         mv_p_full_bw, mv_p_max_bw, mv_p_am_bw, mv_p_ax_bw], axis=1)
    mvh_ref[0] = jnp.concatenate(
        [mv_h_full_fw, mv_h_max_fw, mv_h_am_fw, mv_h_ax_fw,
         mv_h_full_bw, mv_h_max_bw, mv_h_am_bw, mv_h_ax_bw], axis=1)


def matching_stage(con_p_fw, con_p_bw, con_h_fw, con_h_bw, w2_stack):
    B, T1, H = con_p_fw.shape
    T2 = con_h_fw.shape[1]
    L = w2_stack.shape[1]

    def seq_spec(t):
        return pl.BlockSpec((1, t, H), lambda b: (b, 0, 0))

    return pl.pallas_call(
        _match_kernel,
        grid=(B,),
        in_specs=[seq_spec(T1), seq_spec(T1), seq_spec(T2), seq_spec(T2),
                  pl.BlockSpec((8, L, H), lambda b: (0, 0, 0))],
        out_specs=(pl.BlockSpec((1, T1, 8 * L), lambda b: (b, 0, 0)),
                   pl.BlockSpec((1, T2, 8 * L), lambda b: (b, 0, 0))),
        out_shape=(jax.ShapeDtypeStruct((B, T1, 8 * L), jnp.float32),
                   jax.ShapeDtypeStruct((B, T2, 8 * L), jnp.float32)),
        compiler_params=pltpu.CompilerParams(dimension_semantics=("parallel",)),
    )(con_p_fw, con_p_bw, con_h_fw, con_h_bw, w2_stack)


# --------------------------------------------------------------------------
# full BIMPM forward
# --------------------------------------------------------------------------
def bimpm_forward(params, q1, q2):
    B, T = q1.shape

    # word embedding lookup (XLA gather glue); dropout(p=0.1) identity (eval)
    p_enc = jnp.take(params['embed'], q1, axis=0)     # (B, T, E)
    h_enc = jnp.take(params['embed'], q2, axis=0)

    # context BiLSTM: both sentences & both directions in one recurrence
    ctx = jnp.transpose(bilstm_context(p_enc, h_enc, params['ctx']),
                        (1, 0, 2))                    # (4B, T, H)
    con_p_fw = ctx[0:B]
    con_h_fw = ctx[B:2 * B]
    con_p_bw = ctx[2 * B:3 * B, ::-1]                 # back to original time
    con_h_bw = ctx[3 * B:4 * B, ::-1]

    # entire matching stage in a single fused kernel -> (B, T, 8L)
    w2_stack = jnp.stack([params[f'mp_w{i}'] for i in range(1, 9)], axis=0)
    w2_stack = w2_stack * w2_stack                    # hoisted w*w
    mv_p, mv_h = matching_stage(con_p_fw, con_p_bw, con_h_fw, con_h_bw,
                                w2_stack)

    # aggregation BiLSTM (final hiddens only) + prediction head, one kernel
    logits, probs = bilstm_agg_pred(mv_p, mv_h, params['agg'],
                                    params['fc1_w'], params['fc1_b'],
                                    params['fc2_w'], params['fc2_b'])
    return logits, probs


# --------------------------------------------------------------------------
# deterministic parameter initialization (shapes per BIMPM.__init__)
# --------------------------------------------------------------------------
def init_params(key, vocab=50, embed_dim=32, hidden=32, l=20, class_size=2):
    ks = jax.random.split(key, 16)

    def nrm(k, shape, scale=0.1):
        return scale * jax.random.normal(k, shape, dtype=jnp.float32)

    def lstm_params(k, in_dim, hid):
        k1, k2, k3, k4 = jax.random.split(k, 4)
        return {
            'w_ih_f': nrm(k1, (in_dim, 4 * hid)),
            'w_hh_f': nrm(k2, (hid, 4 * hid)),
            'b_ih_f': jnp.zeros((4 * hid,), jnp.float32),
            'b_hh_f': jnp.zeros((4 * hid,), jnp.float32),
            'w_ih_b': nrm(k3, (in_dim, 4 * hid)),
            'w_hh_b': nrm(k4, (hid, 4 * hid)),
            'b_ih_b': jnp.zeros((4 * hid,), jnp.float32),
            'b_hh_b': jnp.zeros((4 * hid,), jnp.float32),
        }

    params = {
        'embed': nrm(ks[0], (vocab, embed_dim), 1.0),
        'ctx': lstm_params(ks[1], embed_dim, hidden),
        'agg': lstm_params(ks[2], 8 * l, hidden),
        'fc1_w': 0.005 * (2.0 * jax.random.uniform(ks[3], (4 * hidden, 2 * hidden),
                                                   dtype=jnp.float32) - 1.0),
        'fc1_b': jnp.zeros((2 * hidden,), jnp.float32),
        'fc2_w': 0.005 * (2.0 * jax.random.uniform(ks[4], (2 * hidden, class_size),
                                                   dtype=jnp.float32) - 1.0),
        'fc2_b': jnp.zeros((class_size,), jnp.float32),
    }
    for i in range(1, 9):
        params[f'mp_w{i}'] = nrm(ks[4 + i], (l, hidden))
    return params


if __name__ == "__main__":
    key = jax.random.PRNGKey(0)
    kp, k1, k2 = jax.random.split(key, 3)

    B, T, vocab = 2, 8, 50
    hidden, l, class_size, embed_dim = 32, 20, 2, 32

    params = init_params(kp, vocab=vocab, embed_dim=embed_dim,
                         hidden=hidden, l=l, class_size=class_size)
    q1 = jax.random.randint(k1, (B, T), 0, vocab)
    q2 = jax.random.randint(k2, (B, T), 0, vocab)

    fwd = jax.jit(bimpm_forward)
    logits, probs = fwd(params, q1, q2)
    jax.block_until_ready((logits, probs))

    assert logits.shape == (B, class_size) and probs.shape == (B, class_size)
    assert bool(jnp.all(jnp.isfinite(logits))) and bool(jnp.all(jnp.isfinite(probs)))
    print("KERNEL_OK")
</pallas_src>

<mosaic_0001>
module attributes {stable_mosaic.version = 11 : i64} {
  func.func @_matmul_bias_kernel(%arg0: memref<32x32xf32, #tpu.memory_space<vmem>>, %arg1: memref<32x256xf32, #tpu.memory_space<vmem>>, %arg2: memref<1x256xf32, #tpu.memory_space<vmem>>, %arg3: memref<32x256xf32, #tpu.memory_space<vmem>>) attributes {dimension_semantics = [], scalar_prefetch = 0 : i64, scratch_operands = 0 : i64, tpu.core_type = #tpu.core_type<tc>} {
    %c0 = arith.constant 0 : index
    %c0_0 = arith.constant 0 : index
    %0 = vector.load %arg0[%c0, %c0_0] : memref<32x32xf32, #tpu.memory_space<vmem>>, vector<32x32xf32>
    %c0_1 = arith.constant 0 : index
    %c0_2 = arith.constant 0 : index
    %1 = vector.load %arg1[%c0_1, %c0_2] : memref<32x256xf32, #tpu.memory_space<vmem>>, vector<32x256xf32>
    %cst = arith.constant dense<0.000000e+00> : vector<32x256xf32>
    %2 = tpu.matmul %0, %1, %cst {dimension_numbers = #tpu.dot_dimension_numbers<[1], [0], [0], [1], [0, 0, 1, 1], [], []>} : vector<32x32xf32>, vector<32x256xf32>, vector<32x256xf32> -> vector<32x256xf32>
    %c0_3 = arith.constant 0 : index
    %c0_4 = arith.constant 0 : index
    %3 = vector.load %arg2[%c0_3, %c0_4] : memref<1x256xf32, #tpu.memory_space<vmem>>, vector<1x256xf32>
    %4 = vector.broadcast %3 : vector<1x256xf32> to vector<32x256xf32>
    %5 = arith.addf %2, %4 : vector<32x256xf32>
    %c0_5 = arith.constant 0 : index
    %c0_6 = arith.constant 0 : index
    %6 = vector.load %arg3[%c0_5, %c0_6] : memref<32x256xf32, #tpu.memory_space<vmem>>, vector<32x256xf32>
    tpu.vector_store %arg3[%c0_5, %c0_6], %5 {strides = array<i32>} : memref<32x256xf32, #tpu.memory_space<vmem>>, vector<32x256xf32>,
    return
  }
}

module attributes {stable_mosaic.version = 11 : i64} {
  func.func @_lstm_all_kernel(%arg0: memref<8x8x128xf32, #tpu.memory_space<vmem>>, %arg1: memref<32x256xf32, #tpu.memory_space<vmem>>, %arg2: memref<8x8x32xf32, #tpu.memory_space<vmem>>) attributes {dimension_semantics = [], scalar_prefetch = 0 : i64, scratch_operands = 0 : i64, tpu.core_type = #tpu.core_type<tc>} {
    %0 = tpu.iota {dimensions = array<i32: 0>} : vector<8x128xi32>
    %c4_i32 = arith.constant 4 : i32
    %1 = vector.broadcast %c4_i32 : i32 to vector<8x128xi32>
    %2 = arith.cmpi slt, %0, %1 : vector<8x128xi32>
    %cst = arith.constant 0.000000e+00 : f32
    %3 = vector.broadcast %cst : f32 to vector<8x32xf32>
    %c0_i32 = arith.constant 0 : i32
    %c0 = arith.constant 0 : index
    %c0_0 = arith.constant 0 : index
    %4 = vector.load %arg1[%c0, %c0_0] : memref<32x256xf32, #tpu.memory_space<vmem>>, vector<32x256xf32>
    %cst_1 = arith.constant dense<0.000000e+00> : vector<8x256xf32>
    %5 = tpu.matmul %3, %4, %cst_1 {dimension_numbers = #tpu.dot_dimension_numbers<[1], [0], [0], [1], [0, 0, 1, 1], [], []>} : vector<8x32xf32>, vector<32x256xf32>, vector<8x256xf32> -> vector<8x256xf32>
    %6 = vector.extract_strided_slice %5 {offsets = [0, 0], sizes = [8, 128], strides = [1, 1]} : vector<8x256xf32> to vector<8x128xf32>
    %7 = vector.extract_strided_slice %5 {offsets = [0, 128], sizes = [8, 128], strides = [1, 1]} : vector<8x256xf32> to vector<8x128xf32>
    %8 = arith.select %2, %6, %7 : vector<8x128xi1>, vector<8x128xf32>
    %9 = arith.index_cast %c0_i32 : i32 to index
    %c0_2 = arith.constant 0 : index
    %c0_3 = arith.constant 0 : index
    %10 = vector.load %arg0[%9, %c0_2, %c0_3] : memref<8x8x128xf32, #tpu.memory_space<vmem>>, vector<1x8x128xf32>
    %11 = vector.shape_cast %10 : vector<1x8x128xf32> to vector<8x128xf32>
    %12 = arith.addf %11, %8 : vector<8x128xf32>
    %13 = vector.extract_strided_slice %12 {offsets = [0, 0], sizes = [8, 32], strides = [1, 1]} : vector<8x128xf32> to vector<8x32xf32>
    %14 = arith.negf %13 : vector<8x32xf32>
    %15 = math.exp %14 : vector<8x32xf32>
    %cst_4 = arith.constant 1.000000e+00 : f32
    %16 = vector.broadcast %cst_4 : f32 to vector<8x32xf32>
    %17 = arith.addf %16, %15 : vector<8x32xf32>
    %18 = arith.divf %16, %17 : vector<8x32xf32>
    %19 = vector.extract_strided_slice %12 {offsets = [0, 32], sizes = [8, 32], strides = [1, 1]} : vector<8x128xf32> to vector<8x32xf32>
    %20 = arith.negf %19 : vector<8x32xf32>
    %21 = math.exp %20 : vector<8x32xf32>
    %cst_5 = arith.constant 1.000000e+00 : f32
    %22 = vector.broadcast %cst_5 : f32 to vector<8x32xf32>
    %23 = arith.addf %22, %21 : vector<8x32xf32>
    %24 = arith.divf %22, %23 : vector<8x32xf32>
    %25 = vector.extract_strided_slice %12 {offsets = [0, 64], sizes = [8, 32], strides = [1, 1]} : vector<8x128xf32> to vector<8x32xf32>
    %26 = math.tanh %25 : vector<8x32xf32>
    %27 = vector.extract_strided_slice %12 {offsets = [0, 96], sizes = [8, 32], strides = [1, 1]} : vector<8x128xf32> to vector<8x32xf32>
    %28 = arith.negf %27 : vector<8x32xf32>
    %29 = math.exp %28 : vector<8x32xf32>
    %cst_6 = arith.constant 1.000000e+00 : f32
    %30 = vector.broadcast %cst_6 : f32 to vector<8x32xf32>
    %31 = arith.addf %30, %29 : vector<8x32xf32>
    %32 = arith.divf %30, %31 : vector<8x32xf32>
    %33 = arith.mulf %24, %3 : vector<8x32xf32>
    %34 = arith.mulf %18, %26 : vector<8x32xf32>
    %35 = arith.addf %33, %34 : vector<8x32xf32>
    %36 = math.tanh %35 : vector<8x32xf32>
    %37 = arith.mulf %32, %36 : vector<8x32xf32>
    %38 = arith.index_cast %c0_i32 : i32 to index
    %c0_7 = arith.constant 0 : index
    %c0_8 = arith.constant 0 : index
    %39 = vector.load %arg2[%38, %c0_7, %c0_8] : memref<8x8x32xf32, #tpu.memory_space<vmem>>, vector<1x8x32xf32>
    %40 = vector.shape_cast %39 : vector<1x8x32xf32> to vector<8x32xf32>
    %41 = vector.shape_cast %37 : vector<8x32xf32> to vector<1x8x32xf32>
    tpu.vector_store %arg2[%38, %c0_7, %c0_8], %41 {strides = array<i32>} : memref<8x8x32xf32, #tpu.memory_space<vmem>>, vector<1x8x32xf32>,
    %c1_i32 = arith.constant 1 : i32
    %c0_9 = arith.constant 0 : index
    %c0_10 = arith.constant 0 : index
    %42 = vector.load %arg1[%c0_9, %c0_10] : memref<32x256xf32, #tpu.memory_space<vmem>>, vector<32x256xf32>
    %cst_11 = arith.constant dense<0.000000e+00> : vector<8x256xf32>
    %43 = tpu.matmul %37, %42, %cst_11 {dimension_numbers = #tpu.dot_dimension_numbers<[1], [0], [0], [1], [0, 0, 1, 1], [], []>} : vector<8x32xf32>, vector<32x256xf32>, vector<8x256xf32> -> vector<8x256xf32>
    %44 = vector.extract_strided_slice %43 {offsets = [0, 0], sizes = [8, 128], strides = [1, 1]} : vector<8x256xf32> to vector<8x128xf32>
    %45 = vector.extract_strided_slice %43 {offsets = [0, 128], sizes = [8, 128], strides = [1, 1]} : vector<8x256xf32> to vector<8x128xf32>
    %46 = arith.select %2, %44, %45 : vector<8x128xi1>, vector<8x128xf32>
    %47 = arith.index_cast %c1_i32 : i32 to index
    %c0_12 = arith.constant 0 : index
    %c0_13 = arith.constant 0 : index
    %48 = vector.load %arg0[%47, %c0_12, %c0_13] : memref<8x8x128xf32, #tpu.memory_space<vmem>>, vector<1x8x128xf32>
    %49 = vector.shape_cast %48 : vector<1x8x128xf32> to vector<8x128xf32>
    %50 = arith.addf %49, %46 : vector<8x128xf32>
    %51 = vector.extract_strided_slice %50 {offsets = [0, 0], sizes = [8, 32], strides = [1, 1]} : vector<8x128xf32> to vector<8x32xf32>
    %52 = arith.negf %51 : vector<8x32xf32>
    %53 = math.exp %52 : vector<8x32xf32>
    %cst_14 = arith.constant 1.000000e+00 : f32
    %54 = vector.broadcast %cst_14 : f32 to vector<8x32xf32>
    %55 = arith.addf %54, %53 : vector<8x32xf32>
    %56 = arith.divf %54, %55 : vector<8x32xf32>
    %57 = vector.extract_strided_slice %50 {offsets = [0, 32], sizes = [8, 32], strides = [1, 1]} : vector<8x128xf32> to vector<8x32xf32>
    %58 = arith.negf %57 : vector<8x32xf32>
    %59 = math.exp %58 : vector<8x32xf32>
    %cst_15 = arith.constant 1.000000e+00 : f32
    %60 = vector.broadcast %cst_15 : f32 to vector<8x32xf32>
    %61 = arith.addf %60, %59 : vector<8x32xf32>
    %62 = arith.divf %60, %61 : vector<8x32xf32>
    %63 = vector.extract_strided_slice %50 {offsets = [0, 64], sizes = [8, 32], strides = [1, 1]} : vector<8x128xf32> to vector<8x32xf32>
    %64 = math.tanh %63 : vector<8x32xf32>
    %65 = vector.extract_strided_slice %50 {offsets = [0, 96], sizes = [8, 32], strides = [1, 1]} : vector<8x128xf32> to vector<8x32xf32>
    %66 = arith.negf %65 : vector<8x32xf32>
    %67 = math.exp %66 : vector<8x32xf32>
    %cst_16 = arith.constant 1.000000e+00 : f32
    %68 = vector.broadcast %cst_16 : f32 to vector<8x32xf32>
    %69 = arith.addf %68, %67 : vector<8x32xf32>
    %70 = arith.divf %68, %69 : vector<8x32xf32>
    %71 = arith.mulf %62, %35 : vector<8x32xf32>
    %72 = arith.mulf %56, %64 : vector<8x32xf32>
    %73 = arith.addf %71, %72 : vector<8x32xf32>
    %74 = math.tanh %73 : vector<8x32xf32>
    %75 = arith.mulf %70, %74 : vector<8x32xf32>
    %76 = arith.index_cast %c1_i32 : i32 to index
    %c0_17 = arith.constant 0 : index
    %c0_18 = arith.constant 0 : index
    %77 = vector.load %arg2[%76, %c0_17, %c0_18] : memref<8x8x32xf32, #tpu.memory_space<vmem>>, vector<1x8x32xf32>
    %78 = vector.shape_cast %77 : vector<1x8x32xf32> to vector<8x32xf32>
    %79 = vector.shape_cast %75 : vector<8x32xf32> to vector<1x8x32xf32>
    tpu.vector_store %arg2[%76, %c0_17, %c0_18], %79 {strides = array<i32>} : memref<8x8x32xf32, #tpu.memory_space<vmem>>, vector<1x8x32xf32>,
    %c2_i32 = arith.constant 2 : i32
    %c0_19 = arith.constant 0 : index
    %c0_20 = arith.constant 0 : index
    %80 = vector.load %arg1[%c0_19, %c0_20] : memref<32x256xf32, #tpu.memory_space<vmem>>, vector<32x256xf32>
    %cst_21 = arith.constant dense<0.000000e+00> : vector<8x256xf32>
    %81 = tpu.matmul %75, %80, %cst_21 {dimension_numbers = #tpu.dot_dimension_numbers<[1], [0], [0], [1], [0, 0, 1, 1], [], []>} : vector<8x32xf32>, vector<32x256xf32>, vector<8x256xf32> -> vector<8x256xf32>
    %82 = vector.extract_strided_slice %81 {offsets = [0, 0], sizes = [8, 128], strides = [1, 1]} : vector<8x256xf32> to vector<8x128xf32>
    %83 = vector.extract_strided_slice %81 {offsets = [0, 128], sizes = [8, 128], strides = [1, 1]} : vector<8x256xf32> to vector<8x128xf32>
    %84 = arith.select %2, %82, %83 : vector<8x128xi1>, vector<8x128xf32>
    %85 = arith.index_cast %c2_i32 : i32 to index
    %c0_22 = arith.constant 0 : index
    %c0_23 = arith.constant 0 : index
    %86 = vector.load %arg0[%85, %c0_22, %c0_23] : memref<8x8x128xf32, #tpu.memory_space<vmem>>, vector<1x8x128xf32>
    %87 = vector.shape_cast %86 : vector<1x8x128xf32> to vector<8x128xf32>
    %88 = arith.addf %87, %84 : vector<8x128xf32>
    %89 = vector.extract_strided_slice %88 {offsets = [0, 0], sizes = [8, 32], strides = [1, 1]} : vector<8x128xf32> to vector<8x32xf32>
    %90 = arith.negf %89 : vector<8x32xf32>
    %91 = math.exp %90 : vector<8x32xf32>
    %cst_24 = arith.constant 1.000000e+00 : f32
    %92 = vector.broadcast %cst_24 : f32 to vector<8x32xf32>
    %93 = arith.addf %92, %91 : vector<8x32xf32>
    %94 = arith.divf %92, %93 : vector<8x32xf32>
    %95 = vector.extract_strided_slice %88 {offsets = [0, 32], sizes = [8, 32], strides = [1, 1]} : vector<8x128xf32> to vector<8x32xf32>
    %96 = arith.negf %95 : vector<8x32xf32>
    %97 = math.exp %96 : vector<8x32xf32>
    %cst_25 = arith.constant 1.000000e+00 : f32
    %98 = vector.broadcast %cst_25 : f32 to vector<8x32xf32>
    %99 = arith.addf %98, %97 : vector<8x32xf32>
    %100 = arith.divf %98, %99 : vector<8x32xf32>
    %101 = vector.extract_strided_slice %88 {offsets = [0, 64], sizes = [8, 32], strides = [1, 1]} : vector<8x128xf32> to vector<8x32xf32>
    %102 = math.tanh %101 : vector<8x32xf32>
    %103 = vector.extract_strided_slice %88 {offsets = [0, 96], sizes = [8, 32], strides = [1, 1]} : vector<8x128xf32> to vector<8x32xf32>
    %104 = arith.negf %103 : vector<8x32xf32>
    %105 = math.exp %104 : vector<8x32xf32>
    %cst_26 = arith.constant 1.000000e+00 : f32
    %106 = vector.broadcast %cst_26 : f32 to vector<8x32xf32>
    %107 = arith.addf %106, %105 : vector<8x32xf32>
    %108 = arith.divf %106, %107 : vector<8x32xf32>
    %109 = arith.mulf %100, %73 : vector<8x32xf32>
    %110 = arith.mulf %94, %102 : vector<8x32xf32>
    %111 = arith.addf %109, %110 : vector<8x32xf32>
    %112 = math.tanh %111 : vector<8x32xf32>
    %113 = arith.mulf %108, %112 : vector<8x32xf32>
    %114 = arith.index_cast %c2_i32 : i32 to index
    %c0_27 = arith.constant 0 : index
    %c0_28 = arith.constant 0 : index
    %115 = vector.load %arg2[%114, %c0_27, %c0_28] : memref<8x8x32xf32, #tpu.memory_space<vmem>>, vector<1x8x32xf32>
    %116 = vector.shape_cast %115 : vector<1x8x32xf32> to vector<8x32xf32>
    %117 = vector.shape_cast %113 : vector<8x32xf32> to vector<1x8x32xf32>
    tpu.vector_store %arg2[%114, %c0_27, %c0_28], %117 {strides = array<i32>} : memref<8x8x32xf32, #tpu.memory_space<vmem>>, vector<1x8x32xf32>,
    %c3_i32 = arith.constant 3 : i32
    %c0_29 = arith.constant 0 : index
    %c0_30 = arith.constant 0 : index
    %118 = vector.load %arg1[%c0_29, %c0_30] : memref<32x256xf32, #tpu.memory_space<vmem>>, vector<32x256xf32>
    %cst_31 = arith.constant dense<0.000000e+00> : vector<8x256xf32>
    %119 = tpu.matmul %113, %118, %cst_31 {dimension_numbers = #tpu.dot_dimension_numbers<[1], [0], [0], [1], [0, 0, 1, 1], [], []>} : vector<8x32xf32>, vector<32x256xf32>, vector<8x256xf32> -> vector<8x256xf32>
    %120 = vector.extract_strided_slice %119 {offsets = [0, 0], sizes = [8, 128], strides = [1, 1]} : vector<8x256xf32> to vector<8x128xf32>
    %121 = vector.extract_strided_slice %119 {offsets = [0, 128], sizes = [8, 128], strides = [1, 1]} : vector<8x256xf32> to vector<8x128xf32>
    %122 = arith.select %2, %120, %121 : vector<8x128xi1>, vector<8x128xf32>
    %123 = arith.index_cast %c3_i32 : i32 to index
    %c0_32 = arith.constant 0 : index
    %c0_33 = arith.constant 0 : index
    %124 = vector.load %arg0[%123, %c0_32, %c0_33] : memref<8x8x128xf32, #tpu.memory_space<vmem>>, vector<1x8x128xf32>
    %125 = vector.shape_cast %124 : vector<1x8x128xf32> to vector<8x128xf32>
    %126 = arith.addf %125, %122 : vector<8x128xf32>
    %127 = vector.extract_strided_slice %126 {offsets = [0, 0], sizes = [8, 32], strides = [1, 1]} : vector<8x128xf32> to vector<8x32xf32>
    %128 = arith.negf %127 : vector<8x32xf32>
    %129 = math.exp %128 : vector<8x32xf32>
    %cst_34 = arith.constant 1.000000e+00 : f32
    %130 = vector.broadcast %cst_34 : f32 to vector<8x32xf32>
    %131 = arith.addf %130, %129 : vector<8x32xf32>
    %132 = arith.divf %130, %131 : vector<8x32xf32>
    %133 = vector.extract_strided_slice %126 {offsets = [0, 32], sizes = [8, 32], strides = [1, 1]} : vector<8x128xf32> to vector<8x32xf32>
    %134 = arith.negf %133 : vector<8x32xf32>
    %135 = math.exp %134 : vector<8x32xf32>
    %cst_35 = arith.constant 1.000000e+00 : f32
    %136 = vector.broadcast %cst_35 : f32 to vector<8x32xf32>
    %137 = arith.addf %136, %135 : vector<8x32xf32>
    %138 = arith.divf %136, %137 : vector<8x32xf32>
    %139 = vector.extract_strided_slice %126 {offsets = [0, 64], sizes = [8, 32], strides = [1, 1]} : vector<8x128xf32> to vector<8x32xf32>
    %140 = math.tanh %139 : vector<8x32xf32>
    %141 = vector.extract_strided_slice %126 {offsets = [0, 96], sizes = [8, 32], strides = [1, 1]} : vector<8x128xf32> to vector<8x32xf32>
    %142 = arith.negf %141 : vector<8x32xf32>
    %143 = math.exp %142 : vector<8x32xf32>
    %cst_36 = arith.constant 1.000000e+00 : f32
    %144 = vector.broadcast %cst_36 : f32 to vector<8x32xf32>
    %145 = arith.addf %144, %143 : vector<8x32xf32>
    %146 = arith.divf %144, %145 : vector<8x32xf32>
    %147 = arith.mulf %138, %111 : vector<8x32xf32>
    %148 = arith.mulf %132, %140 : vector<8x32xf32>
    %149 = arith.addf %147, %148 : vector<8x32xf32>
    %150 = math.tanh %149 : vector<8x32xf32>
    %151 = arith.mulf %146, %150 : vector<8x32xf32>
    %152 = arith.index_cast %c3_i32 : i32 to index
    %c0_37 = arith.constant 0 : index
    %c0_38 = arith.constant 0 : index
    %153 = vector.load %arg2[%152, %c0_37, %c0_38] : memref<8x8x32xf32, #tpu.memory_space<vmem>>, vector<1x8x32xf32>
    %154 = vector.shape_cast %153 : vector<1x8x32xf32> to vector<8x32xf32>
    %155 = vector.shape_cast %151 : vector<8x32xf32> to vector<1x8x32xf32>
    tpu.vector_store %arg2[%152, %c0_37, %c0_38], %155 {strides = array<i32>} : memref<8x8x32xf32, #tpu.memory_space<vmem>>, vector<1x8x32xf32>,
    %c4_i32_39 = arith.constant 4 : i32
    %c0_40 = arith.constant 0 : index
    %c0_41 = arith.constant 0 : index
    %156 = vector.load %arg1[%c0_40, %c0_41] : memref<32x256xf32, #tpu.memory_space<vmem>>, vector<32x256xf32>
    %cst_42 = arith.constant dense<0.000000e+00> : vector<8x256xf32>
    %157 = tpu.matmul %151, %156, %cst_42 {dimension_numbers = #tpu.dot_dimension_numbers<[1], [0], [0], [1], [0, 0, 1, 1], [], []>} : vector<8x32xf32>, vector<32x256xf32>, vector<8x256xf32> -> vector<8x256xf32>
    %158 = vector.extract_strided_slice %157 {offsets = [0, 0], sizes = [8, 128], strides = [1, 1]} : vector<8x256xf32> to vector<8x128xf32>
    %159 = vector.extract_strided_slice %157 {offsets = [0, 128], sizes = [8, 128], strides = [1, 1]} : vector<8x256xf32> to vector<8x128xf32>
    %160 = arith.select %2, %158, %159 : vector<8x128xi1>, vector<8x128xf32>
    %161 = arith.index_cast %c4_i32_39 : i32 to index
    %c0_43 = arith.constant 0 : index
    %c0_44 = arith.constant 0 : index
    %162 = vector.load %arg0[%161, %c0_43, %c0_44] : memref<8x8x128xf32, #tpu.memory_space<vmem>>, vector<1x8x128xf32>
    %163 = vector.shape_cast %162 : vector<1x8x128xf32> to vector<8x128xf32>
    %164 = arith.addf %163, %160 : vector<8x128xf32>
    %165 = vector.extract_strided_slice %164 {offsets = [0, 0], sizes = [8, 32], strides = [1, 1]} : vector<8x128xf32> to vector<8x32xf32>
    %166 = arith.negf %165 : vector<8x32xf32>
    %167 = math.exp %166 : vector<8x32xf32>
    %cst_45 = arith.constant 1.000000e+00 : f32
    %168 = vector.broadcast %cst_45 : f32 to vector<8x32xf32>
    %169 = arith.addf %168, %167 : vector<8x32xf32>
    %170 = arith.divf %168, %169 : vector<8x32xf32>
    %171 = vector.extract_strided_slice %164 {offsets = [0, 32], sizes = [8, 32], strides = [1, 1]} : vector<8x128xf32> to vector<8x32xf32>
    %172 = arith.negf %171 : vector<8x32xf32>
    %173 = math.exp %172 : vector<8x32xf32>
    %cst_46 = arith.constant 1.000000e+00 : f32
    %174 = vector.broadcast %cst_46 : f32 to vector<8x32xf32>
    %175 = arith.addf %174, %173 : vector<8x32xf32>
    %176 = arith.divf %174, %175 : vector<8x32xf32>
    %177 = vector.extract_strided_slice %164 {offsets = [0, 64], sizes = [8, 32], strides = [1, 1]} : vector<8x128xf32> to vector<8x32xf32>
    %178 = math.tanh %177 : vector<8x32xf32>
    %179 = vector.extract_strided_slice %164 {offsets = [0, 96], sizes = [8, 32], strides = [1, 1]} : vector<8x128xf32> to vector<8x32xf32>
    %180 = arith.negf %179 : vector<8x32xf32>
    %181 = math.exp %180 : vector<8x32xf32>
    %cst_47 = arith.constant 1.000000e+00 : f32
    %182 = vector.broadcast %cst_47 : f32 to vector<8x32xf32>
    %183 = arith.addf %182, %181 : vector<8x32xf32>
    %184 = arith.divf %182, %183 : vector<8x32xf32>
    %185 = arith.mulf %176, %149 : vector<8x32xf32>
    %186 = arith.mulf %170, %178 : vector<8x32xf32>
    %187 = arith.addf %185, %186 : vector<8x32xf32>
    %188 = math.tanh %187 : vector<8x32xf32>
    %189 = arith.mulf %184, %188 : vector<8x32xf32>
    %190 = arith.index_cast %c4_i32_39 : i32 to index
    %c0_48 = arith.constant 0 : index
    %c0_49 = arith.constant 0 : index
    %191 = vector.load %arg2[%190, %c0_48, %c0_49] : memref<8x8x32xf32, #tpu.memory_space<vmem>>, vector<1x8x32xf32>
    %192 = vector.shape_cast %191 : vector<1x8x32xf32> to vector<8x32xf32>
    %193 = vector.shape_cast %189 : vector<8x32xf32> to vector<1x8x32xf32>
    tpu.vector_store %arg2[%190, %c0_48, %c0_49], %193 {strides = array<i32>} : memref<8x8x32xf32, #tpu.memory_space<vmem>>, vector<1x8x32xf32>,
    %c5_i32 = arith.constant 5 : i32
    %c0_50 = arith.constant 0 : index
    %c0_51 = arith.constant 0 : index
    %194 = vector.load %arg1[%c0_50, %c0_51] : memref<32x256xf32, #tpu.memory_space<vmem>>, vector<32x256xf32>
    %cst_52 = arith.constant dense<0.000000e+00> : vector<8x256xf32>
    %195 = tpu.matmul %189, %194, %cst_52 {dimension_numbers = #tpu.dot_dimension_numbers<[1], [0], [0], [1], [0, 0, 1, 1], [], []>} : vector<8x32xf32>, vector<32x256xf32>, vector<8x256xf32> -> vector<8x256xf32>
    %196 = vector.extract_strided_slice %195 {offsets = [0, 0], sizes = [8, 128], strides = [1, 1]} : vector<8x256xf32> to vector<8x128xf32>
    %197 = vector.extract_strided_slice %195 {offsets = [0, 128], sizes = [8, 128], strides = [1, 1]} : vector<8x256xf32> to vector<8x128xf32>
    %198 = arith.select %2, %196, %197 : vector<8x128xi1>, vector<8x128xf32>
    %199 = arith.index_cast %c5_i32 : i32 to index
    %c0_53 = arith.constant 0 : index
    %c0_54 = arith.constant 0 : index
    %200 = vector.load %arg0[%199, %c0_53, %c0_54] : memref<8x8x128xf32, #tpu.memory_space<vmem>>, vector<1x8x128xf32>
    %201 = vector.shape_cast %200 : vector<1x8x128xf32> to vector<8x128xf32>
    %202 = arith.addf %201, %198 : vector<8x128xf32>
    %203 = vector.extract_strided_slice %202 {offsets = [0, 0], sizes = [8, 32], strides = [1, 1]} : vector<8x128xf32> to vector<8x32xf32>
    %204 = arith.negf %203 : vector<8x32xf32>
    %205 = math.exp %204 : vector<8x32xf32>
    %cst_55 = arith.constant 1.000000e+00 : f32
    %206 = vector.broadcast %cst_55 : f32 to vector<8x32xf32>
    %207 = arith.addf %206, %205 : vector<8x32xf32>
    %208 = arith.divf %206, %207 : vector<8x32xf32>
    %209 = vector.extract_strided_slice %202 {offsets = [0, 32], sizes = [8, 32], strides = [1, 1]} : vector<8x128xf32> to vector<8x32xf32>
    %210 = arith.negf %209 : vector<8x32xf32>
    %211 = math.exp %210 : vector<8x32xf32>
    %cst_56 = arith.constant 1.000000e+00 : f32
    %212 = vector.broadcast %cst_56 : f32 to vector<8x32xf32>
    %213 = arith.addf %212, %211 : vector<8x32xf32>
    %214 = arith.divf %212, %213 : vector<8x32xf32>
    %215 = vector.extract_strided_slice %202 {offsets = [0, 64], sizes = [8, 32], strides = [1, 1]} : vector<8x128xf32> to vector<8x32xf32>
    %216 = math.tanh %215 : vector<8x32xf32>
    %217 = vector.extract_strided_slice %202 {offsets = [0, 96], sizes = [8, 32], strides = [1, 1]} : vector<8x128xf32> to vector<8x32xf32>
    %218 = arith.negf %217 : vector<8x32xf32>
    %219 = math.exp %218 : vector<8x32xf32>
    %cst_57 = arith.constant 1.000000e+00 : f32
    %220 = vector.broadcast %cst_57 : f32 to vector<8x32xf32>
    %221 = arith.addf %220, %219 : vector<8x32xf32>
    %222 = arith.divf %220, %221 : vector<8x32xf32>
    %223 = arith.mulf %214, %187 : vector<8x32xf32>
    %224 = arith.mulf %208, %216 : vector<8x32xf32>
    %225 = arith.addf %223, %224 : vector<8x32xf32>
    %226 = math.tanh %225 : vector<8x32xf32>
    %227 = arith.mulf %222, %226 : vector<8x32xf32>
    %228 = arith.index_cast %c5_i32 : i32 to index
    %c0_58 = arith.constant 0 : index
    %c0_59 = arith.constant 0 : index
    %229 = vector.load %arg2[%228, %c0_58, %c0_59] : memref<8x8x32xf32, #tpu.memory_space<vmem>>, vector<1x8x32xf32>
    %230 = vector.shape_cast %229 : vector<1x8x32xf32> to vector<8x32xf32>
    %231 = vector.shape_cast %227 : vector<8x32xf32> to vector<1x8x32xf32>
    tpu.vector_store %arg2[%228, %c0_58, %c0_59], %231 {strides = array<i32>} : memref<8x8x32xf32, #tpu.memory_space<vmem>>, vector<1x8x32xf32>,
    %c6_i32 = arith.constant 6 : i32
    %c0_60 = arith.constant 0 : index
    %c0_61 = arith.constant 0 : index
    %232 = vector.load %arg1[%c0_60, %c0_61] : memref<32x256xf32, #tpu.memory_space<vmem>>, vector<32x256xf32>
    %cst_62 = arith.constant dense<0.000000e+00> : vector<8x256xf32>
    %233 = tpu.matmul %227, %232, %cst_62 {dimension_numbers = #tpu.dot_dimension_numbers<[1], [0], [0], [1], [0, 0, 1, 1], [], []>} : vector<8x32xf32>, vector<32x256xf32>, vector<8x256xf32> -> vector<8x256xf32>
    %234 = vector.extract_strided_slice %233 {offsets = [0, 0], sizes = [8, 128], strides = [1, 1]} : vector<8x256xf32> to vector<8x128xf32>
    %235 = vector.extract_strided_slice %233 {offsets = [0, 128], sizes = [8, 128], strides = [1, 1]} : vector<8x256xf32> to vector<8x128xf32>
    %236 = arith.select %2, %234, %235 : vector<8x128xi1>, vector<8x128xf32>
    %237 = arith.index_cast %c6_i32 : i32 to index
    %c0_63 = arith.constant 0 : index
    %c0_64 = arith.constant 0 : index
    %238 = vector.load %arg0[%237, %c0_63, %c0_64] : memref<8x8x128xf32, #tpu.memory_space<vmem>>, vector<1x8x128xf32>
    %239 = vector.shape_cast %238 : vector<1x8x128xf32> to vector<8x128xf32>
    %240 = arith.addf %239, %236 : vector<8x128xf32>
    %241 = vector.extract_strided_slice %240 {offsets = [0, 0], sizes = [8, 32], strides = [1, 1]} : vector<8x128xf32> to vector<8x32xf32>
    %242 = arith.negf %241 : vector<8x32xf32>
    %243 = math.exp %242 : vector<8x32xf32>
    %cst_65 = arith.constant 1.000000e+00 : f32
    %244 = vector.broadcast %cst_65 : f32 to vector<8x32xf32>
    %245 = arith.addf %244, %243 : vector<8x32xf32>
    %246 = arith.divf %244, %245 : vector<8x32xf32>
    %247 = vector.extract_strided_slice %240 {offsets = [0, 32], sizes = [8, 32], strides = [1, 1]} : vector<8x128xf32> to vector<8x32xf32>
    %248 = arith.negf %247 : vector<8x32xf32>
    %249 = math.exp %248 : vector<8x32xf32>
    %cst_66 = arith.constant 1.000000e+00 : f32
    %250 = vector.broadcast %cst_66 : f32 to vector<8x32xf32>
    %251 = arith.addf %250, %249 : vector<8x32xf32>
    %252 = arith.divf %250, %251 : vector<8x32xf32>
    %253 = vector.extract_strided_slice %240 {offsets = [0, 64], sizes = [8, 32], strides = [1, 1]} : vector<8x128xf32> to vector<8x32xf32>
    %254 = math.tanh %253 : vector<8x32xf32>
    %255 = vector.extract_strided_slice %240 {offsets = [0, 96], sizes = [8, 32], strides = [1, 1]} : vector<8x128xf32> to vector<8x32xf32>
    %256 = arith.negf %255 : vector<8x32xf32>
    %257 = math.exp %256 : vector<8x32xf32>
    %cst_67 = arith.constant 1.000000e+00 : f32
    %258 = vector.broadcast %cst_67 : f32 to vector<8x32xf32>
    %259 = arith.addf %258, %257 : vector<8x32xf32>
    %260 = arith.divf %258, %259 : vector<8x32xf32>
    %261 = arith.mulf %252, %225 : vector<8x32xf32>
    %262 = arith.mulf %246, %254 : vector<8x32xf32>
    %263 = arith.addf %261, %262 : vector<8x32xf32>
    %264 = math.tanh %263 : vector<8x32xf32>
    %265 = arith.mulf %260, %264 : vector<8x32xf32>
    %266 = arith.index_cast %c6_i32 : i32 to index
    %c0_68 = arith.constant 0 : index
    %c0_69 = arith.constant 0 : index
    %267 = vector.load %arg2[%266, %c0_68, %c0_69] : memref<8x8x32xf32, #tpu.memory_space<vmem>>, vector<1x8x32xf32>
    %268 = vector.shape_cast %267 : vector<1x8x32xf32> to vector<8x32xf32>
    %269 = vector.shape_cast %265 : vector<8x32xf32> to vector<1x8x32xf32>
    tpu.vector_store %arg2[%266, %c0_68, %c0_69], %269 {strides = array<i32>} : memref<8x8x32xf32, #tpu.memory_space<vmem>>, vector<1x8x32xf32>,
    %c7_i32 = arith.constant 7 : i32
    %c0_70 = arith.constant 0 : index
    %c0_71 = arith.constant 0 : index
    %270 = vector.load %arg1[%c0_70, %c0_71] : memref<32x256xf32, #tpu.memory_space<vmem>>, vector<32x256xf32>
    %cst_72 = arith.constant dense<0.000000e+00> : vector<8x256xf32>
    %271 = tpu.matmul %265, %270, %cst_72 {dimension_numbers = #tpu.dot_dimension_numbers<[1], [0], [0], [1], [0, 0, 1, 1], [], []>} : vector<8x32xf32>, vector<32x256xf32>, vector<8x256xf32> -> vector<8x256xf32>
    %272 = vector.extract_strided_slice %271 {offsets = [0, 0], sizes = [8, 128], strides = [1, 1]} : vector<8x256xf32> to vector<8x128xf32>
    %273 = vector.extract_strided_slice %271 {offsets = [0, 128], sizes = [8, 128], strides = [1, 1]} : vector<8x256xf32> to vector<8x128xf32>
    %274 = arith.select %2, %272, %273 : vector<8x128xi1>, vector<8x128xf32>
    %275 = arith.index_cast %c7_i32 : i32 to index
    %c0_73 = arith.constant 0 : index
    %c0_74 = arith.constant 0 : index
    %276 = vector.load %arg0[%275, %c0_73, %c0_74] : memref<8x8x128xf32, #tpu.memory_space<vmem>>, vector<1x8x128xf32>
    %277 = vector.shape_cast %276 : vector<1x8x128xf32> to vector<8x128xf32>
    %278 = arith.addf %277, %274 : vector<8x128xf32>
    %279 = vector.extract_strided_slice %278 {offsets = [0, 0], sizes = [8, 32], strides = [1, 1]} : vector<8x128xf32> to vector<8x32xf32>
    %280 = arith.negf %279 : vector<8x32xf32>
    %281 = math.exp %280 : vector<8x32xf32>
    %cst_75 = arith.constant 1.000000e+00 : f32
    %282 = vector.broadcast %cst_75 : f32 to vector<8x32xf32>
    %283 = arith.addf %282, %281 : vector<8x32xf32>
    %284 = arith.divf %282, %283 : vector<8x32xf32>
    %285 = vector.extract_strided_slice %278 {offsets = [0, 32], sizes = [8, 32], strides = [1, 1]} : vector<8x128xf32> to vector<8x32xf32>
    %286 = arith.negf %285 : vector<8x32xf32>
    %287 = math.exp %286 : vector<8x32xf32>
    %cst_76 = arith.constant 1.000000e+00 : f32
    %288 = vector.broadcast %cst_76 : f32 to vector<8x32xf32>
    %289 = arith.addf %288, %287 : vector<8x32xf32>
    %290 = arith.divf %288, %289 : vector<8x32xf32>
    %291 = vector.extract_strided_slice %278 {offsets = [0, 64], sizes = [8, 32], strides = [1, 1]} : vector<8x128xf32> to vector<8x32xf32>
    %292 = math.tanh %291 : vector<8x32xf32>
    %293 = vector.extract_strided_slice %278 {offsets = [0, 96], sizes = [8, 32], strides = [1, 1]} : vector<8x128xf32> to vector<8x32xf32>
    %294 = arith.negf %293 : vector<8x32xf32>
    %295 = math.exp %294 : vector<8x32xf32>
    %cst_77 = arith.constant 1.000000e+00 : f32
    %296 = vector.broadcast %cst_77 : f32 to vector<8x32xf32>
    %297 = arith.addf %296, %295 : vector<8x32xf32>
    %298 = arith.divf %296, %297 : vector<8x32xf32>
    %299 = arith.mulf %290, %263 : vector<8x32xf32>
    %300 = arith.mulf %284, %292 : vector<8x32xf32>
    %301 = arith.addf %299, %300 : vector<8x32xf32>
    %302 = math.tanh %301 : vector<8x32xf32>
    %303 = arith.mulf %298, %302 : vector<8x32xf32>
    %304 = arith.index_cast %c7_i32 : i32 to index
    %c0_78 = arith.constant 0 : index
    %c0_79 = arith.constant 0 : index
    %305 = vector.load %arg2[%304, %c0_78, %c0_79] : memref<8x8x32xf32, #tpu.memory_space<vmem>>, vector<1x8x32xf32>
    %306 = vector.shape_cast %305 : vector<1x8x32xf32> to vector<8x32xf32>
    %307 = vector.shape_cast %303 : vector<8x32xf32> to vector<1x8x32xf32>
    tpu.vector_store %arg2[%304, %c0_78, %c0_79], %307 {strides = array<i32>} : memref<8x8x32xf32, #tpu.memory_space<vmem>>, vector<1x8x32xf32>,
    %c8_i32 = arith.constant 8 : i32
    return
  }
}

module attributes {stable_mosaic.version = 11 : i64} {
  func.func @_match_kernel(%arg0: i32, %arg1: memref<1x8x32xf32, #tpu.memory_space<vmem>>, %arg2: memref<1x8x32xf32, #tpu.memory_space<vmem>>, %arg3: memref<1x8x32xf32, #tpu.memory_space<vmem>>, %arg4: memref<1x8x32xf32, #tpu.memory_space<vmem>>, %arg5: memref<8x20x32xf32, #tpu.memory_space<vmem>>, %arg6: memref<1x8x160xf32, #tpu.memory_space<vmem>>, %arg7: memref<1x8x160xf32, #tpu.memory_space<vmem>>) attributes {dimension_semantics = [#tpu.dimension_semantics<parallel>], iteration_bounds = array<i64: 2>, scalar_prefetch = 0 : i64, scratch_operands = 0 : i64, tpu.core_type = #tpu.core_type<tc>, window_params = [{transform_indices = @transform_0, window_bounds = array<i64: 1, 8, 32>}, {transform_indices = @transform_1, window_bounds = array<i64: 1, 8, 32>}, {transform_indices = @transform_2, window_bounds = array<i64: 1, 8, 32>}, {transform_indices = @transform_3, window_bounds = array<i64: 1, 8, 32>}, {pipeline_mode = #tpu.pipeline_mode<synchronous>, transform_indices = @transform_4, window_bounds = array<i64: 8, 20, 32>}, {transform_indices = @transform_5, window_bounds = array<i64: 1, 8, 160>}, {transform_indices = @transform_6, window_bounds = array<i64: 1, 8, 160>}]} {
    %c0 = arith.constant 0 : index
    %c0_0 = arith.constant 0 : index
    %c0_1 = arith.constant 0 : index
    %0 = vector.load %arg1[%c0, %c0_0, %c0_1] : memref<1x8x32xf32, #tpu.memory_space<vmem>>, vector<1x8x32xf32>
    %1 = vector.shape_cast %0 : vector<1x8x32xf32> to vector<8x32xf32>
    %c0_2 = arith.constant 0 : index
    %c0_3 = arith.constant 0 : index
    %c0_4 = arith.constant 0 : index
    %2 = vector.load %arg2[%c0_2, %c0_3, %c0_4] : memref<1x8x32xf32, #tpu.memory_space<vmem>>, vector<1x8x32xf32>
    %3 = vector.shape_cast %2 : vector<1x8x32xf32> to vector<8x32xf32>
    %c0_5 = arith.constant 0 : index
    %c0_6 = arith.constant 0 : index
    %c0_7 = arith.constant 0 : index
    %4 = vector.load %arg3[%c0_5, %c0_6, %c0_7] : memref<1x8x32xf32, #tpu.memory_space<vmem>>, vector<1x8x32xf32>
    %5 = vector.shape_cast %4 : vector<1x8x32xf32> to vector<8x32xf32>
    %c0_8 = arith.constant 0 : index
    %c0_9 = arith.constant 0 : index
    %c0_10 = arith.constant 0 : index
    %6 = vector.load %arg4[%c0_8, %c0_9, %c0_10] : memref<1x8x32xf32, #tpu.memory_space<vmem>>, vector<1x8x32xf32>
    %7 = vector.shape_cast %6 : vector<1x8x32xf32> to vector<8x32xf32>
    %c0_11 = arith.constant 0 : index
    %c0_12 = arith.constant 0 : index
    %c0_13 = arith.constant 0 : index
    %8 = vector.load %arg5[%c0_11, %c0_12, %c0_13] : memref<8x20x32xf32, #tpu.memory_space<vmem>>, vector<1x20x32xf32>
    %9 = vector.shape_cast %8 : vector<1x20x32xf32> to vector<20x32xf32>
    %c1 = arith.constant 1 : index
    %c0_14 = arith.constant 0 : index
    %c0_15 = arith.constant 0 : index
    %10 = vector.load %arg5[%c1, %c0_14, %c0_15] : memref<8x20x32xf32, #tpu.memory_space<vmem>>, vector<1x20x32xf32>
    %11 = vector.shape_cast %10 : vector<1x20x32xf32> to vector<20x32xf32>
    %c2 = arith.constant 2 : index
    %c0_16 = arith.constant 0 : index
    %c0_17 = arith.constant 0 : index
    %12 = vector.load %arg5[%c2, %c0_16, %c0_17] : memref<8x20x32xf32, #tpu.memory_space<vmem>>, vector<1x20x32xf32>
    %13 = vector.shape_cast %12 : vector<1x20x32xf32> to vector<20x32xf32>
    %c3 = arith.constant 3 : index
    %c0_18 = arith.constant 0 : index
    %c0_19 = arith.constant 0 : index
    %14 = vector.load %arg5[%c3, %c0_18, %c0_19] : memref<8x20x32xf32, #tpu.memory_space<vmem>>, vector<1x20x32xf32>
    %15 = vector.shape_cast %14 : vector<1x20x32xf32> to vector<20x32xf32>
    %c4 = arith.constant 4 : index
    %c0_20 = arith.constant 0 : index
    %c0_21 = arith.constant 0 : index
    %16 = vector.load %arg5[%c4, %c0_20, %c0_21] : memref<8x20x32xf32, #tpu.memory_space<vmem>>, vector<1x20x32xf32>
    %17 = vector.shape_cast %16 : vector<1x20x32xf32> to vector<20x32xf32>
    %c5 = arith.constant 5 : index
    %c0_22 = arith.constant 0 : index
    %c0_23 = arith.constant 0 : index
    %18 = vector.load %arg5[%c5, %c0_22, %c0_23] : memref<8x20x32xf32, #tpu.memory_space<vmem>>, vector<1x20x32xf32>
    %19 = vector.shape_cast %18 : vector<1x20x32xf32> to vector<20x32xf32>
    %c6 = arith.constant 6 : index
    %c0_24 = arith.constant 0 : index
    %c0_25 = arith.constant 0 : index
    %20 = vector.load %arg5[%c6, %c0_24, %c0_25] : memref<8x20x32xf32, #tpu.memory_space<vmem>>, vector<1x20x32xf32>
    %21 = vector.shape_cast %20 : vector<1x20x32xf32> to vector<20x32xf32>
    %c7 = arith.constant 7 : index
    %c0_26 = arith.constant 0 : index
    %c0_27 = arith.constant 0 : index
    %22 = vector.load %arg5[%c7, %c0_26, %c0_27] : memref<8x20x32xf32, #tpu.memory_space<vmem>>, vector<1x20x32xf32>
    %23 = vector.shape_cast %22 : vector<1x20x32xf32> to vector<20x32xf32>
    %24 = vector.extract_strided_slice %5 {offsets = [7, 0], sizes = [1, 32], strides = [1, 1]} : vector<8x32xf32> to vector<1x32xf32>
    %25 = vector.shape_cast %24 : vector<1x32xf32> to vector<1x32xf32>
    %26 = vector.broadcast %25 : vector<1x32xf32> to vector<8x32xf32>
    %27 = arith.mulf %1, %26 : vector<8x32xf32>
    "tpu.trace_start"() <{level = 10 : i32, message = "th,lh->tl"}> : () -> ()
    %cst = arith.constant dense<0.000000e+00> : vector<8x20xf32>
    %28 = tpu.matmul %27, %9, %cst {dimension_numbers = #tpu.dot_dimension_numbers<[1], [1], [0], [0], [0, 0, 1, 0], [], []>} : vector<8x32xf32>, vector<20x32xf32>, vector<8x20xf32> -> vector<8x20xf32>
    "tpu.trace_stop"() : () -> ()
    %29 = arith.mulf %1, %1 : vector<8x32xf32>
    "tpu.trace_start"() <{level = 10 : i32, message = "th,lh->tl"}> : () -> ()
    %cst_28 = arith.constant dense<0.000000e+00> : vector<8x20xf32>
    %30 = tpu.matmul %29, %9, %cst_28 {dimension_numbers = #tpu.dot_dimension_numbers<[1], [1], [0], [0], [0, 0, 1, 0], [], []>} : vector<8x32xf32>, vector<20x32xf32>, vector<8x20xf32> -> vector<8x20xf32>
    "tpu.trace_stop"() : () -> ()
    %31 = arith.mulf %26, %26 : vector<8x32xf32>
    "tpu.trace_start"() <{level = 10 : i32, message = "th,lh->tl"}> : () -> ()
    %cst_29 = arith.constant dense<0.000000e+00> : vector<8x20xf32>
    %32 = tpu.matmul %31, %9, %cst_29 {dimension_numbers = #tpu.dot_dimension_numbers<[1], [1], [0], [0], [0, 0, 1, 0], [], []>} : vector<8x32xf32>, vector<20x32xf32>, vector<8x20xf32> -> vector<8x20xf32>
    "tpu.trace_stop"() : () -> ()
    %33 = arith.mulf %30, %32 : vector<8x20xf32>
    %34 = math.sqrt %33 : vector<8x20xf32>
    %cst_30 = arith.constant 9.99999993E-9 : f32
    %35 = vector.broadcast %cst_30 : f32 to vector<8x20xf32>
    %36 = arith.maximumf %34, %35 : vector<8x20xf32>
    %37 = arith.divf %28, %36 : vector<8x20xf32>
    %38 = vector.extract_strided_slice %7 {offsets = [0, 0], sizes = [1, 32], strides = [1, 1]} : vector<8x32xf32> to vector<1x32xf32>
    %39 = vector.shape_cast %38 : vector<1x32xf32> to vector<1x32xf32>
    %40 = vector.broadcast %39 : vector<1x32xf32> to vector<8x32xf32>
    %41 = arith.mulf %3, %40 : vector<8x32xf32>
    "tpu.trace_start"() <{level = 10 : i32, message = "th,lh->tl"}> : () -> ()
    %cst_31 = arith.constant dense<0.000000e+00> : vector<8x20xf32>
    %42 = tpu.matmul %41, %11, %cst_31 {dimension_numbers = #tpu.dot_dimension_numbers<[1], [1], [0], [0], [0, 0, 1, 0], [], []>} : vector<8x32xf32>, vector<20x32xf32>, vector<8x20xf32> -> vector<8x20xf32>
    "tpu.trace_stop"() : () -> ()
    %43 = arith.mulf %3, %3 : vector<8x32xf32>
    "tpu.trace_start"() <{level = 10 : i32, message = "th,lh->tl"}> : () -> ()
    %cst_32 = arith.constant dense<0.000000e+00> : vector<8x20xf32>
    %44 = tpu.matmul %43, %11, %cst_32 {dimension_numbers = #tpu.dot_dimension_numbers<[1], [1], [0], [0], [0, 0, 1, 0], [], []>} : vector<8x32xf32>, vector<20x32xf32>, vector<8x20xf32> -> vector<8x20xf32>
    "tpu.trace_stop"() : () -> ()
    %45 = arith.mulf %40, %40 : vector<8x32xf32>
    "tpu.trace_start"() <{level = 10 : i32, message = "th,lh->tl"}> : () -> ()
    %cst_33 = arith.constant dense<0.000000e+00> : vector<8x20xf32>
    %46 = tpu.matmul %45, %11, %cst_33 {dimension_numbers = #tpu.dot_dimension_numbers<[1], [1], [0], [0], [0, 0, 1, 0], [], []>} : vector<8x32xf32>, vector<20x32xf32>, vector<8x20xf32> -> vector<8x20xf32>
    "tpu.trace_stop"() : () -> ()
    %47 = arith.mulf %44, %46 : vector<8x20xf32>
    %48 = math.sqrt %47 : vector<8x20xf32>
    %cst_34 = arith.constant 9.99999993E-9 : f32
    %49 = vector.broadcast %cst_34 : f32 to vector<8x20xf32>
    %50 = arith.maximumf %48, %49 : vector<8x20xf32>
    %51 = arith.divf %42, %50 : vector<8x20xf32>
    %52 = vector.extract_strided_slice %1 {offsets = [7, 0], sizes = [1, 32], strides = [1, 1]} : vector<8x32xf32> to vector<1x32xf32>
    %53 = vector.shape_cast %52 : vector<1x32xf32> to vector<1x32xf32>
    %54 = vector.broadcast %53 : vector<1x32xf32> to vector<8x32xf32>
    %55 = arith.mulf %5, %54 : vector<8x32xf32>
    "tpu.trace_start"() <{level = 10 : i32, message = "th,lh->tl"}> : () -> ()
    %cst_35 = arith.constant dense<0.000000e+00> : vector<8x20xf32>
    %56 = tpu.matmul %55, %9, %cst_35 {dimension_numbers = #tpu.dot_dimension_numbers<[1], [1], [0], [0], [0, 0, 1, 0], [], []>} : vector<8x32xf32>, vector<20x32xf32>, vector<8x20xf32> -> vector<8x20xf32>
    "tpu.trace_stop"() : () -> ()
    %57 = arith.mulf %5, %5 : vector<8x32xf32>
    "tpu.trace_start"() <{level = 10 : i32, message = "th,lh->tl"}> : () -> ()
    %cst_36 = arith.constant dense<0.000000e+00> : vector<8x20xf32>
    %58 = tpu.matmul %57, %9, %cst_36 {dimension_numbers = #tpu.dot_dimension_numbers<[1], [1], [0], [0], [0, 0, 1, 0], [], []>} : vector<8x32xf32>, vector<20x32xf32>, vector<8x20xf32> -> vector<8x20xf32>
    "tpu.trace_stop"() : () -> ()
    %59 = arith.mulf %54, %54 : vector<8x32xf32>
    "tpu.trace_start"() <{level = 10 : i32, message = "th,lh->tl"}> : () -> ()
    %cst_37 = arith.constant dense<0.000000e+00> : vector<8x20xf32>
    %60 = tpu.matmul %59, %9, %cst_37 {dimension_numbers = #tpu.dot_dimension_numbers<[1], [1], [0], [0], [0, 0, 1, 0], [], []>} : vector<8x32xf32>, vector<20x32xf32>, vector<8x20xf32> -> vector<8x20xf32>
    "tpu.trace_stop"() : () -> ()
    %61 = arith.mulf %58, %60 : vector<8x20xf32>
    %62 = math.sqrt %61 : vector<8x20xf32>
    %cst_38 = arith.constant 9.99999993E-9 : f32
    %63 = vector.broadcast %cst_38 : f32 to vector<8x20xf32>
    %64 = arith.maximumf %62, %63 : vector<8x20xf32>
    %65 = arith.divf %56, %64 : vector<8x20xf32>
    %66 = vector.extract_strided_slice %3 {offsets = [0, 0], sizes = [1, 32], strides = [1, 1]} : vector<8x32xf32> to vector<1x32xf32>
    %67 = vector.shape_cast %66 : vector<1x32xf32> to vector<1x32xf32>
    %68 = vector.broadcast %67 : vector<1x32xf32> to vector<8x32xf32>
    %69 = arith.mulf %7, %68 : vector<8x32xf32>
    "tpu.trace_start"() <{level = 10 : i32, message = "th,lh->tl"}> : () -> ()
    %cst_39 = arith.constant dense<0.000000e+00> : vector<8x20xf32>
    %70 = tpu.matmul %69, %11, %cst_39 {dimension_numbers = #tpu.dot_dimension_numbers<[1], [1], [0], [0], [0, 0, 1, 0], [], []>} : vector<8x32xf32>, vector<20x32xf32>, vector<8x20xf32> -> vector<8x20xf32>
    "tpu.trace_stop"() : () -> ()
    %71 = arith.mulf %7, %7 : vector<8x32xf32>
    "tpu.trace_start"() <{level = 10 : i32, message = "th,lh->tl"}> : () -> ()
    %cst_40 = arith.constant dense<0.000000e+00> : vector<8x20xf32>
    %72 = tpu.matmul %71, %11, %cst_40 {dimension_numbers = #tpu.dot_dimension_numbers<[1], [1], [0], [0], [0, 0, 1, 0], [], []>} : vector<8x32xf32>, vector<20x32xf32>, vector<8x20xf32> -> vector<8x20xf32>
    "tpu.trace_stop"() : () -> ()
    %73 = arith.mulf %68, %68 : vector<8x32xf32>
    "tpu.trace_start"() <{level = 10 : i32, message = "th,lh->tl"}> : () -> ()
    %cst_41 = arith.constant dense<0.000000e+00> : vector<8x20xf32>
    %74 = tpu.matmul %73, %11, %cst_41 {dimension_numbers = #tpu.dot_dimension_numbers<[1], [1], [0], [0], [0, 0, 1, 0], [], []>} : vector<8x32xf32>, vector<20x32xf32>, vector<8x20xf32> -> vector<8x20xf32>
    "tpu.trace_stop"() : () -> ()
    %75 = arith.mulf %72, %74 : vector<8x20xf32>
    %76 = math.sqrt %75 : vector<8x20xf32>
    %cst_42 = arith.constant 9.99999993E-9 : f32
    %77 = vector.broadcast %cst_42 : f32 to vector<8x20xf32>
    %78 = arith.maximumf %76, %77 : vector<8x20xf32>
    %79 = arith.divf %70, %78 : vector<8x20xf32>
    %80 = vector.shape_cast %1 : vector<8x32xf32> to vector<8x1x32xf32>
    %81 = vector.shape_cast %5 : vector<8x32xf32> to vector<1x8x32xf32>
    %82 = vector.broadcast %80 : vector<8x1x32xf32> to vector<8x8x32xf32>
    %83 = vector.broadcast %81 : vector<1x8x32xf32> to vector<8x8x32xf32>
    %84 = arith.mulf %82, %83 : vector<8x8x32xf32>
    "tpu.trace_start"() <{level = 10 : i32, message = "pqh,lh->pql"}> : () -> ()
    %cst_43 = arith.constant dense<0.000000e+00> : vector<8x8x20xf32>
    %85 = tpu.matmul %84, %13, %cst_43 {dimension_numbers = #tpu.dot_dimension_numbers<[2], [1], [0, 1], [0], [0, 0, 0, 1, 1, 0], [], []>} : vector<8x8x32xf32>, vector<20x32xf32>, vector<8x8x20xf32> -> vector<8x8x20xf32>
    "tpu.trace_stop"() : () -> ()
    %86 = arith.mulf %1, %1 : vector<8x32xf32>
    "tpu.trace_start"() <{level = 10 : i32, message = "ph,lh->pl"}> : () -> ()
    %cst_44 = arith.constant dense<0.000000e+00> : vector<8x20xf32>
    %87 = tpu.matmul %86, %13, %cst_44 {dimension_numbers = #tpu.dot_dimension_numbers<[1], [1], [0], [0], [0, 0, 1, 0], [], []>} : vector<8x32xf32>, vector<20x32xf32>, vector<8x20xf32> -> vector<8x20xf32>
    "tpu.trace_stop"() : () -> ()
    %88 = math.sqrt %87 : vector<8x20xf32>
    %89 = arith.mulf %5, %5 : vector<8x32xf32>
    "tpu.trace_start"() <{level = 10 : i32, message = "qh,lh->ql"}> : () -> ()
    %cst_45 = arith.constant dense<0.000000e+00> : vector<8x20xf32>
    %90 = tpu.matmul %89, %13, %cst_45 {dimension_numbers = #tpu.dot_dimension_numbers<[1], [1], [0], [0], [0, 0, 1, 0], [], []>} : vector<8x32xf32>, vector<20x32xf32>, vector<8x20xf32> -> vector<8x20xf32>
    "tpu.trace_stop"() : () -> ()
    %91 = math.sqrt %90 : vector<8x20xf32>
    %92 = vector.shape_cast %88 : vector<8x20xf32> to vector<8x1x20xf32>
    %93 = vector.shape_cast %91 : vector<8x20xf32> to vector<1x8x20xf32>
    %94 = vector.broadcast %92 : vector<8x1x20xf32> to vector<8x8x20xf32>
    %95 = vector.broadcast %93 : vector<1x8x20xf32> to vector<8x8x20xf32>
    %96 = arith.mulf %94, %95 : vector<8x8x20xf32>
    %cst_46 = arith.constant 9.99999993E-9 : f32
    %97 = vector.broadcast %cst_46 : f32 to vector<8x8x20xf32>
    %98 = arith.cmpf ogt, %96, %97 : vector<8x8x20xf32>
    %cst_47 = arith.constant 9.99999993E-9 : f32
    %99 = vector.broadcast %cst_47 : f32 to vector<8x8x20xf32>
    %100 = arith.select %98, %96, %99 : vector<8x8x20xi1>, vector<8x8x20xf32>
    %101 = arith.divf %85, %100 : vector<8x8x20xf32>
    %cst_48 = arith.constant dense<0xFF800000> : vector<8x20xf32>
    %102 = vector.multi_reduction <maximumf>, %101, %cst_48 [1] : vector<8x8x20xf32> to vector<8x20xf32>
    %cst_49 = arith.constant dense<0xFF800000> : vector<8x20xf32>
    %103 = vector.multi_reduction <maximumf>, %101, %cst_49 [0] : vector<8x8x20xf32> to vector<8x20xf32>
    %104 = vector.shape_cast %3 : vector<8x32xf32> to vector<8x1x32xf32>
    %105 = vector.shape_cast %7 : vector<8x32xf32> to vector<1x8x32xf32>
    %106 = vector.broadcast %104 : vector<8x1x32xf32> to vector<8x8x32xf32>
    %107 = vector.broadcast %105 : vector<1x8x32xf32> to vector<8x8x32xf32>
    %108 = arith.mulf %106, %107 : vector<8x8x32xf32>
    "tpu.trace_start"() <{level = 10 : i32, message = "pqh,lh->pql"}> : () -> ()
    %cst_50 = arith.constant dense<0.000000e+00> : vector<8x8x20xf32>
    %109 = tpu.matmul %108, %15, %cst_50 {dimension_numbers = #tpu.dot_dimension_numbers<[2], [1], [0, 1], [0], [0, 0, 0, 1, 1, 0], [], []>} : vector<8x8x32xf32>, vector<20x32xf32>, vector<8x8x20xf32> -> vector<8x8x20xf32>
    "tpu.trace_stop"() : () -> ()
    %110 = arith.mulf %3, %3 : vector<8x32xf32>
    "tpu.trace_start"() <{level = 10 : i32, message = "ph,lh->pl"}> : () -> ()
    %cst_51 = arith.constant dense<0.000000e+00> : vector<8x20xf32>
    %111 = tpu.matmul %110, %15, %cst_51 {dimension_numbers = #tpu.dot_dimension_numbers<[1], [1], [0], [0], [0, 0, 1, 0], [], []>} : vector<8x32xf32>, vector<20x32xf32>, vector<8x20xf32> -> vector<8x20xf32>
    "tpu.trace_stop"() : () -> ()
    %112 = math.sqrt %111 : vector<8x20xf32>
    %113 = arith.mulf %7, %7 : vector<8x32xf32>
    "tpu.trace_start"() <{level = 10 : i32, message = "qh,lh->ql"}> : () -> ()
    %cst_52 = arith.constant dense<0.000000e+00> : vector<8x20xf32>
    %114 = tpu.matmul %113, %15, %cst_52 {dimension_numbers = #tpu.dot_dimension_numbers<[1], [1], [0], [0], [0, 0, 1, 0], [], []>} : vector<8x32xf32>, vector<20x32xf32>, vector<8x20xf32> -> vector<8x20xf32>
    "tpu.trace_stop"() : () -> ()
    %115 = math.sqrt %114 : vector<8x20xf32>
    %116 = vector.shape_cast %112 : vector<8x20xf32> to vector<8x1x20xf32>
    %117 = vector.shape_cast %115 : vector<8x20xf32> to vector<1x8x20xf32>
    %118 = vector.broadcast %116 : vector<8x1x20xf32> to vector<8x8x20xf32>
    %119 = vector.broadcast %117 : vector<1x8x20xf32> to vector<8x8x20xf32>
    %120 = arith.mulf %118, %119 : vector<8x8x20xf32>
    %cst_53 = arith.constant 9.99999993E-9 : f32
    %121 = vector.broadcast %cst_53 : f32 to vector<8x8x20xf32>
    %122 = arith.cmpf ogt, %120, %121 : vector<8x8x20xf32>
    %cst_54 = arith.constant 9.99999993E-9 : f32
    %123 = vector.broadcast %cst_54 : f32 to vector<8x8x20xf32>
    %124 = arith.select %122, %120, %123 : vector<8x8x20xi1>, vector<8x8x20xf32>
    %125 = arith.divf %109, %124 : vector<8x8x20xf32>
    %cst_55 = arith.constant dense<0xFF800000> : vector<8x20xf32>
    %126 = vector.multi_reduction <maximumf>, %125, %cst_55 [1] : vector<8x8x20xf32> to vector<8x20xf32>
    %cst_56 = arith.constant dense<0xFF800000> : vector<8x20xf32>
    %127 = vector.multi_reduction <maximumf>, %125, %cst_56 [0] : vector<8x8x20xf32> to vector<8x20xf32>
    %128 = arith.mulf %1, %1 : vector<8x32xf32>
    %cst_57 = arith.constant dense<0.000000e+00> : vector<8xf32>
    %129 = vector.multi_reduction <add>, %128, %cst_57 [1] : vector<8x32xf32> to vector<8xf32>
    %130 = vector.shape_cast %129 : vector<8xf32> to vector<8x1xf32>
    %131 = arith.mulf %5, %5 : vector<8x32xf32>
    %cst_58 = arith.constant dense<0.000000e+00> : vector<8xf32>
    %132 = vector.multi_reduction <add>, %131, %cst_58 [1] : vector<8x32xf32> to vector<8xf32>
    %133 = vector.shape_cast %132 : vector<8xf32> to vector<8x1xf32>
    "tpu.trace_start"() <{level = 10 : i32, message = "ph,qh->pq"}> : () -> ()
    %cst_59 = arith.constant dense<0.000000e+00> : vector<8x8xf32>
    %134 = tpu.matmul %1, %5, %cst_59 {dimension_numbers = #tpu.dot_dimension_numbers<[1], [1], [0], [0], [0, 0, 1, 0], [], []>} : vector<8x32xf32>, vector<8x32xf32>, vector<8x8xf32> -> vector<8x8xf32>
    "tpu.trace_stop"() : () -> ()
    "tpu.trace_start"() <{level = 10 : i32, message = "pi,qi->pq"}> : () -> ()
    %cst_60 = arith.constant dense<0.000000e+00> : vector<8x8xf32>
    %135 = tpu.matmul %130, %133, %cst_60 {dimension_numbers = #tpu.dot_dimension_numbers<[1], [1], [0], [0], [0, 0, 1, 0], [], []>} : vector<8x1xf32>, vector<8x1xf32>, vector<8x8xf32> -> vector<8x8xf32>
    "tpu.trace_stop"() : () -> ()
    %136 = math.sqrt %135 : vector<8x8xf32>
    %cst_61 = arith.constant 9.99999993E-9 : f32
    %137 = vector.broadcast %cst_61 : f32 to vector<8x8xf32>
    %138 = arith.cmpf ogt, %136, %137 : vector<8x8xf32>
    %cst_62 = arith.constant 9.99999993E-9 : f32
    %139 = vector.broadcast %cst_62 : f32 to vector<8x8xf32>
    %140 = arith.select %138, %136, %139 : vector<8x8xi1>, vector<8x8xf32>
    %141 = arith.divf %134, %140 : vector<8x8xf32>
    %142 = tpu.transpose %141, [1, 0] : vector<8x8xf32> -> vector<8x8xf32>
    %cst_63 = arith.constant dense<0.000000e+00> : vector<8x32xf32>
    %143 = tpu.matmul %141, %5, %cst_63 {dimension_numbers = #tpu.dot_dimension_numbers<[1], [0], [0], [1], [0, 0, 1, 1], [], []>} : vector<8x8xf32>, vector<8x32xf32>, vector<8x32xf32> -> vector<8x32xf32>
    %cst_64 = arith.constant dense<0.000000e+00> : vector<8xf32>
    %144 = vector.multi_reduction <add>, %141, %cst_64 [1] : vector<8x8xf32> to vector<8xf32>
    %145 = vector.shape_cast %144 : vector<8xf32> to vector<8x1xf32>
    %cst_65 = arith.constant 9.99999993E-9 : f32
    %146 = vector.broadcast %cst_65 : f32 to vector<8x1xf32>
    %147 = arith.cmpf ogt, %145, %146 : vector<8x1xf32>
    %cst_66 = arith.constant 9.99999993E-9 : f32
    %148 = vector.broadcast %cst_66 : f32 to vector<8x1xf32>
    %149 = arith.select %147, %145, %148 : vector<8x1xi1>, vector<8x1xf32>
    %150 = vector.broadcast %149 : vector<8x1xf32> to vector<8x32xf32>
    %151 = arith.divf %143, %150 : vector<8x32xf32>
    %cst_67 = arith.constant dense<0.000000e+00> : vector<8x32xf32>
    %152 = tpu.matmul %142, %1, %cst_67 {dimension_numbers = #tpu.dot_dimension_numbers<[1], [0], [0], [1], [0, 0, 1, 1], [], []>} : vector<8x8xf32>, vector<8x32xf32>, vector<8x32xf32> -> vector<8x32xf32>
    %cst_68 = arith.constant dense<0.000000e+00> : vector<8xf32>
    %153 = vector.multi_reduction <add>, %142, %cst_68 [1] : vector<8x8xf32> to vector<8xf32>
    %154 = vector.shape_cast %153 : vector<8xf32> to vector<8x1xf32>
    %cst_69 = arith.constant 9.99999993E-9 : f32
    %155 = vector.broadcast %cst_69 : f32 to vector<8x1xf32>
    %156 = arith.cmpf ogt, %154, %155 : vector<8x1xf32>
    %cst_70 = arith.constant 9.99999993E-9 : f32
    %157 = vector.broadcast %cst_70 : f32 to vector<8x1xf32>
    %158 = arith.select %156, %154, %157 : vector<8x1xi1>, vector<8x1xf32>
    %159 = vector.broadcast %158 : vector<8x1xf32> to vector<8x32xf32>
    %160 = arith.divf %152, %159 : vector<8x32xf32>
    %161 = vector.shape_cast %5 : vector<8x32xf32> to vector<1x8x32xf32>
    %162 = vector.shape_cast %141 : vector<8x8xf32> to vector<8x8x1xf32>
    %163 = vector.broadcast %161 : vector<1x8x32xf32> to vector<8x8x32xf32>
    %164 = vector.broadcast %162 : vector<8x8x1xf32> to vector<8x8x32xf32>
    %165 = arith.mulf %163, %164 : vector<8x8x32xf32>
    %cst_71 = arith.constant dense<0xFF800000> : vector<8x32xf32>
    %166 = vector.multi_reduction <maximumf>, %165, %cst_71 [1] : vector<8x8x32xf32> to vector<8x32xf32>
    %167 = vector.shape_cast %1 : vector<8x32xf32> to vector<8x1x32xf32>
    %168 = vector.shape_cast %141 : vector<8x8xf32> to vector<8x8x1xf32>
    %169 = vector.broadcast %167 : vector<8x1x32xf32> to vector<8x8x32xf32>
    %170 = vector.broadcast %168 : vector<8x8x1xf32> to vector<8x8x32xf32>
    %171 = arith.mulf %169, %170 : vector<8x8x32xf32>
    %cst_72 = arith.constant dense<0xFF800000> : vector<8x32xf32>
    %172 = vector.multi_reduction <maximumf>, %171, %cst_72 [0] : vector<8x8x32xf32> to vector<8x32xf32>
    %173 = arith.mulf %3, %3 : vector<8x32xf32>
    %cst_73 = arith.constant dense<0.000000e+00> : vector<8xf32>
    %174 = vector.multi_reduction <add>, %173, %cst_73 [1] : vector<8x32xf32> to vector<8xf32>
    %175 = vector.shape_cast %174 : vector<8xf32> to vector<8x1xf32>
    %176 = arith.mulf %7, %7 : vector<8x32xf32>
    %cst_74 = arith.constant dense<0.000000e+00> : vector<8xf32>
    %177 = vector.multi_reduction <add>, %176, %cst_74 [1] : vector<8x32xf32> to vector<8xf32>
    %178 = vector.shape_cast %177 : vector<8xf32> to vector<8x1xf32>
    "tpu.trace_start"() <{level = 10 : i32, message = "ph,qh->pq"}> : () -> ()
    %cst_75 = arith.constant dense<0.000000e+00> : vector<8x8xf32>
    %179 = tpu.matmul %3, %7, %cst_75 {dimension_numbers = #tpu.dot_dimension_numbers<[1], [1], [0], [0], [0, 0, 1, 0], [], []>} : vector<8x32xf32>, vector<8x32xf32>, vector<8x8xf32> -> vector<8x8xf32>
    "tpu.trace_stop"() : () -> ()
    "tpu.trace_start"() <{level = 10 : i32, message = "pi,qi->pq"}> : () -> ()
    %cst_76 = arith.constant dense<0.000000e+00> : vector<8x8xf32>
    %180 = tpu.matmul %175, %178, %cst_76 {dimension_numbers = #tpu.dot_dimension_numbers<[1], [1], [0], [0], [0, 0, 1, 0], [], []>} : vector<8x1xf32>, vector<8x1xf32>, vector<8x8xf32> -> vector<8x8xf32>
    "tpu.trace_stop"() : () -> ()
    %181 = math.sqrt %180 : vector<8x8xf32>
    %cst_77 = arith.constant 9.99999993E-9 : f32
    %182 = vector.broadcast %cst_77 : f32 to vector<8x8xf32>
    %183 = arith.cmpf ogt, %181, %182 : vector<8x8xf32>
    %cst_78 = arith.constant 9.99999993E-9 : f32
    %184 = vector.broadcast %cst_78 : f32 to vector<8x8xf32>
    %185 = arith.select %183, %181, %184 : vector<8x8xi1>, vector<8x8xf32>
    %186 = arith.divf %179, %185 : vector<8x8xf32>
    %187 = tpu.transpose %186, [1, 0] : vector<8x8xf32> -> vector<8x8xf32>
    %cst_79 = arith.constant dense<0.000000e+00> : vector<8x32xf32>
    %188 = tpu.matmul %186, %7, %cst_79 {dimension_numbers = #tpu.dot_dimension_numbers<[1], [0], [0], [1], [0, 0, 1, 1], [], []>} : vector<8x8xf32>, vector<8x32xf32>, vector<8x32xf32> -> vector<8x32xf32>
    %cst_80 = arith.constant dense<0.000000e+00> : vector<8xf32>
    %189 = vector.multi_reduction <add>, %186, %cst_80 [1] : vector<8x8xf32> to vector<8xf32>
    %190 = vector.shape_cast %189 : vector<8xf32> to vector<8x1xf32>
    %cst_81 = arith.constant 9.99999993E-9 : f32
    %191 = vector.broadcast %cst_81 : f32 to vector<8x1xf32>
    %192 = arith.cmpf ogt, %190, %191 : vector<8x1xf32>
    %cst_82 = arith.constant 9.99999993E-9 : f32
    %193 = vector.broadcast %cst_82 : f32 to vector<8x1xf32>
    %194 = arith.select %192, %190, %193 : vector<8x1xi1>, vector<8x1xf32>
    %195 = vector.broadcast %194 : vector<8x1xf32> to vector<8x32xf32>
    %196 = arith.divf %188, %195 : vector<8x32xf32>
    %cst_83 = arith.constant dense<0.000000e+00> : vector<8x32xf32>
    %197 = tpu.matmul %187, %3, %cst_83 {dimension_numbers = #tpu.dot_dimension_numbers<[1], [0], [0], [1], [0, 0, 1, 1], [], []>} : vector<8x8xf32>, vector<8x32xf32>, vector<8x32xf32> -> vector<8x32xf32>
    %cst_84 = arith.constant dense<0.000000e+00> : vector<8xf32>
    %198 = vector.multi_reduction <add>, %187, %cst_84 [1] : vector<8x8xf32> to vector<8xf32>
    %199 = vector.shape_cast %198 : vector<8xf32> to vector<8x1xf32>
    %cst_85 = arith.constant 9.99999993E-9 : f32
    %200 = vector.broadcast %cst_85 : f32 to vector<8x1xf32>
    %201 = arith.cmpf ogt, %199, %200 : vector<8x1xf32>
    %cst_86 = arith.constant 9.99999993E-9 : f32
    %202 = vector.broadcast %cst_86 : f32 to vector<8x1xf32>
    %203 = arith.select %201, %199, %202 : vector<8x1xi1>, vector<8x1xf32>
    %204 = vector.broadcast %203 : vector<8x1xf32> to vector<8x32xf32>
    %205 = arith.divf %197, %204 : vector<8x32xf32>
    %206 = vector.shape_cast %7 : vector<8x32xf32> to vector<1x8x32xf32>
    %207 = vector.shape_cast %186 : vector<8x8xf32> to vector<8x8x1xf32>
    %208 = vector.broadcast %206 : vector<1x8x32xf32> to vector<8x8x32xf32>
    %209 = vector.broadcast %207 : vector<8x8x1xf32> to vector<8x8x32xf32>
    %210 = arith.mulf %208, %209 : vector<8x8x32xf32>
    %cst_87 = arith.constant dense<0xFF800000> : vector<8x32xf32>
    %211 = vector.multi_reduction <maximumf>, %210, %cst_87 [1] : vector<8x8x32xf32> to vector<8x32xf32>
    %212 = vector.shape_cast %3 : vector<8x32xf32> to vector<8x1x32xf32>
    %213 = vector.shape_cast %186 : vector<8x8xf32> to vector<8x8x1xf32>
    %214 = vector.broadcast %212 : vector<8x1x32xf32> to vector<8x8x32xf32>
    %215 = vector.broadcast %213 : vector<8x8x1xf32> to vector<8x8x32xf32>
    %216 = arith.mulf %214, %215 : vector<8x8x32xf32>
    %cst_88 = arith.constant dense<0xFF800000> : vector<8x32xf32>
    %217 = vector.multi_reduction <maximumf>, %216, %cst_88 [0] : vector<8x8x32xf32> to vector<8x32xf32>
    %218 = arith.mulf %1, %151 : vector<8x32xf32>
    "tpu.trace_start"() <{level = 10 : i32, message = "th,lh->tl"}> : () -> ()
    %cst_89 = arith.constant dense<0.000000e+00> : vector<8x20xf32>
    %219 = tpu.matmul %218, %17, %cst_89 {dimension_numbers = #tpu.dot_dimension_numbers<[1], [1], [0], [0], [0, 0, 1, 0], [], []>} : vector<8x32xf32>, vector<20x32xf32>, vector<8x20xf32> -> vector<8x20xf32>
    "tpu.trace_stop"() : () -> ()
    %220 = arith.mulf %1, %1 : vector<8x32xf32>
    "tpu.trace_start"() <{level = 10 : i32, message = "th,lh->tl"}> : () -> ()
    %cst_90 = arith.constant dense<0.000000e+00> : vector<8x20xf32>
    %221 = tpu.matmul %220, %17, %cst_90 {dimension_numbers = #tpu.dot_dimension_numbers<[1], [1], [0], [0], [0, 0, 1, 0], [], []>} : vector<8x32xf32>, vector<20x32xf32>, vector<8x20xf32> -> vector<8x20xf32>
    "tpu.trace_stop"() : () -> ()
    %222 = arith.mulf %151, %151 : vector<8x32xf32>
    "tpu.trace_start"() <{level = 10 : i32, message = "th,lh->tl"}> : () -> ()
    %cst_91 = arith.constant dense<0.000000e+00> : vector<8x20xf32>
    %223 = tpu.matmul %222, %17, %cst_91 {dimension_numbers = #tpu.dot_dimension_numbers<[1], [1], [0], [0], [0, 0, 1, 0], [], []>} : vector<8x32xf32>, vector<20x32xf32>, vector<8x20xf32> -> vector<8x20xf32>
    "tpu.trace_stop"() : () -> ()
    %224 = arith.mulf %221, %223 : vector<8x20xf32>
    %225 = math.sqrt %224 : vector<8x20xf32>
    %cst_92 = arith.constant 9.99999993E-9 : f32
    %226 = vector.broadcast %cst_92 : f32 to vector<8x20xf32>
    %227 = arith.maximumf %225, %226 : vector<8x20xf32>
    %228 = arith.divf %219, %227 : vector<8x20xf32>
    %229 = arith.mulf %3, %196 : vector<8x32xf32>
    "tpu.trace_start"() <{level = 10 : i32, message = "th,lh->tl"}> : () -> ()
    %cst_93 = arith.constant dense<0.000000e+00> : vector<8x20xf32>
    %230 = tpu.matmul %229, %19, %cst_93 {dimension_numbers = #tpu.dot_dimension_numbers<[1], [1], [0], [0], [0, 0, 1, 0], [], []>} : vector<8x32xf32>, vector<20x32xf32>, vector<8x20xf32> -> vector<8x20xf32>
    "tpu.trace_stop"() : () -> ()
    %231 = arith.mulf %3, %3 : vector<8x32xf32>
    "tpu.trace_start"() <{level = 10 : i32, message = "th,lh->tl"}> : () -> ()
    %cst_94 = arith.constant dense<0.000000e+00> : vector<8x20xf32>
    %232 = tpu.matmul %231, %19, %cst_94 {dimension_numbers = #tpu.dot_dimension_numbers<[1], [1], [0], [0], [0, 0, 1, 0], [], []>} : vector<8x32xf32>, vector<20x32xf32>, vector<8x20xf32> -> vector<8x20xf32>
    "tpu.trace_stop"() : () -> ()
    %233 = arith.mulf %196, %196 : vector<8x32xf32>
    "tpu.trace_start"() <{level = 10 : i32, message = "th,lh->tl"}> : () -> ()
    %cst_95 = arith.constant dense<0.000000e+00> : vector<8x20xf32>
    %234 = tpu.matmul %233, %19, %cst_95 {dimension_numbers = #tpu.dot_dimension_numbers<[1], [1], [0], [0], [0, 0, 1, 0], [], []>} : vector<8x32xf32>, vector<20x32xf32>, vector<8x20xf32> -> vector<8x20xf32>
    "tpu.trace_stop"() : () -> ()
    %235 = arith.mulf %232, %234 : vector<8x20xf32>
    %236 = math.sqrt %235 : vector<8x20xf32>
    %cst_96 = arith.constant 9.99999993E-9 : f32
    %237 = vector.broadcast %cst_96 : f32 to vector<8x20xf32>
    %238 = arith.maximumf %236, %237 : vector<8x20xf32>
    %239 = arith.divf %230, %238 : vector<8x20xf32>
    %240 = arith.mulf %5, %160 : vector<8x32xf32>
    "tpu.trace_start"() <{level = 10 : i32, message = "th,lh->tl"}> : () -> ()
    %cst_97 = arith.constant dense<0.000000e+00> : vector<8x20xf32>
    %241 = tpu.matmul %240, %17, %cst_97 {dimension_numbers = #tpu.dot_dimension_numbers<[1], [1], [0], [0], [0, 0, 1, 0], [], []>} : vector<8x32xf32>, vector<20x32xf32>, vector<8x20xf32> -> vector<8x20xf32>
    "tpu.trace_stop"() : () -> ()
    %242 = arith.mulf %5, %5 : vector<8x32xf32>
    "tpu.trace_start"() <{level = 10 : i32, message = "th,lh->tl"}> : () -> ()
    %cst_98 = arith.constant dense<0.000000e+00> : vector<8x20xf32>
    %243 = tpu.matmul %242, %17, %cst_98 {dimension_numbers = #tpu.dot_dimension_numbers<[1], [1], [0], [0], [0, 0, 1, 0], [], []>} : vector<8x32xf32>, vector<20x32xf32>, vector<8x20xf32> -> vector<8x20xf32>
    "tpu.trace_stop"() : () -> ()
    %244 = arith.mulf %160, %160 : vector<8x32xf32>
    "tpu.trace_start"() <{level = 10 : i32, message = "th,lh->tl"}> : () -> ()
    %cst_99 = arith.constant dense<0.000000e+00> : vector<8x20xf32>
    %245 = tpu.matmul %244, %17, %cst_99 {dimension_numbers = #tpu.dot_dimension_numbers<[1], [1], [0], [0], [0, 0, 1, 0], [], []>} : vector<8x32xf32>, vector<20x32xf32>, vector<8x20xf32> -> vector<8x20xf32>
    "tpu.trace_stop"() : () -> ()
    %246 = arith.mulf %243, %245 : vector<8x20xf32>
    %247 = math.sqrt %246 : vector<8x20xf32>
    %cst_100 = arith.constant 9.99999993E-9 : f32
    %248 = vector.broadcast %cst_100 : f32 to vector<8x20xf32>
    %249 = arith.maximumf %247, %248 : vector<8x20xf32>
    %250 = arith.divf %241, %249 : vector<8x20xf32>
    %251 = arith.mulf %7, %205 : vector<8x32xf32>
    "tpu.trace_start"() <{level = 10 : i32, message = "th,lh->tl"}> : () -> ()
    %cst_101 = arith.constant dense<0.000000e+00> : vector<8x20xf32>
    %252 = tpu.matmul %251, %19, %cst_101 {dimension_numbers = #tpu.dot_dimension_numbers<[1], [1], [0], [0], [0, 0, 1, 0], [], []>} : vector<8x32xf32>, vector<20x32xf32>, vector<8x20xf32> -> vector<8x20xf32>
    "tpu.trace_stop"() : () -> ()
    %253 = arith.mulf %7, %7 : vector<8x32xf32>
    "tpu.trace_start"() <{level = 10 : i32, message = "th,lh->tl"}> : () -> ()
    %cst_102 = arith.constant dense<0.000000e+00> : vector<8x20xf32>
    %254 = tpu.matmul %253, %19, %cst_102 {dimension_numbers = #tpu.dot_dimension_numbers<[1], [1], [0], [0], [0, 0, 1, 0], [], []>} : vector<8x32xf32>, vector<20x32xf32>, vector<8x20xf32> -> vector<8x20xf32>
    "tpu.trace_stop"() : () -> ()
    %255 = arith.mulf %205, %205 : vector<8x32xf32>
    "tpu.trace_start"() <{level = 10 : i32, message = "th,lh->tl"}> : () -> ()
    %cst_103 = arith.constant dense<0.000000e+00> : vector<8x20xf32>
    %256 = tpu.matmul %255, %19, %cst_103 {dimension_numbers = #tpu.dot_dimension_numbers<[1], [1], [0], [0], [0, 0, 1, 0], [], []>} : vector<8x32xf32>, vector<20x32xf32>, vector<8x20xf32> -> vector<8x20xf32>
    "tpu.trace_stop"() : () -> ()
    %257 = arith.mulf %254, %256 : vector<8x20xf32>
    %258 = math.sqrt %257 : vector<8x20xf32>
    %cst_104 = arith.constant 9.99999993E-9 : f32
    %259 = vector.broadcast %cst_104 : f32 to vector<8x20xf32>
    %260 = arith.maximumf %258, %259 : vector<8x20xf32>
    %261 = arith.divf %252, %260 : vector<8x20xf32>
    %262 = arith.mulf %1, %166 : vector<8x32xf32>
    "tpu.trace_start"() <{level = 10 : i32, message = "th,lh->tl"}> : () -> ()
    %cst_105 = arith.constant dense<0.000000e+00> : vector<8x20xf32>
    %263 = tpu.matmul %262, %21, %cst_105 {dimension_numbers = #tpu.dot_dimension_numbers<[1], [1], [0], [0], [0, 0, 1, 0], [], []>} : vector<8x32xf32>, vector<20x32xf32>, vector<8x20xf32> -> vector<8x20xf32>
    "tpu.trace_stop"() : () -> ()
    %264 = arith.mulf %1, %1 : vector<8x32xf32>
    "tpu.trace_start"() <{level = 10 : i32, message = "th,lh->tl"}> : () -> ()
    %cst_106 = arith.constant dense<0.000000e+00> : vector<8x20xf32>
    %265 = tpu.matmul %264, %21, %cst_106 {dimension_numbers = #tpu.dot_dimension_numbers<[1], [1], [0], [0], [0, 0, 1, 0], [], []>} : vector<8x32xf32>, vector<20x32xf32>, vector<8x20xf32> -> vector<8x20xf32>
    "tpu.trace_stop"() : () -> ()
    %266 = arith.mulf %166, %166 : vector<8x32xf32>
    "tpu.trace_start"() <{level = 10 : i32, message = "th,lh->tl"}> : () -> ()
    %cst_107 = arith.constant dense<0.000000e+00> : vector<8x20xf32>
    %267 = tpu.matmul %266, %21, %cst_107 {dimension_numbers = #tpu.dot_dimension_numbers<[1], [1], [0], [0], [0, 0, 1, 0], [], []>} : vector<8x32xf32>, vector<20x32xf32>, vector<8x20xf32> -> vector<8x20xf32>
    "tpu.trace_stop"() : () -> ()
    %268 = arith.mulf %265, %267 : vector<8x20xf32>
    %269 = math.sqrt %268 : vector<8x20xf32>
    %cst_108 = arith.constant 9.99999993E-9 : f32
    %270 = vector.broadcast %cst_108 : f32 to vector<8x20xf32>
    %271 = arith.maximumf %269, %270 : vector<8x20xf32>
    %272 = arith.divf %263, %271 : vector<8x20xf32>
    %273 = arith.mulf %3, %211 : vector<8x32xf32>
    "tpu.trace_start"() <{level = 10 : i32, message = "th,lh->tl"}> : () -> ()
    %cst_109 = arith.constant dense<0.000000e+00> : vector<8x20xf32>
    %274 = tpu.matmul %273, %23, %cst_109 {dimension_numbers = #tpu.dot_dimension_numbers<[1], [1], [0], [0], [0, 0, 1, 0], [], []>} : vector<8x32xf32>, vector<20x32xf32>, vector<8x20xf32> -> vector<8x20xf32>
    "tpu.trace_stop"() : () -> ()
    %275 = arith.mulf %3, %3 : vector<8x32xf32>
    "tpu.trace_start"() <{level = 10 : i32, message = "th,lh->tl"}> : () -> ()
    %cst_110 = arith.constant dense<0.000000e+00> : vector<8x20xf32>
    %276 = tpu.matmul %275, %23, %cst_110 {dimension_numbers = #tpu.dot_dimension_numbers<[1], [1], [0], [0], [0, 0, 1, 0], [], []>} : vector<8x32xf32>, vector<20x32xf32>, vector<8x20xf32> -> vector<8x20xf32>
    "tpu.trace_stop"() : () -> ()
    %277 = arith.mulf %211, %211 : vector<8x32xf32>
    "tpu.trace_start"() <{level = 10 : i32, message = "th,lh->tl"}> : () -> ()
    %cst_111 = arith.constant dense<0.000000e+00> : vector<8x20xf32>
    %278 = tpu.matmul %277, %23, %cst_111 {dimension_numbers = #tpu.dot_dimension_numbers<[1], [1], [0], [0], [0, 0, 1, 0], [], []>} : vector<8x32xf32>, vector<20x32xf32>, vector<8x20xf32> -> vector<8x20xf32>
    "tpu.trace_stop"() : () -> ()
    %279 = arith.mulf %276, %278 : vector<8x20xf32>
    %280 = math.sqrt %279 : vector<8x20xf32>
    %cst_112 = arith.constant 9.99999993E-9 : f32
    %281 = vector.broadcast %cst_112 : f32 to vector<8x20xf32>
    %282 = arith.maximumf %280, %281 : vector<8x20xf32>
    %283 = arith.divf %274, %282 : vector<8x20xf32>
    %284 = arith.mulf %5, %172 : vector<8x32xf32>
    "tpu.trace_start"() <{level = 10 : i32, message = "th,lh->tl"}> : () -> ()
    %cst_113 = arith.constant dense<0.000000e+00> : vector<8x20xf32>
    %285 = tpu.matmul %284, %21, %cst_113 {dimension_numbers = #tpu.dot_dimension_numbers<[1], [1], [0], [0], [0, 0, 1, 0], [], []>} : vector<8x32xf32>, vector<20x32xf32>, vector<8x20xf32> -> vector<8x20xf32>
    "tpu.trace_stop"() : () -> ()
    %286 = arith.mulf %5, %5 : vector<8x32xf32>
    "tpu.trace_start"() <{level = 10 : i32, message = "th,lh->tl"}> : () -> ()
    %cst_114 = arith.constant dense<0.000000e+00> : vector<8x20xf32>
    %287 = tpu.matmul %286, %21, %cst_114 {dimension_numbers = #tpu.dot_dimension_numbers<[1], [1], [0], [0], [0, 0, 1, 0], [], []>} : vector<8x32xf32>, vector<20x32xf32>, vector<8x20xf32> -> vector<8x20xf32>
    "tpu.trace_stop"() : () -> ()
    %288 = arith.mulf %172, %172 : vector<8x32xf32>
    "tpu.trace_start"() <{level = 10 : i32, message = "th,lh->tl"}> : () -> ()
    %cst_115 = arith.constant dense<0.000000e+00> : vector<8x20xf32>
    %289 = tpu.matmul %288, %21, %cst_115 {dimension_numbers = #tpu.dot_dimension_numbers<[1], [1], [0], [0], [0, 0, 1, 0], [], []>} : vector<8x32xf32>, vector<20x32xf32>, vector<8x20xf32> -> vector<8x20xf32>
    "tpu.trace_stop"() : () -> ()
    %290 = arith.mulf %287, %289 : vector<8x20xf32>
    %291 = math.sqrt %290 : vector<8x20xf32>
    %cst_116 = arith.constant 9.99999993E-9 : f32
    %292 = vector.broadcast %cst_116 : f32 to vector<8x20xf32>
    %293 = arith.maximumf %291, %292 : vector<8x20xf32>
    %294 = arith.divf %285, %293 : vector<8x20xf32>
    %295 = arith.mulf %7, %217 : vector<8x32xf32>
    "tpu.trace_start"() <{level = 10 : i32, message = "th,lh->tl"}> : () -> ()
    %cst_117 = arith.constant dense<0.000000e+00> : vector<8x20xf32>
    %296 = tpu.matmul %295, %23, %cst_117 {dimension_numbers = #tpu.dot_dimension_numbers<[1], [1], [0], [0], [0, 0, 1, 0], [], []>} : vector<8x32xf32>, vector<20x32xf32>, vector<8x20xf32> -> vector<8x20xf32>
    "tpu.trace_stop"() : () -> ()
    %297 = arith.mulf %7, %7 : vector<8x32xf32>
    "tpu.trace_start"() <{level = 10 : i32, message = "th,lh->tl"}> : () -> ()
    %cst_118 = arith.constant dense<0.000000e+00> : vector<8x20xf32>
    %298 = tpu.matmul %297, %23, %cst_118 {dimension_numbers = #tpu.dot_dimension_numbers<[1], [1], [0], [0], [0, 0, 1, 0], [], []>} : vector<8x32xf32>, vector<20x32xf32>, vector<8x20xf32> -> vector<8x20xf32>
    "tpu.trace_stop"() : () -> ()
    %299 = arith.mulf %217, %217 : vector<8x32xf32>
    "tpu.trace_start"() <{level = 10 : i32, message = "th,lh->tl"}> : () -> ()
    %cst_119 = arith.constant dense<0.000000e+00> : vector<8x20xf32>
    %300 = tpu.matmul %299, %23, %cst_119 {dimension_numbers = #tpu.dot_dimension_numbers<[1], [1], [0], [0], [0, 0, 1, 0], [], []>} : vector<8x32xf32>, vector<20x32xf32>, vector<8x20xf32> -> vector<8x20xf32>
    "tpu.trace_stop"() : () -> ()
    %301 = arith.mulf %298, %300 : vector<8x20xf32>
    %302 = math.sqrt %301 : vector<8x20xf32>
    %cst_120 = arith.constant 9.99999993E-9 : f32
    %303 = vector.broadcast %cst_120 : f32 to vector<8x20xf32>
    %304 = arith.maximumf %302, %303 : vector<8x20xf32>
    %305 = arith.divf %296, %304 : vector<8x20xf32>
    %306 = tpu.concatenate %37, %102, %228, %272, %51, %126, %239, %283 in 1 : vector<8x20xf32>, vector<8x20xf32>, vector<8x20xf32>, vector<8x20xf32>, vector<8x20xf32>, vector<8x20xf32>, vector<8x20xf32>, vector<8x20xf32> -> vector<8x160xf32>
    %c0_121 = arith.constant 0 : index
    %c0_122 = arith.constant 0 : index
    %c0_123 = arith.constant 0 : index
    %307 = vector.load %arg6[%c0_121, %c0_122, %c0_123] : memref<1x8x160xf32, #tpu.memory_space<vmem>>, vector<1x8x160xf32>
    %308 = vector.shape_cast %307 : vector<1x8x160xf32> to vector<8x160xf32>
    %309 = vector.shape_cast %306 : vector<8x160xf32> to vector<1x8x160xf32>
    tpu.vector_store %arg6[%c0_121, %c0_122, %c0_123], %309 {strides = array<i32>} : memref<1x8x160xf32, #tpu.memory_space<vmem>>, vector<1x8x160xf32>,
    %310 = tpu.concatenate %65, %103, %250, %294, %79, %127, %261, %305 in 1 : vector<8x20xf32>, vector<8x20xf32>, vector<8x20xf32>, vector<8x20xf32>, vector<8x20xf32>, vector<8x20xf32>, vector<8x20xf32>, vector<8x20xf32> -> vector<8x160xf32>
    %c0_124 = arith.constant 0 : index
    %c0_125 = arith.constant 0 : index
    %c0_126 = arith.constant 0 : index
    %311 = vector.load %arg7[%c0_124, %c0_125, %c0_126] : memref<1x8x160xf32, #tpu.memory_space<vmem>>, vector<1x8x160xf32>
    %312 = vector.shape_cast %311 : vector<1x8x160xf32> to vector<8x160xf32>
    %313 = vector.shape_cast %310 : vector<8x160xf32> to vector<1x8x160xf32>
    tpu.vector_store %arg7[%c0_124, %c0_125, %c0_126], %313 {strides = array<i32>} : memref<1x8x160xf32, #tpu.memory_space<vmem>>, vector<1x8x160xf32>,
    return
  }
  func.func @transform_0(%arg0: i32) -> (i32, i32, i32) {
    %c0_i32 = arith.constant 0 : i32
    %c0_i32_0 = arith.constant 0 : i32
    %c0_i32_1 = arith.constant 0 : i32
    return %arg0, %c0_i32, %c0_i32_0 : i32, i32, i32
  }
  func.func @transform_1(%arg0: i32) -> (i32, i32, i32) {
    %c0_i32 = arith.constant 0 : i32
    %c0_i32_0 = arith.constant 0 : i32
    %c0_i32_1 = arith.constant 0 : i32
    return %arg0, %c0_i32, %c0_i32_0 : i32, i32, i32
  }
  func.func @transform_2(%arg0: i32) -> (i32, i32, i32) {
    %c0_i32 = arith.constant 0 : i32
    %c0_i32_0 = arith.constant 0 : i32
    %c0_i32_1 = arith.constant 0 : i32
    return %arg0, %c0_i32, %c0_i32_0 : i32, i32, i32
  }
  func.func @transform_3(%arg0: i32) -> (i32, i32, i32) {
    %c0_i32 = arith.constant 0 : i32
    %c0_i32_0 = arith.constant 0 : i32
    %c0_i32_1 = arith.constant 0 : i32
    return %arg0, %c0_i32, %c0_i32_0 : i32, i32, i32
  }
  func.func @transform_4(%arg0: i32) -> (i32, i32, i32) {
    %c0_i32 = arith.constant 0 : i32
    %c0_i32_0 = arith.constant 0 : i32
    %c0_i32_1 = arith.constant 0 : i32
    %c0_i32_2 = arith.constant 0 : i32
    return %c0_i32, %c0_i32_0, %c0_i32_1 : i32, i32, i32
  }
  func.func @transform_5(%arg0: i32) -> (i32, i32, i32) {
    %c0_i32 = arith.constant 0 : i32
    %c0_i32_0 = arith.constant 0 : i32
    %c0_i32_1 = arith.constant 0 : i32
    return %arg0, %c0_i32, %c0_i32_0 : i32, i32, i32
  }
  func.func @transform_6(%arg0: i32) -> (i32, i32, i32) {
    %c0_i32 = arith.constant 0 : i32
    %c0_i32_0 = arith.constant 0 : i32
    %c0_i32_1 = arith.constant 0 : i32
    return %arg0, %c0_i32, %c0_i32_0 : i32, i32, i32
  }
}

module attributes {stable_mosaic.version = 11 : i64} {
  func.func @_matmul_bias_kernel(%arg0: memref<32x160xf32, #tpu.memory_space<vmem>>, %arg1: memref<160x256xf32, #tpu.memory_space<vmem>>, %arg2: memref<1x256xf32, #tpu.memory_space<vmem>>, %arg3: memref<32x256xf32, #tpu.memory_space<vmem>>) attributes {dimension_semantics = [], scalar_prefetch = 0 : i64, scratch_operands = 0 : i64, tpu.core_type = #tpu.core_type<tc>} {
    %c0 = arith.constant 0 : index
    %c0_0 = arith.constant 0 : index
    %0 = vector.load %arg0[%c0, %c0_0] : memref<32x160xf32, #tpu.memory_space<vmem>>, vector<32x160xf32>
    %c0_1 = arith.constant 0 : index
    %c0_2 = arith.constant 0 : index
    %1 = vector.load %arg1[%c0_1, %c0_2] : memref<160x256xf32, #tpu.memory_space<vmem>>, vector<160x256xf32>
    %cst = arith.constant dense<0.000000e+00> : vector<32x256xf32>
    %2 = tpu.matmul %0, %1, %cst {dimension_numbers = #tpu.dot_dimension_numbers<[1], [0], [0], [1], [0, 0, 1, 1], [], []>} : vector<32x160xf32>, vector<160x256xf32>, vector<32x256xf32> -> vector<32x256xf32>
    %c0_3 = arith.constant 0 : index
    %c0_4 = arith.constant 0 : index
    %3 = vector.load %arg2[%c0_3, %c0_4] : memref<1x256xf32, #tpu.memory_space<vmem>>, vector<1x256xf32>
    %4 = vector.broadcast %3 : vector<1x256xf32> to vector<32x256xf32>
    %5 = arith.addf %2, %4 : vector<32x256xf32>
    %c0_5 = arith.constant 0 : index
    %c0_6 = arith.constant 0 : index
    %6 = vector.load %arg3[%c0_5, %c0_6] : memref<32x256xf32, #tpu.memory_space<vmem>>, vector<32x256xf32>
    tpu.vector_store %arg3[%c0_5, %c0_6], %5 {strides = array<i32>} : memref<32x256xf32, #tpu.memory_space<vmem>>, vector<32x256xf32>,
    return
  }
}

module attributes {stable_mosaic.version = 11 : i64} {
  func.func @_agg_pred_kernel(%arg0: memref<8x8x128xf32, #tpu.memory_space<vmem>>, %arg1: memref<32x256xf32, #tpu.memory_space<vmem>>, %arg2: memref<128x64xf32, #tpu.memory_space<vmem>>, %arg3: memref<1x64xf32, #tpu.memory_space<vmem>>, %arg4: memref<64x2xf32, #tpu.memory_space<vmem>>, %arg5: memref<1x2xf32, #tpu.memory_space<vmem>>, %arg6: memref<2x2xf32, #tpu.memory_space<vmem>>, %arg7: memref<2x2xf32, #tpu.memory_space<vmem>>) attributes {dimension_semantics = [], scalar_prefetch = 0 : i64, scratch_operands = 0 : i64, tpu.core_type = #tpu.core_type<tc>} {
    %0 = tpu.iota {dimensions = array<i32: 0>} : vector<8x128xi32>
    %c4_i32 = arith.constant 4 : i32
    %1 = vector.broadcast %c4_i32 : i32 to vector<8x128xi32>
    %2 = arith.cmpi slt, %0, %1 : vector<8x128xi32>
    %cst = arith.constant 0.000000e+00 : f32
    %3 = vector.broadcast %cst : f32 to vector<8x32xf32>
    %c0_i32 = arith.constant 0 : i32
    %c0 = arith.constant 0 : index
    %c0_0 = arith.constant 0 : index
    %4 = vector.load %arg1[%c0, %c0_0] : memref<32x256xf32, #tpu.memory_space<vmem>>, vector<32x256xf32>
    %cst_1 = arith.constant dense<0.000000e+00> : vector<8x256xf32>
    %5 = tpu.matmul %3, %4, %cst_1 {dimension_numbers = #tpu.dot_dimension_numbers<[1], [0], [0], [1], [0, 0, 1, 1], [], []>} : vector<8x32xf32>, vector<32x256xf32>, vector<8x256xf32> -> vector<8x256xf32>
    %6 = vector.extract_strided_slice %5 {offsets = [0, 0], sizes = [8, 128], strides = [1, 1]} : vector<8x256xf32> to vector<8x128xf32>
    %7 = vector.extract_strided_slice %5 {offsets = [0, 128], sizes = [8, 128], strides = [1, 1]} : vector<8x256xf32> to vector<8x128xf32>
    %8 = arith.select %2, %6, %7 : vector<8x128xi1>, vector<8x128xf32>
    %9 = arith.index_cast %c0_i32 : i32 to index
    %c0_2 = arith.constant 0 : index
    %c0_3 = arith.constant 0 : index
    %10 = vector.load %arg0[%9, %c0_2, %c0_3] : memref<8x8x128xf32, #tpu.memory_space<vmem>>, vector<1x8x128xf32>
    %11 = vector.shape_cast %10 : vector<1x8x128xf32> to vector<8x128xf32>
    %12 = arith.addf %11, %8 : vector<8x128xf32>
    %13 = vector.extract_strided_slice %12 {offsets = [0, 0], sizes = [8, 32], strides = [1, 1]} : vector<8x128xf32> to vector<8x32xf32>
    %14 = arith.negf %13 : vector<8x32xf32>
    %15 = math.exp %14 : vector<8x32xf32>
    %cst_4 = arith.constant 1.000000e+00 : f32
    %16 = vector.broadcast %cst_4 : f32 to vector<8x32xf32>
    %17 = arith.addf %16, %15 : vector<8x32xf32>
    %18 = arith.divf %16, %17 : vector<8x32xf32>
    %19 = vector.extract_strided_slice %12 {offsets = [0, 32], sizes = [8, 32], strides = [1, 1]} : vector<8x128xf32> to vector<8x32xf32>
    %20 = arith.negf %19 : vector<8x32xf32>
    %21 = math.exp %20 : vector<8x32xf32>
    %cst_5 = arith.constant 1.000000e+00 : f32
    %22 = vector.broadcast %cst_5 : f32 to vector<8x32xf32>
    %23 = arith.addf %22, %21 : vector<8x32xf32>
    %24 = arith.divf %22, %23 : vector<8x32xf32>
    %25 = vector.extract_strided_slice %12 {offsets = [0, 64], sizes = [8, 32], strides = [1, 1]} : vector<8x128xf32> to vector<8x32xf32>
    %26 = math.tanh %25 : vector<8x32xf32>
    %27 = vector.extract_strided_slice %12 {offsets = [0, 96], sizes = [8, 32], strides = [1, 1]} : vector<8x128xf32> to vector<8x32xf32>
    %28 = arith.negf %27 : vector<8x32xf32>
    %29 = math.exp %28 : vector<8x32xf32>
    %cst_6 = arith.constant 1.000000e+00 : f32
    %30 = vector.broadcast %cst_6 : f32 to vector<8x32xf32>
    %31 = arith.addf %30, %29 : vector<8x32xf32>
    %32 = arith.divf %30, %31 : vector<8x32xf32>
    %33 = arith.mulf %24, %3 : vector<8x32xf32>
    %34 = arith.mulf %18, %26 : vector<8x32xf32>
    %35 = arith.addf %33, %34 : vector<8x32xf32>
    %36 = math.tanh %35 : vector<8x32xf32>
    %37 = arith.mulf %32, %36 : vector<8x32xf32>
    %c1_i32 = arith.constant 1 : i32
    %c0_7 = arith.constant 0 : index
    %c0_8 = arith.constant 0 : index
    %38 = vector.load %arg1[%c0_7, %c0_8] : memref<32x256xf32, #tpu.memory_space<vmem>>, vector<32x256xf32>
    %cst_9 = arith.constant dense<0.000000e+00> : vector<8x256xf32>
    %39 = tpu.matmul %37, %38, %cst_9 {dimension_numbers = #tpu.dot_dimension_numbers<[1], [0], [0], [1], [0, 0, 1, 1], [], []>} : vector<8x32xf32>, vector<32x256xf32>, vector<8x256xf32> -> vector<8x256xf32>
    %40 = vector.extract_strided_slice %39 {offsets = [0, 0], sizes = [8, 128], strides = [1, 1]} : vector<8x256xf32> to vector<8x128xf32>
    %41 = vector.extract_strided_slice %39 {offsets = [0, 128], sizes = [8, 128], strides = [1, 1]} : vector<8x256xf32> to vector<8x128xf32>
    %42 = arith.select %2, %40, %41 : vector<8x128xi1>, vector<8x128xf32>
    %43 = arith.index_cast %c1_i32 : i32 to index
    %c0_10 = arith.constant 0 : index
    %c0_11 = arith.constant 0 : index
    %44 = vector.load %arg0[%43, %c0_10, %c0_11] : memref<8x8x128xf32, #tpu.memory_space<vmem>>, vector<1x8x128xf32>
    %45 = vector.shape_cast %44 : vector<1x8x128xf32> to vector<8x128xf32>
    %46 = arith.addf %45, %42 : vector<8x128xf32>
    %47 = vector.extract_strided_slice %46 {offsets = [0, 0], sizes = [8, 32], strides = [1, 1]} : vector<8x128xf32> to vector<8x32xf32>
    %48 = arith.negf %47 : vector<8x32xf32>
    %49 = math.exp %48 : vector<8x32xf32>
    %cst_12 = arith.constant 1.000000e+00 : f32
    %50 = vector.broadcast %cst_12 : f32 to vector<8x32xf32>
    %51 = arith.addf %50, %49 : vector<8x32xf32>
    %52 = arith.divf %50, %51 : vector<8x32xf32>
    %53 = vector.extract_strided_slice %46 {offsets = [0, 32], sizes = [8, 32], strides = [1, 1]} : vector<8x128xf32> to vector<8x32xf32>
    %54 = arith.negf %53 : vector<8x32xf32>
    %55 = math.exp %54 : vector<8x32xf32>
    %cst_13 = arith.constant 1.000000e+00 : f32
    %56 = vector.broadcast %cst_13 : f32 to vector<8x32xf32>
    %57 = arith.addf %56, %55 : vector<8x32xf32>
    %58 = arith.divf %56, %57 : vector<8x32xf32>
    %59 = vector.extract_strided_slice %46 {offsets = [0, 64], sizes = [8, 32], strides = [1, 1]} : vector<8x128xf32> to vector<8x32xf32>
    %60 = math.tanh %59 : vector<8x32xf32>
    %61 = vector.extract_strided_slice %46 {offsets = [0, 96], sizes = [8, 32], strides = [1, 1]} : vector<8x128xf32> to vector<8x32xf32>
    %62 = arith.negf %61 : vector<8x32xf32>
    %63 = math.exp %62 : vector<8x32xf32>
    %cst_14 = arith.constant 1.000000e+00 : f32
    %64 = vector.broadcast %cst_14 : f32 to vector<8x32xf32>
    %65 = arith.addf %64, %63 : vector<8x32xf32>
    %66 = arith.divf %64, %65 : vector<8x32xf32>
    %67 = arith.mulf %58, %35 : vector<8x32xf32>
    %68 = arith.mulf %52, %60 : vector<8x32xf32>
    %69 = arith.addf %67, %68 : vector<8x32xf32>
    %70 = math.tanh %69 : vector<8x32xf32>
    %71 = arith.mulf %66, %70 : vector<8x32xf32>
    %c2_i32 = arith.constant 2 : i32
    %c0_15 = arith.constant 0 : index
    %c0_16 = arith.constant 0 : index
    %72 = vector.load %arg1[%c0_15, %c0_16] : memref<32x256xf32, #tpu.memory_space<vmem>>, vector<32x256xf32>
    %cst_17 = arith.constant dense<0.000000e+00> : vector<8x256xf32>
    %73 = tpu.matmul %71, %72, %cst_17 {dimension_numbers = #tpu.dot_dimension_numbers<[1], [0], [0], [1], [0, 0, 1, 1], [], []>} : vector<8x32xf32>, vector<32x256xf32>, vector<8x256xf32> -> vector<8x256xf32>
    %74 = vector.extract_strided_slice %73 {offsets = [0, 0], sizes = [8, 128], strides = [1, 1]} : vector<8x256xf32> to vector<8x128xf32>
    %75 = vector.extract_strided_slice %73 {offsets = [0, 128], sizes = [8, 128], strides = [1, 1]} : vector<8x256xf32> to vector<8x128xf32>
    %76 = arith.select %2, %74, %75 : vector<8x128xi1>, vector<8x128xf32>
    %77 = arith.index_cast %c2_i32 : i32 to index
    %c0_18 = arith.constant 0 : index
    %c0_19 = arith.constant 0 : index
    %78 = vector.load %arg0[%77, %c0_18, %c0_19] : memref<8x8x128xf32, #tpu.memory_space<vmem>>, vector<1x8x128xf32>
    %79 = vector.shape_cast %78 : vector<1x8x128xf32> to vector<8x128xf32>
    %80 = arith.addf %79, %76 : vector<8x128xf32>
    %81 = vector.extract_strided_slice %80 {offsets = [0, 0], sizes = [8, 32], strides = [1, 1]} : vector<8x128xf32> to vector<8x32xf32>
    %82 = arith.negf %81 : vector<8x32xf32>
    %83 = math.exp %82 : vector<8x32xf32>
    %cst_20 = arith.constant 1.000000e+00 : f32
    %84 = vector.broadcast %cst_20 : f32 to vector<8x32xf32>
    %85 = arith.addf %84, %83 : vector<8x32xf32>
    %86 = arith.divf %84, %85 : vector<8x32xf32>
    %87 = vector.extract_strided_slice %80 {offsets = [0, 32], sizes = [8, 32], strides = [1, 1]} : vector<8x128xf32> to vector<8x32xf32>
    %88 = arith.negf %87 : vector<8x32xf32>
    %89 = math.exp %88 : vector<8x32xf32>
    %cst_21 = arith.constant 1.000000e+00 : f32
    %90 = vector.broadcast %cst_21 : f32 to vector<8x32xf32>
    %91 = arith.addf %90, %89 : vector<8x32xf32>
    %92 = arith.divf %90, %91 : vector<8x32xf32>
    %93 = vector.extract_strided_slice %80 {offsets = [0, 64], sizes = [8, 32], strides = [1, 1]} : vector<8x128xf32> to vector<8x32xf32>
    %94 = math.tanh %93 : vector<8x32xf32>
    %95 = vector.extract_strided_slice %80 {offsets = [0, 96], sizes = [8, 32], strides = [1, 1]} : vector<8x128xf32> to vector<8x32xf32>
    %96 = arith.negf %95 : vector<8x32xf32>
    %97 = math.exp %96 : vector<8x32xf32>
    %cst_22 = arith.constant 1.000000e+00 : f32
    %98 = vector.broadcast %cst_22 : f32 to vector<8x32xf32>
    %99 = arith.addf %98, %97 : vector<8x32xf32>
    %100 = arith.divf %98, %99 : vector<8x32xf32>
    %101 = arith.mulf %92, %69 : vector<8x32xf32>
    %102 = arith.mulf %86, %94 : vector<8x32xf32>
    %103 = arith.addf %101, %102 : vector<8x32xf32>
    %104 = math.tanh %103 : vector<8x32xf32>
    %105 = arith.mulf %100, %104 : vector<8x32xf32>
    %c3_i32 = arith.constant 3 : i32
    %c0_23 = arith.constant 0 : index
    %c0_24 = arith.constant 0 : index
    %106 = vector.load %arg1[%c0_23, %c0_24] : memref<32x256xf32, #tpu.memory_space<vmem>>, vector<32x256xf32>
    %cst_25 = arith.constant dense<0.000000e+00> : vector<8x256xf32>
    %107 = tpu.matmul %105, %106, %cst_25 {dimension_numbers = #tpu.dot_dimension_numbers<[1], [0], [0], [1], [0, 0, 1, 1], [], []>} : vector<8x32xf32>, vector<32x256xf32>, vector<8x256xf32> -> vector<8x256xf32>
    %108 = vector.extract_strided_slice %107 {offsets = [0, 0], sizes = [8, 128], strides = [1, 1]} : vector<8x256xf32> to vector<8x128xf32>
    %109 = vector.extract_strided_slice %107 {offsets = [0, 128], sizes = [8, 128], strides = [1, 1]} : vector<8x256xf32> to vector<8x128xf32>
    %110 = arith.select %2, %108, %109 : vector<8x128xi1>, vector<8x128xf32>
    %111 = arith.index_cast %c3_i32 : i32 to index
    %c0_26 = arith.constant 0 : index
    %c0_27 = arith.constant 0 : index
    %112 = vector.load %arg0[%111, %c0_26, %c0_27] : memref<8x8x128xf32, #tpu.memory_space<vmem>>, vector<1x8x128xf32>
    %113 = vector.shape_cast %112 : vector<1x8x128xf32> to vector<8x128xf32>
    %114 = arith.addf %113, %110 : vector<8x128xf32>
    %115 = vector.extract_strided_slice %114 {offsets = [0, 0], sizes = [8, 32], strides = [1, 1]} : vector<8x128xf32> to vector<8x32xf32>
    %116 = arith.negf %115 : vector<8x32xf32>
    %117 = math.exp %116 : vector<8x32xf32>
    %cst_28 = arith.constant 1.000000e+00 : f32
    %118 = vector.broadcast %cst_28 : f32 to vector<8x32xf32>
    %119 = arith.addf %118, %117 : vector<8x32xf32>
    %120 = arith.divf %118, %119 : vector<8x32xf32>
    %121 = vector.extract_strided_slice %114 {offsets = [0, 32], sizes = [8, 32], strides = [1, 1]} : vector<8x128xf32> to vector<8x32xf32>
    %122 = arith.negf %121 : vector<8x32xf32>
    %123 = math.exp %122 : vector<8x32xf32>
    %cst_29 = arith.constant 1.000000e+00 : f32
    %124 = vector.broadcast %cst_29 : f32 to vector<8x32xf32>
    %125 = arith.addf %124, %123 : vector<8x32xf32>
    %126 = arith.divf %124, %125 : vector<8x32xf32>
    %127 = vector.extract_strided_slice %114 {offsets = [0, 64], sizes = [8, 32], strides = [1, 1]} : vector<8x128xf32> to vector<8x32xf32>
    %128 = math.tanh %127 : vector<8x32xf32>
    %129 = vector.extract_strided_slice %114 {offsets = [0, 96], sizes = [8, 32], strides = [1, 1]} : vector<8x128xf32> to vector<8x32xf32>
    %130 = arith.negf %129 : vector<8x32xf32>
    %131 = math.exp %130 : vector<8x32xf32>
    %cst_30 = arith.constant 1.000000e+00 : f32
    %132 = vector.broadcast %cst_30 : f32 to vector<8x32xf32>
    %133 = arith.addf %132, %131 : vector<8x32xf32>
    %134 = arith.divf %132, %133 : vector<8x32xf32>
    %135 = arith.mulf %126, %103 : vector<8x32xf32>
    %136 = arith.mulf %120, %128 : vector<8x32xf32>
    %137 = arith.addf %135, %136 : vector<8x32xf32>
    %138 = math.tanh %137 : vector<8x32xf32>
    %139 = arith.mulf %134, %138 : vector<8x32xf32>
    %c4_i32_31 = arith.constant 4 : i32
    %c0_32 = arith.constant 0 : index
    %c0_33 = arith.constant 0 : index
    %140 = vector.load %arg1[%c0_32, %c0_33] : memref<32x256xf32, #tpu.memory_space<vmem>>, vector<32x256xf32>
    %cst_34 = arith.constant dense<0.000000e+00> : vector<8x256xf32>
    %141 = tpu.matmul %139, %140, %cst_34 {dimension_numbers = #tpu.dot_dimension_numbers<[1], [0], [0], [1], [0, 0, 1, 1], [], []>} : vector<8x32xf32>, vector<32x256xf32>, vector<8x256xf32> -> vector<8x256xf32>
    %142 = vector.extract_strided_slice %141 {offsets = [0, 0], sizes = [8, 128], strides = [1, 1]} : vector<8x256xf32> to vector<8x128xf32>
    %143 = vector.extract_strided_slice %141 {offsets = [0, 128], sizes = [8, 128], strides = [1, 1]} : vector<8x256xf32> to vector<8x128xf32>
    %144 = arith.select %2, %142, %143 : vector<8x128xi1>, vector<8x128xf32>
    %145 = arith.index_cast %c4_i32_31 : i32 to index
    %c0_35 = arith.constant 0 : index
    %c0_36 = arith.constant 0 : index
    %146 = vector.load %arg0[%145, %c0_35, %c0_36] : memref<8x8x128xf32, #tpu.memory_space<vmem>>, vector<1x8x128xf32>
    %147 = vector.shape_cast %146 : vector<1x8x128xf32> to vector<8x128xf32>
    %148 = arith.addf %147, %144 : vector<8x128xf32>
    %149 = vector.extract_strided_slice %148 {offsets = [0, 0], sizes = [8, 32], strides = [1, 1]} : vector<8x128xf32> to vector<8x32xf32>
    %150 = arith.negf %149 : vector<8x32xf32>
    %151 = math.exp %150 : vector<8x32xf32>
    %cst_37 = arith.constant 1.000000e+00 : f32
    %152 = vector.broadcast %cst_37 : f32 to vector<8x32xf32>
    %153 = arith.addf %152, %151 : vector<8x32xf32>
    %154 = arith.divf %152, %153 : vector<8x32xf32>
    %155 = vector.extract_strided_slice %148 {offsets = [0, 32], sizes = [8, 32], strides = [1, 1]} : vector<8x128xf32> to vector<8x32xf32>
    %156 = arith.negf %155 : vector<8x32xf32>
    %157 = math.exp %156 : vector<8x32xf32>
    %cst_38 = arith.constant 1.000000e+00 : f32
    %158 = vector.broadcast %cst_38 : f32 to vector<8x32xf32>
    %159 = arith.addf %158, %157 : vector<8x32xf32>
    %160 = arith.divf %158, %159 : vector<8x32xf32>
    %161 = vector.extract_strided_slice %148 {offsets = [0, 64], sizes = [8, 32], strides = [1, 1]} : vector<8x128xf32> to vector<8x32xf32>
    %162 = math.tanh %161 : vector<8x32xf32>
    %163 = vector.extract_strided_slice %148 {offsets = [0, 96], sizes = [8, 32], strides = [1, 1]} : vector<8x128xf32> to vector<8x32xf32>
    %164 = arith.negf %163 : vector<8x32xf32>
    %165 = math.exp %164 : vector<8x32xf32>
    %cst_39 = arith.constant 1.000000e+00 : f32
    %166 = vector.broadcast %cst_39 : f32 to vector<8x32xf32>
    %167 = arith.addf %166, %165 : vector<8x32xf32>
    %168 = arith.divf %166, %167 : vector<8x32xf32>
    %169 = arith.mulf %160, %137 : vector<8x32xf32>
    %170 = arith.mulf %154, %162 : vector<8x32xf32>
    %171 = arith.addf %169, %170 : vector<8x32xf32>
    %172 = math.tanh %171 : vector<8x32xf32>
    %173 = arith.mulf %168, %172 : vector<8x32xf32>
    %c5_i32 = arith.constant 5 : i32
    %c0_40 = arith.constant 0 : index
    %c0_41 = arith.constant 0 : index
    %174 = vector.load %arg1[%c0_40, %c0_41] : memref<32x256xf32, #tpu.memory_space<vmem>>, vector<32x256xf32>
    %cst_42 = arith.constant dense<0.000000e+00> : vector<8x256xf32>
    %175 = tpu.matmul %173, %174, %cst_42 {dimension_numbers = #tpu.dot_dimension_numbers<[1], [0], [0], [1], [0, 0, 1, 1], [], []>} : vector<8x32xf32>, vector<32x256xf32>, vector<8x256xf32> -> vector<8x256xf32>
    %176 = vector.extract_strided_slice %175 {offsets = [0, 0], sizes = [8, 128], strides = [1, 1]} : vector<8x256xf32> to vector<8x128xf32>
    %177 = vector.extract_strided_slice %175 {offsets = [0, 128], sizes = [8, 128], strides = [1, 1]} : vector<8x256xf32> to vector<8x128xf32>
    %178 = arith.select %2, %176, %177 : vector<8x128xi1>, vector<8x128xf32>
    %179 = arith.index_cast %c5_i32 : i32 to index
    %c0_43 = arith.constant 0 : index
    %c0_44 = arith.constant 0 : index
    %180 = vector.load %arg0[%179, %c0_43, %c0_44] : memref<8x8x128xf32, #tpu.memory_space<vmem>>, vector<1x8x128xf32>
    %181 = vector.shape_cast %180 : vector<1x8x128xf32> to vector<8x128xf32>
    %182 = arith.addf %181, %178 : vector<8x128xf32>
    %183 = vector.extract_strided_slice %182 {offsets = [0, 0], sizes = [8, 32], strides = [1, 1]} : vector<8x128xf32> to vector<8x32xf32>
    %184 = arith.negf %183 : vector<8x32xf32>
    %185 = math.exp %184 : vector<8x32xf32>
    %cst_45 = arith.constant 1.000000e+00 : f32
    %186 = vector.broadcast %cst_45 : f32 to vector<8x32xf32>
    %187 = arith.addf %186, %185 : vector<8x32xf32>
    %188 = arith.divf %186, %187 : vector<8x32xf32>
    %189 = vector.extract_strided_slice %182 {offsets = [0, 32], sizes = [8, 32], strides = [1, 1]} : vector<8x128xf32> to vector<8x32xf32>
    %190 = arith.negf %189 : vector<8x32xf32>
    %191 = math.exp %190 : vector<8x32xf32>
    %cst_46 = arith.constant 1.000000e+00 : f32
    %192 = vector.broadcast %cst_46 : f32 to vector<8x32xf32>
    %193 = arith.addf %192, %191 : vector<8x32xf32>
    %194 = arith.divf %192, %193 : vector<8x32xf32>
    %195 = vector.extract_strided_slice %182 {offsets = [0, 64], sizes = [8, 32], strides = [1, 1]} : vector<8x128xf32> to vector<8x32xf32>
    %196 = math.tanh %195 : vector<8x32xf32>
    %197 = vector.extract_strided_slice %182 {offsets = [0, 96], sizes = [8, 32], strides = [1, 1]} : vector<8x128xf32> to vector<8x32xf32>
    %198 = arith.negf %197 : vector<8x32xf32>
    %199 = math.exp %198 : vector<8x32xf32>
    %cst_47 = arith.constant 1.000000e+00 : f32
    %200 = vector.broadcast %cst_47 : f32 to vector<8x32xf32>
    %201 = arith.addf %200, %199 : vector<8x32xf32>
    %202 = arith.divf %200, %201 : vector<8x32xf32>
    %203 = arith.mulf %194, %171 : vector<8x32xf32>
    %204 = arith.mulf %188, %196 : vector<8x32xf32>
    %205 = arith.addf %203, %204 : vector<8x32xf32>
    %206 = math.tanh %205 : vector<8x32xf32>
    %207 = arith.mulf %202, %206 : vector<8x32xf32>
    %c6_i32 = arith.constant 6 : i32
    %c0_48 = arith.constant 0 : index
    %c0_49 = arith.constant 0 : index
    %208 = vector.load %arg1[%c0_48, %c0_49] : memref<32x256xf32, #tpu.memory_space<vmem>>, vector<32x256xf32>
    %cst_50 = arith.constant dense<0.000000e+00> : vector<8x256xf32>
    %209 = tpu.matmul %207, %208, %cst_50 {dimension_numbers = #tpu.dot_dimension_numbers<[1], [0], [0], [1], [0, 0, 1, 1], [], []>} : vector<8x32xf32>, vector<32x256xf32>, vector<8x256xf32> -> vector<8x256xf32>
    %210 = vector.extract_strided_slice %209 {offsets = [0, 0], sizes = [8, 128], strides = [1, 1]} : vector<8x256xf32> to vector<8x128xf32>
    %211 = vector.extract_strided_slice %209 {offsets = [0, 128], sizes = [8, 128], strides = [1, 1]} : vector<8x256xf32> to vector<8x128xf32>
    %212 = arith.select %2, %210, %211 : vector<8x128xi1>, vector<8x128xf32>
    %213 = arith.index_cast %c6_i32 : i32 to index
    %c0_51 = arith.constant 0 : index
    %c0_52 = arith.constant 0 : index
    %214 = vector.load %arg0[%213, %c0_51, %c0_52] : memref<8x8x128xf32, #tpu.memory_space<vmem>>, vector<1x8x128xf32>
    %215 = vector.shape_cast %214 : vector<1x8x128xf32> to vector<8x128xf32>
    %216 = arith.addf %215, %212 : vector<8x128xf32>
    %217 = vector.extract_strided_slice %216 {offsets = [0, 0], sizes = [8, 32], strides = [1, 1]} : vector<8x128xf32> to vector<8x32xf32>
    %218 = arith.negf %217 : vector<8x32xf32>
    %219 = math.exp %218 : vector<8x32xf32>
    %cst_53 = arith.constant 1.000000e+00 : f32
    %220 = vector.broadcast %cst_53 : f32 to vector<8x32xf32>
    %221 = arith.addf %220, %219 : vector<8x32xf32>
    %222 = arith.divf %220, %221 : vector<8x32xf32>
    %223 = vector.extract_strided_slice %216 {offsets = [0, 32], sizes = [8, 32], strides = [1, 1]} : vector<8x128xf32> to vector<8x32xf32>
    %224 = arith.negf %223 : vector<8x32xf32>
    %225 = math.exp %224 : vector<8x32xf32>
    %cst_54 = arith.constant 1.000000e+00 : f32
    %226 = vector.broadcast %cst_54 : f32 to vector<8x32xf32>
    %227 = arith.addf %226, %225 : vector<8x32xf32>
    %228 = arith.divf %226, %227 : vector<8x32xf32>
    %229 = vector.extract_strided_slice %216 {offsets = [0, 64], sizes = [8, 32], strides = [1, 1]} : vector<8x128xf32> to vector<8x32xf32>
    %230 = math.tanh %229 : vector<8x32xf32>
    %231 = vector.extract_strided_slice %216 {offsets = [0, 96], sizes = [8, 32], strides = [1, 1]} : vector<8x128xf32> to vector<8x32xf32>
    %232 = arith.negf %231 : vector<8x32xf32>
    %233 = math.exp %232 : vector<8x32xf32>
    %cst_55 = arith.constant 1.000000e+00 : f32
    %234 = vector.broadcast %cst_55 : f32 to vector<8x32xf32>
    %235 = arith.addf %234, %233 : vector<8x32xf32>
    %236 = arith.divf %234, %235 : vector<8x32xf32>
    %237 = arith.mulf %228, %205 : vector<8x32xf32>
    %238 = arith.mulf %222, %230 : vector<8x32xf32>
    %239 = arith.addf %237, %238 : vector<8x32xf32>
    %240 = math.tanh %239 : vector<8x32xf32>
    %241 = arith.mulf %236, %240 : vector<8x32xf32>
    %c7_i32 = arith.constant 7 : i32
    %c0_56 = arith.constant 0 : index
    %c0_57 = arith.constant 0 : index
    %242 = vector.load %arg1[%c0_56, %c0_57] : memref<32x256xf32, #tpu.memory_space<vmem>>, vector<32x256xf32>
    %cst_58 = arith.constant dense<0.000000e+00> : vector<8x256xf32>
    %243 = tpu.matmul %241, %242, %cst_58 {dimension_numbers = #tpu.dot_dimension_numbers<[1], [0], [0], [1], [0, 0, 1, 1], [], []>} : vector<8x32xf32>, vector<32x256xf32>, vector<8x256xf32> -> vector<8x256xf32>
    %244 = vector.extract_strided_slice %243 {offsets = [0, 0], sizes = [8, 128], strides = [1, 1]} : vector<8x256xf32> to vector<8x128xf32>
    %245 = vector.extract_strided_slice %243 {offsets = [0, 128], sizes = [8, 128], strides = [1, 1]} : vector<8x256xf32> to vector<8x128xf32>
    %246 = arith.select %2, %244, %245 : vector<8x128xi1>, vector<8x128xf32>
    %247 = arith.index_cast %c7_i32 : i32 to index
    %c0_59 = arith.constant 0 : index
    %c0_60 = arith.constant 0 : index
    %248 = vector.load %arg0[%247, %c0_59, %c0_60] : memref<8x8x128xf32, #tpu.memory_space<vmem>>, vector<1x8x128xf32>
    %249 = vector.shape_cast %248 : vector<1x8x128xf32> to vector<8x128xf32>
    %250 = arith.addf %249, %246 : vector<8x128xf32>
    %251 = vector.extract_strided_slice %250 {offsets = [0, 0], sizes = [8, 32], strides = [1, 1]} : vector<8x128xf32> to vector<8x32xf32>
    %252 = arith.negf %251 : vector<8x32xf32>
    %253 = math.exp %252 : vector<8x32xf32>
    %cst_61 = arith.constant 1.000000e+00 : f32
    %254 = vector.broadcast %cst_61 : f32 to vector<8x32xf32>
    %255 = arith.addf %254, %253 : vector<8x32xf32>
    %256 = arith.divf %254, %255 : vector<8x32xf32>
    %257 = vector.extract_strided_slice %250 {offsets = [0, 32], sizes = [8, 32], strides = [1, 1]} : vector<8x128xf32> to vector<8x32xf32>
    %258 = arith.negf %257 : vector<8x32xf32>
    %259 = math.exp %258 : vector<8x32xf32>
    %cst_62 = arith.constant 1.000000e+00 : f32
    %260 = vector.broadcast %cst_62 : f32 to vector<8x32xf32>
    %261 = arith.addf %260, %259 : vector<8x32xf32>
    %262 = arith.divf %260, %261 : vector<8x32xf32>
    %263 = vector.extract_strided_slice %250 {offsets = [0, 64], sizes = [8, 32], strides = [1, 1]} : vector<8x128xf32> to vector<8x32xf32>
    %264 = math.tanh %263 : vector<8x32xf32>
    %265 = vector.extract_strided_slice %250 {offsets = [0, 96], sizes = [8, 32], strides = [1, 1]} : vector<8x128xf32> to vector<8x32xf32>
    %266 = arith.negf %265 : vector<8x32xf32>
    %267 = math.exp %266 : vector<8x32xf32>
    %cst_63 = arith.constant 1.000000e+00 : f32
    %268 = vector.broadcast %cst_63 : f32 to vector<8x32xf32>
    %269 = arith.addf %268, %267 : vector<8x32xf32>
    %270 = arith.divf %268, %269 : vector<8x32xf32>
    %271 = arith.mulf %262, %239 : vector<8x32xf32>
    %272 = arith.mulf %256, %264 : vector<8x32xf32>
    %273 = arith.addf %271, %272 : vector<8x32xf32>
    %274 = math.tanh %273 : vector<8x32xf32>
    %275 = arith.mulf %270, %274 : vector<8x32xf32>
    %c8_i32 = arith.constant 8 : i32
    %276 = vector.extract_strided_slice %275 {offsets = [0, 0], sizes = [2, 32], strides = [1, 1]} : vector<8x32xf32> to vector<2x32xf32>
    %277 = vector.extract_strided_slice %275 {offsets = [4, 0], sizes = [2, 32], strides = [1, 1]} : vector<8x32xf32> to vector<2x32xf32>
    %278 = vector.extract_strided_slice %275 {offsets = [2, 0], sizes = [2, 32], strides = [1, 1]} : vector<8x32xf32> to vector<2x32xf32>
    %279 = vector.extract_strided_slice %275 {offsets = [6, 0], sizes = [2, 32], strides = [1, 1]} : vector<8x32xf32> to vector<2x32xf32>
    %280 = tpu.concatenate %276, %277, %278, %279 in 1 : vector<2x32xf32>, vector<2x32xf32>, vector<2x32xf32>, vector<2x32xf32> -> vector<2x128xf32>
    %c0_64 = arith.constant 0 : index
    %c0_65 = arith.constant 0 : index
    %281 = vector.load %arg2[%c0_64, %c0_65] : memref<128x64xf32, #tpu.memory_space<vmem>>, vector<128x64xf32>
    %cst_66 = arith.constant dense<0.000000e+00> : vector<2x64xf32>
    %282 = tpu.matmul %280, %281, %cst_66 {dimension_numbers = #tpu.dot_dimension_numbers<[1], [0], [0], [1], [0, 0, 1, 1], [], []>} : vector<2x128xf32>, vector<128x64xf32>, vector<2x64xf32> -> vector<2x64xf32>
    %c0_67 = arith.constant 0 : index
    %c0_68 = arith.constant 0 : index
    %283 = vector.load %arg3[%c0_67, %c0_68] : memref<1x64xf32, #tpu.memory_space<vmem>>, vector<1x64xf32>
    %284 = vector.broadcast %283 : vector<1x64xf32> to vector<2x64xf32>
    %285 = arith.addf %282, %284 : vector<2x64xf32>
    %286 = math.tanh %285 : vector<2x64xf32>
    %c0_69 = arith.constant 0 : index
    %c0_70 = arith.constant 0 : index
    %287 = vector.load %arg4[%c0_69, %c0_70] : memref<64x2xf32, #tpu.memory_space<vmem>>, vector<64x2xf32>
    %cst_71 = arith.constant dense<0.000000e+00> : vector<2x2xf32>
    %288 = tpu.matmul %286, %287, %cst_71 {dimension_numbers = #tpu.dot_dimension_numbers<[1], [0], [0], [1], [0, 0, 1, 1], [], []>} : vector<2x64xf32>, vector<64x2xf32>, vector<2x2xf32> -> vector<2x2xf32>
    %c0_72 = arith.constant 0 : index
    %c0_73 = arith.constant 0 : index
    %289 = vector.load %arg5[%c0_72, %c0_73] : memref<1x2xf32, #tpu.memory_space<vmem>>, vector<1x2xf32>
    %290 = vector.broadcast %289 : vector<1x2xf32> to vector<2x2xf32>
    %291 = arith.addf %288, %290 : vector<2x2xf32>
    %c0_74 = arith.constant 0 : index
    %c0_75 = arith.constant 0 : index
    %292 = vector.load %arg6[%c0_74, %c0_75] : memref<2x2xf32, #tpu.memory_space<vmem>>, vector<2x2xf32>
    tpu.vector_store %arg6[%c0_74, %c0_75], %291 {strides = array<i32>} : memref<2x2xf32, #tpu.memory_space<vmem>>, vector<2x2xf32>,
    %cst_76 = arith.constant dense<0xFF800000> : vector<2xf32>
    %293 = vector.multi_reduction <maximumf>, %291, %cst_76 [1] : vector<2x2xf32> to vector<2xf32>
    %294 = vector.shape_cast %293 : vector<2xf32> to vector<2x1xf32>
    %295 = vector.broadcast %294 : vector<2x1xf32> to vector<2x2xf32>
    %296 = arith.subf %291, %295 : vector<2x2xf32>
    %297 = math.exp %296 : vector<2x2xf32>
    %cst_77 = arith.constant dense<0.000000e+00> : vector<2xf32>
    %298 = vector.multi_reduction <add>, %297, %cst_77 [1] : vector<2x2xf32> to vector<2xf32>
    %299 = vector.shape_cast %298 : vector<2xf32> to vector<2x1xf32>
    %300 = vector.broadcast %299 : vector<2x1xf32> to vector<2x2xf32>
    %301 = arith.divf %297, %300 : vector<2x2xf32>
    %c0_78 = arith.constant 0 : index
    %c0_79 = arith.constant 0 : index
    %302 = vector.load %arg7[%c0_78, %c0_79] : memref<2x2xf32, #tpu.memory_space<vmem>>, vector<2x2xf32>
    tpu.vector_store %arg7[%c0_78, %c0_79], %301 {strides = array<i32>} : memref<2x2xf32, #tpu.memory_space<vmem>>, vector<2x2xf32>,
    return
  }
}

</mosaic_0001>

<bundles_post_ra>
// kernel: mul.1
= control target key start
LH: loop header
LB: loop body
LE: loop exit
PB: predicated region body
PF: predicated region fallthrough
CT: control target
= control target key end

     0   :  { %s540_s0 = inlined_call_operand.vmem [shape: f32[8,20,32], index: 0, kind: input, shape index: {}, may-alias: {0,1}]   ;;  %s541_s1 = inlined_call_operand.vmem [shape: f32[8,20,32], index: 1, kind: input, shape index: {}, may-alias: {0,1}]   ;;  %s542_s2 = inlined_call_operand.vmem [shape: f32[8,20,32], index: 2, kind: output, shape index: {}]  }
   0x1   :  { %v3_v0 = vld [vmem:[%s540_s0] sm:$0xff]  ;;  %v240_v2 = vld [vmem:[%s540_s0 + $0x18] sm:$0xff]  ;;  %v243_v5 = vld [vmem:[%s540_s0 + $0x30] sm:$0xff] }
   0x2   :  { %v4_v1 = vld [vmem:[%s541_s1] sm:$0xff]  ;;  %v241_v4 = vld [vmem:[%s541_s1 + $0x18] sm:$0xff]  ;;  %v244_v6 = vld [vmem:[%s541_s1 + $0x30] sm:$0xff] }
   0x3   :  { %v7_v3 = vmul.f32 %v4_v1, %v3_v0  ;;  %v16_v7 = vmul.f32 %v241_v4, %v240_v2  ;;  %v26_v8 = vmul.f32 %v244_v6, %v243_v5  ;;  %v246_v9 = vld [vmem:[%s540_s0 + $0x48] sm:$0xff]  ;;  %v249_v11 = vld [vmem:[%s540_s0 + $0x60] sm:$0xff]  ;;  %v252_v14 = vld [vmem:[%s540_s0 + $0x78] sm:$0xff] }
   0x4   :  { %v247_v10 = vld [vmem:[%s541_s1 + $0x48] sm:$0xff]  ;;  %v250_v13 = vld [vmem:[%s541_s1 + $0x60] sm:$0xff]  ;;  %v253_v15 = vld [vmem:[%s541_s1 + $0x78] sm:$0xff] }
   0x5   :  { %9 = vst [vmem:[%s542_s2] sm:$0xff] %v7_v3  ;;  %v36_v12 = vmul.f32 %v247_v10, %v246_v9  ;;  %v46_v16 = vmul.f32 %v250_v13, %v249_v11  ;;  %v56_v17 = vmul.f32 %v253_v15, %v252_v14  ;;  %v255_v18 = vld [vmem:[%s540_s0 + $0x90] sm:$0xff]  ;;  %v258_v20 = vld [vmem:[%s540_s0 + $0xa8] sm:$0xff]  ;;  %v264_v27 = vld [vmem:[%s540_s0 + $0x20] sm:$0xff] }
   0x6   :  { %242 = vst [vmem:[%s542_s2 + $0x18] sm:$0xff] %v16_v7  ;;  %v256_v19 = vld [vmem:[%s541_s1 + $0x90] sm:$0xff]  ;;  %v259_v22 = vld [vmem:[%s541_s1 + $0xa8] sm:$0xff]  ;;  %v265_v28 = vld [vmem:[%s541_s1 + $0x20] sm:$0xff] }
   0x7   :  { %245 = vst [vmem:[%s542_s2 + $0x30] sm:$0xff] %v26_v8  ;;  %v66_v21 = vmul.f32 %v256_v19, %v255_v18  ;;  %v261_v23 = vld [vmem:[%s540_s0 + $0x8] sm:$0xff]  ;;  %v76_v25 = vmul.f32 %v259_v22, %v258_v20  ;;  %v267_v29 = vld [vmem:[%s540_s0 + $0x38] sm:$0xff]  ;;  %v96_v30 = vmul.f32 %v265_v28, %v264_v27  ;;  %v270_v32 = vld [vmem:[%s540_s0 + $0x50] sm:$0xff] }
   0x8   :  { %v262_v24 = vld [vmem:[%s541_s1 + $0x8] sm:$0xff]  ;;  %248 = vst [vmem:[%s542_s2 + $0x48] sm:$0xff] %v36_v12  ;;  %v268_v31 = vld [vmem:[%s541_s1 + $0x38] sm:$0xff]  ;;  %v271_v33 = vld [vmem:[%s541_s1 + $0x50] sm:$0xff] }
   0x9   :  { %v86_v26 = vmul.f32 %v262_v24, %v261_v23  ;;  %251 = vst [vmem:[%s542_s2 + $0x60] sm:$0xff] %v46_v16  ;;  %v106_v34 = vmul.f32 %v268_v31, %v267_v29  ;;  %v116_v35 = vmul.f32 %v271_v33, %v270_v32  ;;  %v273_v36 = vld [vmem:[%s540_s0 + $0x68] sm:$0xff]  ;;  %v276_v38 = vld [vmem:[%s540_s0 + $0x80] sm:$0xff]  ;;  %v279_v41 = vld [vmem:[%s540_s0 + $0x98] sm:$0xff] }
   0xa   :  { %254 = vst [vmem:[%s542_s2 + $0x78] sm:$0xff] %v56_v17  ;;  %v274_v37 = vld [vmem:[%s541_s1 + $0x68] sm:$0xff]  ;;  %v277_v40 = vld [vmem:[%s541_s1 + $0x80] sm:$0xff]  ;;  %v280_v42 = vld [vmem:[%s541_s1 + $0x98] sm:$0xff] }
   0xb   :  { %257 = vst [vmem:[%s542_s2 + $0x90] sm:$0xff] %v66_v21  ;;  %v126_v39 = vmul.f32 %v274_v37, %v273_v36  ;;  %v136_v43 = vmul.f32 %v277_v40, %v276_v38  ;;  %v146_v44 = vmul.f32 %v280_v42, %v279_v41  ;;  %v282_v45 = vld [vmem:[%s540_s0 + $0xb0] sm:$0xff]  ;;  %v288_v50 = vld [vmem:[%s540_s0 + $0x28] sm:$0xff]  ;;  %v291_v54 = vld [vmem:[%s540_s0 + $0x40] sm:$0xff] }
   0xc   :  { %260 = vst [vmem:[%s542_s2 + $0xa8] sm:$0xff] %v76_v25  ;;  %v283_v46 = vld [vmem:[%s541_s1 + $0xb0] sm:$0xff]  ;;  %v289_v51 = vld [vmem:[%s541_s1 + $0x28] sm:$0xff]  ;;  %v292_v55 = vld [vmem:[%s541_s1 + $0x40] sm:$0xff] }
   0xd   :  { %v285_v47 = vld [vmem:[%s540_s0 + $0x10] sm:$0xff]  ;;  %263 = vst [vmem:[%s542_s2 + $0x8] sm:$0xff] %v86_v26  ;;  %v156_v48 = vmul.f32 %v283_v46, %v282_v45  ;;  %v176_v53 = vmul.f32 %v289_v51, %v288_v50  ;;  %v294_v56 = vld [vmem:[%s540_s0 + $0x58] sm:$0xff]  ;;  %v186_v57 = vmul.f32 %v292_v55, %v291_v54  ;;  %v300_v63 = vld [vmem:[%s540_s0 + $0x88] sm:$0xff] }
   0xe   :  { %v286_v49 = vld [vmem:[%s541_s1 + $0x10] sm:$0xff]  ;;  %266 = vst [vmem:[%s542_s2 + $0x20] sm:$0xff] %v96_v30  ;;  %v295_v58 = vld [vmem:[%s541_s1 + $0x58] sm:$0xff]  ;;  %v301_v0 = vld [vmem:[%s541_s1 + $0x88] sm:$0xff] }
   0xf   :  { %v166_v52 = vmul.f32 %v286_v49, %v285_v47  ;;  %269 = vst [vmem:[%s542_s2 + $0x38] sm:$0xff] %v106_v34  ;;  %v297_v59 = vld [vmem:[%s540_s0 + $0x70] sm:$0xff]  ;;  %v196_v61 = vmul.f32 %v295_v58, %v294_v56  ;;  %v303_v1 = vld [vmem:[%s540_s0 + $0xa0] sm:$0xff]  ;;  %v216_v2 = vmul.f32 %v301_v0, %v300_v63  ;;  %v306_v4 = vld [vmem:[%s540_s0 + $0xb8] sm:$0xff] }
  0x10   :  { %v298_v60 = vld [vmem:[%s541_s1 + $0x70] sm:$0xff]  ;;  %272 = vst [vmem:[%s542_s2 + $0x50] sm:$0xff] %v116_v35  ;;  %v304_v3 = vld [vmem:[%s541_s1 + $0xa0] sm:$0xff]  ;;  %v307_v5 = vld [vmem:[%s541_s1 + $0xb8] sm:$0xff] }
  0x11   :  { %v206_v62 = vmul.f32 %v298_v60, %v297_v59  ;;  %275 = vst [vmem:[%s542_s2 + $0x68] sm:$0xff] %v126_v39  ;;  %v226_v6 = vmul.f32 %v304_v3, %v303_v1  ;;  %v236_v7 = vmul.f32 %v307_v5, %v306_v4 }
  0x12   :  { %278 = vst [vmem:[%s542_s2 + $0x80] sm:$0xff] %v136_v43 }
  0x13   :  { %281 = vst [vmem:[%s542_s2 + $0x98] sm:$0xff] %v146_v44 }
  0x14   :  { %284 = vst [vmem:[%s542_s2 + $0xb0] sm:$0xff] %v156_v48 }
  0x15   :  { %287 = vst [vmem:[%s542_s2 + $0x10] sm:$0xff] %v166_v52 }
  0x16   :  { %290 = vst [vmem:[%s542_s2 + $0x28] sm:$0xff] %v176_v53 }
  0x17   :  { %293 = vst [vmem:[%s542_s2 + $0x40] sm:$0xff] %v186_v57 }
  0x18   :  { %296 = vst [vmem:[%s542_s2 + $0x58] sm:$0xff] %v196_v61 }
  0x19   :  { %299 = vst [vmem:[%s542_s2 + $0x70] sm:$0xff] %v206_v62 }
  0x1a   :  { %302 = vst [vmem:[%s542_s2 + $0x88] sm:$0xff] %v216_v2 }
  0x1b   :  { %305 = vst [vmem:[%s542_s2 + $0xa0] sm:$0xff] %v226_v6 }
  0x1c   :  { %308 = vst [vmem:[%s542_s2 + $0xb8] sm:$0xff] %v236_v7 }

// kernel: bimpm_forward.5
= control target key start
LH: loop header
LB: loop body
LE: loop exit
PB: predicated region body
PF: predicated region fallthrough
CT: control target
= control target key end

     0   :  { %vm32_vm0 = vcmask 261120   ;;  %s222_s1 = inlined_call_operand.vmem [shape: f32[32,256], index: 1, kind: input, shape index: {}]   ;;  %s223_s0 = inlined_call_operand.vmem [shape: f32[32,32], index: 0, kind: input, shape index: {}]   ;;  %s224_s2 = inlined_call_operand.vmem [shape: f32[1,256], index: 2, kind: input, shape index: {}]   ;;  %s225_s3 = inlined_call_operand.vmem [shape: f32[32,256], index: 3, kind: output, shape index: {}]  }
   0x1   :  { %v24_v0 = vld [vmem:[%s222_s1 + $0x30] sm:$0xff]  ;;  %v25_v1 = vld [vmem:[%s222_s1 + $0x38] sm:$0xff]  ;;  %v22_v2 = vld [vmem:[%s222_s1 + $0x20] sm:$0xff] }
   0x2   :  { %123 = vmatpush.msra.mxu2 %v24_v0  ;;  %127 = vmatpush.msra.mxu3 %v25_v1  ;;  %v23_v3 = vld [vmem:[%s222_s1 + $0x28] sm:$0xff]  ;;  %v20_v4 = vld [vmem:[%s222_s1 + $0x10] sm:$0xff]  ;;  %v21_v5 = vld [vmem:[%s222_s1 + $0x18] sm:$0xff] }
   0x3   :  { %57 = vmatpush.msra.mxu0 %v24_v0  ;;  %86 = vmatpush.msra.mxu1 %v25_v1  ;;  %v18_v6 = vld [vmem:[%s222_s1] sm:$0xff]  ;;  %v19_v7 = vld [vmem:[%s222_s1 + $0x8] sm:$0xff]  ;;  %v16_v8 = vld [vmem:[%s223_s0 + $0x10] sm:$0xff] }
   0x4   :  { %124 = vmatpush.msra.mxu2 %v22_v2  ;;  %128 = vmatpush.msra.mxu3 %v23_v3  ;;  %v14_v9 = vld [vmem:[%s223_s0] sm:$0xff]  ;;  %v17_v10 = vld [vmem:[%s223_s0 + $0x18] sm:$0xff]  ;;  %v15_v11 = vld [vmem:[%s223_s0 + $0x8] sm:$0xff] }
   0x5   :  { %58 = vmatpush.msra.mxu0 %v22_v2  ;;  %87 = vmatpush.msra.mxu1 %v23_v3  ;;  %v26_v12 = vld [vmem:[%s224_s2] sm:$0x3] }
   0x6   :  { %125 = vmatpush.msra.mxu2 %v20_v4  ;;  %129 = vmatpush.msra.mxu3 %v21_v5  ;;  %v28_v13 = vperm.slane %v26_v12, 0  ;;  %v29_v14 = vperm.slane %v26_v12, 1 }
   0x7   :  { %59 = vmatpush.msra.mxu0 %v20_v4  ;;  %88 = vmatpush.msra.mxu1 %v21_v5 }
   0x8   :  { %126 = vmatpush.msra.mxu2 %v18_v6  ;;  %130 = vmatpush.msra.mxu3 %v19_v7 }
   0x9   :  { %117 = vmatmul.msk.f32.vlgmr.msra.gmra.mxu2 %vm32_vm0, %v16_v8  ;;  %121 = vmatmul.msk.f32.vlgmr.msra.gmra.mxu3 %vm32_vm0, %v16_v8 }
   0xa   :  { %60 = vmatpush.msra.mxu0 %v18_v6  ;;  %89 = vmatpush.msra.mxu1 %v19_v7 }
   0xb   :  { %115 = vmatmul.msk.f32.vlgmr.msra.gmra.mxu0 %vm32_vm0, %v14_v9  ;;  %119 = vmatmul.msk.f32.vlgmr.msra.gmra.mxu1 %vm32_vm0, %v14_v9 }
  0x11   :  { %118 = vmatmul.msk.f32.gmra.mxu2 %vm32_vm0, %v17_v10  ;;  %122 = vmatmul.msk.f32.gmra.mxu3 %vm32_vm0, %v17_v10 }
  0x13   :  { %116 = vmatmul.msk.f32.gmra.mxu0 %vm32_vm0, %v15_v11  ;;  %120 = vmatmul.msk.f32.gmra.mxu1 %vm32_vm0, %v15_v11 }
  0x88   :  { %v62_v15 = vpop.f32.mrf.mxu0  ;;  %v91_v16 = vpop.f32.mrf.mxu1 }
  0x89   :  { %v63_v17 = vadd.f32 %v62_v15, %v28_v13  ;;  %v92_v18 = vadd.f32 %v91_v16, %v29_v14 }
  0x8b   :  { %103 = vst [vmem:[%s225_s3] sm:$0xff] %v63_v17 }
  0x8c   :  { %v68_v19 = vpop.f32.mrf.mxu2  ;;  %104 = vst [vmem:[%s225_s3 + $0x8] sm:$0xff] %v92_v18  ;;  %v97_v20 = vpop.f32.mrf.mxu3 }
  0x8d   :  { %v69_v21 = vadd.f32 %v68_v19, %v28_v13  ;;  %v98_v22 = vadd.f32 %v97_v20, %v29_v14 }
  0x8f   :  { %107 = vst [vmem:[%s225_s3 + $0x20] sm:$0xff] %v69_v21 }
  0x90   :  { %108 = vst [vmem:[%s225_s3 + $0x28] sm:$0xff] %v98_v22  ;;  %v65_v23 = vpop.f32.mrf.mxu0  ;;  %v94_v24 = vpop.f32.mrf.mxu1 }
  0x91   :  { %v66_v25 = vadd.f32 %v65_v23, %v28_v13  ;;  %v95_v26 = vadd.f32 %v94_v24, %v29_v14 }
  0x93   :  { %105 = vst [vmem:[%s225_s3 + $0x10] sm:$0xff] %v66_v25 }
  0x94   :  { %v71_v27 = vpop.f32.mrf.mxu2  ;;  %106 = vst [vmem:[%s225_s3 + $0x18] sm:$0xff] %v95_v26  ;;  %v100_v28 = vpop.f32.mrf.mxu3 }
  0x95   :  { %v72_v29 = vadd.f32 %v71_v27, %v28_v13  ;;  %v101_v30 = vadd.f32 %v100_v28, %v29_v14 }
  0x97   :  { %109 = vst [vmem:[%s225_s3 + $0x30] sm:$0xff] %v72_v29 }
  0x98   :  { %110 = vst [vmem:[%s225_s3 + $0x38] sm:$0xff] %v101_v30 }

// kernel: bimpm_forward.6
= control target key start
LH: loop header
LB: loop body
LE: loop exit
PB: predicated region body
PF: predicated region fallthrough
CT: control target
= control target key end

     0   :  { %v897_v8 = vmov 0.0   ;;  %v11_v9 = vlaneseq  ;;  %s898_s26 = smov 64   ;;  %s899_s27 = smov 32   ;;  %vm22_vm5 = vcmask 261120   ;;  %s1140_s1 = inlined_call_operand.vmem [shape: f32[32,256], index: 1, kind: input, shape index: {}]   ;;  %s1141_s0 = inlined_call_operand.vmem [shape: f32[8,8,128], index: 0, kind: input, shape index: {}]   ;;  %s1142_s2 = inlined_call_operand.vmem [shape: f32[8,8,32], index: 2, kind: output, shape index: {}]  }
   0x1   :  { %v918_v0 = vld [vmem:[%s1140_s1 + $0x30] sm:$0xff]  ;;  %v923_v1 = vld [vmem:[%s1140_s1 + $0x38] sm:$0xff]  ;;  %v928_v2 = vld [vmem:[%s1140_s1 + $0x20] sm:$0xff] }
   0x2   :  { %38 = vmatpush.msra.mxu0 %v918_v0  ;;  %58 = vmatpush.msra.mxu1 %v923_v1  ;;  %v935_v3 = vld [vmem:[%s1140_s1 + $0x28] sm:$0xff]  ;;  %v940_v4 = vld [vmem:[%s1140_s1 + $0x10] sm:$0xff]  ;;  %v945_v5 = vld [vmem:[%s1140_s1 + $0x18] sm:$0xff]  ;;  %v995_v10 = vshrl.u32 %v11_v9, 7 }
   0x3   :  { %133 = vmatpush.msra.mxu2 %v918_v0  ;;  %153 = vmatpush.msra.mxu3 %v923_v1  ;;  %v954_v6 = vld [vmem:[%s1140_s1] sm:$0xff]  ;;  %v959_v7 = vld [vmem:[%s1140_s1 + $0x8] sm:$0xff] }
   0x4   :  { %39 = vmatpush.msra.mxu0 %v928_v2  ;;  %59 = vmatpush.msra.mxu1 %v935_v3  ;;  %vm13_vm0 = vcmp.lt.s32.totalorder %v995_v10, 4  ;;  %v67_v11 = vld [vmem:[%s1141_s0] sm:$0xff]  ;;  %v797_v39 = vld [vmem:[%s1141_s0 + $0x8] sm:$0xff] }
   0x5   :  { %134 = vmatpush.msra.mxu2 %v928_v2  ;;  %154 = vmatpush.msra.mxu3 %v935_v3 }
   0x6   :  { %40 = vmatpush.msra.mxu0 %v940_v4  ;;  %60 = vmatpush.msra.mxu1 %v945_v5 }
   0x7   :  { %135 = vmatpush.msra.mxu2 %v940_v4  ;;  %155 = vmatpush.msra.mxu3 %v945_v5 }
   0x8   :  { %41 = vmatpush.msra.mxu0 %v954_v6  ;;  %61 = vmatpush.msra.mxu1 %v959_v7 }
   0x9   :  { %42 = vmatmul.f32.vlgmr.msra.gmra.mxu0 %v897_v8  ;;  %62 = vmatmul.f32.vlgmr.msra.gmra.mxu1 %v897_v8 }
   0xa   :  { %136 = vmatpush.msra.mxu2 %v954_v6  ;;  %156 = vmatpush.msra.mxu3 %v959_v7 }
   0xb   :  { %230 = vmatpush.msrb.mxu0 %v918_v0  ;;  %250 = vmatpush.msrb.mxu1 %v923_v1 }
   0xc   :  { %327 = vmatpush.msrb.mxu2 %v918_v0  ;;  %347 = vmatpush.msrb.mxu3 %v923_v1 }
   0xd   :  { %231 = vmatpush.msrb.mxu0 %v928_v2  ;;  %251 = vmatpush.msrb.mxu1 %v935_v3 }
   0xe   :  { %328 = vmatpush.msrb.mxu2 %v928_v2  ;;  %348 = vmatpush.msrb.mxu3 %v935_v3 }
   0xf   :  { %232 = vmatpush.msrb.mxu0 %v940_v4  ;;  %252 = vmatpush.msrb.mxu1 %v945_v5 }
  0x10   :  { %329 = vmatpush.msrb.mxu2 %v940_v4  ;;  %349 = vmatpush.msrb.mxu3 %v945_v5 }
  0x11   :  { %233 = vmatpush.msrb.mxu0 %v954_v6  ;;  %253 = vmatpush.msrb.mxu1 %v959_v7 }
  0x12   :  { %330 = vmatpush.msrb.mxu2 %v954_v6  ;;  %350 = vmatpush.msrb.mxu3 %v959_v7 }
  0x13   :  { %424 = vmatpush.msra.mxu0 %v918_v0  ;;  %444 = vmatpush.msra.mxu1 %v923_v1 }
  0x15   :  { %425 = vmatpush.msra.mxu0 %v928_v2  ;;  %445 = vmatpush.msra.mxu1 %v935_v3 }
  0x17   :  { %426 = vmatpush.msra.mxu0 %v940_v4  ;;  %446 = vmatpush.msra.mxu1 %v945_v5 }
  0x19   :  { %427 = vmatpush.msra.mxu0 %v954_v6  ;;  %447 = vmatpush.msra.mxu1 %v959_v7 }
  0x86   :  { %v43_v12 = vpop.f32.mrf.mxu0  ;;  %v63_v13 = vpop.f32.mrf.mxu1 }
  0x87   :  { %v66_v14 = vsel %vm13_vm0, %v43_v12, %v63_v13  ;;  %v802_v12 = vld [vmem:[%s1141_s0 + $0x10] sm:$0xff] }
  0x88   :  { %v68_v15 = vadd.f32 %v67_v11, %v66_v14 }
  0x8a   :  { %833 = vtanh.f32 %v68_v15  ;;  %v794_v17 = vmul.f32 -1.442695, %v68_v15 }
  0x8c   :  { %835 = vpow2.f32 %v794_v17 }
  0x90   :  { %v834_v16 = vpop.eup %833 }
  0x91   :  { %91 = vrot.lane.b32.xlu0 %v834_v16, %s898_s26 }
  0x92   :  { %v836_v18 = vpop.eup %835 }
  0x93   :  { %v72_v19 = vadd.f32 1.0, %v836_v18 }
  0x95   :  { %837 = vrcp.f32 %v72_v19  ;;  %v84_v25 = vand.u32 2147483648, %v72_v19  ;;  %vm78_vm2 = vweird.f32 %v72_v19  ;;  %v82_v26 = vand.u32 2147483647, %v72_v19 }
  0x97   :  { %v85_v28 = vor.u32 1.1754944e-38, %v84_v25  ;;  %vm83_vm4 = vcmp.eq.f32.partialorder %v82_v26, 8.507059e+37 }
  0x9b   :  { %v838_v20 = vpop.eup %837 }
  0x9c   :  { %v74_v21 = vmul.f32 %v838_v20, %v72_v19  ;;  %vm79_vm1 = vweird.f32 %v838_v20 }
  0x9d   :  { %vm80_vm3 = vmor %vm78_vm2, %vm79_vm1 }
  0x9e   :  { %v75_v22 = vsub.f32 1.0, %v74_v21 }
  0xa0   :  { %v76_v23 = vmul.f32 %v838_v20, %v75_v22 }
  0xa2   :  { %v77_v24 = vadd.f32 %v838_v20, %v76_v23 }
  0xa4   :  { %v81_v27 = vsel %vm80_vm3, %v838_v20, %v77_v24 }
  0xa5   :  { %v86_v30 = vsel %vm83_vm4, %v85_v28, %v81_v27 }
  0xa6   :  { %v89_v32 = vmul.f32 0.0, %v86_v30 }
 0x103   :  { %v92_v29 = vpop.permute.xlu0 %91 }
 0x104   :  { %v94_v31 = vmul.f32 %v92_v29, %v86_v30 }
 0x106   :  { %96 = vrot.lane.b32.xlu0 %v94_v31, %s899_s27 }
 0x178   :  { %v97_v33 = vpop.permute.xlu0 %96 }
 0x179   :  { %v99_v34 = vadd.f32 %v97_v33, %v89_v32 }
 0x17b   :  { %839 = vtanh.f32 %v99_v34 }
 0x181   :  { %v840_v35 = vpop.eup %839 }
 0x182   :  { %102 = vrot.lane.b32.xlu1 %v840_v35, %s898_s26 }
 0x1f4   :  { %v103_v36 = vpop.permute.xlu1 %102 }
 0x1f5   :  { %v105_v37 = vmul.f32 %v103_v36, %v86_v30 }
 0x1f7   :  { %107 = vrot.lane.b32.xlu1 %v105_v37, %s899_s27 }
 0x269   :  { %v108_v38 = vpop.permute.xlu1 %107 }
 0x26a   :  { %110 = vst.msk [vmem:[%s1142_s2] sm:$0xff] %vm22_vm5, %v108_v38  ;;  %795 = vmatmul.msk.f32.vlgmr.msra.gmra.mxu2 %vm22_vm5, %v108_v38  ;;  %796 = vmatmul.msk.f32.vlgmr.msra.gmra.mxu3 %vm22_vm5, %v108_v38 }
 0x26b   :  { %521 = vmatpush.msra.mxu2 %v918_v0  ;;  %541 = vmatpush.msra.mxu3 %v923_v1 }
 0x26d   :  { %522 = vmatpush.msra.mxu2 %v928_v2  ;;  %542 = vmatpush.msra.mxu3 %v935_v3 }
 0x26f   :  { %523 = vmatpush.msra.mxu2 %v940_v4  ;;  %543 = vmatpush.msra.mxu3 %v945_v5 }
 0x271   :  { %524 = vmatpush.msra.mxu2 %v954_v6  ;;  %544 = vmatpush.msra.mxu3 %v959_v7 }
 0x2ed   :  { %v138_v40 = vpop.f32.mrf.mxu2  ;;  %v158_v41 = vpop.f32.mrf.mxu3 }
 0x2ee   :  { %v161_v42 = vsel %vm13_vm0, %v138_v40, %v158_v41  ;;  %v807_v40 = vld [vmem:[%s1141_s0 + $0x18] sm:$0xff] }
 0x2ef   :  { %v164_v43 = vadd.f32 %v797_v39, %v161_v42 }
 0x2f1   :  { %841 = vtanh.f32 %v164_v43  ;;  %v798_v45 = vmul.f32 -1.442695, %v164_v43 }
 0x2f3   :  { %843 = vpow2.f32 %v798_v45 }
 0x2f7   :  { %v842_v44 = vpop.eup %841 }
 0x2f8   :  { %187 = vrot.lane.b32.xlu2 %v842_v44, %s898_s26 }
 0x2f9   :  { %v844_v46 = vpop.eup %843 }
 0x2fa   :  { %v168_v47 = vadd.f32 1.0, %v844_v46 }
 0x2fc   :  { %845 = vrcp.f32 %v168_v47  ;;  %v180_v53 = vand.u32 2147483648, %v168_v47  ;;  %vm174_vm7 = vweird.f32 %v168_v47  ;;  %v178_v54 = vand.u32 2147483647, %v168_v47 }
 0x2fe   :  { %v181_v56 = vor.u32 1.1754944e-38, %v180_v53  ;;  %vm179_vm9 = vcmp.eq.f32.partialorder %v178_v54, 8.507059e+37 }
 0x302   :  { %v846_v48 = vpop.eup %845 }
 0x303   :  { %v170_v49 = vmul.f32 %v846_v48, %v168_v47  ;;  %vm175_vm6 = vweird.f32 %v846_v48 }
 0x304   :  { %vm176_vm8 = vmor %vm174_vm7, %vm175_vm6 }
 0x305   :  { %v171_v50 = vsub.f32 1.0, %v170_v49 }
 0x307   :  { %v172_v51 = vmul.f32 %v846_v48, %v171_v50 }
 0x309   :  { %v173_v52 = vadd.f32 %v846_v48, %v172_v51 }
 0x30b   :  { %v177_v55 = vsel %vm176_vm8, %v846_v48, %v173_v52 }
 0x30c   :  { %v182_v58 = vsel %vm179_vm9, %v181_v56, %v177_v55 }
 0x30d   :  { %v185_v60 = vmul.f32 %v182_v58, %v99_v34 }
 0x352   :  { %v188_v57 = vpop.permute.xlu2 %187 }
 0x353   :  { %v190_v59 = vmul.f32 %v188_v57, %v182_v58 }
 0x355   :  { %192 = vrot.lane.b32.xlu2 %v190_v59, %s899_s27 }
 0x3af   :  { %v193_v61 = vpop.permute.xlu2 %192 }
 0x3b0   :  { %v195_v62 = vadd.f32 %v193_v61, %v185_v60  ;;  %v812_v60 = vld [vmem:[%s1141_s0 + $0x20] sm:$0xff] }
 0x3b2   :  { %847 = vtanh.f32 %v195_v62 }
 0x3b8   :  { %v848_v63 = vpop.eup %847 }
 0x3b9   :  { %198 = vrot.lane.b32.xlu0 %v848_v63, %s898_s26 }
 0x42b   :  { %v199_v8 = vpop.permute.xlu0 %198 }
 0x42c   :  { %v201_v9 = vmul.f32 %v199_v8, %v182_v58 }
 0x42e   :  { %203 = vrot.lane.b32.xlu1 %v201_v9, %s899_s27 }
 0x4a0   :  { %v204_v11 = vpop.permute.xlu1 %203 }
 0x4a1   :  { %799 = vst.msk [vmem:[%s1142_s2 + $0x8] sm:$0xff] %vm22_vm5, %v204_v11  ;;  %800 = vmatmul.msk.f32.vlgmr.msrb.gmra.mxu0 %vm22_vm5, %v204_v11  ;;  %801 = vmatmul.msk.f32.vlgmr.msrb.gmra.mxu1 %vm22_vm5, %v204_v11 }
 0x4a2   :  { %618 = vmatpush.msrb.mxu0 %v918_v0  ;;  %638 = vmatpush.msrb.mxu1 %v923_v1 }
 0x4a4   :  { %619 = vmatpush.msrb.mxu0 %v928_v2  ;;  %639 = vmatpush.msrb.mxu1 %v935_v3 }
 0x4a6   :  { %620 = vmatpush.msrb.mxu0 %v940_v4  ;;  %640 = vmatpush.msrb.mxu1 %v945_v5 }
 0x4a8   :  { %621 = vmatpush.msrb.mxu0 %v954_v6  ;;  %641 = vmatpush.msrb.mxu1 %v959_v7 }
 0x51e   :  { %v235_v13 = vpop.f32.mrf.mxu0  ;;  %v255_v14 = vpop.f32.mrf.mxu1 }
 0x51f   :  { %v258_v15 = vsel %vm13_vm0, %v235_v13, %v255_v14 }
 0x520   :  { %v261_v16 = vadd.f32 %v802_v12, %v258_v15 }
 0x522   :  { %849 = vtanh.f32 %v261_v16  ;;  %v803_v18 = vmul.f32 -1.442695, %v261_v16 }
 0x524   :  { %851 = vpow2.f32 %v803_v18 }
 0x528   :  { %v850_v17 = vpop.eup %849 }
 0x529   :  { %284 = vrot.lane.b32.xlu2 %v850_v17, %s898_s26 }
 0x52a   :  { %v852_v19 = vpop.eup %851 }
 0x52b   :  { %v265_v20 = vadd.f32 1.0, %v852_v19 }
 0x52d   :  { %853 = vrcp.f32 %v265_v20  ;;  %v277_v26 = vand.u32 2147483648, %v265_v20  ;;  %vm271_vm11 = vweird.f32 %v265_v20  ;;  %v275_v27 = vand.u32 2147483647, %v265_v20 }
 0x52f   :  { %v278_v29 = vor.u32 1.1754944e-38, %v277_v26  ;;  %vm276_vm13 = vcmp.eq.f32.partialorder %v275_v27, 8.507059e+37 }
 0x533   :  { %v854_v21 = vpop.eup %853 }
 0x534   :  { %v267_v22 = vmul.f32 %v854_v21, %v265_v20  ;;  %vm272_vm10 = vweird.f32 %v854_v21 }
 0x535   :  { %vm273_vm12 = vmor %vm271_vm11, %vm272_vm10 }
 0x536   :  { %v268_v23 = vsub.f32 1.0, %v267_v22 }
 0x538   :  { %v269_v24 = vmul.f32 %v854_v21, %v268_v23 }
 0x53a   :  { %v270_v25 = vadd.f32 %v854_v21, %v269_v24 }
 0x53c   :  { %v274_v28 = vsel %vm273_vm12, %v854_v21, %v270_v25 }
 0x53d   :  { %v279_v31 = vsel %vm276_vm13, %v278_v29, %v274_v28 }
 0x53e   :  { %v282_v33 = vmul.f32 %v279_v31, %v195_v62 }
 0x583   :  { %v285_v30 = vpop.permute.xlu2 %284 }
 0x584   :  { %v287_v32 = vmul.f32 %v285_v30, %v279_v31 }
 0x586   :  { %289 = vrot.lane.b32.xlu0 %v287_v32, %s899_s27 }
 0x5f8   :  { %v290_v34 = vpop.permute.xlu0 %289 }
 0x5f9   :  { %v292_v35 = vadd.f32 %v290_v34, %v282_v33  ;;  %v817_v33 = vld [vmem:[%s1141_s0 + $0x28] sm:$0xff] }
 0x5fb   :  { %855 = vtanh.f32 %v292_v35 }
 0x601   :  { %v856_v36 = vpop.eup %855 }
 0x602   :  { %295 = vrot.lane.b32.xlu1 %v856_v36, %s898_s26 }
 0x674   :  { %v296_v37 = vpop.permute.xlu1 %295 }
 0x675   :  { %v298_v38 = vmul.f32 %v296_v37, %v279_v31 }
 0x677   :  { %300 = vrot.lane.b32.xlu2 %v298_v38, %s899_s27 }
 0x6d1   :  { %v301_v39 = vpop.permute.xlu2 %300 }
 0x6d2   :  { %804 = vst.msk [vmem:[%s1142_s2 + $0x10] sm:$0xff] %vm22_vm5, %v301_v39  ;;  %805 = vmatmul.msk.f32.vlgmr.msrb.gmra.mxu2 %vm22_vm5, %v301_v39  ;;  %806 = vmatmul.msk.f32.vlgmr.msrb.gmra.mxu3 %vm22_vm5, %v301_v39 }
 0x6d3   :  { %715 = vmatpush.msrb.mxu2 %v918_v0  ;;  %735 = vmatpush.msrb.mxu3 %v923_v1 }
 0x6d5   :  { %716 = vmatpush.msrb.mxu2 %v928_v2  ;;  %736 = vmatpush.msrb.mxu3 %v935_v3 }
 0x6d7   :  { %717 = vmatpush.msrb.mxu2 %v940_v4  ;;  %737 = vmatpush.msrb.mxu3 %v945_v5 }
 0x6d9   :  { %718 = vmatpush.msrb.mxu2 %v954_v6  ;;  %738 = vmatpush.msrb.mxu3 %v959_v7 }
 0x755   :  { %v332_v41 = vpop.f32.mrf.mxu2  ;;  %v352_v0 = vpop.f32.mrf.mxu3 }
 0x756   :  { %v355_v1 = vsel %vm13_vm0, %v332_v41, %v352_v0 }
 0x757   :  { %v358_v2 = vadd.f32 %v807_v40, %v355_v1 }
 0x759   :  { %857 = vtanh.f32 %v358_v2  ;;  %v808_v4 = vmul.f32 -1.442695, %v358_v2 }
 0x75b   :  { %859 = vpow2.f32 %v808_v4 }
 0x75f   :  { %v858_v3 = vpop.eup %857 }
 0x760   :  { %381 = vrot.lane.b32.xlu0 %v858_v3, %s898_s26 }
 0x761   :  { %v860_v5 = vpop.eup %859 }
 0x762   :  { %v362_v6 = vadd.f32 1.0, %v860_v5 }
 0x764   :  { %861 = vrcp.f32 %v362_v6  ;;  %v374_v46 = vand.u32 2147483648, %v362_v6  ;;  %vm368_vm15 = vweird.f32 %v362_v6  ;;  %v372_v47 = vand.u32 2147483647, %v362_v6 }
 0x766   :  { %v375_v49 = vor.u32 1.1754944e-38, %v374_v46  ;;  %vm373_vm2 = vcmp.eq.f32.partialorder %v372_v47, 8.507059e+37 }
 0x76a   :  { %v862_v7 = vpop.eup %861 }
 0x76b   :  { %v364_v42 = vmul.f32 %v862_v7, %v362_v6  ;;  %vm369_vm14 = vweird.f32 %v862_v7 }
 0x76c   :  { %vm370_vm1 = vmor %vm368_vm15, %vm369_vm14 }
 0x76d   :  { %v365_v43 = vsub.f32 1.0, %v364_v42 }
 0x76f   :  { %v366_v44 = vmul.f32 %v862_v7, %v365_v43 }
 0x771   :  { %v367_v45 = vadd.f32 %v862_v7, %v366_v44 }
 0x773   :  { %v371_v48 = vsel %vm370_vm1, %v862_v7, %v367_v45 }
 0x774   :  { %v376_v51 = vsel %vm373_vm2, %v375_v49, %v371_v48 }
 0x775   :  { %v379_v53 = vmul.f32 %v376_v51, %v292_v35 }
 0x7d2   :  { %v382_v50 = vpop.permute.xlu0 %381 }
 0x7d3   :  { %v384_v52 = vmul.f32 %v382_v50, %v376_v51 }
 0x7d5   :  { %386 = vrot.lane.b32.xlu1 %v384_v52, %s899_s27 }
 0x847   :  { %v387_v54 = vpop.permute.xlu1 %386 }
 0x848   :  { %v389_v55 = vadd.f32 %v387_v54, %v379_v53  ;;  %v822_v53 = vld [vmem:[%s1141_s0 + $0x30] sm:$0xff] }
 0x84a   :  { %863 = vtanh.f32 %v389_v55 }
 0x850   :  { %v864_v56 = vpop.eup %863 }
 0x851   :  { %392 = vrot.lane.b32.xlu2 %v864_v56, %s898_s26 }
 0x8ab   :  { %v393_v57 = vpop.permute.xlu2 %392 }
 0x8ac   :  { %v395_v58 = vmul.f32 %v393_v57, %v376_v51 }
 0x8ae   :  { %397 = vrot.lane.b32.xlu0 %v395_v58, %s899_s27 }
 0x920   :  { %v398_v59 = vpop.permute.xlu0 %397 }
 0x921   :  { %809 = vst.msk [vmem:[%s1142_s2 + $0x18] sm:$0xff] %vm22_vm5, %v398_v59  ;;  %810 = vmatmul.msk.f32.vlgmr.msra.gmra.mxu0 %vm22_vm5, %v398_v59  ;;  %811 = vmatmul.msk.f32.vlgmr.msra.gmra.mxu1 %vm22_vm5, %v398_v59 }
 0x99e   :  { %v429_v61 = vpop.f32.mrf.mxu0  ;;  %v449_v62 = vpop.f32.mrf.mxu1 }
 0x99f   :  { %v452_v63 = vsel %vm13_vm0, %v429_v61, %v449_v62 }
 0x9a0   :  { %v455_v8 = vadd.f32 %v812_v60, %v452_v63 }
 0x9a2   :  { %865 = vtanh.f32 %v455_v8  ;;  %v813_v11 = vmul.f32 -1.442695, %v455_v8 }
 0x9a4   :  { %867 = vpow2.f32 %v813_v11 }
 0x9a8   :  { %v866_v9 = vpop.eup %865 }
 0x9a9   :  { %478 = vrot.lane.b32.xlu1 %v866_v9, %s898_s26 }
 0x9aa   :  { %v868_v12 = vpop.eup %867 }
 0x9ab   :  { %v459_v13 = vadd.f32 1.0, %v868_v12 }
 0x9ad   :  { %869 = vrcp.f32 %v459_v13  ;;  %v471_v19 = vand.u32 2147483648, %v459_v13  ;;  %vm465_vm4 = vweird.f32 %v459_v13  ;;  %v469_v20 = vand.u32 2147483647, %v459_v13 }
 0x9af   :  { %v472_v22 = vor.u32 1.1754944e-38, %v471_v19  ;;  %vm470_vm7 = vcmp.eq.f32.partialorder %v469_v20, 8.507059e+37 }
 0x9b3   :  { %v870_v14 = vpop.eup %869 }
 0x9b4   :  { %v461_v15 = vmul.f32 %v870_v14, %v459_v13  ;;  %vm466_vm3 = vweird.f32 %v870_v14 }
 0x9b5   :  { %vm467_vm6 = vmor %vm465_vm4, %vm466_vm3 }
 0x9b6   :  { %v462_v16 = vsub.f32 1.0, %v461_v15 }
 0x9b8   :  { %v463_v17 = vmul.f32 %v870_v14, %v462_v16 }
 0x9ba   :  { %v464_v18 = vadd.f32 %v870_v14, %v463_v17 }
 0x9bc   :  { %v468_v21 = vsel %vm467_vm6, %v870_v14, %v464_v18 }
 0x9bd   :  { %v473_v24 = vsel %vm470_vm7, %v472_v22, %v468_v21 }
 0x9be   :  { %v476_v26 = vmul.f32 %v473_v24, %v389_v55 }
 0xa1b   :  { %v479_v23 = vpop.permute.xlu1 %478 }
 0xa1c   :  { %v481_v25 = vmul.f32 %v479_v23, %v473_v24 }
 0xa1e   :  { %483 = vrot.lane.b32.xlu2 %v481_v25, %s899_s27 }
 0xa78   :  { %v484_v27 = vpop.permute.xlu2 %483 }
 0xa79   :  { %v486_v28 = vadd.f32 %v484_v27, %v476_v26  ;;  %v827_v26 = vld [vmem:[%s1141_s0 + $0x38] sm:$0xff] }
 0xa7b   :  { %871 = vtanh.f32 %v486_v28 }
 0xa81   :  { %v872_v29 = vpop.eup %871 }
 0xa82   :  { %489 = vrot.lane.b32.xlu0 %v872_v29, %s898_s26 }
 0xaf4   :  { %v490_v30 = vpop.permute.xlu0 %489 }
 0xaf5   :  { %v492_v31 = vmul.f32 %v490_v30, %v473_v24 }
 0xaf7   :  { %494 = vrot.lane.b32.xlu1 %v492_v31, %s899_s27 }
 0xb69   :  { %v495_v32 = vpop.permute.xlu1 %494 }
 0xb6a   :  { %814 = vst.msk [vmem:[%s1142_s2 + $0x20] sm:$0xff] %vm22_vm5, %v495_v32  ;;  %815 = vmatmul.msk.f32.vlgmr.msra.gmra.mxu2 %vm22_vm5, %v495_v32  ;;  %816 = vmatmul.msk.f32.vlgmr.msra.gmra.mxu3 %vm22_vm5, %v495_v32 }
 0xbed   :  { %v526_v34 = vpop.f32.mrf.mxu2  ;;  %v546_v35 = vpop.f32.mrf.mxu3 }
 0xbee   :  { %v549_v36 = vsel %vm13_vm0, %v526_v34, %v546_v35 }
 0xbef   :  { %v552_v37 = vadd.f32 %v817_v33, %v549_v36 }
 0xbf1   :  { %873 = vtanh.f32 %v552_v37  ;;  %v818_v39 = vmul.f32 -1.442695, %v552_v37 }
 0xbf3   :  { %875 = vpow2.f32 %v818_v39 }
 0xbf7   :  { %v874_v38 = vpop.eup %873 }
 0xbf8   :  { %575 = vrot.lane.b32.xlu2 %v874_v38, %s898_s26 }
 0xbf9   :  { %v876_v40 = vpop.eup %875 }
 0xbfa   :  { %v556_v41 = vadd.f32 1.0, %v876_v40 }
 0xbfc   :  { %877 = vrcp.f32 %v556_v41  ;;  %v568_v5 = vand.u32 2147483648, %v556_v41  ;;  %vm562_vm9 = vweird.f32 %v556_v41  ;;  %v566_v6 = vand.u32 2147483647, %v556_v41 }
 0xbfe   :  { %v569_v42 = vor.u32 1.1754944e-38, %v568_v5  ;;  %vm567_vm11 = vcmp.eq.f32.partialorder %v566_v6, 8.507059e+37 }
 0xc02   :  { %v878_v0 = vpop.eup %877 }
 0xc03   :  { %v558_v1 = vmul.f32 %v878_v0, %v556_v41  ;;  %vm563_vm8 = vweird.f32 %v878_v0 }
 0xc04   :  { %vm564_vm10 = vmor %vm562_vm9, %vm563_vm8 }
 0xc05   :  { %v559_v2 = vsub.f32 1.0, %v558_v1 }
 0xc07   :  { %v560_v3 = vmul.f32 %v878_v0, %v559_v2 }
 0xc09   :  { %v561_v4 = vadd.f32 %v878_v0, %v560_v3 }
 0xc0b   :  { %v565_v7 = vsel %vm564_vm10, %v878_v0, %v561_v4 }
 0xc0c   :  { %v570_v44 = vsel %vm567_vm11, %v569_v42, %v565_v7 }
 0xc0d   :  { %v573_v46 = vmul.f32 %v570_v44, %v486_v28 }
 0xc52   :  { %v576_v43 = vpop.permute.xlu2 %575 }
 0xc53   :  { %v578_v45 = vmul.f32 %v576_v43, %v570_v44 }
 0xc55   :  { %580 = vrot.lane.b32.xlu0 %v578_v45, %s899_s27 }
 0xcc7   :  { %v581_v47 = vpop.permute.xlu0 %580 }
 0xcc8   :  { %v583_v48 = vadd.f32 %v581_v47, %v573_v46 }
 0xcca   :  { %879 = vtanh.f32 %v583_v48 }
 0xcd0   :  { %v880_v49 = vpop.eup %879 }
 0xcd1   :  { %586 = vrot.lane.b32.xlu1 %v880_v49, %s898_s26 }
 0xd43   :  { %v587_v50 = vpop.permute.xlu1 %586 }
 0xd44   :  { %v589_v51 = vmul.f32 %v587_v50, %v570_v44 }
 0xd46   :  { %591 = vrot.lane.b32.xlu2 %v589_v51, %s899_s27 }
 0xda0   :  { %v592_v52 = vpop.permute.xlu2 %591 }
 0xda1   :  { %819 = vst.msk [vmem:[%s1142_s2 + $0x28] sm:$0xff] %vm22_vm5, %v592_v52  ;;  %820 = vmatmul.msk.f32.vlgmr.msrb.gmra.mxu0 %vm22_vm5, %v592_v52  ;;  %821 = vmatmul.msk.f32.vlgmr.msrb.gmra.mxu1 %vm22_vm5, %v592_v52 }
 0xe1e   :  { %v623_v54 = vpop.f32.mrf.mxu0  ;;  %v643_v55 = vpop.f32.mrf.mxu1 }
 0xe1f   :  { %v646_v56 = vsel %vm13_vm0, %v623_v54, %v643_v55 }
 0xe20   :  { %v649_v57 = vadd.f32 %v822_v53, %v646_v56 }
 0xe22   :  { %881 = vtanh.f32 %v649_v57  ;;  %v823_v59 = vmul.f32 -1.442695, %v649_v57 }
 0xe24   :  { %883 = vpow2.f32 %v823_v59 }
 0xe28   :  { %v882_v58 = vpop.eup %881 }
 0xe29   :  { %672 = vrot.lane.b32.xlu0 %v882_v58, %s898_s26 }
 0xe2a   :  { %v884_v60 = vpop.eup %883 }
 0xe2b   :  { %v653_v61 = vadd.f32 1.0, %v884_v60 }
 0xe2d   :  { %885 = vrcp.f32 %v653_v61  ;;  %v665_v12 = vand.u32 2147483648, %v653_v61  ;;  %vm659_vm13 = vweird.f32 %v653_v61  ;;  %v663_v13 = vand.u32 2147483647, %v653_v61 }
 0xe2f   :  { %v666_v15 = vor.u32 1.1754944e-38, %v665_v12  ;;  %vm664_vm15 = vcmp.eq.f32.partialorder %v663_v13, 8.507059e+37 }
 0xe33   :  { %v886_v62 = vpop.eup %885 }
 0xe34   :  { %v655_v63 = vmul.f32 %v886_v62, %v653_v61  ;;  %vm660_vm12 = vweird.f32 %v886_v62 }
 0xe35   :  { %vm661_vm14 = vmor %vm659_vm13, %vm660_vm12 }
 0xe36   :  { %v656_v8 = vsub.f32 1.0, %v655_v63 }
 0xe38   :  { %v657_v9 = vmul.f32 %v886_v62, %v656_v8 }
 0xe3a   :  { %v658_v11 = vadd.f32 %v886_v62, %v657_v9 }
 0xe3c   :  { %v662_v14 = vsel %vm661_vm14, %v886_v62, %v658_v11 }
 0xe3d   :  { %v667_v17 = vsel %vm664_vm15, %v666_v15, %v662_v14 }
 0xe3e   :  { %v670_v19 = vmul.f32 %v667_v17, %v583_v48 }
 0xe9b   :  { %v673_v16 = vpop.permute.xlu0 %672 }
 0xe9c   :  { %v675_v18 = vmul.f32 %v673_v16, %v667_v17 }
 0xe9e   :  { %677 = vrot.lane.b32.xlu1 %v675_v18, %s899_s27 }
 0xf10   :  { %v678_v20 = vpop.permute.xlu1 %677 }
 0xf11   :  { %v680_v21 = vadd.f32 %v678_v20, %v670_v19 }
 0xf13   :  { %887 = vtanh.f32 %v680_v21 }
 0xf19   :  { %v888_v22 = vpop.eup %887 }
 0xf1a   :  { %683 = vrot.lane.b32.xlu2 %v888_v22, %s898_s26 }
 0xf74   :  { %v684_v23 = vpop.permute.xlu2 %683 }
 0xf75   :  { %v686_v24 = vmul.f32 %v684_v23, %v667_v17 }
 0xf77   :  { %688 = vrot.lane.b32.xlu0 %v686_v24, %s899_s27 }
 0xfe9   :  { %v689_v25 = vpop.permute.xlu0 %688 }
 0xfea   :  { %824 = vst.msk [vmem:[%s1142_s2 + $0x30] sm:$0xff] %vm22_vm5, %v689_v25  ;;  %825 = vmatmul.msk.f32.vlgmr.msrb.gmra.mxu2 %vm22_vm5, %v689_v25  ;;  %826 = vmatmul.msk.f32.vlgmr.msrb.gmra.mxu3 %vm22_vm5, %v689_v25 }
0x106d   :  { %v720_v27 = vpop.f32.mrf.mxu2  ;;  %v740_v28 = vpop.f32.mrf.mxu3 }
0x106e   :  { %v743_v29 = vsel %vm13_vm0, %v720_v27, %v740_v28 }
0x106f   :  { %v746_v30 = vadd.f32 %v827_v26, %v743_v29 }
0x1071   :  { %889 = vtanh.f32 %v746_v30  ;;  %v828_v32 = vmul.f32 -1.442695, %v746_v30 }
0x1073   :  { %891 = vpow2.f32 %v828_v32 }
0x1077   :  { %v890_v31 = vpop.eup %889 }
0x1078   :  { %769 = vrot.lane.b32.xlu1 %v890_v31, %s898_s26 }
0x1079   :  { %v892_v33 = vpop.eup %891 }
0x107a   :  { %v750_v34 = vadd.f32 1.0, %v892_v33 }
0x107c   :  { %893 = vrcp.f32 %v750_v34  ;;  %v762_v40 = vand.u32 2147483648, %v750_v34  ;;  %vm756_vm2 = vweird.f32 %v750_v34  ;;  %v760_v10 = vand.u32 2147483647, %v750_v34 }
0x107e   :  { %v763_v0 = vor.u32 1.1754944e-38, %v762_v40  ;;  %vm761_vm3 = vcmp.eq.f32.partialorder %v760_v10, 8.507059e+37 }
0x1082   :  { %v894_v35 = vpop.eup %893 }
0x1083   :  { %v752_v36 = vmul.f32 %v894_v35, %v750_v34  ;;  %vm757_vm1 = vweird.f32 %v894_v35 }
0x1084   :  { %vm758_vm0 = vmor %vm756_vm2, %vm757_vm1 }
0x1085   :  { %v753_v37 = vsub.f32 1.0, %v752_v36 }
0x1087   :  { %v754_v38 = vmul.f32 %v894_v35, %v753_v37 }
0x1089   :  { %v755_v39 = vadd.f32 %v894_v35, %v754_v38 }
0x108b   :  { %v759_v41 = vsel %vm758_vm0, %v894_v35, %v755_v39 }
0x108c   :  { %v764_v2 = vsel %vm761_vm3, %v763_v0, %v759_v41 }
0x108d   :  { %v767_v4 = vmul.f32 %v764_v2, %v680_v21 }
0x10ea   :  { %v770_v1 = vpop.permute.xlu1 %769 }
0x10eb   :  { %v772_v3 = vmul.f32 %v770_v1, %v764_v2 }
0x10ed   :  { %774 = vrot.lane.b32.xlu2 %v772_v3, %s899_s27 }
0x1147   :  { %v775_v5 = vpop.permute.xlu2 %774 }
0x1148   :  { %v777_v6 = vadd.f32 %v775_v5, %v767_v4 }
0x114a   :  { %895 = vtanh.f32 %v777_v6 }
0x1150   :  { %v896_v7 = vpop.eup %895 }
0x1151   :  { %780 = vrot.lane.b32.xlu0 %v896_v7, %s898_s26 }
0x11c3   :  { %v781_v42 = vpop.permute.xlu0 %780 }
0x11c4   :  { %v783_v43 = vmul.f32 %v781_v42, %v764_v2 }
0x11c6   :  { %785 = vrot.lane.b32.xlu1 %v783_v43, %s899_s27 }
0x1238   :  { %v786_v44 = vpop.permute.xlu1 %785 }
0x1239   :  { %829 = vst.msk [vmem:[%s1142_s2 + $0x38] sm:$0xff] %vm22_vm5, %v786_v44 }

// kernel: bimpm_forward.8
= control target key start
LH: loop header
LB: loop body
LE: loop exit
PB: predicated region body
PF: predicated region fallthrough
CT: control target
= control target key end

     0   :  { %vm68_vm0 = vcmask 261120   ;;  %s416_s1 = inlined_call_operand.vmem [shape: f32[160,256], index: 1, kind: input, shape index: {}]   ;;  %s417_s0 = inlined_call_operand.vmem [shape: f32[32,160], index: 0, kind: input, shape index: {}]   ;;  %s418_s2 = inlined_call_operand.vmem [shape: f32[1,256], index: 2, kind: input, shape index: {}]   ;;  %s419_s3 = inlined_call_operand.vmem [shape: f32[32,256], index: 3, kind: output, shape index: {}]  }
   0x1   :  { %v53_v0 = vld [vmem:[%s416_s1 + $0xf8] sm:$0xff]  ;;  %v51_v1 = vld [vmem:[%s416_s1 + $0xe8] sm:$0xff]  ;;  %v52_v2 = vld [vmem:[%s416_s1 + $0xf0] sm:$0xff] }
   0x2   :  { %139 = vmatpush.msra.mxu2 %v53_v0  ;;  %v50_v3 = vld [vmem:[%s416_s1 + $0xe0] sm:$0xff]  ;;  %v49_v4 = vld [vmem:[%s416_s1 + $0xd8] sm:$0xff]  ;;  %81 = vmatpush.msra.mxu0 %v52_v2  ;;  %v48_v5 = vld [vmem:[%s416_s1 + $0xd0] sm:$0xff] }
   0x3   :  { %v47_v6 = vld [vmem:[%s416_s1 + $0xc8] sm:$0xff]  ;;  %v46_v7 = vld [vmem:[%s416_s1 + $0xc0] sm:$0xff]  ;;  %v45_v8 = vld [vmem:[%s416_s1 + $0xb8] sm:$0xff] }
   0x4   :  { %140 = vmatpush.msra.mxu2 %v51_v1  ;;  %82 = vmatpush.msra.mxu0 %v50_v3  ;;  %v44_v9 = vld [vmem:[%s416_s1 + $0xb0] sm:$0xff]  ;;  %v43_v10 = vld [vmem:[%s416_s1 + $0xa8] sm:$0xff]  ;;  %v61_v11 = vld [vmem:[%s416_s1 + $0x138] sm:$0xff] }
   0x5   :  { %v42_v12 = vld [vmem:[%s416_s1 + $0xa0] sm:$0xff]  ;;  %180 = vmatpush.msra.mxu3 %v61_v11  ;;  %v59_v13 = vld [vmem:[%s416_s1 + $0x128] sm:$0xff]  ;;  %v41_v14 = vld [vmem:[%s416_s1 + $0x98] sm:$0xff] }
   0x6   :  { %141 = vmatpush.msra.mxu2 %v49_v4  ;;  %83 = vmatpush.msra.mxu0 %v48_v5  ;;  %v57_v15 = vld [vmem:[%s416_s1 + $0x118] sm:$0xff]  ;;  %v40_v16 = vld [vmem:[%s416_s1 + $0x90] sm:$0xff]  ;;  %v39_v18 = vld [vmem:[%s416_s1 + $0x88] sm:$0xff] }
   0x7   :  { %181 = vmatpush.msra.mxu3 %v59_v13  ;;  %v60_v17 = vld [vmem:[%s416_s1 + $0x130] sm:$0xff]  ;;  %v55_v19 = vld [vmem:[%s416_s1 + $0x108] sm:$0xff]  ;;  %v58_v20 = vld [vmem:[%s416_s1 + $0x120] sm:$0xff] }
   0x8   :  { %142 = vmatpush.msra.mxu2 %v47_v6  ;;  %84 = vmatpush.msra.mxu0 %v46_v7  ;;  %v38_v21 = vld [vmem:[%s416_s1 + $0x80] sm:$0xff]  ;;  %v15_v22 = vld [vmem:[%s417_s0 + $0x8] sm:$0xff]  ;;  %v37_v23 = vld [vmem:[%s416_s1 + $0x78] sm:$0xff] }
   0x9   :  { %122 = vmatpush.msra.mxu1 %v60_v17  ;;  %182 = vmatpush.msra.mxu3 %v57_v15  ;;  %v56_v24 = vld [vmem:[%s416_s1 + $0x110] sm:$0xff]  ;;  %v35_v26 = vld [vmem:[%s416_s1 + $0x68] sm:$0xff]  ;;  %v54_v27 = vld [vmem:[%s416_s1 + $0x100] sm:$0xff] }
   0xa   :  { %143 = vmatpush.msra.mxu2 %v45_v8  ;;  %85 = vmatpush.msra.mxu0 %v44_v9  ;;  %v36_v25 = vld [vmem:[%s416_s1 + $0x70] sm:$0xff]  ;;  %v34_v28 = vld [vmem:[%s416_s1 + $0x60] sm:$0xff]  ;;  %v33_v29 = vld [vmem:[%s416_s1 + $0x58] sm:$0xff] }
   0xb   :  { %123 = vmatpush.msra.mxu1 %v58_v20  ;;  %183 = vmatpush.msra.mxu3 %v55_v19  ;;  %v32_v30 = vld [vmem:[%s416_s1 + $0x50] sm:$0xff]  ;;  %v31_v31 = vld [vmem:[%s416_s1 + $0x48] sm:$0xff]  ;;  %v30_v32 = vld [vmem:[%s416_s1 + $0x40] sm:$0xff] }
   0xc   :  { %144 = vmatpush.msra.mxu2 %v43_v10  ;;  %86 = vmatpush.msra.mxu0 %v42_v12  ;;  %v17_v33 = vld [vmem:[%s417_s0 + $0x18] sm:$0xff]  ;;  %v28_v35 = vld [vmem:[%s416_s1 + $0x30] sm:$0xff]  ;;  %v27_v36 = vld [vmem:[%s416_s1 + $0x28] sm:$0xff] }
   0xd   :  { %213 = vmatmul.msk.f32.vlgmr.msra.gmra.mxu3 %vm68_vm0, %v15_v22  ;;  %124 = vmatpush.msra.mxu1 %v56_v24  ;;  %v29_v34 = vld [vmem:[%s416_s1 + $0x38] sm:$0xff]  ;;  %v26_v37 = vld [vmem:[%s416_s1 + $0x20] sm:$0xff]  ;;  %v24_v39 = vld [vmem:[%s416_s1 + $0x10] sm:$0xff] }
   0xe   :  { %145 = vmatpush.msra.mxu2 %v41_v14  ;;  %87 = vmatpush.msra.mxu0 %v40_v16  ;;  %v25_v38 = vld [vmem:[%s416_s1 + $0x18] sm:$0xff]  ;;  %v23_v40 = vld [vmem:[%s416_s1 + $0x8] sm:$0xff]  ;;  %v14_v41 = vld [vmem:[%s417_s0] sm:$0xff] }
   0xf   :  { %125 = vmatpush.msra.mxu1 %v54_v27  ;;  %v22_v42 = vld [vmem:[%s416_s1] sm:$0xff]  ;;  %v19_v43 = vld [vmem:[%s417_s0 + $0x28] sm:$0xff]  ;;  %v16_v44 = vld [vmem:[%s417_s0 + $0x10] sm:$0xff] }
  0x10   :  { %146 = vmatpush.msra.mxu2 %v39_v18  ;;  %88 = vmatpush.msra.mxu0 %v38_v21  ;;  %v21_v45 = vld [vmem:[%s417_s0 + $0x38] sm:$0xff]  ;;  %v18_v46 = vld [vmem:[%s417_s0 + $0x20] sm:$0xff]  ;;  %v20_v47 = vld [vmem:[%s417_s0 + $0x30] sm:$0xff] }
  0x11   :  { %209 = vmatmul.msk.f32.vlgmr.msra.gmra.mxu1 %vm68_vm0, %v15_v22  ;;  %v62_v48 = vld [vmem:[%s418_s2] sm:$0x3] }
  0x12   :  { %147 = vmatpush.msra.mxu2 %v37_v23  ;;  %89 = vmatpush.msra.mxu0 %v36_v25  ;;  %v64_v50 = vperm.slane %v62_v48, 0  ;;  %v65_v54 = vperm.slane %v62_v48, 1 }
  0x14   :  { %148 = vmatpush.msra.mxu2 %v35_v26  ;;  %90 = vmatpush.msra.mxu0 %v34_v28 }
  0x15   :  { %214 = vmatmul.msk.f32.gmra.mxu3 %vm68_vm0, %v17_v33 }
  0x16   :  { %149 = vmatpush.msra.mxu2 %v33_v29  ;;  %91 = vmatpush.msra.mxu0 %v32_v30 }
  0x18   :  { %150 = vmatpush.msra.mxu2 %v31_v31  ;;  %92 = vmatpush.msra.mxu0 %v30_v32 }
  0x19   :  { %210 = vmatmul.msk.f32.gmra.mxu1 %vm68_vm0, %v17_v33 }
  0x1a   :  { %151 = vmatpush.msra.mxu2 %v29_v34  ;;  %93 = vmatpush.msra.mxu0 %v28_v35 }
  0x1c   :  { %152 = vmatpush.msra.mxu2 %v27_v36  ;;  %94 = vmatpush.msra.mxu0 %v26_v37 }
  0x1d   :  { %215 = vmatmul.msk.f32.gmra.mxu3 %vm68_vm0, %v19_v43 }
  0x1e   :  { %153 = vmatpush.msra.mxu2 %v25_v38  ;;  %95 = vmatpush.msra.mxu0 %v24_v39 }
  0x20   :  { %154 = vmatpush.msra.mxu2 %v23_v40  ;;  %96 = vmatpush.msra.mxu0 %v22_v42 }
  0x21   :  { %155 = vmatmul.f32.vlgmr.msra.gmra.mxu2 %v14_v41  ;;  %97 = vmatmul.f32.vlgmr.msra.gmra.mxu0 %v14_v41 }
  0x22   :  { %211 = vmatmul.msk.f32.gmra.mxu1 %vm68_vm0, %v19_v43 }
  0x25   :  { %216 = vmatmul.msk.f32.gmra.mxu3 %vm68_vm0, %v21_v45 }
  0x29   :  { %158 = vmatmul.f32.gmra.mxu2 %v16_v44  ;;  %100 = vmatmul.f32.gmra.mxu0 %v16_v44 }
  0x2a   :  { %212 = vmatmul.msk.f32.gmra.mxu1 %vm68_vm0, %v21_v45 }
  0x31   :  { %161 = vmatmul.f32.gmra.mxu2 %v18_v46  ;;  %103 = vmatmul.f32.gmra.mxu0 %v18_v46 }
  0x39   :  { %164 = vmatmul.f32.gmra.mxu2 %v20_v47  ;;  %106 = vmatmul.f32.gmra.mxu0 %v20_v47 }
  0x8e   :  { %v127_v49 = vpop.f32.mrf.mxu1 }
  0x90   :  { %v185_v51 = vpop.f32.mrf.mxu3 }
  0x96   :  { %v130_v56 = vpop.f32.mrf.mxu1 }
  0x98   :  { %v188_v62 = vpop.f32.mrf.mxu3 }
  0x9e   :  { %v98_v52 = vpop.f32.mrf.mxu0 }
  0x9f   :  { %v99_v53 = vadd.f32 %v98_v52, %v64_v50  ;;  %v133_v2 = vpop.f32.mrf.mxu1 }
  0xa0   :  { %v191_v7 = vpop.f32.mrf.mxu3 }
  0xa1   :  { %v128_v55 = vadd.f32 %v127_v49, %v99_v53 }
  0xa3   :  { %197 = vst [vmem:[%s419_s3] sm:$0xff] %v128_v55 }
  0xa4   :  { %v156_v57 = vpop.f32.mrf.mxu2 }
  0xa5   :  { %v157_v58 = vadd.f32 %v156_v57, %v65_v54 }
  0xa6   :  { %v101_v60 = vpop.f32.mrf.mxu0 }
  0xa7   :  { %v186_v59 = vadd.f32 %v185_v51, %v157_v58  ;;  %v102_v61 = vadd.f32 %v101_v60, %v64_v50  ;;  %v136_v12 = vpop.f32.mrf.mxu1 }
  0xa8   :  { %v194_v16 = vpop.f32.mrf.mxu3 }
  0xa9   :  { %198 = vst [vmem:[%s419_s3 + $0x8] sm:$0xff] %v186_v59  ;;  %v131_v63 = vadd.f32 %v130_v56, %v102_v61 }
  0xab   :  { %199 = vst [vmem:[%s419_s3 + $0x10] sm:$0xff] %v131_v63 }
  0xac   :  { %v159_v0 = vpop.f32.mrf.mxu2 }
  0xad   :  { %v160_v1 = vadd.f32 %v159_v0, %v65_v54 }
  0xae   :  { %v104_v4 = vpop.f32.mrf.mxu0 }
  0xaf   :  { %v189_v3 = vadd.f32 %v188_v62, %v160_v1  ;;  %v105_v5 = vadd.f32 %v104_v4, %v64_v50 }
  0xb1   :  { %200 = vst [vmem:[%s419_s3 + $0x18] sm:$0xff] %v189_v3  ;;  %v134_v6 = vadd.f32 %v133_v2, %v105_v5 }
  0xb3   :  { %201 = vst [vmem:[%s419_s3 + $0x20] sm:$0xff] %v134_v6 }
  0xb4   :  { %v162_v8 = vpop.f32.mrf.mxu2 }
  0xb5   :  { %v163_v9 = vadd.f32 %v162_v8, %v65_v54 }
  0xb6   :  { %v107_v11 = vpop.f32.mrf.mxu0 }
  0xb7   :  { %v192_v10 = vadd.f32 %v191_v7, %v163_v9  ;;  %v108_v13 = vadd.f32 %v107_v11, %v64_v50 }
  0xb9   :  { %202 = vst [vmem:[%s419_s3 + $0x28] sm:$0xff] %v192_v10  ;;  %v137_v14 = vadd.f32 %v136_v12, %v108_v13 }
  0xbb   :  { %203 = vst [vmem:[%s419_s3 + $0x30] sm:$0xff] %v137_v14 }
  0xbc   :  { %v165_v15 = vpop.f32.mrf.mxu2 }
  0xbd   :  { %v166_v17 = vadd.f32 %v165_v15, %v65_v54 }
  0xbf   :  { %v195_v18 = vadd.f32 %v194_v16, %v166_v17 }
  0xc1   :  { %204 = vst [vmem:[%s419_s3 + $0x38] sm:$0xff] %v195_v18 }

// kernel: bimpm_forward.7
= control target key start
LH: loop header
LB: loop body
LE: loop exit
PB: predicated region body
PF: predicated region fallthrough
CT: control target
= control target key end

     0   :  { %s3810_s21 = smov 0   ;;  %s5269_s0 = inlined_call_operand.vmem [shape: f32[2,8,32], index: 0, kind: input, shape index: {}]   ;;  %s5270_s1 = inlined_call_operand.vmem [shape: f32[2,8,32], index: 1, kind: input, shape index: {}]   ;;  %s5271_s2 = inlined_call_operand.vmem [shape: f32[2,8,32], index: 2, kind: input, shape index: {}]   ;;  %s5272_s3 = inlined_call_operand.vmem [shape: f32[2,8,32], index: 3, kind: input, shape index: {}]   ;;  %s5273_s4 = inlined_call_operand.vmem [shape: f32[8,20,32], index: 4, kind: input, shape index: {}]   ;;  %s5274_s5 = inlined_call_operand.vmem [shape: f32[2,8,160], index: 5, kind: output, shape index: {0}]   ;;  %s5275_s6 = inlined_call_operand.vmem [shape: f32[2,8,160], index: 6, kind: output, shape index: {1}]  }
   0x1 LB: > { %s3399_s22 = sadd.s32 4294967295, %s3766_s21   ;;  %p3403_p0 = scmp.ge.s32.totalorder %s3766_s21, 1  ;;  %s3766_s21 = sphi %s3810_s21, %s17_s21  }
   0x2   : > { %p241_p1 = scmp.lt.s32.totalorder %s3766_s21, 3 }
   0x4   : > { %p242_p2 = pnand %p3403_p0, %p241_p1 }
   0x6   : > { %245 = sbr.rel (%p242_p2) target bundleno = 1281 (0x501), region = 40 }
   0xb   : > { %p287_p3 = scmp.lt.s32.totalorder %s3399_s22, 1  ;;  %vm350_vm0 = vcmask 261120   ;;  %v319_v0 = vld [vmem:[%s5273_s4 + $0x10] sm:$0xf]  ;;  %v3414_v1 = vld [vmem:[%s5273_s4 + $0x28] sm:$0xf] }
   0xc   : > { %3433 = vmatpush.xpose.msk.msra.mxu0 %vm350_vm0, %v319_v0  ;;  %3441 = vmatpush.xpose.msk.msra.mxu2 %vm350_vm0, %v319_v0  ;;  %v318_v2 = vld [vmem:[%s5273_s4 + $0x8] sm:$0xff]  ;;  %v3836_v3 = vld [vmem:[%s5273_s4 + $0x20] sm:$0xff]  ;;  %v3412_v10 = vld [vmem:[%s5273_s4 + $0x18] sm:$0xff]  ;;  %vm1609_vm1 = vcmask 7168   ;;  %s3769_s26 = smov 100   ;;  %s3770_s9 = smov 80  }
   0xd   : > { %s5401_s22 = smov (!%p287_p3, %s3399_s22), 1  ;;  %3445 = vmatpush.xpose.msk.msra.mxu3 %vm350_vm0, %v3414_v1  ;;  %3437 = vmatpush.xpose.msk.msra.mxu1 %vm350_vm0, %v319_v0  ;;  %v317_v5 = vld [vmem:[%s5273_s4] sm:$0xff]  ;;  %v3420_v26 = vld [vmem:[%s5273_s4 + $0x58] sm:$0xf]  ;;  %v3419_v31 = vld [vmem:[%s5273_s4 + $0x50] sm:$0xff]  ;;  %s3774_s28 = smov 12  }
   0xe   : > { %s3404_s7 = sshll.u32 %s5401_s22, 3  ;;  %v3417_v23 = vld [vmem:[%s5273_s4 + $0x40] sm:$0xf]  ;;  %v3416_v28 = vld [vmem:[%s5273_s4 + $0x38] sm:$0xff]  ;;  %v3415_v33 = vld [vmem:[%s5273_s4 + $0x30] sm:$0xff] }
   0xf   : > { %s3842_s10 = scalar_lea.vmem %s5271_s2, %s3404_s7  ;;  %s3847_s13 = scalar_lea.vmem %s5269_s0, %s3404_s7  ;;  %v3418_v34 = vld [vmem:[%s5273_s4 + $0x48] sm:$0xff] }
  0x10   : > { %3434 = vmatpush.xpose.msk.msra.mxu0 %vm350_vm0, %v318_v2  ;;  %3442 = vmatpush.xpose.msk.msra.mxu2 %vm350_vm0, %v318_v2  ;;  %v3852_v4 = vld [vmem:[%s3842_s10] sm:$0xff]  ;;  %s3863_s18 = scalar_lea.vmem %s5270_s1, %s3404_s7  ;;  %s3868_s23 = scalar_lea.vmem %s5272_s3, %s3404_s7 }
  0x11   : > { %3446 = vmatpush.xpose.msk.msra.mxu3 %vm350_vm0, %v3836_v3  ;;  %3438 = vmatpush.xpose.msk.msra.mxu1 %vm350_vm0, %v318_v2  ;;  %v3872_v6 = vmul.f32 %v3852_v4, %v3852_v4  ;;  %v348_v7 = vperm.slane %v3852_v4, 7  ;;  %v3876_v8 = vld [vmem:[%s3868_s23] sm:$0xff] }
  0x12   : > { %v3879_v9 = vld [vmem:[%s3847_s13] sm:$0xff]  ;;  %v460_v12 = vperm.slane %v3876_v8, 0  ;;  %v3958_v27 = vmul.f32 %v3876_v8, %v3876_v8 }
  0x13   : > { %v3885_v11 = vld [vmem:[%s3863_s18] sm:$0xff]  ;;  %v1581_v13 = vsel %vm350_vm0, %v3872_v6, 0.0  ;;  %v349_v14 = vmul.f32 %v348_v7, %v3879_v9  ;;  %v407_v15 = vmul.f32 %v348_v7, %v348_v7  ;;  %v3896_v16 = vmul.f32 %v3879_v9, %v3879_v9 }
  0x14   : > { %3435 = vmatpush.xpose.msk.msra.mxu0 %vm350_vm0, %v317_v5  ;;  %3443 = vmatpush.xpose.msk.msra.mxu2 %vm350_vm0, %v317_v5  ;;  %v461_v17 = vmul.f32 %v460_v12, %v3885_v11  ;;  %v571_v19 = vperm.slane %v3879_v9, 7  ;;  %v3921_v20 = vmul.f32 %v3885_v11, %v3885_v11  ;;  %v518_v22 = vmul.f32 %v460_v12, %v460_v12 }
  0x15   : > { %1582 = vadd.xlane.f32.xlu0 %v1581_v13  ;;  %3447 = vmatpush.xpose.msk.msra.mxu3 %vm350_vm0, %v3412_v10  ;;  %v1578_v18 = vsel %vm350_vm0, %v3896_v16, 0.0  ;;  %v3946_v24 = vperm.slane %v3885_v11, 0  ;;  %5295 = vst [vmem:[#allocation2_spill] sm:$0xff] %v3958_v27  ;;  %v5276_v32 = vperm.slane %v3879_v9, 0  ;;  %v776_v36 = vrot.slane %v3879_v9, 1 }
  0x16   : > { %3439 = vmatpush.xpose.msk.msra.mxu1 %vm350_vm0, %v317_v5  ;;  %v572_v21 = vmul.f32 %v571_v19, %v3852_v4  ;;  %v620_v25 = vmul.f32 %v571_v19, %v571_v19  ;;  %v1178_v37 = vrot.slane %v3885_v11, 1  ;;  %v777_v41 = vrot.slane %v3879_v9, 2 }
  0x17   : > { %3436 = vmatmul.msk.f32.vlgmr.msra.gmra.mxu0 %vm350_vm0, %v349_v14  ;;  %3444 = vmatmul.msk.f32.vlgmr.msra.gmra.mxu2 %vm350_vm0, %v407_v15  ;;  %v722_v29 = vmul.f32 %v3946_v24, %v3946_v24  ;;  %v674_v30 = vmul.f32 %v3946_v24, %v3876_v8  ;;  %v799_v35 = vmul.f32 %v5276_v32, %v3852_v4  ;;  %v4002_v38 = vperm.slane %v776_v36, 0 }
  0x18   : > { %3449 = vmatpush.xpose.msk.msrb.mxu0 %vm350_vm0, %v3414_v1  ;;  %3457 = vmatpush.xpose.msk.msrb.mxu2 %vm350_vm0, %v319_v0  ;;  %v4008_v39 = vperm.slane %v1178_v37, 0  ;;  %v1179_v43 = vrot.slane %v3885_v11, 2  ;;  %v4022_v44 = vperm.slane %v777_v41, 0  ;;  %v778_v47 = vrot.slane %v3879_v9, 3 }
  0x19   : > { %3461 = vmatpush.xpose.msk.msrb.mxu3 %vm350_vm0, %v319_v0  ;;  %3440 = vmatmul.msk.f32.vlgmr.msra.gmra.mxu1 %vm350_vm0, %v3896_v16  ;;  %v800_v40 = vmul.f32 %v4002_v38, %v3852_v4  ;;  %v1180_v49 = vrot.slane %v3885_v11, 3  ;;  %v779_v53 = vrot.slane %v3879_v9, 4  ;;  %v1181_v55 = vrot.slane %v3885_v11, 4 }
  0x1a   : > { %3453 = vmatpush.xpose.msk.msrb.mxu1 %vm350_vm0, %v3414_v1  ;;  %3448 = vmatmul.msk.f32.vlgmr.msra.gmra.mxu3 %vm350_vm0, %v461_v17  ;;  %v1202_v42 = vmul.f32 %v4008_v39, %v3876_v8  ;;  %5296 = vst [vmem:[#allocation3_spill] sm:$0xff] %v4022_v44  ;;  %v4028_v45 = vperm.slane %v1179_v43, 0  ;;  %v801_v46 = vmul.f32 %v4022_v44, %v3852_v4  ;;  %v4042_v50 = vperm.slane %v778_v47, 0 }
  0x1b   : > { %v4045_v51 = vperm.slane %v1180_v49, 0  ;;  %v4058_v56 = vperm.slane %v779_v53, 0  ;;  %v4061_v57 = vperm.slane %v1181_v55, 0  ;;  %v780_v59 = vrot.slane %v3879_v9, 5 }
  0x1c   : > { %3450 = vmatpush.xpose.msk.msrb.mxu0 %vm350_vm0, %v3836_v3  ;;  %3458 = vmatpush.xpose.msk.msrb.mxu2 %vm350_vm0, %v318_v2  ;;  %5297 = vst [vmem:[#allocation4_spill] sm:$0xff] %v4028_v45  ;;  %v1203_v48 = vmul.f32 %v4028_v45, %v3876_v8  ;;  %v802_v52 = vmul.f32 %v4042_v50, %v3852_v4  ;;  %v1182_v61 = vrot.slane %v3885_v11, 5  ;;  %v782_v13 = vrot.slane %v3879_v9, 7 }
  0x1d   : > { %3462 = vmatpush.xpose.msk.msrb.mxu3 %vm350_vm0, %v318_v2  ;;  %1579 = vadd.xlane.f32.xlu0 %v1578_v18  ;;  %5298 = vst [vmem:[#allocation5_spill] sm:$0xff] %v4042_v50  ;;  %v1204_v54 = vmul.f32 %v4045_v51, %v3876_v8  ;;  %v803_v58 = vmul.f32 %v4058_v56, %v3852_v4  ;;  %v4070_v62 = vperm.slane %v780_v59, 0  ;;  %v1184_v15 = vrot.slane %v3885_v11, 7 }
  0x1e   : > { %3454 = vmatpush.xpose.msk.msrb.mxu1 %vm350_vm0, %v3836_v3  ;;  %5299 = vst [vmem:[#allocation6_spill] sm:$0xff] %v4045_v51  ;;  %v1205_v60 = vmul.f32 %v4061_v57, %v3876_v8  ;;  %v4073_v63 = vperm.slane %v1182_v61, 0  ;;  %v4094_v14 = vperm.slane %v782_v13, 0  ;;  %v1785_v51 = vlaneseq }
  0x1f   : > { %v4099_v18 = vperm.slane %v1184_v15, 0 }
  0x20   : > { %3451 = vmatpush.xpose.msk.msrb.mxu0 %vm350_vm0, %v3412_v10  ;;  %3459 = vmatpush.xpose.msk.msrb.mxu2 %vm350_vm0, %v317_v5  ;;  %5301 = vst [vmem:[#allocation8_spill] sm:$0xff] %v4094_v14  ;;  %v806_v17 = vmul.f32 %v4094_v14, %v3852_v4 }
  0x21   : > { %3463 = vmatpush.xpose.msk.msrb.mxu3 %vm350_vm0, %v317_v5  ;;  %5302 = vst [vmem:[#allocation9_spill] sm:$0xff] %v4099_v18  ;;  %v1208_v19 = vmul.f32 %v4099_v18, %v3876_v8 }
  0x22   : > { %3455 = vmatpush.xpose.msk.msrb.mxu1 %vm350_vm0, %v3412_v10 }
  0x23   : > { %3452 = vmatmul.msk.f32.vlgmr.msrb.gmra.mxu0 %vm350_vm0, %v3921_v20  ;;  %3460 = vmatmul.msk.f32.vlgmr.msrb.gmra.mxu2 %vm350_vm0, %v572_v21 }
  0x24   : > { %3465 = vmatpush.xpose.msk.msra.mxu0 %vm350_vm0, %v319_v0  ;;  %3473 = vmatpush.xpose.msk.msra.mxu2 %vm350_vm0, %v3414_v1  ;;  %v804_v0 = vmul.f32 %v4070_v62, %v3852_v4 }
  0x25   : > { %3477 = vmatpush.xpose.msk.msra.mxu3 %vm350_vm0, %v3414_v1  ;;  %3456 = vmatmul.msk.f32.vlgmr.msrb.gmra.mxu1 %vm350_vm0, %v518_v22 }
  0x26   : > { %3469 = vmatpush.xpose.msk.msra.mxu1 %vm350_vm0, %v3414_v1  ;;  %3464 = vmatmul.msk.f32.vlgmr.msrb.gmra.mxu3 %vm350_vm0, %v3872_v6  ;;  %v781_v1 = vrot.slane %v3879_v9, 6 }
  0x28   : > { %3466 = vmatpush.xpose.msk.msra.mxu0 %vm350_vm0, %v318_v2  ;;  %3474 = vmatpush.xpose.msk.msra.mxu2 %vm350_vm0, %v3836_v3  ;;  %v1206_v2 = vmul.f32 %v4073_v63, %v3876_v8 }
  0x29   : > { %3478 = vmatpush.xpose.msk.msra.mxu3 %vm350_vm0, %v3836_v3 }
  0x2a   : > { %3470 = vmatpush.xpose.msk.msra.mxu1 %vm350_vm0, %v3836_v3  ;;  %v1183_v3 = vrot.slane %v3885_v11, 6 }
  0x2c   : > { %3467 = vmatpush.xpose.msk.msra.mxu0 %vm350_vm0, %v317_v5  ;;  %3475 = vmatpush.xpose.msk.msra.mxu2 %vm350_vm0, %v3412_v10  ;;  %v4082_v5 = vperm.slane %v781_v1, 0  ;;  %v4085_v7 = vperm.slane %v1183_v3, 0 }
  0x2d   : > { %3479 = vmatpush.xpose.msk.msra.mxu3 %vm350_vm0, %v3412_v10 }
  0x2e   : > { %3471 = vmatpush.xpose.msk.msra.mxu1 %vm350_vm0, %v3412_v10  ;;  %5300 = vst [vmem:[#allocation7_spill] sm:$0xff] %v4082_v5  ;;  %v805_v10 = vmul.f32 %v4082_v5, %v3852_v4  ;;  %v1207_v12 = vmul.f32 %v4085_v7, %v3876_v8 }
  0x2f   : > { %3468 = vmatmul.msk.f32.vlgmr.msra.gmra.mxu0 %vm350_vm0, %v620_v25  ;;  %3476 = vmatmul.msk.f32.vlgmr.msra.gmra.mxu2 %vm350_vm0, %v3958_v27 }
  0x30   : > { %3481 = vmatpush.xpose.msk.msrb.mxu0 %vm350_vm0, %v3417_v23  ;;  %3496 = vmatpush.xpose.msk.msrb.mxu2 %vm350_vm0, %v3417_v23 }
  0x31   : > { %3500 = vmatpush.xpose.msk.msrb.mxu3 %vm350_vm0, %v3420_v26  ;;  %3472 = vmatmul.msk.f32.vlgmr.msra.gmra.mxu1 %vm350_vm0, %v674_v30 }
  0x32   : > { %3492 = vmatpush.xpose.msk.msrb.mxu1 %vm350_vm0, %v3417_v23  ;;  %3480 = vmatmul.msk.f32.vlgmr.msra.gmra.mxu3 %vm350_vm0, %v722_v29 }
  0x34   : > { %3482 = vmatpush.xpose.msk.msrb.mxu0 %vm350_vm0, %v3416_v28  ;;  %3497 = vmatpush.xpose.msk.msrb.mxu2 %vm350_vm0, %v3416_v28 }
  0x35   : > { %3501 = vmatpush.xpose.msk.msrb.mxu3 %vm350_vm0, %v3419_v31 }
  0x36   : > { %3493 = vmatpush.xpose.msk.msrb.mxu1 %vm350_vm0, %v3416_v28 }
  0x38   : > { %3483 = vmatpush.xpose.msk.msrb.mxu0 %vm350_vm0, %v3415_v33  ;;  %3498 = vmatpush.xpose.msk.msrb.mxu2 %vm350_vm0, %v3415_v33 }
  0x39   : > { %3502 = vmatpush.xpose.msk.msrb.mxu3 %vm350_vm0, %v3418_v34 }
  0x3a   : > { %3494 = vmatpush.xpose.msk.msrb.mxu1 %vm350_vm0, %v3415_v33 }
  0x3b   : > { %3484 = vmatmul.msk.f32.vlgmr.msrb.gmra.mxu0 %vm350_vm0, %v799_v35  ;;  %3499 = vmatmul.msk.f32.vlgmr.msrb.gmra.mxu2 %vm350_vm0, %v3872_v6 }
  0x3c   : > { %3515 = vmatpush.xpose.msk.msra.mxu2 %vm350_vm0, %v3420_v26  ;;  %3503 = vmatmul.msk.f32.vlgmr.msrb.gmra.mxu3 %vm350_vm0, %v674_v30 }
  0x3d   : > { %3495 = vmatmul.msk.f32.vlgmr.msrb.gmra.mxu1 %vm350_vm0, %v3896_v16 }
  0x3e   : > { %3511 = vmatpush.xpose.msk.msra.mxu1 %vm350_vm0, %v3420_v26 }
  0x40   : > { %3516 = vmatpush.xpose.msk.msra.mxu2 %vm350_vm0, %v3419_v31 }
  0x42   : > { %3512 = vmatpush.xpose.msk.msra.mxu1 %vm350_vm0, %v3419_v31 }
  0x43   : > { %3485 = vmatmul.msk.f32.gmra.mxu0 %vm350_vm0, %v800_v40 }
  0x44   : > { %3517 = vmatpush.xpose.msk.msra.mxu2 %vm350_vm0, %v3418_v34  ;;  %3504 = vmatmul.msk.f32.gmra.mxu3 %vm350_vm0, %v1202_v42 }
  0x46   : > { %3513 = vmatpush.xpose.msk.msra.mxu1 %vm350_vm0, %v3418_v34 }
  0x47   : > { %3518 = vmatmul.msk.f32.vlgmr.msra.gmra.mxu2 %vm350_vm0, %v3958_v27 }
  0x49   : > { %3514 = vmatmul.msk.f32.vlgmr.msra.gmra.mxu1 %vm350_vm0, %v3921_v20 }
  0x4a   : > { %3519 = vmatpush.xpose.msk.msrb.mxu1 %vm350_vm0, %v3852_v4 }
  0x4b   : > { %3486 = vmatmul.msk.f32.gmra.mxu0 %vm350_vm0, %v801_v46 }
  0x4c   : > { %3505 = vmatmul.msk.f32.gmra.mxu3 %vm350_vm0, %v1203_v48 }
  0x4e   : > { %1716 = vmatpush.msra.mxu1 %v3852_v4 }
  0x51   : > { %3520 = vmatmul.msk.f32.vlgmr.msrb.gmra.mxu1 %vm350_vm0, %v3879_v9 }
  0x52   : > { %3525 = vmatpush.xpose.msk.msrb.mxu1 %vm350_vm0, %v3876_v8 }
  0x53   : > { %3487 = vmatmul.msk.f32.gmra.mxu0 %vm350_vm0, %v802_v52 }
  0x54   : > { %3506 = vmatmul.msk.f32.gmra.mxu3 %vm350_vm0, %v1204_v54 }
  0x5b   : > { %3488 = vmatmul.msk.f32.gmra.mxu0 %vm350_vm0, %v803_v58 }
  0x5c   : > { %3507 = vmatmul.msk.f32.gmra.mxu3 %vm350_vm0, %v1205_v60 }
  0x63   : > { %3489 = vmatmul.msk.f32.gmra.mxu0 %vm350_vm0, %v804_v0 }
  0x64   : > { %3508 = vmatmul.msk.f32.gmra.mxu3 %vm350_vm0, %v1206_v2 }
  0x6b   : > { %3490 = vmatmul.msk.f32.gmra.mxu0 %vm350_vm0, %v805_v10 }
  0x6c   : > { %3509 = vmatmul.msk.f32.gmra.mxu3 %vm350_vm0, %v1207_v12 }
  0x73   : > { %3491 = vmatmul.msk.f32.gmra.mxu0 %vm350_vm0, %v806_v17 }
  0x74   : > { %3510 = vmatmul.msk.f32.gmra.mxu3 %vm350_vm0, %v1208_v19 }
  0x88   : > { %v1583_v21 = vpop.xlane.xlu0 %1582 }
  0x89   : > { %3521 = vmatpush.xpose.msk.msrb.mxu2 %vm1609_vm1, %v1583_v21 }
  0x8d   : > { %1759 = vmatpush.msra.mxu2 %v3879_v9 }
  0x90   : > { %v1580_v22 = vpop.xlane.xlu0 %1579 }
  0x91   : > { %3522 = vmatmul.msk.f32.vlgmr.msrb.gmra.mxu2 %vm1609_vm1, %v1580_v22 }
  0x94   : > { %v4108_v11 = vpop.f32.mrf.mxu0 }
  0x95   : > { %5303 = vst [vmem:[#allocation10_spill] sm:$0xff] %v4108_v11 }
  0x96   : > { %v404_v4 = vpop.f32.mrf.mxu1 }
  0x9a   : > { %v428_v23 = vpop.f32.mrf.mxu2 }
  0x9b   : > { %v4110_v25 = vmul.f32 %v428_v23, %v404_v4 }
  0x9d   : > { %5304 = vst [vmem:[#allocation11_spill] sm:$0xff] %v4110_v25  ;;  %v4112_v26 = vpop.f32.mrf.mxu3 }
  0x9e   : > { %5305 = vst [vmem:[#allocation12_spill] sm:$0xff] %v4112_v26 }
  0xa0   : > { %v515_v8 = vpop.f32.mrf.mxu0 }
  0xa2   : > { %v539_v28 = vpop.f32.mrf.mxu1 }
  0xa3   : > { %v4114_v29 = vmul.f32 %v539_v28, %v515_v8 }
  0xa6   : > { %v4116_v30 = vpop.f32.mrf.mxu2 }
  0xa7   : > { %5306 = vst [vmem:[#allocation13_spill] sm:$0xff] %v4116_v30 }
  0xa9   : > { %v617_v31 = vpop.f32.mrf.mxu3 }
  0xac   : > { %v641_v33 = vpop.f32.mrf.mxu0 }
  0xad   : > { %v4118_v34 = vmul.f32 %v641_v33, %v617_v31 }
  0xae   : > { %v4120_v35 = vpop.f32.mrf.mxu1 }
  0xaf   : > { %5307 = vst [vmem:[#allocation14_spill] sm:$0xff] %v4118_v34 }
  0xb0   : > { %5308 = vst [vmem:[#allocation15_spill] sm:$0xff] %v4120_v35 }
  0xb2   : > { %v719_v36 = vpop.f32.mrf.mxu2 }
  0xb5   : > { %v743_v37 = vpop.f32.mrf.mxu3 }
  0xb6   : > { %v4122_v40 = vmul.f32 %v743_v37, %v719_v36 }
  0xb8   : > { %v4124_v0 = vpop.f32.mrf.mxu0 }
  0xba   : > { %v898_v41 = vpop.f32.mrf.mxu1 }
  0xbb   : > { %3649 = vrsqrt.f32 %v898_v41  ;;  %vm908_vm2 = vcmp.eq.f32.partialorder %v898_v41, inf  ;;  %v911_v59 = vand.u32 2147483648, %v898_v41  ;;  %vm910_vm3 = vcmp.eq.f32.partialorder %v898_v41, 0.0 }
  0xbe   : > { %v930_v42 = vpop.f32.mrf.mxu2 }
  0xbf   : > { %3651 = vrsqrt.f32 %v930_v42  ;;  %vm940_vm4 = vcmp.eq.f32.partialorder %v930_v42, inf  ;;  %v943_v10 = vand.u32 2147483648, %v930_v42  ;;  %vm942_vm5 = vcmp.eq.f32.partialorder %v930_v42, 0.0 }
  0xc0   : > { %v4138_v33 = vpop.f32.mrf.mxu0 }
  0xc1   : > { %v3650_v43 = vpop.eup %3649 }
  0xc2   : > { %v902_v46 = vmul.f32 %v3650_v43, %v898_v41 }
  0xc4   : > { %v903_v47 = vmul.f32 %v3650_v43, %v902_v46 }
  0xc5   : > { %v3652_v48 = vpop.eup %3651 }
  0xc6   : > { %v904_v49 = vmul.f32 0.5, %v903_v47  ;;  %v934_v52 = vmul.f32 %v3652_v48, %v930_v42  ;;  %v4133_v4 = vpop.f32.mrf.mxu1 }
  0xc7   : > { %3653 = vrsqrt.f32 %v4133_v4 }
  0xc8   : > { %v905_v53 = vsub.f32 1.5, %v904_v49  ;;  %v935_v54 = vmul.f32 %v3652_v48, %v934_v52 }
  0xca   : > { %v906_v55 = vmul.f32 %v3650_v43, %v905_v53  ;;  %v936_v58 = vmul.f32 0.5, %v935_v54  ;;  %v4141_v36 = vpop.f32.mrf.mxu2 }
  0xcb   : > { %3655 = vrsqrt.f32 %v4141_v36 }
  0xcc   : > { %v907_v60 = vmul.f32 %v906_v55, %v898_v41  ;;  %v937_v61 = vsub.f32 1.5, %v936_v58 }
  0xce   : > { %v909_v1 = vsel %vm908_vm2, %v898_v41, %v907_v60  ;;  %v938_v2 = vmul.f32 %v3652_v48, %v937_v61  ;;  %v3654_v48 = vpop.eup %3653 }
  0xcf   : > { %v4126_v3 = vsel %vm910_vm3, %v911_v59, %v909_v1  ;;  %v1304_v54 = vmul.f32 %v3654_v48, %v4133_v4  ;;  %v4155_v59 = vpop.f32.mrf.mxu0 }
  0xd0   : > { %v939_v12 = vmul.f32 %v938_v2, %v930_v42  ;;  %v947_v13 = vrot.slane %v4126_v3, 2  ;;  %v948_v21 = vrot.slane %v4126_v3, 3  ;;  %v953_v22 = vperm.slane %v4126_v3, 0 }
  0xd1   : > { %v949_v31 = vrot.slane %v4126_v3, 4  ;;  %v946_v41 = vrot.slane %v4126_v3, 1  ;;  %v3656_v53 = vpop.eup %3655  ;;  %v1305_v1 = vmul.f32 %v3654_v48, %v1304_v54  ;;  %v951_v11 = vrot.slane %v4126_v3, 6 }
  0xd2   : > { %v941_v15 = vsel %vm940_vm4, %v930_v42, %v939_v12  ;;  %v955_v17 = vperm.slane %v947_v13, 0  ;;  %v956_v8 = vperm.slane %v948_v21, 0  ;;  %v950_v42 = vrot.slane %v4126_v3, 5 }
  0xd3   : > { %v4129_v19 = vsel %vm942_vm5, %v943_v10, %v941_v15  ;;  %v957_v43 = vperm.slane %v949_v31, 0  ;;  %v954_v47 = vperm.slane %v946_v41, 0  ;;  %v1336_v61 = vmul.f32 %v3656_v53, %v4141_v36 }
  0xd4   : > { %v971_v23 = vmul.f32 %v955_v17, %v4129_v19  ;;  %v969_v28 = vmul.f32 %v953_v22, %v4129_v19  ;;  %v4144_v37 = vmul.f32 %v956_v8, %v4129_v19  ;;  %v958_v52 = vperm.slane %v950_v42, 0 }
  0xd5   : > { %v973_v46 = vmul.f32 %v957_v43, %v4129_v19  ;;  %v970_v55 = vmul.f32 %v954_v47, %v4129_v19  ;;  %v1337_v10 = vmul.f32 %v3656_v53, %v1336_v61  ;;  %v1306_v13 = vmul.f32 0.5, %v1305_v1 }
  0xd6   : > { %vm977_vm6 = vcmp.gt.f32.partialorder %v969_v28, 1e-08  ;;  %v4153_v58 = vmul.f32 %v958_v52, %v4129_v19  ;;  %vm979_vm8 = vcmp.gt.f32.partialorder %v971_v23, 1e-08  ;;  %vm980_vm15 = vcmp.gt.f32.partialorder %v4144_v37, 1e-08 }
  0xd7   : > { %v985_v49 = vsel %vm977_vm6, %v969_v28, 1e-08  ;;  %vm981_vm7 = vcmp.gt.f32.partialorder %v973_v46, 1e-08  ;;  %v4158_v15 = vsel %vm979_vm8, %v971_v23, 1e-08  ;;  %v4160_v31 = vpop.f32.mrf.mxu0 }
  0xd8   : > { %3657 = vrcp.f32 %v985_v49  ;;  %v989_v60 = vsel %vm981_vm7, %v973_v46, 1e-08  ;;  %vm998_vm9 = vweird.f32 %v985_v49  ;;  %v1002_v21 = vand.u32 2147483647, %v985_v49 }
  0xd9   : > { %3659 = vrcp.f32 %v989_v60  ;;  %v1004_v22 = vand.u32 2147483648, %v985_v49  ;;  %v1338_v28 = vmul.f32 0.5, %v1337_v10  ;;  %v1307_v42 = vsub.f32 1.5, %v1306_v13  ;;  %v4169_v10 = vpop.f32.mrf.mxu3 }
  0xda   : > { %3661 = vrcp.f32 %v4158_v15  ;;  %vm1003_vm12 = vcmp.eq.f32.partialorder %v1002_v21, 8.507059e+37  ;;  %v1064_v52 = vand.u32 2147483648, %v989_v60  ;;  %vm1058_vm13 = vweird.f32 %v989_v60 }
  0xdb   : > { %v1005_v47 = vor.u32 1.1754944e-38, %v1004_v22  ;;  %v1339_v61 = vsub.f32 1.5, %v1338_v28  ;;  %v1308_v21 = vmul.f32 %v3654_v48, %v1307_v42  ;;  %vm978_vm4 = vcmp.gt.f32.partialorder %v970_v55, 1e-08 }
  0xdc   : > { %vm1113_vm5 = vcmask 162816   ;;  %vm982_vm6 = vcmp.gt.f32.partialorder %v4153_v58, 1e-08  ;;  %vm1310_vm7 = vcmp.eq.f32.partialorder %v4133_v4, inf  ;;  %vm1342_vm8 = vcmp.eq.f32.partialorder %v4141_v36, inf }
  0xde   : > { %v3658_v2 = vpop.eup %3657 }
  0xdf   : > { %v994_v12 = vmul.f32 %v3658_v2, %v985_v49  ;;  %vm999_vm10 = vweird.f32 %v3658_v2  ;;  %v3660_v8 = vpop.eup %3659  ;;  %v1062_v49 = vand.u32 2147483647, %v989_v60  ;;  %v869_v43 = vpop.f32.mrf.mxu0 }
  0xe0   : > { %vm4163_vm11 = vmor %vm998_vm9, %vm999_vm10  ;;  %v1054_v46 = vmul.f32 %v3660_v8, %v989_v60  ;;  %vm1059_vm14 = vweird.f32 %v3660_v8  ;;  %v4175_v60 = vsel %vm980_vm15, %v4144_v37, 1e-08  ;;  %vm1312_vm9 = vcmp.eq.f32.partialorder %v4133_v4, 0.0 }
  0xe1   : > { %v995_v17 = vsub.f32 1.0, %v994_v12  ;;  %vm1060_vm2 = vmor %vm1058_vm13, %vm1059_vm14  ;;  %vm1063_vm3 = vcmp.eq.f32.partialorder %v1062_v49, 8.507059e+37  ;;  %3663 = vrcp.f32 %v4175_v60  ;;  %vm1344_vm10 = vcmp.eq.f32.partialorder %v4141_v36, 0.0 }
  0xe2   : > { %v1055_v54 = vsub.f32 1.0, %v1054_v46  ;;  %v1340_v46 = vmul.f32 %v3656_v53, %v1339_v61  ;;  %v4200_v61 = vpop.f32.mrf.mxu3 }
  0xe3   : > { %v996_v41 = vmul.f32 %v3658_v2, %v995_v17  ;;  %v1065_v17 = vor.u32 1.1754944e-38, %v1064_v52  ;;  %v1309_v52 = vmul.f32 %v1308_v21, %v4133_v4 }
  0xe4   : > { %v1056_v12 = vmul.f32 %v3660_v8, %v1055_v54  ;;  %v1341_v37 = vmul.f32 %v1340_v46, %v4141_v36 }
  0xe5   : > { %v997_v23 = vadd.f32 %v3658_v2, %v996_v41  ;;  %v4172_v41 = vpop.eup %3661  ;;  %v1311_v49 = vsel %vm1310_vm7, %v4133_v4, %v1309_v52 }
  0xe6   : > { %v1057_v22 = vadd.f32 %v3660_v8, %v1056_v12  ;;  %v1024_v48 = vmul.f32 %v4172_v41, %v4158_v15  ;;  %v1343_v12 = vsel %vm1342_vm8, %v4141_v36, %v1341_v37 }
  0xe7   : > { %v1001_v1 = vsel %vm4163_vm11, %v3658_v2, %v997_v23  ;;  %vm1028_vm11 = vweird.f32 %v4158_v15 }
  0xe8   : > { %v1006_v13 = vsel %vm1003_vm12, %v1005_v47, %v1001_v1  ;;  %v1061_v28 = vsel %vm1060_vm2, %v3660_v8, %v1057_v22  ;;  %v986_v47 = vsel %vm978_vm4, %v970_v55, 1e-08  ;;  %v4192_v55 = vsel %vm982_vm6, %v4153_v58, 1e-08 }
  0xe9   : > { %v1007_v2 = vmul.f32 %v1006_v13, %v4124_v0  ;;  %v1066_v23 = vsel %vm1063_vm3, %v1065_v17, %v1061_v28  ;;  %3665 = vrcp.f32 %v986_v47  ;;  %v1313_v8 = vand.u32 2147483648, %v4133_v4  ;;  %v4206_v13 = vpop.eup %3663 }
  0xea   : > { %v1067_v54 = vmul.f32 %v1066_v23, %v869_v43  ;;  %v1345_v1 = vand.u32 2147483648, %v4141_v36  ;;  %3667 = vrcp.f32 %v4192_v55  ;;  %v1025_v58 = vsub.f32 1.0, %v1024_v48  ;;  %v4228_v34 = vpop.f32.mrf.mxu3 }
  0xeb   : > { %v4186_v0 = vsel %vm1113_vm5, %v1007_v2, -inf  ;;  %v4208_v17 = vsel %vm1312_vm9, %v1313_v8, %v1311_v49  ;;  %v1032_v4 = vand.u32 2147483647, %v4158_v15  ;;  %v1034_v22 = vand.u32 2147483648, %v4158_v15 }
  0xec   : > { %v4189_v53 = vsel %vm1113_vm5, %v1067_v54, -inf  ;;  %v1019_v46 = vand.u32 2147483648, %v986_v47  ;;  %v1351_v2 = vrot.slane %v4208_v17, 4  ;;  %vm1029_vm12 = vweird.f32 %v4172_v41 }
  0xed   : > { %v4215_v28 = vsel %vm1344_vm10, %v1345_v1, %v1343_v12  ;;  %v1047_v36 = vand.u32 2147483647, %v4175_v60  ;;  %v1026_v23 = vmul.f32 %v4172_v41, %v1025_v58  ;;  %v1039_v52 = vmul.f32 %v4206_v13, %v4175_v60  ;;  %vm4257_vm10 = vmor %vm1028_vm11, %vm1029_vm12 }
  0xee   : > { %vm1013_vm13 = vweird.f32 %v986_v47  ;;  %v1355_v54 = vperm.slane %v4208_v17, 0  ;;  %v1017_v8 = vand.u32 2147483647, %v986_v47  ;;  %vm1073_vm15 = vweird.f32 %v4192_v55 }
  0xef   : > { %v3666_v21 = vpop.eup %3665  ;;  %v1020_v49 = vor.u32 1.1754944e-38, %v1019_v46  ;;  %v1359_v12 = vperm.slane %v1351_v2, 0  ;;  %v1077_v58 = vand.u32 2147483647, %v4192_v55  ;;  %v1079_v30 = vand.u32 2147483648, %v4192_v55 }
  0xf0   : > { %v1009_v43 = vmul.f32 %v3666_v21, %v986_v47  ;;  %v3668_v48 = vpop.eup %3667  ;;  %vm1014_vm14 = vweird.f32 %v3666_v21  ;;  %v1371_v32 = vmul.f32 %v1355_v54, %v4215_v28  ;;  %v1040_v54 = vsub.f32 1.0, %v1039_v52 }
  0xf1   : > { %v1069_v1 = vmul.f32 %v3668_v48, %v4192_v55  ;;  %vm4231_vm2 = vmor %vm1013_vm13, %vm1014_vm14  ;;  %vm1074_vm3 = vweird.f32 %v3668_v48  ;;  %v1375_v2 = vmul.f32 %v1359_v12, %v4215_v28  ;;  %vm1018_vm6 = vcmp.eq.f32.partialorder %v1017_v8, 8.507059e+37 }
  0xf2   : > { %v1010_v37 = vsub.f32 1.0, %v1009_v43  ;;  %vm1379_vm4 = vcmp.gt.f32.partialorder %v1371_v32, 1e-08  ;;  %v4239_v14 = vadd.f32 %v4172_v41, %v1026_v23  ;;  %vm4246_vm8 = vmor %vm1073_vm15, %vm1074_vm3  ;;  %vm1078_vm9 = vcmp.eq.f32.partialorder %v1077_v58, 8.507059e+37 }
  0xf3   : > { %v1070_v46 = vsub.f32 1.0, %v1069_v1  ;;  %v4236_v25 = vsel %vm1379_vm4, %v1371_v32, 1e-08  ;;  %vm1383_vm7 = vcmp.gt.f32.partialorder %v1375_v2, 1e-08  ;;  %v959_v32 = vperm.slane %v951_v11, 0 }
  0xf4   : > { %v1011_v42 = vmul.f32 %v3666_v21, %v1010_v37  ;;  %3669 = vrcp.f32 %v4236_v25  ;;  %v4250_v52 = vsel %vm1383_vm7, %v1375_v2, 1e-08  ;;  %vm4261_vm13 = vcmp.eq.f32.partialorder %v1032_v4, 8.507059e+37  ;;  %v872_v4 = vpop.f32.mrf.mxu0 }
  0xf5   : > { %v1071_v50 = vmul.f32 %v3668_v48, %v1070_v46  ;;  %3671 = vrcp.f32 %v4250_v52  ;;  %vm1043_vm14 = vweird.f32 %v4175_v60  ;;  %v1348_v12 = vrot.slane %v4208_v17, 1 }
  0xf6   : > { %v1012_v37 = vadd.f32 %v3666_v21, %v1011_v42  ;;  %v1080_v42 = vor.u32 1.1754944e-38, %v1079_v30  ;;  %v1035_v30 = vor.u32 1.1754944e-38, %v1034_v22  ;;  %v1041_v58 = vmul.f32 %v4206_v13, %v1040_v54 }
  0xf7   : > { %v1072_v23 = vadd.f32 %v3668_v48, %v1071_v50  ;;  %vm1044_vm11 = vweird.f32 %v4206_v13  ;;  %v975_v22 = vmul.f32 %v959_v32, %v4129_v19  ;;  %vm4279_vm12 = vcmp.eq.f32.partialorder %v1047_v36, 8.507059e+37  ;;  %v4290_v32 = vpop.f32.mrf.mxu3 }
  0xf8   : > { %v1016_v47 = vsel %vm4231_vm2, %v3666_v21, %v1012_v37  ;;  %vm1400_vm15 = vweird.f32 %v4236_v25  ;;  %v1404_v54 = vand.u32 2147483647, %v4236_v25  ;;  %v1406_v1 = vand.u32 2147483648, %v4236_v25 }
  0xf9   : > { %v1021_v8 = vsel %vm1018_vm6, %v1020_v49, %v1016_v47  ;;  %v1049_v49 = vand.u32 2147483648, %v4175_v60  ;;  %v1076_v15 = vsel %vm4246_vm8, %v3668_v48, %v1072_v23  ;;  %vm983_vm2 = vcmp.gt.f32.partialorder %v975_v22, 1e-08  ;;  %vm4309_vm6 = vmor %vm1043_vm14, %vm1044_vm11 }
  0xfa   : > { %v1022_v50 = vmul.f32 %v1021_v8, %v4138_v33  ;;  %v1081_v43 = vsel %vm1078_vm9, %v1080_v42, %v1076_v15  ;;  %v3670_v46 = vpop.eup %3669  ;;  %v1031_v33 = vsel %vm4257_vm10, %v4172_v41, %v4239_v14  ;;  %v4295_v41 = vsel %vm983_vm2, %v975_v22, 1e-08 }
  0xfb   : > { %v1082_v48 = vmul.f32 %v1081_v43, %v872_v4  ;;  %v1396_v47 = vmul.f32 %v3670_v46, %v4236_v25  ;;  %v3672_v42 = vpop.eup %3671  ;;  %v1352_v36 = vrot.slane %v4208_v17, 5  ;;  %v1356_v8 = vperm.slane %v1348_v12, 0 }
  0xfc   : > { %v4286_v37 = vsel %vm1113_vm5, %v1022_v50, -inf  ;;  %vm1401_vm3 = vweird.f32 %v3670_v46  ;;  %v1456_v50 = vmul.f32 %v3672_v42, %v4250_v52  ;;  %v1042_v15 = vadd.f32 %v4206_v13, %v1041_v58 }
  0xfd   : > { %v4293_v14 = vsel %vm1113_vm5, %v1082_v48, -inf  ;;  %v1397_v21 = vsub.f32 1.0, %v1396_v47  ;;  %vm1460_vm4 = vweird.f32 %v4250_v52  ;;  %v1466_v4 = vand.u32 2147483648, %v4250_v52  ;;  %vm4316_vm8 = vmor %vm1400_vm15, %vm1401_vm3 }
  0xfe   : > { %3673 = vrcp.f32 %v4295_v41  ;;  %v1457_v22 = vsub.f32 1.0, %v1456_v50  ;;  %vm1461_vm7 = vweird.f32 %v3672_v42  ;;  %v1464_v48 = vand.u32 2147483647, %v4250_v52 }
  0xff   : > { %v1398_v43 = vmul.f32 %v3670_v46, %v1397_v21  ;;  %v1050_v58 = vor.u32 1.1754944e-38, %v1049_v49  ;;  %v1407_v23 = vor.u32 1.1754944e-38, %v1406_v1  ;;  %v1360_v11 = vperm.slane %v1352_v36, 0  ;;  %vm4328_vm10 = vmor %vm1460_vm4, %vm1461_vm7 }
 0x100   : > { %v1372_v60 = vmul.f32 %v1356_v8, %v4215_v28  ;;  %v1036_v5 = vsel %vm4261_vm13, %v1035_v30, %v1031_v33  ;;  %vm1405_vm9 = vcmp.eq.f32.partialorder %v1404_v54, 8.507059e+37  ;;  %v1458_v21 = vmul.f32 %v3672_v42, %v1457_v22 }
 0x101   : > { %v1399_v44 = vadd.f32 %v3670_v46, %v1398_v43  ;;  %v1046_v49 = vsel %vm4309_vm6, %v4206_v13, %v1042_v15  ;;  %v1467_v1 = vor.u32 1.1754944e-38, %v1466_v4  ;;  %v1376_v36 = vmul.f32 %v1360_v11, %v4215_v28 }
 0x102   : > { %vm1380_vm14 = vcmp.gt.f32.partialorder %v1372_v60, 1e-08  ;;  %v1459_v30 = vadd.f32 %v3672_v42, %v1458_v21  ;;  %vm1465_vm13 = vcmp.eq.f32.partialorder %v1464_v48, 8.507059e+37  ;;  %v1037_v8 = vmul.f32 %v1036_v5, %v4155_v59 }
 0x103   : > { %v1403_v55 = vsel %vm4316_vm8, %v3670_v46, %v1399_v44  ;;  %v1388_v33 = vsel %vm1380_vm14, %v1372_v60, 1e-08  ;;  %vm1384_vm11 = vcmp.gt.f32.partialorder %v1376_v36, 1e-08  ;;  %v1051_v52 = vsel %vm4279_vm12, %v1050_v58, %v1046_v49  ;;  %v1271_v44 = vpop.f32.mrf.mxu3 }
 0x104   : > { %v3674_v54 = vpop.eup %3673  ;;  %v1408_v13 = vsel %vm1405_vm9, %v1407_v23, %v1403_v55  ;;  %3675 = vrcp.f32 %v1388_v33  ;;  %v1463_v11 = vsel %vm4328_vm10, %v3672_v42, %v1459_v30  ;;  %vm1088_vm15 = vweird.f32 %v4295_v41 }
 0x105   : > { %v1409_v50 = vmul.f32 %v1408_v13, %v4169_v10  ;;  %v1084_v15 = vmul.f32 %v3674_v54, %v4295_v41  ;;  %v1468_v46 = vsel %vm1465_vm13, %v1467_v1, %v1463_v11  ;;  %v1094_v4 = vand.u32 2147483648, %v4295_v41 }
 0x106   : > { %v1392_v5 = vsel %vm1384_vm11, %v1376_v36, 1e-08  ;;  %v1469_v59 = vmul.f32 %v1468_v46, %v1271_v44  ;;  %vm1089_vm2 = vweird.f32 %v3674_v54  ;;  %v1092_v2 = vand.u32 2147483647, %v4295_v41 }
 0x107   : > { %v1085_v23 = vsub.f32 1.0, %v1084_v15  ;;  %3677 = vrcp.f32 %v1392_v5  ;;  %v4346_v10 = vsel %vm1113_vm5, %v1037_v8, -inf  ;;  %v4349_v42 = vsel %vm1113_vm5, %v1409_v50, -inf  ;;  %vm4361_vm12 = vmor %vm1088_vm15, %vm1089_vm2  ;;  %v875_v15 = vpop.f32.mrf.mxu0 }
 0x108   : > { %v4352_v12 = vsel %vm1113_vm5, %v1469_v59, -inf  ;;  %v1052_v48 = vmul.f32 %v1051_v52, %v4160_v31  ;;  %v5327_v58 = vrot.slane %v4208_v17, 2  ;;  %v1095_v49 = vor.u32 1.1754944e-38, %v1094_v4 }
 0x109   : > { %v1086_v43 = vmul.f32 %v3674_v54, %v1085_v23  ;;  %v1350_v25 = vrot.slane %v4208_v17, 3  ;;  %vm1093_vm3 = vcmp.eq.f32.partialorder %v1092_v2, 8.507059e+37  ;;  %v1129_v31 = vrot.slane %v4346_v10, 4 }
 0x10a   : > { %v3676_v22 = vpop.eup %3675  ;;  %v1357_v47 = vperm.slane %v5327_v58, 0  ;;  %vm1415_vm4 = vweird.f32 %v1388_v33  ;;  %v1419_v55 = vand.u32 2147483647, %v1388_v33  ;;  %v1421_v30 = vand.u32 2147483648, %v1388_v33 }
 0x10b   : > { %v1087_v1 = vadd.f32 %v3674_v54, %v1086_v43  ;;  %v1411_v36 = vmul.f32 %v3676_v22, %v1388_v33  ;;  %vm1416_vm6 = vweird.f32 %v3676_v22  ;;  %v952_v41 = vrot.slane %v4126_v3, 7 }
 0x10c   : > { %v4371_v50 = vsel %vm1113_vm5, %v1052_v48, -inf  ;;  %v1115_v11 = vrot.slane %v4186_v0, 4  ;;  %vm1475_vm7 = vweird.f32 %v1392_v5  ;;  %v1479_v23 = vand.u32 2147483647, %v1392_v5  ;;  %vm4375_vm8 = vmor %vm1415_vm4, %vm1416_vm6 }
 0x10d   : > { %v1091_v8 = vsel %vm4361_vm12, %v3674_v54, %v1087_v1  ;;  %v1412_v13 = vsub.f32 1.0, %v1411_v36  ;;  %v3678_v52 = vpop.eup %3677  ;;  %vm4379_vm9 = vcmp.eq.f32.partialorder %v1419_v55, 8.507059e+37  ;;  %v1422_v2 = vor.u32 1.1754944e-38, %v1421_v30 }
 0x10e   : > { %v1096_v44 = vsel %vm1093_vm3, %v1095_v49, %v1091_v8  ;;  %v1471_v59 = vmul.f32 %v3678_v52, %v1392_v5  ;;  %v1481_v43 = vand.u32 2147483648, %v1392_v5  ;;  %v960_v48 = vperm.slane %v952_v41, 0 }
 0x10f   : > { %v1097_v46 = vmul.f32 %v1096_v44, %v875_v15  ;;  %v1413_v4 = vmul.f32 %v3676_v22, %v1412_v13  ;;  %vm1476_vm10 = vweird.f32 %v3678_v52  ;;  %v1373_v1 = vmul.f32 %v1357_v47, %v4215_v28 }
 0x110   : > { %v1472_v49 = vsub.f32 1.0, %v1471_v59  ;;  %v1122_v33 = vrot.slane %v4286_v37, 4  ;;  %v1358_v55 = vperm.slane %v1350_v25, 0  ;;  %v976_v13 = vmul.f32 %v960_v48, %v4129_v19  ;;  %vm4398_vm14 = vmor %vm1475_vm7, %vm1476_vm10 }
 0x111   : > { %v4384_v58 = vsel %vm1113_vm5, %v1097_v46, -inf  ;;  %v1414_v21 = vadd.f32 %v3676_v22, %v1413_v4  ;;  %v1130_v41 = vmax.f32 %v4346_v10, %v1129_v31  ;;  %v1136_v15 = vrot.slane %v4371_v50, 4 }
 0x112   : > { %v1473_v30 = vmul.f32 %v3678_v52, %v1472_v49  ;;  %v1482_v46 = vor.u32 1.1754944e-38, %v1481_v43  ;;  %v1116_v25 = vmax.f32 %v4186_v0, %v1115_v11  ;;  %vm1480_vm13 = vcmp.eq.f32.partialorder %v1479_v23, 8.507059e+37  ;;  %v1274_v11 = vpop.f32.mrf.mxu3 }
 0x113   : > { %v1418_v8 = vsel %vm4375_vm8, %v3676_v22, %v1414_v21  ;;  %vm984_vm11 = vcmp.gt.f32.partialorder %v976_v13, 1e-08  ;;  %v1143_v19 = vrot.slane %v4189_v53, 4  ;;  %v1123_v22 = vmax.f32 %v4286_v37, %v1122_v33 }
 0x114   : > { %v1423_v44 = vsel %vm4379_vm9, %v1422_v2, %v1418_v8  ;;  %v1474_v4 = vadd.f32 %v3678_v52, %v1473_v30  ;;  %v992_v31 = vsel %vm984_vm11, %v976_v13, 1e-08  ;;  %v1150_v59 = vrot.slane %v4293_v14, 4  ;;  %v4412_v8 = vpop.f32.mrf.mxu2 }
 0x115   : > { %v1424_v54 = vmul.f32 %v1423_v44, %v4200_v61  ;;  %3679 = vrcp.f32 %v992_v31  ;;  %v1131_v3 = vrot.slane %v1130_v41, 2  ;;  %v1374_v2 = vmul.f32 %v1358_v55, %v4215_v28 }
 0x116   : > { %v1478_v5 = vsel %vm4398_vm14, %v3678_v52, %v1474_v4  ;;  %v1137_v23 = vmax.f32 %v4371_v50, %v1136_v15  ;;  %vm1381_vm15 = vcmp.gt.f32.partialorder %v1373_v1, 1e-08  ;;  %v1117_v48 = vrot.slane %v1116_v25, 2 }
 0x117   : > { %v1483_v43 = vsel %vm1480_vm13, %v1482_v46, %v1478_v5  ;;  %v1144_v49 = vmax.f32 %v4189_v53, %v1143_v19  ;;  %v1124_v33 = vrot.slane %v1123_v22, 2  ;;  %v1151_v61 = vmax.f32 %v4293_v14, %v1150_v59 }
 0x118   : > { %v1484_v21 = vmul.f32 %v1483_v43, %v1274_v11  ;;  %v1157_v52 = vrot.slane %v4384_v58, 4  ;;  %v4417_v30 = vsel %vm1113_vm5, %v1424_v54, -inf  ;;  %v1132_v13 = vmax.f32 %v1130_v41, %v1131_v3 }
 0x119   : > { %v4422_v15 = vsel %vm1381_vm15, %v1373_v1, 1e-08  ;;  %vm1382_vm2 = vcmp.gt.f32.partialorder %v1374_v2, 1e-08  ;;  %v1138_v46 = vrot.slane %v1137_v23, 2  ;;  %v1118_v4 = vmax.f32 %v1116_v25, %v1117_v48 }
 0x11a   : > { %v4420_v55 = vsel %vm1113_vm5, %v1484_v21, -inf  ;;  %v1353_v19 = vrot.slane %v4208_v17, 6  ;;  %3681 = vrsqrt.f32 %v4412_v8  ;;  %v1145_v59 = vrot.slane %v1144_v49, 2 }
 0x11b   : > { %v3680_v47 = vpop.eup %3679  ;;  %v1125_v54 = vmax.f32 %v1123_v22, %v1124_v33  ;;  %v1354_v11 = vrot.slane %v4208_v17, 7  ;;  %v4429_v43 = vsel %vm1382_vm2, %v1374_v2, 1e-08  ;;  %v1152_v1 = vrot.slane %v1151_v61, 2 }
 0x11c   : > { %v1099_v5 = vmul.f32 %v3680_v47, %v992_v31  ;;  %v1158_v41 = vmax.f32 %v4384_v58, %v1157_v52  ;;  %v1109_v3 = vand.u32 2147483648, %v992_v31  ;;  %vm1103_vm12 = vweird.f32 %v992_v31 }
 0x11d   : > { %vm1104_vm3 = vweird.f32 %v3680_v47  ;;  %v1107_v60 = vand.u32 2147483647, %v992_v31  ;;  %v1133_v25 = vrot.slane %v1132_v13, 1  ;;  %v1139_v48 = vmax.f32 %v1137_v23, %v1138_v46  ;;  %v878_v46 = vpop.f32.mrf.mxu0 }
 0x11e   : > { %v1100_v21 = vsub.f32 1.0, %v1099_v5  ;;  %v1119_v44 = vrot.slane %v1118_v4, 1  ;;  %v1361_v36 = vperm.slane %v1353_v19, 0  ;;  %v1146_v35 = vmax.f32 %v1144_v49, %v1145_v59  ;;  %vm4432_vm4 = vmor %vm1103_vm12, %vm1104_vm3 }
 0x11f   : > { %v1126_v26 = vrot.slane %v1125_v54, 1  ;;  %v1362_v33 = vperm.slane %v1354_v11, 0  ;;  %v1153_v17 = vmax.f32 %v1151_v61, %v1152_v1  ;;  %v1110_v52 = vor.u32 1.1754944e-38, %v1109_v3 }
 0x120   : > { %v1101_v22 = vmul.f32 %v3680_v47, %v1100_v21  ;;  %v3682_v18 = vpop.eup %3681  ;;  %v1930_v5 = vsel %vm350_vm0, %v3958_v27, 0.0  ;;  %v1159_v31 = vrot.slane %v1158_v41, 2  ;;  %vm1108_vm6 = vcmp.eq.f32.partialorder %v1107_v60, 8.507059e+37 }
 0x121   : > { %v1637_v23 = vmul.f32 %v3682_v18, %v4412_v8  ;;  %1931 = vadd.xlane.f32.xlu1 %v1930_v5  ;;  %v1134_v49 = vmax.f32 %v1132_v13, %v1133_v25  ;;  %3683 = vrcp.f32 %v4422_v15  ;;  %v1377_v61 = vmul.f32 %v1361_v36, %v4215_v28 }
 0x122   : > { %v1102_v45 = vadd.f32 %v3680_v47, %v1101_v22  ;;  %v1786_v19 = vshrl.u32 %v1785_v51, 7  ;;  %v1140_v59 = vrot.slane %v1139_v48, 1  ;;  %v1147_v11 = vrot.slane %v1146_v35, 1 }
 0x123   : > { %v1378_v3 = vmul.f32 %v1362_v33, %v4215_v28  ;;  %v1120_v21 = vmax.f32 %v1118_v4, %v1119_v44  ;;  %3685 = vrcp.f32 %v4429_v43  ;;  %v1638_v22 = vmul.f32 %v3682_v18, %v1637_v23 }
 0x124   : > { %v1106_v1 = vsel %vm4432_vm4, %v3680_v47, %v1102_v45  ;;  %3648 = vset.pattern.permute.xlu0 %v1786_v19  ;;  %3647 = vset.pattern.permute.xlu1 %v1786_v19  ;;  %v1127_v13 = vmax.f32 %v1125_v54, %v1126_v26  ;;  %v1154_v25 = vrot.slane %v1153_v17, 1  ;;  %v1160_v5 = vmax.f32 %v1158_v41, %v1159_v31 }
 0x125   : > { %v1111_v60 = vsel %vm1108_vm6, %v1110_v52, %v1106_v1  ;;  %vm1385_vm7 = vcmp.gt.f32.partialorder %v1377_v61, 1e-08  ;;  %v1639_v51 = vmul.f32 0.5, %v1638_v22  ;;  %v1927_v36 = vsel %vm350_vm0, %v3921_v20, 0.0 }
 0x126   : > { %v1112_v27 = vmul.f32 %v1111_v60, %v878_v46  ;;  %vm2688_vm8 = vcmask 1041409   ;;  %v1141_v45 = vmax.f32 %v1139_v48, %v1140_v59  ;;  %v1148_v47 = vmax.f32 %v1146_v35, %v1147_v11 }
 0x127   : > { %vm1386_vm9 = vcmp.gt.f32.partialorder %v1378_v3, 1e-08  ;;  %v4448_v44 = vpop.eup %3683  ;;  %v1640_v26 = vsub.f32 1.5, %v1639_v51  ;;  %vm5293_vm10 = vcmask 1042434   ;;  %v1155_v54 = vmax.f32 %v1153_v17, %v1154_v25 }
 0x128   : > { %v1163_v28 = vsel %vm1113_vm5, %v1112_v27, -inf  ;;  %v1161_v41 = vrot.slane %v1160_v5, 1  ;;  %v4451_v2 = vsel %vm1385_vm7, %v1377_v61, 1e-08  ;;  %v3175_v52 = vsel %vm2688_vm8, %v1127_v13, %v1120_v21 }
 0x129   : > { %v1164_v4 = vrot.slane %v1163_v28, 4  ;;  %v1173_v33 = vmax.f32 %v4371_v50, %v1163_v28  ;;  %1928 = vadd.xlane.f32.xlu1 %v1927_v36  ;;  %v4454_v31 = vpop.eup %3685  ;;  %v4456_v48 = vsel %vm1386_vm9, %v1378_v3, 1e-08  ;;  %v1641_v27 = vmul.f32 %v3682_v18, %v1640_v26 }
 0x12a   : > { %vm5292_vm14 = vcmask 1043459   ;;  %vm1643_vm13 = vcmp.eq.f32.partialorder %v4412_v8, inf  ;;  %vm5291_vm11 = vcmask 1044484   ;;  %v3176_v50 = vsel %vm5293_vm10, %v1134_v49, %v3175_v52 }
 0x12b   : > { %v1165_v35 = vmax.f32 %v1163_v28, %v1164_v4  ;;  %v5338_v17 = vmax.f32 %v4286_v37, %v4293_v14  ;;  %v5339_v23 = vmax.f32 %v4186_v0, %v4189_v53  ;;  %v1642_v19 = vmul.f32 %v1641_v27, %v4412_v8 }
 0x12c   : > { %v1646_v59 = vand.u32 2147483648, %v4412_v8  ;;  %vm5290_vm15 = vcmask 1045509   ;;  %vm1645_vm2 = vcmp.eq.f32.partialorder %v4412_v8, 0.0  ;;  %v1162_v18 = vmax.f32 %v1160_v5, %v1161_v41 }
 0x12d   : > { %v4466_v46 = vmax.f32 %v5339_v23, %v5338_v17  ;;  %v1166_v61 = vrot.slane %v1165_v35, 2  ;;  %v3177_v11 = vsel %vm5292_vm14, %v1141_v45, %v3176_v50  ;;  %v5340_v49 = vmax.f32 %v4346_v10, %v4384_v58 }
 0x12e   : > { %v1644_v0 = vsel %vm1643_vm13, %v4412_v8, %v1642_v19  ;;  %vm5289_vm12 = vcmask 1046534   ;;  %v3178_v53 = vsel %vm5291_vm11, %v1148_v47, %v3177_v11  ;;  %3687 = vrcp.f32 %v4451_v2 }
 0x12f   : > { %v4475_v37 = vmax.f32 %v5340_v49, %v1173_v33  ;;  %v1167_v14 = vmax.f32 %v1165_v35, %v1166_v61  ;;  %v1647_v1 = vsel %vm1645_vm2, %v1646_v59, %v1644_v0  ;;  %v3179_v3 = vsel %vm5290_vm15, %v1155_v54, %v3178_v53  ;;  %v1606_v49 = vpop.f32.mrf.mxu1 }
 0x130   : > { %3689 = vrcp.f32 %v4456_v48  ;;  %vm1648_vm3 = vcmp.gt.f32.partialorder %v1647_v1, 1e-08  ;;  %v3180_v10 = vsel %vm5289_vm12, %v1162_v18, %v3179_v3  ;;  %vm5288_vm4 = vcmask 1047559   ;;  %v1277_v3 = vpop.f32.mrf.mxu3 }
 0x131   : > { %v1649_v21 = vsel %vm1648_vm3, %v1647_v1, 1e-08  ;;  %v1168_v60 = vrot.slane %v1167_v14, 1  ;;  %v1426_v22 = vmul.f32 %v4448_v44, %v4422_v15  ;;  %v1441_v51 = vmul.f32 %v4454_v31, %v4429_v43 }
 0x132   : > { %3691 = vrcp.f32 %v1649_v21  ;;  %vm1430_vm6 = vweird.f32 %v4422_v15  ;;  %v1661_v52 = vand.u32 2147483648, %v1649_v21  ;;  %v1659_v50 = vand.u32 2147483647, %v1649_v21 }
 0x133   : > { %v1169_v58 = vmax.f32 %v1167_v14, %v1168_v60  ;;  %v1427_v45 = vsub.f32 1.0, %v1426_v22  ;;  %v1442_v33 = vsub.f32 1.0, %v1441_v51  ;;  %vm1431_vm9 = vweird.f32 %v4448_v44 }
 0x134   : > { %v4487_v13 = vpop.eup %3687  ;;  %v1434_v17 = vand.u32 2147483647, %v4422_v15  ;;  %v1436_v23 = vand.u32 2147483648, %v4422_v15  ;;  %vm1445_vm13 = vweird.f32 %v4429_v43  ;;  %v1449_v19 = vand.u32 2147483647, %v4429_v43  ;;  %vm4519_vm10 = vmor %vm1430_vm6, %vm1431_vm9 }
 0x135   : > { %v4490_v25 = vsel %vm5288_vm4, %v1169_v58, %v3180_v10  ;;  %v1486_v47 = vmul.f32 %v4487_v13, %v4451_v2  ;;  %v1428_v54 = vmul.f32 %v4448_v44, %v1427_v45  ;;  %v1443_v61 = vmul.f32 %v4454_v31, %v1442_v33 }
 0x136   : > { %v4492_v5 = vpop.eup %3689  ;;  %vm1655_vm2 = vweird.f32 %v1649_v21  ;;  %vm1446_vm3 = vweird.f32 %v4454_v31  ;;  %v1451_v11 = vand.u32 2147483648, %v4429_v43  ;;  %v1662_v14 = vor.u32 1.1754944e-38, %v1661_v52 }
 0x137   : > { %v1501_v28 = vmul.f32 %v4492_v5, %v4456_v48  ;;  %v1487_v41 = vsub.f32 1.0, %v1486_v47  ;;  %v1429_v18 = vadd.f32 %v4448_v44, %v1428_v54  ;;  %vm1660_vm12 = vcmp.eq.f32.partialorder %v1659_v50, 8.507059e+37 }
 0x138   : > { %v3692_v36 = vpop.eup %3691  ;;  %vm1490_vm15 = vweird.f32 %v4451_v2  ;;  %vm1491_vm11 = vweird.f32 %v4487_v13  ;;  %vm1697_vm14 = vcmask 64512   ;;  %v1444_v10 = vadd.f32 %v4454_v31, %v1443_v61 }
 0x139   : > { %v1651_v4 = vmul.f32 %v3692_v36, %v1649_v21  ;;  %v1502_v35 = vsub.f32 1.0, %v1501_v28  ;;  %vm1656_vm7 = vweird.f32 %v3692_v36  ;;  %v1488_v0 = vmul.f32 %v4487_v13, %v1487_v41  ;;  %vm4543_vm6 = vmor %vm1490_vm15, %vm1491_vm11 }
 0x13a   : > { %vm1657_vm4 = vmor %vm1655_vm2, %vm1656_vm7  ;;  %vm1506_vm7 = vweird.f32 %v4492_v5  ;;  %v1494_v15 = vand.u32 2147483647, %v4451_v2  ;;  %v1496_v51 = vand.u32 2147483648, %v4451_v2  ;;  %v1511_v45 = vand.u32 2147483648, %v4456_v48  ;;  %v4633_v2 = vld [vmem:[%s5273_s4 + $0x68] sm:$0xff] }
 0x13b   : > { %v1652_v26 = vsub.f32 1.0, %v1651_v4  ;;  %v1503_v53 = vmul.f32 %v4492_v5, %v1502_v35  ;;  %v1489_v47 = vadd.f32 %v4487_v13, %v1488_v0  ;;  %vm1435_vm11 = vcmp.eq.f32.partialorder %v1434_v17, 8.507059e+37 }
 0x13c   : > { %v1437_v54 = vor.u32 1.1754944e-38, %v1436_v23  ;;  %vm1450_vm15 = vcmp.eq.f32.partialorder %v1449_v19, 8.507059e+37  ;;  %v1452_v41 = vor.u32 1.1754944e-38, %v1451_v11  ;;  %v1433_v52 = vsel %vm4519_vm10, %v4448_v44, %v1429_v18  ;;  %v1280_v44 = vpop.f32.mrf.mxu3 }
 0x13d   : > { %v1653_v27 = vmul.f32 %v3692_v36, %v1652_v26  ;;  %v1504_v43 = vadd.f32 %v4492_v5, %v1503_v53  ;;  %v4561_v26 = vld [vmem:[%s3868_s23] sm:$0xff]  ;;  %v1497_v35 = vor.u32 1.1754944e-38, %v1496_v51  ;;  %v1493_v50 = vsel %vm4543_vm6, %v4487_v13, %v1489_v47 }
 0x13e   : > { %v1438_v23 = vsel %vm1435_vm11, %v1437_v54, %v1433_v52  ;;  %v5350_v60 = vmax.f32 %v4349_v42, %v4352_v12  ;;  %vm5353_vm6 = vcmask 1042434   ;;  %vm5355_vm11 = vcmask 1044484  }
 0x13f   : > { %v1654_v59 = vadd.f32 %v3692_v36, %v1653_v27  ;;  %v1512_v27 = vor.u32 1.1754944e-38, %v1511_v45  ;;  %v1439_v13 = vmul.f32 %v1438_v23, %v4228_v34 }
 0x141   : > { %v1658_v1 = vsel %vm1657_vm4, %v3692_v36, %v1654_v59  ;;  %vm1505_vm4 = vweird.f32 %v4456_v48  ;;  %v1509_v36 = vand.u32 2147483647, %v4456_v48 }
 0x142   : > { %v1663_v21 = vsel %vm1660_vm12, %v1662_v14, %v1658_v1  ;;  %vm4532_vm12 = vmor %vm1445_vm13, %vm1446_vm3  ;;  %vm1495_vm13 = vcmp.eq.f32.partialorder %v1494_v15, 8.507059e+37 }
 0x143   : > { %v4526_v58 = vmul.f32 %v1663_v21, %v1606_v49  ;;  %vm4556_vm9 = vmor %vm1505_vm4, %vm1506_vm7  ;;  %v1448_v48 = vsel %vm4532_vm12, %v4454_v31, %v1444_v10  ;;  %vm1510_vm2 = vcmp.eq.f32.partialorder %v1509_v36, 8.507059e+37  ;;  %v1498_v19 = vsel %vm1495_vm13, %v1497_v35, %v1493_v50  ;;  %v4578_v31 = vld [vmem:[%s3863_s18] sm:$0xff] }
 0x144   : > { %v1508_v17 = vsel %vm4556_vm9, %v4492_v5, %v1504_v43  ;;  %v1453_v61 = vsel %vm1450_vm15, %v1452_v41, %v1448_v48  ;;  %v1499_v49 = vmul.f32 %v1498_v19, %v1277_v3  ;;  %v4585_v5 = vsel %vm1113_vm5, %v1439_v13, -inf  ;;  %v4622_v43 = vld [vmem:[%s5273_s4 + $0x70] sm:$0xf]  ;;  %v4642_v41 = vld [vmem:[%s5273_s4 + $0x60] sm:$0xff]  ;;  %vm5356_vm15 = vmmov %vm5353_vm6 }
 0x145   : > { %1665 = vxpose.xlu2.b32.start.end [1/1] (short) (narrow) %v4526_v58, 8  ;;  %3523 = vmatmul.msk.f32.vlgmr.msra.gmra.mxu1 %vm1697_vm14, %v4526_v58  ;;  %v1721_v4 = vsel %vm1697_vm14, %v4526_v58, 0.0  ;;  %v1791_v33 = vperm.slane %v4526_v58, 1  ;;  %v1513_v59 = vsel %vm1510_vm2, %v1512_v27, %v1508_v17  ;;  %v1798_v18 = vperm.slane %v4526_v58, 2  ;;  %v4655_v27 = vld [vmem:[%s3842_s10] sm:$0xff] }
 0x146   : > { %1722 = vadd.xlane.f32.xlu1 %v1721_v4  ;;  %2063 = vmatpush.msra.mxu1 %v4561_v26  ;;  %v1454_v11 = vmul.f32 %v1453_v61, %v4290_v32  ;;  %v1514_v14 = vmul.f32 %v1513_v59, %v1280_v44  ;;  %v4591_v53 = vsel %vm1113_vm5, %v1499_v49, -inf  ;;  %v1805_v3 = vperm.slane %v4526_v58, 3 }
 0x147   : > { %1796 = vperm.xlu0 %3648, %v1791_v33   ;;  %v1573_v34 = vmax.f32 %v4585_v5, %v4591_v53  ;;  %v5349_v21 = vmax.f32 %v4417_v30, %v4420_v55  ;;  %v1812_v51 = vperm.slane %v4526_v58, 4  ;;  %v1784_v36 = vperm.slane %v4526_v58, 0  ;;  %3539 = vmatpush.xpose.msk.msra.mxu0 %vm350_vm0, %v4622_v43 }
 0x148   : > { %v4588_v0 = vsel %vm1113_vm5, %v1454_v11, -inf  ;;  %v4594_v1 = vsel %vm1113_vm5, %v1514_v14, -inf  ;;  %v1819_v45 = vperm.slane %v4526_v58, 5  ;;  %vm5354_vm9 = vcmask 1043459  }
 0x149   : > { %v1574_v32 = vmax.f32 %v4588_v0, %v4594_v1  ;;  %v4607_v10 = vmax.f32 %v5350_v60, %v5349_v21  ;;  %vm5357_vm13 = vmmov %vm5354_vm9 }
 0x14b   : > { %v4609_v22 = vmax.f32 %v1573_v34, %v1574_v32  ;;  %3540 = vmatpush.xpose.msk.msra.mxu0 %vm350_vm0, %v4633_v2 }
 0x14d   : > { %3526 = vmatmul.msk.f32.vlgmr.msrb.gmra.mxu1 %vm350_vm0, %v4578_v31  ;;  %5351 = vst [vmem:[#allocation16_spill] sm:$0xff] %v4609_v22 }
 0x14e   : > { %3531 = vmatpush.xpose.msk.msrb.mxu1 %vm350_vm0, %v4622_v43 }
 0x14f   : > { %1803 = vperm.xlu0 %3648, %v1798_v18   ;;  %3541 = vmatpush.xpose.msk.msra.mxu0 %vm350_vm0, %v4642_v41 }
 0x152   : > { %3532 = vmatpush.xpose.msk.msrb.mxu1 %vm350_vm0, %v4633_v2 }
 0x153   : > { %3555 = vmatpush.xpose.msk.msrb.mxu0 %vm350_vm0, %v4622_v43 }
 0x156   : > { %3533 = vmatpush.xpose.msk.msrb.mxu1 %vm350_vm0, %v4642_v41 }
 0x157   : > { %1810 = vperm.xlu0 %3648, %v1805_v3   ;;  %3556 = vmatpush.xpose.msk.msrb.mxu0 %vm350_vm0, %v4633_v2 }
 0x15b   : > { %3557 = vmatpush.xpose.msk.msrb.mxu0 %vm350_vm0, %v4642_v41 }
 0x15f   : > { %1817 = vperm.xlu0 %3648, %v1812_v51   ;;  %1789 = vperm.xlu1 %3647, %v1784_v36  }
 0x167   : > { %1824 = vperm.xlu0 %3648, %v1819_v45  }
 0x194   : > { %v1932_v47 = vpop.xlane.xlu1 %1931 }
 0x195   : > { %3527 = vmatpush.xpose.msk.msrb.mxu2 %vm1609_vm1, %v1932_v47 }
 0x19c   : > { %v4617_v28 = vpop.xlane.xlu1 %1928 }
 0x1b9   : > { %v4628_v4 = vpop.permute.xlu0 %1796  ;;  %v1723_v33 = vpop.xlane.xlu1 %1722 }
 0x1ba   : > { %vm1724_vm10 = vcmp.gt.f32.partialorder %v1723_v33, 1e-08  ;;  %v1841_v50 = vmul.f32 %v4655_v27, %v4628_v4 }
 0x1bb   : > { %v1725_v54 = vsel %vm1724_vm10, %v1723_v33, 1e-08 }
 0x1bc   : > { %3693 = vrcp.f32 %v1725_v54  ;;  %v1737_v61 = vand.u32 2147483648, %v1725_v54  ;;  %v1735_v44 = vand.u32 2147483647, %v1725_v54  ;;  %v1855_v59 = vsel %vm350_vm0, %v1841_v50, -inf }
 0x1bd   : > { %vm1731_vm4 = vweird.f32 %v1725_v54  ;;  %v1856_v34 = vrot.slane %v1855_v59, 4 }
 0x1be   : > { %v1738_v49 = vor.u32 1.1754944e-38, %v1737_v61  ;;  %vm1736_vm12 = vcmp.eq.f32.partialorder %v1735_v44, 8.507059e+37 }
 0x1bf   : > { %v1857_v47 = vmax.f32 %v1855_v59, %v1856_v34  ;;  %v5352_v34 = vperm.slane %v3879_v9, 0 }
 0x1c1   : > { %v4650_v52 = vpop.permute.xlu0 %1803  ;;  %v1858_v61 = vrot.slane %v1857_v47, 2 }
 0x1c2   : > { %v3694_v48 = vpop.eup %3693  ;;  %v1842_v23 = vmul.f32 %v4655_v27, %v4650_v52  ;;  %v1718_v21 = vpop.f32.mrf.mxu1 }
 0x1c3   : > { %v1727_v35 = vmul.f32 %v3694_v48, %v1725_v54  ;;  %vm1732_vm3 = vweird.f32 %v3694_v48 }
 0x1c4   : > { %v1862_v18 = vsel %vm350_vm0, %v1842_v23, -inf  ;;  %vm1733_vm7 = vmor %vm1731_vm4, %vm1732_vm3 }
 0x1c5   : > { %v1728_v17 = vsub.f32 1.0, %v1727_v35  ;;  %v1863_v3 = vrot.slane %v1862_v18, 4 }
 0x1c7   : > { %v1729_v19 = vmul.f32 %v3694_v48, %v1728_v17  ;;  %v1864_v54 = vmax.f32 %v1862_v18, %v1863_v3  ;;  %v1859_v3 = vmax.f32 %v1857_v47, %v1858_v61 }
 0x1c9   : > { %v1730_v13 = vadd.f32 %v3694_v48, %v1729_v19  ;;  %v4665_v11 = vpop.permute.xlu0 %1810  ;;  %v1865_v19 = vrot.slane %v1864_v54, 2 }
 0x1ca   : > { %v1843_v14 = vmul.f32 %v4655_v27, %v4665_v11 }
 0x1cb   : > { %v1734_v32 = vsel %vm1733_vm7, %v3694_v48, %v1730_v13 }
 0x1cc   : > { %v1739_v60 = vsel %vm1736_vm12, %v1738_v49, %v1734_v32  ;;  %v1869_v51 = vsel %vm350_vm0, %v1843_v14, -inf }
 0x1cd   : > { %v4670_v36 = vmul.f32 %v1739_v60, %v1718_v21  ;;  %v1870_v45 = vrot.slane %v1869_v51, 4 }
 0x1cf   : > { %v2327_v33 = vmul.f32 %v4670_v36, %v4670_v36  ;;  %v1871_v35 = vmax.f32 %v1869_v51, %v1870_v45  ;;  %v1905_v51 = vmul.f32 %v4628_v4, %v4002_v38  ;;  %v1866_v45 = vmax.f32 %v1864_v54, %v1865_v19 }
 0x1d1   : > { %v1818_v50 = vpop.permute.xlu0 %1817  ;;  %v1790_v17 = vpop.permute.xlu1 %1789  ;;  %3542 = vmatmul.msk.f32.vlgmr.msra.gmra.mxu0 %vm350_vm0, %v2327_v33  ;;  %v1872_v59 = vrot.slane %v1871_v35, 2  ;;  %v1867_v61 = vrot.slane %v1866_v45, 1 }
 0x1d2   : > { %v1844_v48 = vmul.f32 %v4655_v27, %v1818_v50  ;;  %v1840_v23 = vmul.f32 %v4655_v27, %v1790_v17  ;;  %v1908_v18 = vmul.f32 %v1818_v50, %v4058_v56  ;;  %v1904_v32 = vmul.f32 %v1790_v17, %v5352_v34 }
 0x1d3   : > { %v1873_v33 = vmax.f32 %v1871_v35, %v1872_v59  ;;  %v1860_v56 = vrot.slane %v1859_v3, 1  ;;  %v1913_v17 = vsel %vm350_vm0, %v1905_v51, -inf }
 0x1d4   : > { %v1876_v44 = vsel %vm350_vm0, %v1844_v48, -inf  ;;  %v1848_v13 = vsel %vm350_vm0, %v1840_v23, -inf  ;;  %v1916_v23 = vsel %vm350_vm0, %v1908_v18, -inf  ;;  %v1912_v22 = vsel %vm350_vm0, %v1904_v32, -inf }
 0x1d5   : > { %v1877_v49 = vrot.slane %v1876_v44, 4  ;;  %v1849_v14 = vrot.slane %v1848_v13, 4  ;;  %v1874_v4 = vrot.slane %v1873_v33, 1  ;;  %v1917_v35 = vmax.f32 %v1912_v22, %v1916_v23 }
 0x1d6   : > { %v1861_v59 = vmax.f32 %v1859_v3, %v1860_v56 }
 0x1d7   : > { %v1878_v21 = vmax.f32 %v1876_v44, %v1877_v49  ;;  %v1850_v60 = vmax.f32 %v1848_v13, %v1849_v14 }
 0x1d9   : > { %v1879_v15 = vrot.slane %v1878_v21, 2  ;;  %v1851_v48 = vrot.slane %v1850_v60, 2  ;;  %v4684_v8 = vpop.permute.xlu0 %1824 }
 0x1da   : > { %v1909_v9 = vmul.f32 %v4684_v8, %v4070_v62  ;;  %v1868_v62 = vmax.f32 %v1866_v45, %v1867_v61 }
 0x1db   : > { %v1880_v47 = vmax.f32 %v1878_v21, %v1879_v15  ;;  %v1852_v50 = vmax.f32 %v1850_v60, %v1851_v48  ;;  %v1875_v15 = vmax.f32 %v1873_v33, %v1874_v4  ;;  %v2757_v60 = vmul.f32 %v1861_v59, %v1861_v59 }
 0x1dc   : > { %v1918_v38 = vsel %vm350_vm0, %v1909_v9, -inf  ;;  %v2758_v45 = vmul.f32 %v1868_v62, %v1868_v62 }
 0x1dd   : > { %v1853_v54 = vrot.slane %v1852_v50, 1  ;;  %v1919_v19 = vmax.f32 %v1913_v17, %v1918_v38  ;;  %v1881_v44 = vrot.slane %v1880_v47, 1  ;;  %v2759_v33 = vmul.f32 %v1875_v15, %v1875_v15 }
 0x1de   : > { %v4692_v13 = vpop.trf.xlu2 }
 0x1df   : > { %v1854_v49 = vmax.f32 %v1852_v50, %v1853_v54  ;;  %v4694_v14 = vmax.f32 %v1917_v35, %v1919_v19  ;;  %3524 = vmatmul.msk.f32.vlgmr.msra.gmra.mxu2 %vm1697_vm14, %v4692_v13  ;;  %v1882_v34 = vmax.f32 %v1880_v47, %v1881_v44 }
 0x1e0   : > { %2106 = vmatpush.msra.mxu2 %v4578_v31 }
 0x1e1   : > { %v2689_v18 = vsel %vm2688_vm8, %v1861_v59, %v1854_v49  ;;  %v2756_v3 = vmul.f32 %v1854_v49, %v1854_v49  ;;  %v2760_v48 = vmul.f32 %v1882_v34, %v1882_v34 }
 0x1e2   : > { %v2691_v22 = vsel %vm5353_vm6, %v1868_v62, %v2689_v18 }
 0x1e3   : > { %v2693_v32 = vsel %vm5354_vm9, %v1875_v15, %v2691_v22  ;;  %v2772_v51 = vsel %vm2688_vm8, %v2757_v60, %v2756_v3  ;;  %v1955_v60 = vpop.f32.mrf.mxu1  ;;  %vm5359_vm9 = vmmov %vm5356_vm15 }
 0x1e4   : > { %v4703_v21 = vsel %vm5355_vm11, %v1882_v34, %v2693_v32  ;;  %v2773_v23 = vsel %vm5356_vm15, %v2758_v45, %v2772_v51 }
 0x1e7   : > { %3528 = vmatmul.msk.f32.vlgmr.msrb.gmra.mxu2 %vm1609_vm1, %v4617_v28  ;;  %v2774_v28 = vsel %vm5357_vm13, %v2759_v33, %v2773_v23  ;;  %vm5358_vm1 = vmmov %vm5355_vm11 }
 0x1e8   : > { %3535 = vmatpush.xpose.msk.msrb.mxu2 %vm350_vm0, %v4622_v43  ;;  %v4717_v9 = vsel %vm5358_vm1, %v2760_v48, %v2774_v28  ;;  %vm5360_vm11 = vmmov %vm5357_vm13  ;;  %vm5362_vm13 = vcmask 1045509  }
 0x1e9   : > { %vm5361_vm15 = vmmov %vm5358_vm1  ;;  %vm5363_vm1 = vcmask 1046534  }
 0x1ec   : > { %3536 = vmatpush.xpose.msk.msrb.mxu2 %vm350_vm0, %v4633_v2 }
 0x1f0   : > { %3537 = vmatpush.xpose.msk.msrb.mxu2 %vm350_vm0, %v4642_v41 }
 0x262   : > { %v4719_v56 = vpop.f32.mrf.mxu2 }
 0x26a   : > { %v1981_v47 = vpop.f32.mrf.mxu2 }
 0x26b   : > { %3695 = vrsqrt.f32 %v1981_v47  ;;  %vm1991_vm2 = vcmp.eq.f32.partialorder %v1981_v47, inf  ;;  %v1994_v19 = vand.u32 2147483648, %v1981_v47  ;;  %vm1993_vm10 = vcmp.eq.f32.partialorder %v1981_v47, 0.0 }
 0x271   : > { %v3696_v50 = vpop.eup %3695 }
 0x272   : > { %v1985_v17 = vmul.f32 %v3696_v50, %v1981_v47 }
 0x274   : > { %v1986_v61 = vmul.f32 %v3696_v50, %v1985_v17 }
 0x276   : > { %v1987_v38 = vmul.f32 0.5, %v1986_v61 }
 0x278   : > { %v1988_v4 = vsub.f32 1.5, %v1987_v38 }
 0x27a   : > { %v1989_v54 = vmul.f32 %v3696_v50, %v1988_v4 }
 0x27c   : > { %v1990_v35 = vmul.f32 %v1989_v54, %v1981_v47  ;;  %v1516_v54 = vrot.slane %v4349_v42, 4 }
 0x27e   : > { %v1992_v44 = vsel %vm1991_vm2, %v1981_v47, %v1990_v35  ;;  %v4724_v47 = vld [vmem:[%s3847_s13] sm:$0xff]  ;;  %v1523_v35 = vrot.slane %v4417_v30, 4  ;;  %s3768_s13 = smov 20   ;;  %vm5364_vm2 = vcmask 1047559  }
 0x27f   : > { %v1995_v59 = vsel %vm1993_vm10, %v1994_v19, %v1992_v44  ;;  %v2274_v50 = vmul.f32 %v4724_v47, %v4670_v36  ;;  %v1530_v44 = vrot.slane %v4585_v5, 4  ;;  %v1517_v36 = vmax.f32 %v4349_v42, %v1516_v54 }
 0x280   : > { %vm1996_vm3 = vcmp.gt.f32.partialorder %v1995_v59, 1e-08 }
 0x281   : > { %v1997_v49 = vsel %vm1996_vm3, %v1995_v59, 1e-08  ;;  %v1524_v59 = vmax.f32 %v4417_v30, %v1523_v35 }
 0x282   : > { %3697 = vrcp.f32 %v1997_v49  ;;  %v2009_v34 = vand.u32 2147483648, %v1997_v49  ;;  %v2007_v32 = vand.u32 2147483647, %v1997_v49  ;;  %vm2003_vm7 = vweird.f32 %v1997_v49 }
 0x283   : > { %3699 = vrsqrt.f32 %v4114_v29 }
 0x284   : > { %v2010_v51 = vor.u32 1.1754944e-38, %v2009_v34  ;;  %vm2008_vm6 = vcmp.eq.f32.partialorder %v2007_v32, 8.507059e+37  ;;  %v1544_v34 = vrot.slane %v4352_v12, 4  ;;  %3701 = vrsqrt.f32 %v4122_v40 }
 0x286   : > { %v1545_v42 = vmax.f32 %v4352_v12, %v1544_v34 }
 0x288   : > { %v3698_v62 = vpop.eup %3697 }
 0x289   : > { %v1999_v15 = vmul.f32 %v3698_v62, %v1997_v49  ;;  %vm2004_vm4 = vweird.f32 %v3698_v62  ;;  %v1537_v49 = vrot.slane %v4588_v0, 4 }
 0x28a   : > { %vm2005_vm12 = vmor %vm2003_vm7, %vm2004_vm4 }
 0x28b   : > { %v2000_v18 = vsub.f32 1.0, %v1999_v15  ;;  %v1518_v15 = vrot.slane %v1517_v36, 2  ;;  %v1538_v32 = vmax.f32 %v4588_v0, %v1537_v49  ;;  %v1565_v0 = vrot.slane %v4594_v1, 4 }
 0x28d   : > { %v2001_v22 = vmul.f32 %v3698_v62, %v2000_v18  ;;  %v1525_v18 = vrot.slane %v1524_v59, 2  ;;  %v1539_v30 = vrot.slane %v1538_v32, 2 }
 0x28f   : > { %v2002_v3 = vadd.f32 %v3698_v62, %v2001_v22 }
 0x291   : > { %v2006_v45 = vsel %vm2005_vm12, %v3698_v62, %v2002_v3  ;;  %v1531_v62 = vmax.f32 %v4585_v5, %v1530_v44 }
 0x292   : > { %v2011_v33 = vsel %vm2008_vm6, %v2010_v51, %v2006_v45  ;;  %v1526_v51 = vmax.f32 %v1524_v59, %v1525_v18  ;;  %v1551_v45 = vrot.slane %v4420_v55, 4  ;;  %v1566_v59 = vmax.f32 %v4594_v1, %v1565_v0 }
 0x293   : > { %v2012_v48 = vmul.f32 %v2011_v33, %v1955_v60  ;;  %v1532_v3 = vrot.slane %v1531_v62, 2  ;;  %v1519_v60 = vmax.f32 %v1517_v36, %v1518_v15  ;;  %v1826_v18 = vperm.slane %v4526_v58, 6 }
 0x294   : > { %vm550_vm6 = vcmp.eq.f32.partialorder %v4114_v29, inf }
 0x295   : > { %2013 = vxpose.xlu2.b32.start.end [1/1] (short) (narrow) %v2012_v48, 8  ;;  %3529 = vmatmul.msk.f32.vlgmr.msra.gmra.mxu1 %vm1697_vm14, %v2012_v48  ;;  %v2068_v23 = vsel %vm1697_vm14, %v2012_v48, 0.0  ;;  %v2131_v28 = vperm.slane %v2012_v48, 0  ;;  %v2145_v17 = vperm.slane %v2012_v48, 2  ;;  %v2152_v61 = vperm.slane %v2012_v48, 3 }
 0x296   : > { %2069 = vadd.xlane.f32.xlu0 %v2068_v23  ;;  %v2138_v38 = vperm.slane %v2012_v48, 1  ;;  %v2159_v4 = vperm.slane %v2012_v48, 4  ;;  %v2166_v19 = vperm.slane %v2012_v48, 5  ;;  %v2173_v22 = vperm.slane %v2012_v48, 6 }
 0x297   : > { %2136 = vperm.xlu1 %3647, %v2131_v28   ;;  %v1533_v33 = vmax.f32 %v1531_v62, %v1532_v3  ;;  %v1558_v23 = vrot.slane %v4591_v53, 4  ;;  %v1520_v5 = vrot.slane %v1519_v60, 1  ;;  %v1527_v28 = vrot.slane %v1526_v51, 1 }
 0x299   : > { %v1559_v54 = vmax.f32 %v4591_v53, %v1558_v23  ;;  %v1521_v35 = vmax.f32 %v1519_v60, %v1520_v5 }
 0x29b   : > { %v1560_v62 = vrot.slane %v1559_v54, 2 }
 0x29d   : > { %3534 = vmatmul.msk.f32.vlgmr.msrb.gmra.mxu1 %vm350_vm0, %v2274_v50  ;;  %v1552_v50 = vmax.f32 %v4420_v55, %v1551_v45 }
 0x29f   : > { %2150 = vperm.xlu1 %3647, %v2145_v17   ;;  %v1546_v17 = vrot.slane %v1545_v42, 2  ;;  %v1553_v12 = vrot.slane %v1552_v50, 2 }
 0x2a1   : > { %v1547_v44 = vmax.f32 %v1545_v42, %v1546_v17  ;;  %v1554_v15 = vmax.f32 %v1552_v50, %v1553_v12  ;;  %v4790_v12 = vld [vmem:[%s5273_s4 + $0x78] sm:$0xff] }
 0x2a3   : > { %v1555_v3 = vrot.slane %v1554_v15, 1 }
 0x2a5   : > { %v1556_v42 = vmax.f32 %v1554_v15, %v1555_v3 }
 0x2a7   : > { %2157 = vperm.xlu1 %3647, %v2152_v61   ;;  %v2180_v61 = vperm.slane %v2012_v48, 7  ;;  %v1548_v48 = vrot.slane %v1547_v44, 1 }
 0x2a9   : > { %v1549_v60 = vmax.f32 %v1547_v44, %v1548_v48 }
 0x2aa   : > { %2143 = vperm.xlu0 %3648, %v2138_v38   ;;  %v1540_v38 = vmax.f32 %v1538_v32, %v1539_v30  ;;  %v1561_v32 = vmax.f32 %v1559_v54, %v1560_v62  ;;  %v4779_v54 = vld [vmem:[%s5273_s4 + $0x80] sm:$0xff] }
 0x2ac   : > { %v1541_v36 = vrot.slane %v1540_v38, 1  ;;  %v1562_v1 = vrot.slane %v1561_v32, 1 }
 0x2ae   : > { %v1542_v34 = vmax.f32 %v1540_v38, %v1541_v36  ;;  %v1563_v23 = vmax.f32 %v1561_v32, %v1562_v1  ;;  %v3700_v38 = vpop.eup %3699 }
 0x2af   : > { %2164 = vperm.xlu1 %3647, %v2159_v4   ;;  %v1534_v4 = vrot.slane %v1533_v33, 1 }
 0x2b1   : > { %v1535_v49 = vmax.f32 %v1533_v33, %v1534_v4 }
 0x2b7   : > { %2171 = vperm.xlu1 %3647, %v2166_v19   ;;  %v1528_v19 = vmax.f32 %v1526_v51, %v1527_v28 }
 0x2b9   : > { %v3205_v55 = vsel %vm2688_vm8, %v1528_v19, %v1521_v35  ;;  %v3702_v19 = vpop.eup %3701 }
 0x2ba   : > { %v3206_v53 = vsel %vm5359_vm9, %v1535_v49, %v3205_v55  ;;  %v748_v36 = vmul.f32 %v3702_v19, %v4122_v40  ;;  %vm552_vm9 = vcmp.eq.f32.partialorder %v4114_v29, 0.0 }
 0x2bb   : > { %v3207_v45 = vsel %vm5360_vm11, %v1542_v34, %v3206_v53  ;;  %vm754_vm11 = vcmp.eq.f32.partialorder %v4122_v40, inf }
 0x2bc   : > { %v3208_v30 = vsel %vm5361_vm15, %v1549_v60, %v3207_v45  ;;  %v749_v55 = vmul.f32 %v3702_v19, %v748_v36  ;;  %vm756_vm15 = vcmp.eq.f32.partialorder %v4122_v40, 0.0 }
 0x2bd   : > { %v3209_v5 = vsel %vm5362_vm13, %v1556_v42, %v3208_v30 }
 0x2be   : > { %v3210_v50 = vsel %vm5363_vm1, %v1563_v23, %v3209_v5  ;;  %v750_v32 = vmul.f32 0.5, %v749_v55  ;;  %v553_v23 = vand.u32 2147483648, %v4114_v29 }
 0x2bf   : > { %2178 = vperm.xlu1 %3647, %v2173_v22   ;;  %v1567_v22 = vrot.slane %v1566_v59, 2 }
 0x2c0   : > { %v751_v45 = vsub.f32 1.5, %v750_v32 }
 0x2c1   : > { %v1568_v51 = vmax.f32 %v1566_v59, %v1567_v22 }
 0x2c2   : > { %v752_v5 = vmul.f32 %v3702_v19, %v751_v45 }
 0x2c3   : > { %v1569_v33 = vrot.slane %v1568_v51, 1 }
 0x2c5   : > { %v1570_v28 = vmax.f32 %v1568_v51, %v1569_v33 }
 0x2c7   : > { %2185 = vperm.xlu1 %3647, %v2180_v61   ;;  %v3211_v17 = vsel %vm5364_vm2, %v1570_v28, %v3210_v50  ;;  %v5365_v61 = vmax.f32 %v4466_v46, %v4475_v37  ;;  %v1764_v46 = vsel %vm1697_vm14, %v4692_v13, 0.0  ;;  %v544_v37 = vmul.f32 %v3700_v38, %v4114_v29 }
 0x2c9   : > { %v545_v35 = vmul.f32 %v3700_v38, %v544_v37 }
 0x2cb   : > { %v546_v44 = vmul.f32 0.5, %v545_v35 }
 0x2cd   : > { %v547_v15 = vsub.f32 1.5, %v546_v44 }
 0x2cf   : > { %1831 = vperm.xlu1 %3647, %v1826_v18   ;;  %v548_v22 = vmul.f32 %v3700_v38, %v547_v15 }
 0x2d7   : > { %3182 = vrot.lane.b32.xlu1 %v4490_v25, %s3768_s13  ;;  %v4762_v25 = vld [vmem:[%s5273_s4 + $0x88] sm:$0xf] }
 0x2d8   : > { %3543 = vmatpush.xpose.msk.msra.mxu3 %vm350_vm0, %v4762_v25  ;;  %3547 = vmatpush.xpose.msk.msra.mxu1 %vm350_vm0, %v4762_v25 }
 0x2d9   : > { %3571 = vmatpush.xpose.msk.msra.mxu0 %vm350_vm0, %v4762_v25 }
 0x2dc   : > { %3544 = vmatpush.xpose.msk.msra.mxu3 %vm350_vm0, %v4779_v54  ;;  %3548 = vmatpush.xpose.msk.msra.mxu1 %vm350_vm0, %v4779_v54 }
 0x2dd   : > { %3572 = vmatpush.xpose.msk.msra.mxu0 %vm350_vm0, %v4779_v54 }
 0x2df   : > { %3212 = vrot.lane.b32.xlu1 %v3211_v17, %s3769_s26  ;;  %v753_v17 = vmul.f32 %v752_v5, %v4122_v40 }
 0x2e0   : > { %3545 = vmatpush.xpose.msk.msra.mxu3 %vm350_vm0, %v4790_v12  ;;  %3549 = vmatpush.xpose.msk.msra.mxu1 %vm350_vm0, %v4790_v12 }
 0x2e1   : > { %3573 = vmatpush.xpose.msk.msra.mxu0 %vm350_vm0, %v4790_v12 }
 0x2e3   : > { %3550 = vmatmul.msk.f32.vlgmr.msra.gmra.mxu1 %vm350_vm0, %v3921_v20 }
 0x2e4   : > { %3559 = vmatpush.xpose.msk.msrb.mxu3 %vm350_vm0, %v4622_v43  ;;  %3563 = vmatpush.xpose.msk.msrb.mxu1 %vm350_vm0, %v4622_v43 }
 0x2e7   : > { %3239 = vrot.lane.b32.xlu1 %v5365_v61, %s3768_s13  ;;  %v757_v61 = vand.u32 2147483648, %v4122_v40 }
 0x2e8   : > { %3560 = vmatpush.xpose.msk.msrb.mxu3 %vm350_vm0, %v4633_v2  ;;  %3564 = vmatpush.xpose.msk.msrb.mxu1 %vm350_vm0, %v4633_v2  ;;  %v549_v2 = vmul.f32 %v548_v22, %v4114_v29 }
 0x2ea   : > { %v551_v28 = vsel %vm550_vm6, %v4114_v29, %v549_v2  ;;  %v755_v29 = vsel %vm754_vm11, %v4122_v40, %v753_v17 }
 0x2eb   : > { %v554_v50 = vsel %vm552_vm9, %v553_v23, %v551_v28 }
 0x2ec   : > { %3561 = vmatpush.xpose.msk.msrb.mxu3 %vm350_vm0, %v4642_v41  ;;  %3565 = vmatpush.xpose.msk.msrb.mxu1 %vm350_vm0, %v4642_v41 }
 0x306   : > { %1765 = vadd.xlane.f32.xlu2 %v1764_v46  ;;  %v758_v46 = vsel %vm756_vm15, %v757_v61, %v755_v29 }
 0x309   : > { %v4774_v0 = vpop.permute.xlu1 %2136  ;;  %v2070_v4 = vpop.xlane.xlu0 %2069 }
 0x30a   : > { %vm2071_vm10 = vcmp.gt.f32.partialorder %v2070_v4, 1e-08 }
 0x30b   : > { %v2072_v13 = vsel %vm2071_vm10, %v2070_v4, 1e-08  ;;  %v4844_v4 = vmax.f32 %v758_v46, 1e-08 }
 0x30c   : > { %3703 = vrcp.f32 %v2072_v13  ;;  %v2084_v18 = vand.u32 2147483648, %v2072_v13  ;;  %v2082_v43 = vand.u32 2147483647, %v2072_v13  ;;  %vm2078_vm4 = vweird.f32 %v2072_v13 }
 0x30d   : > { %vm765_vm10 = vweird.f32 %v4844_v4 }
 0x30e   : > { %v2085_v60 = vor.u32 1.1754944e-38, %v2084_v18  ;;  %vm2083_vm12 = vcmp.eq.f32.partialorder %v2082_v43, 8.507059e+37  ;;  %v5366_v18 = vld [vmem:[#allocation4_spill] sm:$0xff]  ;;  %v5367_v43 = vld [vmem:[#allocation6_spill] sm:$0xff] }
 0x311   : > { %v4797_v59 = vpop.permute.xlu1 %2150 }
 0x312   : > { %v3704_v49 = vpop.eup %3703  ;;  %v2065_v1 = vpop.f32.mrf.mxu1 }
 0x313   : > { %v2074_v62 = vmul.f32 %v3704_v49, %v2072_v13  ;;  %vm2079_vm3 = vweird.f32 %v3704_v49 }
 0x314   : > { %vm2080_vm7 = vmor %vm2078_vm4, %vm2079_vm3 }
 0x315   : > { %v2075_v48 = vsub.f32 1.0, %v2074_v62 }
 0x317   : > { %v2076_v34 = vmul.f32 %v3704_v49, %v2075_v48 }
 0x319   : > { %v2077_v53 = vadd.f32 %v3704_v49, %v2076_v34  ;;  %v4811_v3 = vpop.permute.xlu1 %2157  ;;  %v2253_v34 = vmul.f32 %v4797_v59, %v5366_v18 }
 0x31b   : > { %v2081_v51 = vsel %vm2080_vm7, %v3704_v49, %v2077_v53  ;;  %v5368_v53 = vld [vmem:[#allocation9_spill] sm:$0xff] }
 0x31c   : > { %v2086_v42 = vsel %vm2083_vm12, %v2085_v60, %v2081_v51  ;;  %v4853_v19 = vpop.permute.xlu0 %2143 }
 0x31d   : > { %v2087_v30 = vmul.f32 %v2086_v42, %v2065_v1  ;;  %v2252_v49 = vmul.f32 %v4853_v19, %v4008_v39  ;;  %v2254_v39 = vmul.f32 %v4811_v3, %v5367_v43  ;;  %v2261_v42 = vsel %vm350_vm0, %v2253_v34, -inf  ;;  %v5370_v34 = vld [vmem:[#allocation15_spill] sm:$0xff] }
 0x31f   : > { %v2380_v33 = vmul.f32 %v4578_v31, %v2087_v30  ;;  %v4830_v31 = vmax.f32 %v554_v50, 1e-08  ;;  %v2433_v23 = vmul.f32 %v2087_v30, %v2087_v30 }
 0x321   : > { %v4823_v41 = vpop.permute.xlu1 %2164  ;;  %3546 = vmatmul.msk.f32.vlgmr.msra.gmra.mxu3 %vm350_vm0, %v2380_v33  ;;  %3705 = vrcp.f32 %v4830_v31  ;;  %v2262_v33 = vsel %vm350_vm0, %v2254_v39, -inf  ;;  %v567_v29 = vand.u32 2147483648, %v4830_v31  ;;  %v565_v30 = vand.u32 2147483647, %v4830_v31 }
 0x322   : > { %3575 = vmatpush.xpose.msk.msra.mxu3 %vm350_vm0, %v4762_v25  ;;  %3707 = vrcp.f32 %v4844_v4  ;;  %v2255_v62 = vmul.f32 %v4823_v41, %v4061_v57 }
 0x323   : > { %vm566_vm2 = vcmp.eq.f32.partialorder %v565_v30, 8.507059e+37  ;;  %v2191_v30 = vmul.f32 %v4561_v26, %v4823_v41 }
 0x326   : > { %3576 = vmatpush.xpose.msk.msra.mxu3 %vm350_vm0, %v4779_v54 }
 0x327   : > { %v3706_v13 = vpop.eup %3705 }
 0x328   : > { %v557_v44 = vmul.f32 %v3706_v13, %v4830_v31  ;;  %v3708_v48 = vpop.eup %3707  ;;  %vm562_vm13 = vweird.f32 %v3706_v13 }
 0x329   : > { %v4837_v38 = vpop.permute.xlu1 %2171  ;;  %3562 = vmatmul.msk.f32.vlgmr.msrb.gmra.mxu3 %vm350_vm0, %v3872_v6  ;;  %v761_v45 = vmul.f32 %v3708_v48, %v4844_v4  ;;  %vm766_vm3 = vweird.f32 %v3708_v48 }
 0x32a   : > { %3577 = vmatpush.xpose.msk.msra.mxu3 %vm350_vm0, %v4790_v12  ;;  %v2256_v36 = vmul.f32 %v4837_v38, %v4073_v63  ;;  %v558_v55 = vsub.f32 1.0, %v557_v44  ;;  %v2251_v63 = vmul.f32 %v4774_v0, %v3946_v24  ;;  %v2263_v24 = vsel %vm350_vm0, %v2255_v62, -inf  ;;  %vm767_vm4 = vmor %vm765_vm10, %vm766_vm3 }
 0x32b   : > { %v568_v44 = vor.u32 1.1754944e-38, %v567_v29 }
 0x32c   : > { %v2265_v22 = vsel %vm350_vm0, %v2256_v36, -inf  ;;  %v559_v2 = vmul.f32 %v3706_v13, %v558_v55  ;;  %v2259_v1 = vsel %vm350_vm0, %v2251_v63, -inf  ;;  %v5369_v63 = vld [vmem:[#allocation12_spill] sm:$0xff] }
 0x32d   : > { %v2264_v5 = vmax.f32 %v2259_v1, %v2263_v24 }
 0x32e   : > { %v2029_v37 = vpop.trf.xlu2 }
 0x32f   : > { %3530 = vmatmul.msk.f32.vlgmr.msra.gmra.mxu2 %vm1697_vm14, %v2029_v37  ;;  %v2111_v35 = vsel %vm1697_vm14, %v2029_v37, 0.0  ;;  %vm561_vm14 = vweird.f32 %v4830_v31  ;;  %v560_v37 = vadd.f32 %v3706_v13, %v559_v2  ;;  %v769_v31 = vand.u32 2147483647, %v4844_v4 }
 0x330   : > { %3551 = vmatpush.xpose.msk.msra.mxu2 %vm350_vm0, %v4762_v25  ;;  %2112 = vadd.xlane.f32.xlu0 %v2111_v35  ;;  %v762_v35 = vsub.f32 1.0, %v761_v45  ;;  %vm563_vm1 = vmor %vm561_vm14, %vm562_vm13 }
 0x331   : > { %v4850_v40 = vpop.permute.xlu1 %2178  ;;  %v564_v36 = vsel %vm563_vm1, %v3706_v13, %v560_v37  ;;  %vm770_vm7 = vcmp.eq.f32.partialorder %v769_v31, 8.507059e+37  ;;  %vm5375_vm1 = vcmask 1042434  }
 0x332   : > { %v2257_v15 = vmul.f32 %v4850_v40, %v4085_v7  ;;  %v2260_v7 = vsel %vm350_vm0, %v2252_v49, -inf  ;;  %v763_v49 = vmul.f32 %v3708_v48, %v762_v35  ;;  %v569_v62 = vsel %vm566_vm2, %v568_v44, %v564_v36 }
 0x333   : > { %v2266_v51 = vmax.f32 %v2260_v7, %v2265_v22 }
 0x334   : > { %3552 = vmatpush.xpose.msk.msra.mxu2 %vm350_vm0, %v4779_v54  ;;  %v2267_v32 = vsel %vm350_vm0, %v2257_v15, -inf  ;;  %v771_v15 = vand.u32 2147483648, %v4844_v4  ;;  %v764_v55 = vadd.f32 %v3708_v48, %v763_v49 }
 0x335   : > { %v2268_v28 = vmax.f32 %v2261_v42, %v2267_v32  ;;  %v2271_v17 = vmax.f32 %v2264_v5, %v2266_v51  ;;  %v2189_v5 = vmul.f32 %v4561_v26, %v4797_v59 }
 0x336   : > { %v772_v18 = vor.u32 1.1754944e-38, %v771_v15  ;;  %v2223_v15 = vsel %vm350_vm0, %v2191_v30, -inf }
 0x337   : > { %3538 = vmatmul.msk.f32.vlgmr.msrb.gmra.mxu2 %vm350_vm0, %v3896_v16 }
 0x338   : > { %3553 = vmatpush.xpose.msk.msra.mxu2 %vm350_vm0, %v4790_v12 }
 0x339   : > { %v4877_v57 = vpop.permute.xlu1 %2185 }
 0x33a   : > { %v2258_v60 = vmul.f32 %v4877_v57, %v5368_v53 }
 0x33c   : > { %3567 = vmatpush.xpose.msk.msrb.mxu2 %vm350_vm0, %v4762_v25  ;;  %v2269_v25 = vsel %vm350_vm0, %v2258_v60, -inf }
 0x33d   : > { %v2270_v50 = vmax.f32 %v2262_v33, %v2269_v25  ;;  %v2188_v25 = vmul.f32 %v4561_v26, %v4853_v19  ;;  %v5371_v19 = vld [vmem:[#allocation2_spill] sm:$0xff] }
 0x33f   : > { %v2272_v61 = vmax.f32 %v2268_v28, %v2270_v50  ;;  %3554 = vmatmul.msk.f32.vlgmr.msra.gmra.mxu2 %vm350_vm0, %v2433_v23  ;;  %v2187_v23 = vmul.f32 %v4561_v26, %v4774_v0  ;;  %v2202_v28 = vsel %vm350_vm0, %v2188_v25, -inf }
 0x340   : > { %3568 = vmatpush.xpose.msk.msrb.mxu2 %vm350_vm0, %v4779_v54  ;;  %v1833_v54 = vperm.slane %v4526_v58, 7  ;;  %v768_v58 = vsel %vm767_vm4, %v3708_v48, %v764_v55  ;;  %v2203_v29 = vrot.slane %v2202_v28, 4  ;;  %v2194_v55 = vmul.f32 %v4561_v26, %v4877_v57  ;;  %v4947_v57 = vld [vmem:[%s5273_s4 + $0xa0] sm:$0xf] }
 0x341   : > { %v4896_v46 = vmax.f32 %v2271_v17, %v2272_v61  ;;  %v773_v13 = vsel %vm770_vm7, %v772_v18, %v768_v58  ;;  %v2195_v50 = vsel %vm350_vm0, %v2187_v23, -inf  ;;  %v2209_v17 = vsel %vm350_vm0, %v2189_v5, -inf  ;;  %v4939_v18 = vpop.permute.xlu1 %1831  ;;  %3579 = vmatpush.xpose.msk.msra.mxu1 %vm350_vm0, %v4947_v57 }
 0x342   : > { %v774_v43 = vmul.f32 %v773_v13, %v5370_v34  ;;  %v2190_v61 = vmul.f32 %v4561_v26, %v4811_v3  ;;  %v2196_v37 = vrot.slane %v2195_v50, 4  ;;  %v2210_v59 = vrot.slane %v2209_v17, 4 }
 0x343   : > { %v2204_v35 = vmax.f32 %v2202_v28, %v2203_v29  ;;  %v2193_v3 = vmul.f32 %v4561_v26, %v4850_v40  ;;  %v2224_v40 = vrot.slane %v2223_v15, 4  ;;  %vm5376_vm4 = vcmask 1043459  }
 0x344   : > { %3569 = vmatpush.xpose.msk.msrb.mxu2 %vm350_vm0, %v4790_v12  ;;  %1838 = vperm.xlu0 %3648, %v1833_v54   ;;  %v570_v12 = vmul.f32 %v569_v62, %v5369_v63  ;;  %v2192_v54 = vmul.f32 %v4561_v26, %v4837_v38  ;;  %v2197_v36 = vmax.f32 %v2195_v50, %v2196_v37  ;;  %v5372_v37 = vld [vmem:[#allocation3_spill] sm:$0xff]  ;;  %vm5378_vm7 = vcmask 1044484  }
 0x345   : > { %v2211_v49 = vmax.f32 %v2209_v17, %v2210_v59  ;;  %v2205_v31 = vrot.slane %v2204_v35, 2  ;;  %v2237_v63 = vsel %vm350_vm0, %v2193_v3, -inf  ;;  %v1846_v26 = vmul.f32 %v4655_v27, %v4939_v18 }
 0x346   : > { %v2230_v41 = vsel %vm350_vm0, %v2192_v54, -inf  ;;  %v2198_v38 = vrot.slane %v2197_v36, 2  ;;  %v1906_v59 = vmul.f32 %v4650_v52, %v5372_v37 }
 0x347   : > { %v2212_v58 = vrot.slane %v2211_v49, 2  ;;  %v2231_v34 = vrot.slane %v2230_v41, 4 }
 0x348   : > { %3583 = vmatpush.xpose.msk.msra.mxu2 %vm350_vm0, %v4947_v57 }
 0x34c   : > { %3194 = vrot.lane.b32.xlu0 %v570_v12, %s3770_s9 }
 0x354   : > { %3251 = vrot.lane.b32.xlu0 %v774_v43, %s3770_s9  ;;  %v2238_v43 = vrot.slane %v2237_v63, 4 }
 0x379   : > { %v1766_v39 = vpop.xlane.xlu2 %1765 }
 0x37a   : > { %vm1767_vm12 = vcmp.gt.f32.partialorder %v1766_v39, 1e-08 }
 0x37b   : > { %v1768_v22 = vsel %vm1767_vm12, %v1766_v39, 1e-08  ;;  %v2244_v39 = vsel %vm350_vm0, %v2194_v55, -inf  ;;  %v4992_v55 = vld [vmem:[%s5273_s4 + $0x90] sm:$0xff]  ;;  %vm5379_vm12 = vcmask 1045509  }
 0x37c   : > { %3709 = vrcp.f32 %v1768_v22  ;;  %v1780_v4 = vand.u32 2147483648, %v1768_v22  ;;  %v1778_v60 = vand.u32 2147483647, %v1768_v22  ;;  %vm1774_vm9 = vweird.f32 %v1768_v22 }
 0x37e   : > { %v1781_v48 = vor.u32 1.1754944e-38, %v1780_v4  ;;  %vm1779_vm15 = vcmp.eq.f32.partialorder %v1778_v60, 8.507059e+37  ;;  %v2245_v60 = vrot.slane %v2244_v39, 4 }
 0x380   : > { %v2246_v5 = vmax.f32 %v2244_v39, %v2245_v60  ;;  %v1914_v39 = vsel %vm350_vm0, %v1906_v59, -inf }
 0x382   : > { %v3710_v7 = vpop.eup %3709 }
 0x383   : > { %v1770_v24 = vmul.f32 %v3710_v7, %v1768_v22  ;;  %vm1775_vm6 = vweird.f32 %v3710_v7 }
 0x384   : > { %vm1776_vm11 = vmor %vm1774_vm9, %vm1775_vm6  ;;  %vm5380_vm6 = vcmask 1046534   ;;  %vm5381_vm9 = vcmask 1047559  }
 0x385   : > { %v1771_v32 = vsub.f32 1.0, %v1770_v24  ;;  %v4952_v24 = vld [vmem:[%s5273_s4 + $0xb8] sm:$0xf] }
 0x386   : > { %3591 = vmatpush.xpose.msk.msrb.mxu3 %vm350_vm0, %v4952_v24 }
 0x387   : > { %v1772_v53 = vmul.f32 %v3710_v7, %v1771_v32 }
 0x389   : > { %v1773_v51 = vadd.f32 %v3710_v7, %v1772_v53  ;;  %v2225_v53 = vmax.f32 %v2223_v15, %v2224_v40 }
 0x38b   : > { %v1777_v2 = vsel %vm1776_vm11, %v3710_v7, %v1773_v51  ;;  %v2206_v7 = vmax.f32 %v2204_v35, %v2205_v31  ;;  %v2213_v51 = vmax.f32 %v2211_v49, %v2212_v58  ;;  %v2226_v23 = vrot.slane %v2225_v53, 2  ;;  %v4979_v35 = vld [vmem:[%s5273_s4 + $0xb0] sm:$0xff]  ;;  %v4997_v31 = vld [vmem:[%s5273_s4 + $0xa8] sm:$0xff]  ;;  %vm5382_vm11 = vmmov %vm5379_vm12 }
 0x38c   : > { %v1782_v45 = vsel %vm1779_vm15, %v1781_v48, %v1777_v2  ;;  %3592 = vmatpush.xpose.msk.msrb.mxu3 %vm350_vm0, %v4979_v35  ;;  %v5373_v58 = vld [vmem:[#allocation7_spill] sm:$0xff]  ;;  %vm5384_vm15 = vmmov %vm5375_vm1 }
 0x38d   : > { %v1783_v1 = vmul.f32 %v1782_v45, %v4719_v56  ;;  %v1845_v56 = vmul.f32 %v4655_v27, %v4684_v8  ;;  %v2216_v8 = vsel %vm350_vm0, %v2190_v61, -inf  ;;  %v2207_v2 = vrot.slane %v2206_v7, 1 }
 0x38e   : > { %v2217_v62 = vrot.slane %v2216_v8, 4  ;;  %v2232_v45 = vmax.f32 %v2230_v41, %v2231_v34  ;;  %v2214_v28 = vrot.slane %v2213_v51, 1  ;;  %v1910_v40 = vmul.f32 %v4939_v18, %v5373_v58 }
 0x38f   : > { %v2486_v42 = vmul.f32 %v4655_v27, %v1783_v1  ;;  %v2530_v33 = vmul.f32 %v1783_v1, %v1783_v1  ;;  %v1883_v0 = vsel %vm350_vm0, %v1845_v56, -inf  ;;  %v2199_v27 = vmax.f32 %v2197_v36, %v2198_v38 }
 0x390   : > { %v1884_v44 = vrot.slane %v1883_v0, 4  ;;  %v2218_v13 = vmax.f32 %v2216_v8, %v2217_v62  ;;  %v2239_v1 = vmax.f32 %v2237_v63, %v2238_v43  ;;  %v4966_v61 = vmax.f32 %v2206_v7, %v2207_v2  ;;  %v4974_v8 = vld [vmem:[%s5273_s4 + $0x98] sm:$0xff]  ;;  %3593 = vmatpush.xpose.msk.msrb.mxu3 %vm350_vm0, %v4997_v31 }
 0x391   : > { %3558 = vmatmul.msk.f32.vlgmr.msrb.gmra.mxu0 %vm350_vm0, %v2486_v42  ;;  %3566 = vmatmul.msk.f32.vlgmr.msrb.gmra.mxu1 %vm350_vm0, %v2530_v33  ;;  %v1890_v42 = vsel %vm350_vm0, %v1846_v26, -inf  ;;  %v2200_v25 = vrot.slane %v2199_v27, 1  ;;  %v2233_v29 = vrot.slane %v2232_v45, 2  ;;  %v2247_v36 = vrot.slane %v2246_v5, 2 }
 0x392   : > { %v1885_v12 = vmax.f32 %v1883_v0, %v1884_v44  ;;  %3587 = vmatpush.xpose.msk.msrb.mxu0 %vm350_vm0, %v4947_v57  ;;  %v2219_v48 = vrot.slane %v2218_v13, 2  ;;  %v1891_v50 = vrot.slane %v1890_v42, 4  ;;  %v2240_v0 = vrot.slane %v2239_v1, 2  ;;  %3584 = vmatpush.xpose.msk.msra.mxu2 %vm350_vm0, %v4974_v8 }
 0x393   : > { %v4981_v3 = vmax.f32 %v2199_v27, %v2200_v25  ;;  %v2227_v44 = vmax.f32 %v2225_v53, %v2226_v23  ;;  %v4987_v52 = vmax.f32 %v2213_v51, %v2214_v28  ;;  %3580 = vmatpush.xpose.msk.msra.mxu1 %vm350_vm0, %v4974_v8  ;;  %v2234_v63 = vmax.f32 %v2232_v45, %v2233_v29  ;;  %v5034_v28 = vpop.f32.mrf.mxu1  ;;  %v5037_v29 = vld [vmem:[%s3842_s10] sm:$0xff]  ;;  %s3771_s10 = smov 40  }
 0x394   : > { %v1886_v32 = vrot.slane %v1885_v12, 2  ;;  %v2220_v56 = vmax.f32 %v2218_v13, %v2219_v48  ;;  %v1892_v62 = vmax.f32 %v1890_v42, %v1891_v50  ;;  %v1920_v2 = vsel %vm350_vm0, %v1910_v40, -inf }
 0x395   : > { %v2838_v41 = vsel %vm2688_vm8, %v4966_v61, %v4981_v3  ;;  %v2228_v26 = vrot.slane %v2227_v44, 1  ;;  %v2235_v60 = vrot.slane %v2234_v63, 1 }
 0x396   : > { %v1887_v33 = vmax.f32 %v1885_v12, %v1886_v32  ;;  %v2221_v49 = vrot.slane %v2220_v56, 1  ;;  %3588 = vmatpush.xpose.msk.msrb.mxu0 %vm350_vm0, %v4974_v8  ;;  %v2241_v12 = vmax.f32 %v2239_v1, %v2240_v0  ;;  %v2248_v32 = vmax.f32 %v2246_v5, %v2247_v36  ;;  %3585 = vmatpush.xpose.msk.msra.mxu2 %vm350_vm0, %v4992_v55  ;;  %v5377_v0 = vld [vmem:[#allocation8_spill] sm:$0xff]  ;;  %v5047_v36 = vld [vmem:[%s3868_s23] sm:$0xff]  ;;  %s3773_s23 = smov 60  }
 0x397   : > { %v2839_v18 = vsel %vm5375_vm1, %v4987_v52, %v2838_v41  ;;  %v1893_v27 = vrot.slane %v1892_v62, 2  ;;  %3581 = vmatpush.xpose.msk.msra.mxu1 %vm350_vm0, %v4992_v55  ;;  %v2229_v1 = vmax.f32 %v2227_v44, %v2228_v26  ;;  %v2236_v59 = vmax.f32 %v2234_v63, %v2235_v60  ;;  %v2348_v44 = vpop.f32.mrf.mxu0  ;;  %vm5387_vm1 = vmmov %vm5376_vm4 }
 0x398   : > { %v1888_v54 = vrot.slane %v1887_v33, 1  ;;  %v2242_v51 = vrot.slane %v2241_v12, 1  ;;  %v2249_v25 = vrot.slane %v2248_v32, 1 }
 0x399   : > { %3574 = vmatmul.msk.f32.vlgmr.msra.gmra.mxu0 %vm350_vm0, %v5371_v19 }
 0x39a   : > { %3589 = vmatpush.xpose.msk.msrb.mxu0 %vm350_vm0, %v4992_v55  ;;  %v2250_v63 = vmax.f32 %v2248_v32, %v2249_v25  ;;  %v2899_v32 = vmul.f32 %v4981_v3, %v4981_v3 }
 0x39b   : > { %3595 = vmatpush.xpose.msk.msrb.mxu1 %vm350_vm0, %v4952_v24 }
 0x39e   : > { %3603 = vmatpush.xpose.msk.msra.mxu0 %vm350_vm0, %v4947_v57 }
 0x39f   : > { %3596 = vmatpush.xpose.msk.msrb.mxu1 %vm350_vm0, %v4979_v35 }
 0x3a2   : > { %3604 = vmatpush.xpose.msk.msra.mxu0 %vm350_vm0, %v4974_v8 }
 0x3a3   : > { %v2113_v22 = vpop.xlane.xlu0 %2112  ;;  %3597 = vmatpush.xpose.msk.msrb.mxu1 %vm350_vm0, %v4997_v31 }
 0x3a4   : > { %vm2114_vm14 = vcmp.gt.f32.partialorder %v2113_v22, 1e-08 }
 0x3a5   : > { %v4954_v4 = vsel %vm2114_vm14, %v2113_v22, 1e-08  ;;  %v5374_v22 = vld [vmem:[#allocation5_spill] sm:$0xff]  ;;  %vm5385_vm14 = vmmov %vm5380_vm6 }
 0x3a6   : > { %3711 = vrcp.f32 %v4954_v4  ;;  %v2127_v38 = vand.u32 2147483648, %v4954_v4  ;;  %v2125_v43 = vand.u32 2147483647, %v4954_v4  ;;  %v1907_v7 = vmul.f32 %v4665_v11, %v5374_v22  ;;  %3605 = vmatpush.xpose.msk.msra.mxu0 %vm350_vm0, %v4992_v55 }
 0x3a7   : > { %vm2121_vm2 = vweird.f32 %v4954_v4  ;;  %v5024_v11 = vmax.f32 %v2220_v56, %v2221_v49  ;;  %v1894_v56 = vmax.f32 %v1892_v62, %v1893_v27 }
 0x3a8   : > { %v2128_v48 = vor.u32 1.1754944e-38, %v2127_v38  ;;  %vm2126_vm3 = vcmp.eq.f32.partialorder %v2125_v43, 8.507059e+37 }
 0x3a9   : > { %v2840_v42 = vsel %vm5376_vm4, %v5024_v11, %v2839_v18  ;;  %v1895_v43 = vrot.slane %v1894_v56, 1 }
 0x3ab   : > { %v1896_v60 = vmax.f32 %v1894_v56, %v1895_v43 }
 0x3ac   : > { %v3712_v17 = vpop.eup %3711 }
 0x3ad   : > { %v2117_v30 = vmul.f32 %v3712_v17, %v4954_v4  ;;  %vm2122_vm13 = vweird.f32 %v3712_v17  ;;  %v1889_v4 = vmax.f32 %v1887_v33, %v1888_v54  ;;  %v1921_v54 = vmax.f32 %v1914_v39, %v1920_v2 }
 0x3ae   : > { %vm2123_vm10 = vmor %vm2121_vm2, %vm2122_vm13 }
 0x3af   : > { %v2118_v15 = vsub.f32 1.0, %v2117_v30  ;;  %v2243_v30 = vmax.f32 %v2241_v12, %v2242_v51  ;;  %v2430_v51 = vpop.f32.mrf.mxu1  ;;  %v2697_v3 = vsel %vm5382_vm11, %v1889_v4, %v4703_v21  ;;  %vm5386_vm13 = vmmov %vm5381_vm9 }
 0x3b0   : > { %vm5388_vm2 = vmmov %vm5380_vm6 }
 0x3b1   : > { %v2119_v34 = vmul.f32 %v3712_v17, %v2118_v15 }
 0x3b2   : > { %v2108_v13 = vpop.f32.mrf.mxu2 }
 0x3b3   : > { %v2120_v53 = vadd.f32 %v3712_v17, %v2119_v34  ;;  %v2841_v34 = vsel %vm5378_vm7, %v2229_v1, %v2840_v42  ;;  %v3759_v42 = vld [vmem:[%s3863_s18] sm:$0xff]  ;;  %s3772_s18 = smov 120  }
 0x3b4   : > { %v2842_v39 = vsel %vm5379_vm12, %v2236_v59, %v2841_v34 }
 0x3b5   : > { %v2124_v45 = vsel %vm2123_vm10, %v3712_v17, %v2120_v53  ;;  %v1915_v17 = vsel %vm350_vm0, %v1907_v7, -inf  ;;  %v2843_v26 = vsel %vm5380_vm6, %v2243_v30, %v2842_v39  ;;  %vm5389_vm10 = vmmov %vm5378_vm7 }
 0x3b6   : > { %v2129_v23 = vsel %vm2126_vm3, %v2128_v48, %v2124_v45  ;;  %v1839_v5 = vpop.permute.xlu0 %1838  ;;  %v2844_v53 = vsel %vm5381_vm9, %v2250_v63, %v2843_v26  ;;  %vm5390_vm3 = vmmov %vm5381_vm9  ;;  %v3114_v26 = vmul.f32 %v4896_v46, %v4896_v46 }
 0x3b7   : > { %v2130_v50 = vmul.f32 %v2129_v23, %v2108_v13  ;;  %v1847_v33 = vmul.f32 %v5037_v29, %v1839_v5  ;;  %v1911_v37 = vmul.f32 %v1839_v5, %v5377_v0  ;;  %v2900_v13 = vmul.f32 %v4966_v61, %v4966_v61  ;;  %vm5392_vm7 = vmmov %vm5388_vm2 }
 0x3b8   : > { %v2761_v61 = vmul.f32 %v1889_v4, %v1889_v4  ;;  %v2846_v25 = vmul.f32 %v3759_v42, %v2844_v53  ;;  %v2903_v5 = vmul.f32 %v2229_v1, %v2229_v1  ;;  %v2762_v0 = vmul.f32 %v1896_v60, %v1896_v60  ;;  %vm5393_vm12 = vmmov %vm5390_vm3 }
 0x3b9   : > { %v2583_v49 = vmul.f32 %v5047_v36, %v2130_v50  ;;  %v2627_v62 = vmul.f32 %v2130_v50, %v2130_v50  ;;  %v1897_v15 = vsel %vm350_vm0, %v1847_v33, -inf  ;;  %v1922_v41 = vsel %vm350_vm0, %v1911_v37, -inf }
 0x3ba   : > { %v2324_v38 = vpop.f32.mrf.mxu2  ;;  %v1898_v12 = vrot.slane %v1897_v15, 4  ;;  %v1923_v58 = vmax.f32 %v1915_v17, %v1922_v41  ;;  %v2915_v48 = vsel %vm2688_vm8, %v2900_v13, %v2899_v32  ;;  %vm5383_vm8 = vmmov %vm5382_vm11  ;;  %v2904_v4 = vmul.f32 %v2236_v59, %v2236_v59 }
 0x3bb   : > { %v5052_v40 = vmul.f32 %v2348_v44, %v2324_v38  ;;  %3570 = vmatmul.msk.f32.vlgmr.msrb.gmra.mxu2 %vm350_vm0, %v2583_v49  ;;  %3578 = vmatmul.msk.f32.vlgmr.msra.gmra.mxu3 %vm350_vm0, %v2627_v62  ;;  %v2776_v33 = vsel %vm5383_vm8, %v2761_v61, %v4717_v9  ;;  %v2905_v9 = vmul.f32 %v2243_v30, %v2243_v30  ;;  %vm5391_vm4 = vmmov %vm5383_vm8 }
 0x3bc   : > { %v1899_v22 = vmax.f32 %v1897_v15, %v1898_v12  ;;  %v1925_v7 = vmax.f32 %v1921_v54, %v1923_v58  ;;  %3599 = vmatpush.xpose.msk.msrb.mxu2 %vm350_vm0, %v4952_v24  ;;  %3607 = vmatpush.xpose.msk.msra.mxu3 %vm350_vm0, %v4947_v57  ;;  %v2906_v54 = vmul.f32 %v2250_v63, %v2250_v63 }
 0x3bd   : > { %3713 = vrsqrt.f32 %v5052_v40  ;;  %v2777_v30 = vsel %vm5388_vm2, %v2762_v0, %v2776_v33  ;;  %vm2359_vm6 = vcmp.eq.f32.partialorder %v5052_v40, inf  ;;  %vm2361_vm9 = vcmp.eq.f32.partialorder %v5052_v40, 0.0 }
 0x3be   : > { %v1900_v18 = vrot.slane %v1899_v22, 2  ;;  %v5073_v27 = vmax.f32 %v4694_v14, %v1925_v7  ;;  %v2901_v14 = vmul.f32 %v4987_v52, %v4987_v52  ;;  %v2902_v52 = vmul.f32 %v5024_v11, %v5024_v11 }
 0x3bf   : > { %v3070_v61 = vmul.f32 %v5047_v36, %v4896_v46 }
 0x3c0   : > { %v1901_v2 = vmax.f32 %v1899_v22, %v1900_v18  ;;  %3600 = vmatpush.xpose.msk.msrb.mxu2 %vm350_vm0, %v4979_v35  ;;  %3608 = vmatpush.xpose.msk.msra.mxu3 %vm350_vm0, %v4974_v8  ;;  %v2916_v21 = vsel %vm5384_vm15, %v2901_v14, %v2915_v48  ;;  %v2362_v22 = vand.u32 2147483648, %v5052_v40 }
 0x3c1   : > { %v2917_v44 = vsel %vm5387_vm1, %v2902_v52, %v2916_v21 }
 0x3c2   : > { %v2454_v45 = vpop.f32.mrf.mxu2  ;;  %v1902_v56 = vrot.slane %v1901_v2, 1  ;;  %v2918_v15 = vsel %vm5389_vm10, %v2903_v5, %v2917_v44 }
 0x3c3   : > { %v3714_v23 = vpop.eup %3713  ;;  %v5086_v50 = vmul.f32 %v2454_v45, %v2430_v51  ;;  %3586 = vmatmul.msk.f32.vlgmr.msra.gmra.mxu2 %vm350_vm0, %v3896_v16  ;;  %3594 = vmatmul.msk.f32.vlgmr.msrb.gmra.mxu3 %vm350_vm0, %v2846_v25  ;;  %v2699_v16 = vsel %vm5385_vm14, %v1896_v60, %v2697_v3  ;;  %v2919_v38 = vsel %vm5391_vm4, %v2904_v4, %v2918_v15 }
 0x3c4   : > { %v2353_v37 = vmul.f32 %v3714_v23, %v5052_v40  ;;  %v1903_v1 = vmax.f32 %v1901_v2, %v1902_v56  ;;  %3601 = vmatpush.xpose.msk.msrb.mxu2 %vm350_vm0, %v4997_v31  ;;  %3609 = vmatpush.xpose.msk.msra.mxu3 %vm350_vm0, %v4992_v55  ;;  %v2920_v63 = vsel %vm5392_vm7, %v2905_v9, %v2919_v38 }
 0x3c5   : > { %3715 = vrsqrt.f32 %v5086_v50  ;;  %v2921_v13 = vsel %vm5393_vm12, %v2906_v54, %v2920_v63  ;;  %vm2465_vm11 = vcmp.eq.f32.partialorder %v5086_v50, inf  ;;  %vm2467_vm8 = vcmp.eq.f32.partialorder %v5086_v50, 0.0 }
 0x3c6   : > { %v2354_v17 = vmul.f32 %v3714_v23, %v2353_v37  ;;  %v2701_v11 = vsel %vm5386_vm13, %v1903_v1, %v2699_v16  ;;  %v2763_v59 = vmul.f32 %v1903_v1, %v1903_v1  ;;  %v2410_v37 = vpop.f32.mrf.mxu3 }
 0x3c7   : > { %v2703_v62 = vmul.f32 %v4724_v47, %v2701_v11 }
 0x3c8   : > { %3615 = vmatpush.xpose.msk.msra.mxu2 %vm350_vm0, %v4952_v24  ;;  %3623 = vmatpush.xpose.msk.msrb.mxu3 %vm350_vm0, %v4952_v24  ;;  %v2355_v49 = vmul.f32 0.5, %v2354_v17  ;;  %v2778_v41 = vsel %vm5390_vm3, %v2763_v59, %v2777_v30 }
 0x3c9   : > { %3582 = vmatmul.msk.f32.vlgmr.msra.gmra.mxu1 %vm350_vm0, %v2703_v62  ;;  %3590 = vmatmul.msk.f32.vlgmr.msrb.gmra.mxu0 %vm350_vm0, %v2778_v41 }
 0x3ca   : > { %v2356_v12 = vsub.f32 1.5, %v2355_v49  ;;  %3611 = vmatpush.xpose.msk.msra.mxu1 %vm350_vm0, %v4947_v57  ;;  %3619 = vmatpush.xpose.msk.msrb.mxu0 %vm350_vm0, %v4952_v24 }
 0x3cb   : > { %v3716_v58 = vpop.eup %3715  ;;  %3602 = vmatmul.msk.f32.vlgmr.msrb.gmra.mxu2 %vm350_vm0, %v2921_v13  ;;  %3610 = vmatmul.msk.f32.vlgmr.msra.gmra.mxu3 %vm350_vm0, %v3872_v6  ;;  %v2973_v6 = vmul.f32 %v5037_v29, %v5073_v27 }
 0x3cc   : > { %3616 = vmatpush.xpose.msk.msra.mxu2 %vm350_vm0, %v4979_v35  ;;  %3624 = vmatpush.xpose.msk.msrb.mxu3 %vm350_vm0, %v4979_v35  ;;  %v2357_v47 = vmul.f32 %v3714_v23, %v2356_v12  ;;  %v2459_v34 = vmul.f32 %v3716_v58, %v5086_v50 }
 0x3ce   : > { %v2358_v43 = vmul.f32 %v2357_v47, %v5052_v40  ;;  %v2460_v39 = vmul.f32 %v3716_v58, %v2459_v34  ;;  %3612 = vmatpush.xpose.msk.msra.mxu1 %vm350_vm0, %v4974_v8  ;;  %3620 = vmatpush.xpose.msk.msrb.mxu0 %vm350_vm0, %v4979_v35  ;;  %v3017_v8 = vmul.f32 %v5073_v27, %v5073_v27 }
 0x3d0   : > { %3617 = vmatpush.xpose.msk.msra.mxu2 %vm350_vm0, %v4997_v31  ;;  %3625 = vmatpush.xpose.msk.msrb.mxu3 %vm350_vm0, %v4997_v31  ;;  %v2461_v57 = vmul.f32 0.5, %v2460_v39  ;;  %v2360_v7 = vsel %vm2359_vm6, %v5052_v40, %v2358_v43 }
 0x3d1   : > { %v2363_v24 = vsel %vm2361_vm9, %v2362_v22, %v2360_v7  ;;  %3598 = vmatmul.msk.f32.vlgmr.msrb.gmra.mxu1 %vm350_vm0, %v3921_v20  ;;  %3606 = vmatmul.msk.f32.vlgmr.msra.gmra.mxu0 %vm350_vm0, %v2973_v6  ;;  %v2468_v20 = vand.u32 2147483648, %v5086_v50 }
 0x3d2   : > { %v2462_v32 = vsub.f32 1.5, %v2461_v57  ;;  %v2364_v29 = vmax.f32 %v2363_v24, 1e-08  ;;  %3613 = vmatpush.xpose.msk.msra.mxu1 %vm350_vm0, %v4992_v55  ;;  %3621 = vmatpush.xpose.msk.msrb.mxu0 %vm350_vm0, %v4997_v31 }
 0x3d3   : > { %3618 = vmatmul.msk.f32.vlgmr.msra.gmra.mxu2 %vm350_vm0, %v3070_v61  ;;  %3626 = vmatmul.msk.f32.vlgmr.msrb.gmra.mxu3 %vm350_vm0, %v3114_v26 }
 0x3d4   : > { %v2463_v40 = vmul.f32 %v3716_v58, %v2462_v32  ;;  %3717 = vrcp.f32 %v2364_v29  ;;  %v2376_v60 = vand.u32 2147483648, %v2364_v29  ;;  %v2374_v48 = vand.u32 2147483647, %v2364_v29 }
 0x3d5   : > { %vm2370_vm14 = vweird.f32 %v2364_v29 }
 0x3d6   : > { %v2464_v46 = vmul.f32 %v2463_v40, %v5086_v50  ;;  %v2377_v3 = vor.u32 1.1754944e-38, %v2376_v60  ;;  %vm2375_vm1 = vcmp.eq.f32.partialorder %v2374_v48, 8.507059e+37 }
 0x3d8   : > { %v2466_v35 = vsel %vm2465_vm11, %v5086_v50, %v2464_v46 }
 0x3d9   : > { %v2469_v36 = vsel %vm2467_vm8, %v2468_v20, %v2466_v35  ;;  %3614 = vmatmul.msk.f32.vlgmr.msra.gmra.mxu1 %vm350_vm0, %v3017_v8  ;;  %3622 = vmatmul.msk.f32.vlgmr.msrb.gmra.mxu0 %vm350_vm0, %v5371_v19 }
 0x3da   : > { %v3718_v18 = vpop.eup %3717  ;;  %v2470_v55 = vmax.f32 %v2469_v36, 1e-08 }
 0x3db   : > { %v2366_v31 = vmul.f32 %v3718_v18, %v2364_v29  ;;  %vm2371_vm15 = vweird.f32 %v3718_v18 }
 0x3dc   : > { %3719 = vrcp.f32 %v2470_v55  ;;  %vm2372_vm13 = vmor %vm2370_vm14, %vm2371_vm15  ;;  %v2482_v23 = vand.u32 2147483648, %v2470_v55  ;;  %v2480_v56 = vand.u32 2147483647, %v2470_v55  ;;  %vm2476_vm10 = vweird.f32 %v2470_v55 }
 0x3dd   : > { %v2367_v53 = vsub.f32 1.0, %v2366_v31 }
 0x3de   : > { %v2483_v33 = vor.u32 1.1754944e-38, %v2482_v23  ;;  %vm2481_vm4 = vcmp.eq.f32.partialorder %v2480_v56, 8.507059e+37 }
 0x3df   : > { %v2368_v51 = vmul.f32 %v3718_v18, %v2367_v53 }
 0x3e1   : > { %v2369_v27 = vadd.f32 %v3718_v18, %v2368_v51 }
 0x3e2   : > { %v3720_v2 = vpop.eup %3719 }
 0x3e3   : > { %v2373_v14 = vsel %vm2372_vm13, %v3718_v18, %v2369_v27  ;;  %v2472_v45 = vmul.f32 %v3720_v2, %v2470_v55  ;;  %vm2477_vm2 = vweird.f32 %v3720_v2 }
 0x3e4   : > { %v2378_v42 = vsel %vm2375_vm1, %v2377_v3, %v2373_v14  ;;  %vm2478_vm3 = vmor %vm2476_vm10, %vm2477_vm2 }
 0x3e5   : > { %v2379_v25 = vmul.f32 %v2378_v42, %v5034_v28  ;;  %v2473_v19 = vsub.f32 1.0, %v2472_v45  ;;  %v2527_v28 = vpop.f32.mrf.mxu3 }
 0x3e7   : > { %3186 = vrot.lane.b32.xlu0 %v2379_v25, %s3771_s10  ;;  %v2474_v5 = vmul.f32 %v3720_v2, %v2473_v19 }
 0x3e9   : > { %v2475_v50 = vadd.f32 %v3720_v2, %v2474_v5 }
 0x3eb   : > { %v2479_v0 = vsel %vm2478_vm3, %v3720_v2, %v2475_v50 }
 0x3ec   : > { %v2484_v21 = vsel %vm2481_vm4, %v2483_v33, %v2479_v0 }
 0x3ed   : > { %v2485_v52 = vmul.f32 %v2484_v21, %v2410_v37 }
 0x3ef   : > { %3216 = vrot.lane.b32.xlu2 %v2485_v52, %s3772_s18 }
 0x40e   : > { %v2551_v4 = vpop.f32.mrf.mxu1  ;;  %v2507_v47 = vpop.f32.mrf.mxu0 }
 0x40f   : > { %v2554_v1 = vmul.f32 %v2551_v4, %v2527_v28 }
 0x411   : > { %3721 = vrsqrt.f32 %v2554_v1  ;;  %vm2562_vm7 = vcmp.eq.f32.partialorder %v2554_v1, inf  ;;  %v2565_v49 = vand.u32 2147483648, %v2554_v1  ;;  %vm2564_vm12 = vcmp.eq.f32.partialorder %v2554_v1, 0.0 }
 0x416   : > { %v2624_v57 = vpop.f32.mrf.mxu0 }
 0x417   : > { %v3722_v9 = vpop.eup %3721 }
 0x418   : > { %v2556_v16 = vmul.f32 %v3722_v9, %v2554_v1 }
 0x41a   : > { %v2557_v17 = vmul.f32 %v3722_v9, %v2556_v16 }
 0x41c   : > { %v2558_v11 = vmul.f32 0.5, %v2557_v17 }
 0x41e   : > { %v2559_v59 = vsub.f32 1.5, %v2558_v11 }
 0x420   : > { %v2560_v54 = vmul.f32 %v3722_v9, %v2559_v59 }
 0x422   : > { %v2561_v44 = vmul.f32 %v2560_v54, %v2554_v1 }
 0x424   : > { %v2563_v62 = vsel %vm2562_vm7, %v2554_v1, %v2561_v44 }
 0x425   : > { %v2566_v30 = vsel %vm2564_vm12, %v2565_v49, %v2563_v62 }
 0x426   : > { %v2567_v15 = vmax.f32 %v2566_v30, 1e-08 }
 0x428   : > { %3723 = vrcp.f32 %v2567_v15  ;;  %v2579_v63 = vand.u32 2147483648, %v2567_v15  ;;  %v2577_v13 = vand.u32 2147483647, %v2567_v15  ;;  %vm2573_vm9 = vweird.f32 %v2567_v15 }
 0x42a   : > { %v2580_v43 = vor.u32 1.1754944e-38, %v2579_v63  ;;  %vm2578_vm8 = vcmp.eq.f32.partialorder %v2577_v13, 8.507059e+37 }
 0x42e   : > { %v3724_v41 = vpop.eup %3723 }
 0x42f   : > { %v2569_v38 = vmul.f32 %v3724_v41, %v2567_v15  ;;  %vm2574_vm6 = vweird.f32 %v3724_v41 }
 0x430   : > { %vm2575_vm11 = vmor %vm2573_vm9, %vm2574_vm6 }
 0x431   : > { %v2570_v12 = vsub.f32 1.0, %v2569_v38 }
 0x433   : > { %v2571_v58 = vmul.f32 %v3724_v41, %v2570_v12 }
 0x435   : > { %v2572_v34 = vadd.f32 %v3724_v41, %v2571_v58 }
 0x437   : > { %v2576_v39 = vsel %vm2575_vm11, %v3724_v41, %v2572_v34 }
 0x438   : > { %v2581_v22 = vsel %vm2578_vm8, %v2580_v43, %v2576_v39 }
 0x439   : > { %v2582_v6 = vmul.f32 %v2581_v22, %v2507_v47 }
 0x43b   : > { %3243 = vrot.lane.b32.xlu0 %v2582_v6, %s3771_s10 }
 0x43e   : > { %v5172_v7 = vpop.f32.mrf.mxu2  ;;  %v2648_v24 = vpop.f32.mrf.mxu3 }
 0x43f   : > { %v2651_v61 = vmul.f32 %v2648_v24, %v2624_v57 }
 0x441   : > { %3725 = vrsqrt.f32 %v2651_v61  ;;  %vm2659_vm15 = vcmp.eq.f32.partialorder %v2651_v61, inf  ;;  %v2662_v45 = vand.u32 2147483648, %v2651_v61  ;;  %vm2661_vm14 = vcmp.eq.f32.partialorder %v2651_v61, 0.0 }
 0x446   : > { %v5174_v26 = vpop.f32.mrf.mxu1  ;;  %v2753_v32 = vpop.f32.mrf.mxu2 }
 0x447   : > { %v3726_v29 = vpop.eup %3725  ;;  %v2798_v40 = vpop.f32.mrf.mxu0 }
 0x448   : > { %v5176_v46 = vpop.f32.mrf.mxu3  ;;  %v2653_v20 = vmul.f32 %v3726_v29, %v2651_v61  ;;  %v2801_v8 = vmul.f32 %v2798_v40, %v2753_v32 }
 0x44a   : > { %v2654_v35 = vmul.f32 %v3726_v29, %v2653_v20  ;;  %3727 = vrsqrt.f32 %v2801_v8  ;;  %vm2809_vm13 = vcmp.eq.f32.partialorder %v2801_v8, inf  ;;  %v2812_v16 = vand.u32 2147483648, %v2801_v8 }
 0x44b   : > { %vm2811_vm1 = vcmp.eq.f32.partialorder %v2801_v8, 0.0 }
 0x44c   : > { %v2655_v36 = vmul.f32 0.5, %v2654_v35 }
 0x44e   : > { %v2656_v18 = vsub.f32 1.5, %v2655_v36  ;;  %v2896_v55 = vpop.f32.mrf.mxu1  ;;  %v2941_v31 = vpop.f32.mrf.mxu2 }
 0x44f   : > { %v5178_v53 = vmul.f32 %v2941_v31, %v2896_v55  ;;  %v5180_v60 = vpop.f32.mrf.mxu0 }
 0x450   : > { %v3014_v51 = vpop.f32.mrf.mxu3  ;;  %v3728_v48 = vpop.eup %3727  ;;  %v2657_v27 = vmul.f32 %v3726_v29, %v2656_v18 }
 0x451   : > { %v2803_v2 = vmul.f32 %v3728_v48, %v2801_v8  ;;  %3729 = vrsqrt.f32 %v5178_v53  ;;  %vm2952_vm2 = vcmp.eq.f32.partialorder %v5178_v53, inf  ;;  %v2955_v47 = vand.u32 2147483648, %v5178_v53 }
 0x452   : > { %v2658_v3 = vmul.f32 %v2657_v27, %v2651_v61  ;;  %vm2954_vm3 = vcmp.eq.f32.partialorder %v5178_v53, 0.0 }
 0x453   : > { %v2804_v14 = vmul.f32 %v3728_v48, %v2803_v2 }
 0x454   : > { %v2660_v42 = vsel %vm2659_vm15, %v2651_v61, %v2658_v3 }
 0x455   : > { %v2805_v25 = vmul.f32 0.5, %v2804_v14  ;;  %v2663_v19 = vsel %vm2661_vm14, %v2662_v45, %v2660_v42 }
 0x456   : > { %v3038_v23 = vpop.f32.mrf.mxu1  ;;  %v2664_v5 = vmax.f32 %v2663_v19, 1e-08 }
 0x457   : > { %v3730_v56 = vpop.eup %3729  ;;  %v2806_v50 = vsub.f32 1.5, %v2805_v25  ;;  %v5183_v33 = vmul.f32 %v3038_v23, %v3014_v51  ;;  %v3111_v0 = vpop.f32.mrf.mxu0 }
 0x458   : > { %v3135_v37 = vpop.f32.mrf.mxu3  ;;  %v2946_v21 = vmul.f32 %v3730_v56, %v5178_v53  ;;  %3731 = vrcp.f32 %v2664_v5  ;;  %v2676_v13 = vand.u32 2147483648, %v2664_v5  ;;  %v2674_v39 = vand.u32 2147483647, %v2664_v5 }
 0x459   : > { %v5186_v52 = vmul.f32 %v3135_v37, %v3111_v0  ;;  %v2807_v28 = vmul.f32 %v3728_v48, %v2806_v50  ;;  %3733 = vrsqrt.f32 %v5183_v33  ;;  %vm2670_vm4 = vweird.f32 %v2664_v5 }
 0x45a   : > { %v2947_v4 = vmul.f32 %v3730_v56, %v2946_v21  ;;  %v2677_v29 = vor.u32 1.1754944e-38, %v2676_v13  ;;  %vm2675_vm12 = vcmp.eq.f32.partialorder %v2674_v39, 8.507059e+37  ;;  %vm3049_vm6 = vcmp.eq.f32.partialorder %v5183_v33, inf }
 0x45b   : > { %3735 = vrsqrt.f32 %v5186_v52  ;;  %v2808_v1 = vmul.f32 %v2807_v28, %v2801_v8  ;;  %vm3051_vm9 = vcmp.eq.f32.partialorder %v5183_v33, 0.0  ;;  %v3052_v27 = vand.u32 2147483648, %v5183_v33 }
 0x45c   : > { %v2948_v9 = vmul.f32 0.5, %v2947_v4  ;;  %vm3146_vm11 = vcmp.eq.f32.partialorder %v5186_v52, inf  ;;  %v3149_v42 = vand.u32 2147483648, %v5186_v52  ;;  %vm3148_vm15 = vcmp.eq.f32.partialorder %v5186_v52, 0.0 }
 0x45d   : > { %v2810_v17 = vsel %vm2809_vm13, %v2801_v8, %v2808_v1 }
 0x45e   : > { %v3732_v11 = vpop.eup %3731  ;;  %v2949_v59 = vsub.f32 1.5, %v2948_v9  ;;  %v2813_v54 = vsel %vm2811_vm1, %v2812_v16, %v2810_v17 }
 0x45f   : > { %v3734_v44 = vpop.eup %3733  ;;  %v2666_v49 = vmul.f32 %v3732_v11, %v2664_v5  ;;  %v5190_v62 = vmax.f32 %v2813_v54, 1e-08  ;;  %vm2671_vm10 = vweird.f32 %v3732_v11 }
 0x460   : > { %v2950_v15 = vmul.f32 %v3730_v56, %v2949_v59  ;;  %v3043_v41 = vmul.f32 %v3734_v44, %v5183_v33  ;;  %vm2672_vm7 = vmor %vm2670_vm4, %vm2671_vm10 }
 0x461   : > { %v3736_v30 = vpop.eup %3735  ;;  %v2667_v12 = vsub.f32 1.0, %v2666_v49  ;;  %3737 = vrcp.f32 %v5190_v62  ;;  %v2824_v3 = vand.u32 2147483647, %v5190_v62  ;;  %v2826_v14 = vand.u32 2147483648, %v5190_v62 }
 0x462   : > { %v3140_v38 = vmul.f32 %v3736_v30, %v5186_v52  ;;  %v2951_v63 = vmul.f32 %v2950_v15, %v5178_v53  ;;  %v3044_v58 = vmul.f32 %v3734_v44, %v3043_v41  ;;  %vm2820_vm14 = vweird.f32 %v5190_v62 }
 0x463   : > { %v2668_v43 = vmul.f32 %v3732_v11, %v2667_v12  ;;  %v2827_v0 = vor.u32 1.1754944e-38, %v2826_v14  ;;  %vm2825_vm1 = vcmp.eq.f32.partialorder %v2824_v3, 8.507059e+37 }
 0x464   : > { %v3141_v34 = vmul.f32 %v3736_v30, %v3140_v38  ;;  %v3045_v22 = vmul.f32 0.5, %v3044_v58  ;;  %v2953_v6 = vsel %vm2952_vm2, %v5178_v53, %v2951_v63 }
 0x465   : > { %v2669_v24 = vadd.f32 %v3732_v11, %v2668_v43  ;;  %v2956_v61 = vsel %vm2954_vm3, %v2955_v47, %v2953_v6 }
 0x466   : > { %v3142_v57 = vmul.f32 0.5, %v3141_v34  ;;  %v3046_v32 = vsub.f32 1.5, %v3045_v22  ;;  %v2957_v40 = vmax.f32 %v2956_v61, 1e-08  ;;  %v3091_v61 = vpop.f32.mrf.mxu2 }
 0x467   : > { %v3738_v20 = vpop.eup %3737  ;;  %v2673_v35 = vsel %vm2672_vm7, %v3732_v11, %v2669_v24 }
 0x468   : > { %v3143_v8 = vsub.f32 1.5, %v3142_v57  ;;  %v3047_v36 = vmul.f32 %v3734_v44, %v3046_v32  ;;  %v2678_v18 = vsel %vm2675_vm12, %v2677_v29, %v2673_v35  ;;  %v2816_v55 = vmul.f32 %v3738_v20, %v5190_v62 }
 0x469   : > { %v2679_v51 = vmul.f32 %v2678_v18, %v5172_v7  ;;  %3739 = vrcp.f32 %v2957_v40  ;;  %vm2821_vm8 = vweird.f32 %v3738_v20  ;;  %v2969_v9 = vand.u32 2147483648, %v2957_v40 }
 0x46a   : > { %v3144_v31 = vmul.f32 %v3736_v30, %v3143_v8  ;;  %v3048_v53 = vmul.f32 %v3047_v36, %v5183_v33  ;;  %v2817_v48 = vsub.f32 1.0, %v2816_v55  ;;  %vm2822_vm13 = vmor %vm2820_vm14, %vm2821_vm8  ;;  %v2967_v16 = vand.u32 2147483647, %v2957_v40  ;;  %v5396_v8 = vld [vmem:[#allocation11_spill] sm:$0xff]  ;;  %v5397_v55 = vld [vmem:[#allocation14_spill] sm:$0xff] }
 0x46b   : > { %3259 = vrot.lane.b32.xlu2 %v2679_v51, %s3772_s18  ;;  %vm2963_vm10 = vweird.f32 %v2957_v40  ;;  %v2970_v59 = vor.u32 1.1754944e-38, %v2969_v9 }
 0x46c   : > { %v3145_v2 = vmul.f32 %v3144_v31, %v5186_v52  ;;  %v2818_v7 = vmul.f32 %v3738_v20, %v2817_v48  ;;  %v3050_v45 = vsel %vm3049_vm6, %v5183_v33, %v3048_v53  ;;  %vm2968_vm4 = vcmp.eq.f32.partialorder %v2967_v16, 8.507059e+37 }
 0x46d   : > { %v3053_v25 = vsel %vm3051_vm9, %v3052_v27, %v3050_v45 }
 0x46e   : > { %v3147_v19 = vsel %vm3146_vm11, %v5186_v52, %v3145_v2  ;;  %v2819_v23 = vadd.f32 %v3738_v20, %v2818_v7  ;;  %v3054_v5 = vmax.f32 %v3053_v25, 1e-08 }
 0x46f   : > { %v3150_v56 = vsel %vm3148_vm15, %v3149_v42, %v3147_v19  ;;  %v3740_v50 = vpop.eup %3739 }
 0x470   : > { %v3151_v37 = vmax.f32 %v3150_v56, 1e-08  ;;  %v2823_v21 = vsel %vm2822_vm13, %v3738_v20, %v2819_v23  ;;  %v2959_v28 = vmul.f32 %v3740_v50, %v2957_v40  ;;  %3741 = vrcp.f32 %v3054_v5  ;;  %v5394_v40 = vld [vmem:[#allocation16_spill] sm:$0xff] }
 0x471   : > { %v2828_v33 = vsel %vm2825_vm1, %v2827_v0, %v2823_v21  ;;  %vm2964_vm2 = vweird.f32 %v3740_v50  ;;  %v3066_v41 = vand.u32 2147483648, %v3054_v5  ;;  %v3064_v12 = vand.u32 2147483647, %v3054_v5 }
 0x472   : > { %v2829_v4 = vmul.f32 %v2828_v33, %v5174_v26  ;;  %v2960_v1 = vsub.f32 1.0, %v2959_v28  ;;  %3743 = vrcp.f32 %v3151_v37  ;;  %vm2965_vm3 = vmor %vm2963_vm10, %vm2964_vm2  ;;  %vm3060_vm12 = vweird.f32 %v3054_v5 }
 0x473   : > { %v3163_v58 = vand.u32 2147483648, %v3151_v37  ;;  %v3161_v34 = vand.u32 2147483647, %v3151_v37  ;;  %v3067_v43 = vor.u32 1.1754944e-38, %v3066_v41  ;;  %vm3065_vm11 = vcmp.eq.f32.partialorder %v3064_v12, 8.507059e+37 }
 0x474   : > { %3190 = vrot.lane.b32.xlu1 %v2829_v4, %s3773_s23  ;;  %v2961_v52 = vmul.f32 %v3740_v50, %v2960_v1  ;;  %vm3157_vm8 = vweird.f32 %v3151_v37  ;;  %v5395_v20 = vmax.f32 %v4607_v10, %v5394_v40  ;;  %3745 = vrsqrt.f32 %v5396_v8 }
 0x475   : > { %v3164_v6 = vor.u32 1.1754944e-38, %v3163_v58  ;;  %vm3162_vm14 = vcmp.eq.f32.partialorder %v3161_v34, 8.507059e+37  ;;  %3747 = vrsqrt.f32 %v5397_v55  ;;  %vm439_vm13 = vcmp.eq.f32.partialorder %v5396_v8, inf }
 0x476   : > { %v3742_v17 = vpop.eup %3741  ;;  %v2962_v11 = vadd.f32 %v3740_v50, %v2961_v52  ;;  %v442_v10 = vand.u32 2147483648, %v5396_v8  ;;  %vm441_vm1 = vcmp.eq.f32.partialorder %v5396_v8, 0.0  ;;  %vm652_vm2 = vcmp.eq.f32.partialorder %v5397_v55, inf }
 0x477   : > { %v3056_v54 = vmul.f32 %v3742_v17, %v3054_v5  ;;  %vm3061_vm7 = vweird.f32 %v3742_v17  ;;  %v3183_v5 = vpop.permute.xlu1 %3182  ;;  %v655_v56 = vand.u32 2147483648, %v5397_v55  ;;  %vm654_vm10 = vcmp.eq.f32.partialorder %v5397_v55, 0.0 }
 0x478   : > { %v3744_v44 = vpop.eup %3743  ;;  %v2966_v49 = vsel %vm2965_vm3, %v3740_v50, %v2962_v11  ;;  %vm3062_vm9 = vmor %vm3060_vm12, %vm3061_vm7  ;;  %v3195_v50 = vpop.permute.xlu0 %3194 }
 0x479   : > { %v2971_v62 = vsel %vm2968_vm4, %v2970_v59, %v2966_v49  ;;  %v3057_v26 = vsub.f32 1.0, %v3056_v54  ;;  %v3153_v30 = vmul.f32 %v3744_v44, %v3151_v37  ;;  %vm3158_vm6 = vweird.f32 %v3744_v44 }
 0x47a   : > { %v2972_v15 = vmul.f32 %v2971_v62, %v5176_v46  ;;  %vm3159_vm15 = vmor %vm3157_vm8, %vm3158_vm6  ;;  %v3746_v35 = vpop.eup %3745  ;;  %vm3224_vm6 = vcmask 326656   ;;  %vm3230_vm8 = vcmask 818176  }
 0x47b   : > { %v3058_v38 = vmul.f32 %v3742_v17, %v3057_v26  ;;  %v3154_v63 = vsub.f32 1.0, %v3153_v30  ;;  %v433_v36 = vmul.f32 %v3746_v35, %v5396_v8  ;;  %v3748_v51 = vpop.eup %3747  ;;  %v5398_v30 = vld [vmem:[#allocation10_spill] sm:$0xff] }
 0x47c   : > { %3220 = vrot.lane.b32.xlu0 %v2972_v15, %s3774_s28  ;;  %v646_v48 = vmul.f32 %v3748_v51, %v5397_v55 }
 0x47d   : > { %v3059_v13 = vadd.f32 %v3742_v17, %v3058_v38  ;;  %v3155_v47 = vmul.f32 %v3744_v44, %v3154_v63  ;;  %v434_v18 = vmul.f32 %v3746_v35, %v433_v36 }
 0x47e   : > { %v647_v2 = vmul.f32 %v3748_v51, %v646_v48 }
 0x47f   : > { %v3063_v39 = vsel %vm3062_vm9, %v3742_v17, %v3059_v13  ;;  %v3156_v22 = vadd.f32 %v3744_v44, %v3155_v47  ;;  %v3213_v4 = vpop.permute.xlu1 %3212  ;;  %vm3226_vm9 = vcmask 490496  }
 0x480   : > { %v3068_v46 = vsel %vm3065_vm11, %v3067_v43, %v3063_v39  ;;  %v648_v14 = vmul.f32 0.5, %v647_v2  ;;  %v3252_v9 = vpop.permute.xlu0 %3251  ;;  %vm3228_vm11 = vcmask 654336   ;;  %v3217_v43 = vpop.permute.xlu2 %3216 }
 0x481   : > { %v3069_v57 = vmul.f32 %v3068_v46, %v5180_v60  ;;  %v3160_v24 = vsel %vm3159_vm15, %v3744_v44, %v3156_v22  ;;  %v435_v60 = vmul.f32 0.5, %v434_v18  ;;  %vm3232_vm15 = vcmask 982016  }
 0x482   : > { %v3165_v32 = vsel %vm3162_vm14, %v3164_v6, %v3160_v24  ;;  %v649_v42 = vsub.f32 1.5, %v648_v14 }
 0x483   : > { %3247 = vrot.lane.b32.xlu1 %v3069_v57, %s3773_s23  ;;  %v3166_v29 = vmul.f32 %v3165_v32, %v3091_v61  ;;  %v436_v31 = vsub.f32 1.5, %v435_v60 }
 0x484   : > { %v650_v25 = vmul.f32 %v3748_v51, %v649_v42 }
 0x485   : > { %3263 = vrot.lane.b32.xlu0 %v3166_v29, %s3774_s28  ;;  %v437_v53 = vmul.f32 %v3746_v35, %v436_v31 }
 0x486   : > { %v651_v19 = vmul.f32 %v650_v25, %v5397_v55 }
 0x487   : > { %v438_v27 = vmul.f32 %v437_v53, %v5396_v8  ;;  %v3240_v44 = vpop.permute.xlu1 %3239 }
 0x488   : > { %v653_v37 = vsel %vm652_vm2, %v5397_v55, %v651_v19  ;;  %v3187_v49 = vpop.permute.xlu0 %3186 }
 0x489   : > { %v440_v3 = vsel %vm439_vm13, %v5396_v8, %v438_v27  ;;  %v656_v21 = vsel %vm654_vm10, %v655_v56, %v653_v37  ;;  %v5399_v8 = vld [vmem:[#allocation13_spill] sm:$0xff] }
 0x48a   : > { %v443_v7 = vsel %vm441_vm1, %v442_v10, %v440_v3  ;;  %v657_v33 = vmax.f32 %v656_v21, 1e-08  ;;  %vm3234_vm1 = vcmask 97280  }
 0x48b   : > { %3255 = vrot.lane.b32.xlu1 %v5395_v20, %s3769_s26  ;;  %v444_v45 = vmax.f32 %v443_v7, 1e-08  ;;  %s3629_s26 = sshll.u32 %s5401_s22, 4 }
 0x48c   : > { %s307_s7 = scalar_lea.vmem %s5274_s5, %s3629_s26  ;;  %vm663_vm14 = vweird.f32 %v657_v33  ;;  %v669_v46 = vand.u32 2147483648, %v657_v33  ;;  %v667_v57 = vand.u32 2147483647, %v657_v33  ;;  %s312_s11 = scalar_lea.vmem %s5275_s6, %s3629_s26 }
 0x48d   : > { %3749 = vrcp.f32 %v444_v45  ;;  %vm450_vm3 = vweird.f32 %v444_v45  ;;  %v456_v52 = vand.u32 2147483648, %v444_v45  ;;  %v454_v17 = vand.u32 2147483647, %v444_v45 }
 0x48e   : > { %3751 = vrcp.f32 %v657_v33  ;;  %v670_v61 = vor.u32 1.1754944e-38, %v669_v46  ;;  %vm668_vm10 = vcmp.eq.f32.partialorder %v667_v57, 8.507059e+37 }
 0x48f   : > { %v457_v11 = vor.u32 1.1754944e-38, %v456_v52  ;;  %vm455_vm12 = vcmp.eq.f32.partialorder %v454_v17, 8.507059e+37 }
 0x493   : > { %v3750_v23 = vpop.eup %3749 }
 0x494   : > { %v446_v0 = vmul.f32 %v3750_v23, %v444_v45  ;;  %vm451_vm4 = vweird.f32 %v3750_v23  ;;  %v3752_v59 = vpop.eup %3751 }
 0x495   : > { %vm452_vm7 = vmor %vm450_vm3, %vm451_vm4  ;;  %v659_v26 = vmul.f32 %v3752_v59, %v657_v33  ;;  %vm664_vm13 = vweird.f32 %v3752_v59 }
 0x496   : > { %v447_v28 = vsub.f32 1.0, %v446_v0  ;;  %vm665_vm2 = vmor %vm663_vm14, %vm664_vm13 }
 0x497   : > { %v660_v41 = vsub.f32 1.0, %v659_v26 }
 0x498   : > { %v448_v1 = vmul.f32 %v3750_v23, %v447_v28 }
 0x499   : > { %v661_v47 = vmul.f32 %v3752_v59, %v660_v41 }
 0x49a   : > { %v449_v16 = vadd.f32 %v3750_v23, %v448_v1 }
 0x49b   : > { %v662_v6 = vadd.f32 %v3752_v59, %v661_v47 }
 0x49c   : > { %v453_v54 = vsel %vm452_vm7, %v3750_v23, %v449_v16 }
 0x49d   : > { %v458_v62 = vsel %vm455_vm12, %v457_v11, %v453_v54  ;;  %v666_v29 = vsel %vm665_vm2, %v3752_v59, %v662_v6 }
 0x49e   : > { %v459_v15 = vmul.f32 %v458_v62, %v5398_v30  ;;  %v671_v40 = vsel %vm668_vm10, %v670_v61, %v666_v29 }
 0x49f   : > { %v672_v35 = vmul.f32 %v671_v40, %v5399_v8 }
 0x4a0   : > { %v3223_v38 = vsel %vm1113_vm5, %v459_v15, %v3183_v5 }
 0x4a1   : > { %v3225_v12 = vsel %vm3224_vm6, %v3223_v38, %v3187_v49  ;;  %v3266_v60 = vsel %vm1113_vm5, %v672_v35, %v3240_v44 }
 0x4ad   : > { %v3244_v63 = vpop.permute.xlu0 %3243 }
 0x4ae   : > { %v3267_v31 = vsel %vm3224_vm6, %v3266_v60, %v3244_v63 }
 0x4c5   : > { %v3260_v36 = vpop.permute.xlu2 %3259 }
 0x4e6   : > { %v3191_v58 = vpop.permute.xlu1 %3190 }
 0x4e7   : > { %v3227_v13 = vsel %vm3226_vm9, %v3225_v12, %v3191_v58 }
 0x4e8   : > { %v3229_v34 = vsel %vm3228_vm11, %v3227_v13, %v3195_v50 }
 0x4e9   : > { %v3231_v39 = vsel %vm3230_vm8, %v3229_v34, %v3213_v4 }
 0x4ea   : > { %v3233_v22 = vsel %vm3232_vm15, %v3231_v39, %v3217_v43 }
 0x4eb   : > { %3236 = vst [vmem:[%s307_s7] sm:$0xff] %v3233_v22 }
 0x4ee   : > { %v3221_v24 = vpop.permute.xlu0 %3220 }
 0x4ef   : > { %v3235_v32 = vsel %vm3234_vm1, %v3217_v43, %v3221_v24 }
 0x4f0   : > { %3237 = vst.msk [vmem:[%s307_s7 + $0x8] sm:$0xff] %vm350_vm0, %v3235_v32 }
 0x4f5   : > { %v3248_v20 = vpop.permute.xlu1 %3247 }
 0x4f6   : > { %v3268_v51 = vsel %vm3226_vm9, %v3267_v31, %v3248_v20 }
 0x4f7   : > { %v3264_v18 = vpop.permute.xlu0 %3263  ;;  %v3269_v48 = vsel %vm3228_vm11, %v3268_v51, %v3252_v9 }
 0x4f8   : > { %v3272_v55 = vsel %vm3234_vm1, %v3260_v36, %v3264_v18 }
 0x4f9   : > { %3274 = vst.msk [vmem:[%s312_s11 + $0x8] sm:$0xff] %vm350_vm0, %v3272_v55 }
 0x4fd   : > { %v3256_v53 = vpop.permute.xlu1 %3255 }
 0x4fe   : > { %v3270_v27 = vsel %vm3230_vm8, %v3269_v48, %v3256_v53 }
 0x4ff   : > { %v3271_v10 = vsel %vm3232_vm15, %v3270_v27, %v3260_v36 }
 0x500   : > { %3273 = vst [vmem:[%s312_s11] sm:$0xff] %v3271_v10 }
 0x501 PF: > { %s17_s21 = sadd.s32 1, %s3766_s21  }
 0x502   : > { %p14_p4 = scmp.ge.s32.totalorder %s17_s21, 4  }
 0x504   :  { %16 = sbr.rel (!%p14_p4) target bundleno = 1 (0x1), region = 98 }

// kernel: bimpm_forward.9
= control target key start
LH: loop header
LB: loop body
LE: loop exit
PB: predicated region body
PF: predicated region fallthrough
CT: control target
= control target key end

     0   :  { %13 = vsyncpa [#allocation3], 0  ;;  %s1369_s0 = inlined_call_operand.vmem [shape: f32[8,8,128], index: 0, kind: input, shape index: {}]   ;;  %s1370_s1 = inlined_call_operand.vmem [shape: f32[32,256], index: 1, kind: input, shape index: {}]   ;;  %s1371_s2 = inlined_call_operand.vmem [shape: f32[128,64], index: 2, kind: input, shape index: {}]   ;;  %s1372_s3 = inlined_call_operand.vmem [shape: f32[1,64], index: 3, kind: input, shape index: {}]   ;;  %s1373_s4 = inlined_call_operand.vmem [shape: f32[64,2], index: 4, kind: input, shape index: {}]   ;;  %s1374_s5 = inlined_call_operand.vmem [shape: f32[1,2], index: 5, kind: input, shape index: {}]   ;;  %s1375_s6 = inlined_call_operand.hbm [shape: f32[2,2], index: 6, kind: output, shape index: {0}]   ;;  %s1376_s7 = inlined_call_operand.hbm [shape: f32[2,2], index: 7, kind: output, shape index: {1}]  }
   0x1   :  { %v1087_v0 = vld [vmem:[%s1370_s1 + $0x30] sm:$0xff]  ;;  %v1092_v1 = vld [vmem:[%s1370_s1 + $0x20] sm:$0xff]  ;;  %v1098_v2 = vld [vmem:[%s1370_s1 + $0x38] sm:$0xff] }
   0x2   :  { %54 = vmatpush.msra.mxu2 %v1087_v0  ;;  %v1103_v3 = vld [vmem:[%s1370_s1 + $0x28] sm:$0xff]  ;;  %397 = vmatpush.msra.mxu0 %v1087_v0  ;;  %v1109_v4 = vld [vmem:[%s1370_s1 + $0x10] sm:$0xff]  ;;  %v1117_v5 = vld [vmem:[%s1370_s1 + $0x18] sm:$0xff] }
   0x3   :  { %74 = vmatpush.msra.mxu1 %v1098_v2  ;;  %159 = vmatpush.msra.mxu3 %v1098_v2 }
   0x4   :  { %55 = vmatpush.msra.mxu2 %v1092_v1  ;;  %398 = vmatpush.msra.mxu0 %v1092_v1 }
   0x5   :  { %14 = vsyncpa [#allocation5], 0  ;;  %v1123_v6 = vld [vmem:[%s1370_s1] sm:$0xff]  ;;  %75 = vmatpush.msra.mxu1 %v1103_v3  ;;  %160 = vmatpush.msra.mxu3 %v1103_v3  ;;  %v1131_v7 = vld [vmem:[%s1370_s1 + $0x8] sm:$0xff]  ;;  %v1038_v8 = vmov 0.0   ;;  %v27_v9 = vlaneseq  ;;  %s1039_s18 = smov 64  }
   0x6   :  { %56 = vmatpush.msra.mxu2 %v1109_v4  ;;  %399 = vmatpush.msra.mxu0 %v1109_v4  ;;  %v83_v12 = vld [vmem:[%s1369_s0] sm:$0xff]  ;;  %s1040_s19 = smov 32   ;;  %vm38_vm5 = vcmask 261120   ;;  %v881_v39 = vld [vmem:[%s1369_s0 + $0x8] sm:$0xff]  ;;  %s1041_s16 = smov 96  }
   0x7   :  { %76 = vmatpush.msra.mxu1 %v1117_v5  ;;  %161 = vmatpush.msra.mxu3 %v1117_v5  ;;  %v1164_v10 = vshrl.u32 %v27_v9, 7  ;;  %s1042_s12 = smov [#allocation2]   ;;  %s1043_s14 = smov [#allocation4]  }
   0x8   :  { %57 = vmatpush.msra.mxu2 %v1123_v6  ;;  %400 = vmatpush.msra.mxu0 %v1123_v6  ;;  %s851_s13 = sshll.u32 %s1042_s12, 4  ;;  %s864_s1 = sshll.u32 %s1376_s7, 4  ;;  %s852_s13 = int_to_ptr.vmem [resolvable:$true] %s851_s13  ;;  %s865_s1 = int_to_ptr.hbm [resolvable:$true] %s864_s1 }
   0x9   :  { %58 = vmatmul.f32.vlgmr.msra.gmra.mxu2 %v1038_v8  ;;  %77 = vmatpush.msra.mxu1 %v1131_v7  ;;  %vm29_vm0 = vcmp.lt.s32.totalorder %v1164_v10, 4 }
   0xa   :  { %78 = vmatmul.f32.vlgmr.msra.gmra.mxu1 %v1038_v8  ;;  %139 = vmatpush.msrb.mxu2 %v1087_v0 }
   0xb   :  { %162 = vmatpush.msra.mxu3 %v1131_v7  ;;  %245 = vmatpush.msrb.mxu1 %v1098_v2 }
   0xc   :  { %140 = vmatpush.msrb.mxu2 %v1092_v1  ;;  %569 = vmatpush.msrb.mxu0 %v1087_v0 }
   0xd   :  { %225 = vmatpush.msrb.mxu3 %v1087_v0  ;;  %246 = vmatpush.msrb.mxu1 %v1103_v3 }
   0xe   :  { %141 = vmatpush.msrb.mxu2 %v1109_v4  ;;  %570 = vmatpush.msrb.mxu0 %v1092_v1 }
   0xf   :  { %226 = vmatpush.msrb.mxu3 %v1092_v1  ;;  %247 = vmatpush.msrb.mxu1 %v1117_v5 }
  0x10   :  { %142 = vmatpush.msrb.mxu2 %v1123_v6  ;;  %571 = vmatpush.msrb.mxu0 %v1109_v4 }
  0x11   :  { %227 = vmatpush.msrb.mxu3 %v1109_v4  ;;  %248 = vmatpush.msrb.mxu1 %v1131_v7 }
  0x12   :  { %311 = vmatpush.msra.mxu2 %v1087_v0  ;;  %572 = vmatpush.msrb.mxu0 %v1123_v6 }
  0x13   :  { %228 = vmatpush.msrb.mxu3 %v1123_v6  ;;  %417 = vmatpush.msra.mxu1 %v1098_v2 }
  0x14   :  { %312 = vmatpush.msra.mxu2 %v1092_v1 }
  0x15   :  { %418 = vmatpush.msra.mxu1 %v1103_v3 }
  0x16   :  { %313 = vmatpush.msra.mxu2 %v1109_v4 }
  0x17   :  { %419 = vmatpush.msra.mxu1 %v1117_v5 }
  0x18   :  { %314 = vmatpush.msra.mxu2 %v1123_v6 }
  0x19   :  { %420 = vmatpush.msra.mxu1 %v1131_v7 }
  0x87   :  { %v79_v11 = vpop.f32.mrf.mxu1 }
  0x8c   :  { %v59_v13 = vpop.f32.mrf.mxu2 }
  0x8d   :  { %v82_v14 = vsel %vm29_vm0, %v59_v13, %v79_v11 }
  0x8e   :  { %v84_v15 = vadd.f32 %v83_v12, %v82_v14  ;;  %v885_v12 = vld [vmem:[%s1369_s0 + $0x10] sm:$0xff] }
  0x90   :  { %916 = vtanh.f32 %v84_v15  ;;  %v878_v17 = vmul.f32 -1.442695, %v84_v15 }
  0x92   :  { %918 = vpow2.f32 %v878_v17 }
  0x96   :  { %v917_v16 = vpop.eup %916 }
  0x97   :  { %107 = vrot.lane.b32.xlu0 %v917_v16, %s1039_s18 }
  0x98   :  { %v919_v18 = vpop.eup %918 }
  0x99   :  { %v88_v19 = vadd.f32 1.0, %v919_v18 }
  0x9b   :  { %920 = vrcp.f32 %v88_v19  ;;  %v100_v25 = vand.u32 2147483648, %v88_v19  ;;  %vm94_vm2 = vweird.f32 %v88_v19  ;;  %v98_v26 = vand.u32 2147483647, %v88_v19 }
  0x9d   :  { %v101_v28 = vor.u32 1.1754944e-38, %v100_v25  ;;  %vm99_vm4 = vcmp.eq.f32.partialorder %v98_v26, 8.507059e+37 }
  0xa1   :  { %v921_v20 = vpop.eup %920 }
  0xa2   :  { %v90_v21 = vmul.f32 %v921_v20, %v88_v19  ;;  %vm95_vm1 = vweird.f32 %v921_v20 }
  0xa3   :  { %vm96_vm3 = vmor %vm94_vm2, %vm95_vm1 }
  0xa4   :  { %v91_v22 = vsub.f32 1.0, %v90_v21 }
  0xa6   :  { %v92_v23 = vmul.f32 %v921_v20, %v91_v22 }
  0xa8   :  { %v93_v24 = vadd.f32 %v921_v20, %v92_v23 }
  0xaa   :  { %v97_v27 = vsel %vm96_vm3, %v921_v20, %v93_v24 }
  0xab   :  { %v102_v30 = vsel %vm99_vm4, %v101_v28, %v97_v27 }
  0xac   :  { %v105_v32 = vmul.f32 0.0, %v102_v30 }
 0x109   :  { %v108_v29 = vpop.permute.xlu0 %107 }
 0x10a   :  { %v110_v31 = vmul.f32 %v108_v29, %v102_v30 }
 0x10c   :  { %112 = vrot.lane.b32.xlu0 %v110_v31, %s1040_s19 }
 0x17e   :  { %v113_v33 = vpop.permute.xlu0 %112 }
 0x17f   :  { %v115_v34 = vadd.f32 %v113_v33, %v105_v32 }
 0x181   :  { %922 = vtanh.f32 %v115_v34 }
 0x187   :  { %v923_v35 = vpop.eup %922 }
 0x188   :  { %118 = vrot.lane.b32.xlu1 %v923_v35, %s1039_s18 }
 0x1fa   :  { %v119_v36 = vpop.permute.xlu1 %118 }
 0x1fb   :  { %v121_v37 = vmul.f32 %v119_v36, %v102_v30 }
 0x1fd   :  { %123 = vrot.lane.b32.xlu1 %v121_v37, %s1040_s19 }
 0x26f   :  { %v124_v38 = vpop.permute.xlu1 %123 }
 0x270   :  { %879 = vmatmul.msk.f32.vlgmr.msrb.gmra.mxu2 %vm38_vm5, %v124_v38  ;;  %880 = vmatmul.msk.f32.vlgmr.msra.gmra.mxu3 %vm38_vm5, %v124_v38 }
 0x271   :  { %331 = vmatpush.msra.mxu3 %v1098_v2  ;;  %483 = vmatpush.msrb.mxu2 %v1087_v0 }
 0x273   :  { %332 = vmatpush.msra.mxu3 %v1103_v3  ;;  %484 = vmatpush.msrb.mxu2 %v1092_v1 }
 0x275   :  { %333 = vmatpush.msra.mxu3 %v1117_v5  ;;  %485 = vmatpush.msrb.mxu2 %v1109_v4 }
 0x277   :  { %334 = vmatpush.msra.mxu3 %v1131_v7  ;;  %486 = vmatpush.msrb.mxu2 %v1123_v6 }
 0x2f3   :  { %v144_v40 = vpop.f32.mrf.mxu2  ;;  %v164_v41 = vpop.f32.mrf.mxu3 }
 0x2f4   :  { %v167_v42 = vsel %vm29_vm0, %v144_v40, %v164_v41  ;;  %v889_v40 = vld [vmem:[%s1369_s0 + $0x18] sm:$0xff] }
 0x2f5   :  { %v170_v43 = vadd.f32 %v881_v39, %v167_v42 }
 0x2f7   :  { %924 = vtanh.f32 %v170_v43  ;;  %v882_v45 = vmul.f32 -1.442695, %v170_v43 }
 0x2f9   :  { %926 = vpow2.f32 %v882_v45 }
 0x2fd   :  { %v925_v44 = vpop.eup %924 }
 0x2fe   :  { %193 = vrot.lane.b32.xlu2 %v925_v44, %s1039_s18 }
 0x2ff   :  { %v927_v46 = vpop.eup %926 }
 0x300   :  { %v174_v47 = vadd.f32 1.0, %v927_v46 }
 0x302   :  { %928 = vrcp.f32 %v174_v47  ;;  %v186_v53 = vand.u32 2147483648, %v174_v47  ;;  %vm180_vm7 = vweird.f32 %v174_v47  ;;  %v184_v54 = vand.u32 2147483647, %v174_v47 }
 0x304   :  { %v187_v56 = vor.u32 1.1754944e-38, %v186_v53  ;;  %vm185_vm9 = vcmp.eq.f32.partialorder %v184_v54, 8.507059e+37 }
 0x308   :  { %v929_v48 = vpop.eup %928 }
 0x309   :  { %v176_v49 = vmul.f32 %v929_v48, %v174_v47  ;;  %vm181_vm6 = vweird.f32 %v929_v48 }
 0x30a   :  { %vm182_vm8 = vmor %vm180_vm7, %vm181_vm6 }
 0x30b   :  { %v177_v50 = vsub.f32 1.0, %v176_v49 }
 0x30d   :  { %v178_v51 = vmul.f32 %v929_v48, %v177_v50 }
 0x30f   :  { %v179_v52 = vadd.f32 %v929_v48, %v178_v51 }
 0x311   :  { %v183_v55 = vsel %vm182_vm8, %v929_v48, %v179_v52 }
 0x312   :  { %v188_v58 = vsel %vm185_vm9, %v187_v56, %v183_v55 }
 0x313   :  { %v191_v60 = vmul.f32 %v188_v58, %v115_v34 }
 0x358   :  { %v194_v57 = vpop.permute.xlu2 %193 }
 0x359   :  { %v196_v59 = vmul.f32 %v194_v57, %v188_v58 }
 0x35b   :  { %198 = vrot.lane.b32.xlu2 %v196_v59, %s1040_s19 }
 0x3b5   :  { %v199_v61 = vpop.permute.xlu2 %198 }
 0x3b6   :  { %v201_v62 = vadd.f32 %v199_v61, %v191_v60  ;;  %v893_v60 = vld [vmem:[%s1369_s0 + $0x20] sm:$0xff] }
 0x3b8   :  { %930 = vtanh.f32 %v201_v62 }
 0x3be   :  { %v931_v63 = vpop.eup %930 }
 0x3bf   :  { %204 = vrot.lane.b32.xlu0 %v931_v63, %s1039_s18 }
 0x431   :  { %v205_v8 = vpop.permute.xlu0 %204 }
 0x432   :  { %v207_v9 = vmul.f32 %v205_v8, %v188_v58 }
 0x434   :  { %209 = vrot.lane.b32.xlu1 %v207_v9, %s1040_s19 }
 0x4a6   :  { %v210_v11 = vpop.permute.xlu1 %209 }
 0x4a7   :  { %883 = vmatmul.msk.f32.vlgmr.msrb.gmra.mxu3 %vm38_vm5, %v210_v11  ;;  %884 = vmatmul.msk.f32.vlgmr.msrb.gmra.mxu1 %vm38_vm5, %v210_v11 }
 0x4a8   :  { %503 = vmatpush.msrb.mxu3 %v1098_v2  ;;  %589 = vmatpush.msrb.mxu1 %v1098_v2 }
 0x4aa   :  { %504 = vmatpush.msrb.mxu3 %v1103_v3  ;;  %590 = vmatpush.msrb.mxu1 %v1103_v3 }
 0x4ac   :  { %505 = vmatpush.msrb.mxu3 %v1117_v5  ;;  %591 = vmatpush.msrb.mxu1 %v1117_v5 }
 0x4ae   :  { %506 = vmatpush.msrb.mxu3 %v1131_v7  ;;  %592 = vmatpush.msrb.mxu1 %v1131_v7 }
 0x524   :  { %v250_v13 = vpop.f32.mrf.mxu1 }
 0x52a   :  { %v230_v14 = vpop.f32.mrf.mxu3 }
 0x52b   :  { %v253_v15 = vsel %vm29_vm0, %v230_v14, %v250_v13 }
 0x52c   :  { %v256_v16 = vadd.f32 %v885_v12, %v253_v15 }
 0x52e   :  { %932 = vtanh.f32 %v256_v16  ;;  %v886_v18 = vmul.f32 -1.442695, %v256_v16 }
 0x530   :  { %934 = vpow2.f32 %v886_v18 }
 0x534   :  { %v933_v17 = vpop.eup %932 }
 0x535   :  { %279 = vrot.lane.b32.xlu2 %v933_v17, %s1039_s18 }
 0x536   :  { %v935_v19 = vpop.eup %934 }
 0x537   :  { %v260_v20 = vadd.f32 1.0, %v935_v19 }
 0x539   :  { %936 = vrcp.f32 %v260_v20  ;;  %v272_v26 = vand.u32 2147483648, %v260_v20  ;;  %vm266_vm11 = vweird.f32 %v260_v20  ;;  %v270_v27 = vand.u32 2147483647, %v260_v20 }
 0x53b   :  { %v273_v29 = vor.u32 1.1754944e-38, %v272_v26  ;;  %vm271_vm13 = vcmp.eq.f32.partialorder %v270_v27, 8.507059e+37 }
 0x53f   :  { %v937_v21 = vpop.eup %936 }
 0x540   :  { %v262_v22 = vmul.f32 %v937_v21, %v260_v20  ;;  %vm267_vm10 = vweird.f32 %v937_v21 }
 0x541   :  { %vm268_vm12 = vmor %vm266_vm11, %vm267_vm10 }
 0x542   :  { %v263_v23 = vsub.f32 1.0, %v262_v22 }
 0x544   :  { %v264_v24 = vmul.f32 %v937_v21, %v263_v23 }
 0x546   :  { %v265_v25 = vadd.f32 %v937_v21, %v264_v24 }
 0x548   :  { %v269_v28 = vsel %vm268_vm12, %v937_v21, %v265_v25 }
 0x549   :  { %v274_v31 = vsel %vm271_vm13, %v273_v29, %v269_v28 }
 0x54a   :  { %v277_v33 = vmul.f32 %v274_v31, %v201_v62 }
 0x58f   :  { %v280_v30 = vpop.permute.xlu2 %279 }
 0x590   :  { %v282_v32 = vmul.f32 %v280_v30, %v274_v31 }
 0x592   :  { %284 = vrot.lane.b32.xlu0 %v282_v32, %s1040_s19 }
 0x604   :  { %v285_v34 = vpop.permute.xlu0 %284 }
 0x605   :  { %v287_v35 = vadd.f32 %v285_v34, %v277_v33  ;;  %v897_v33 = vld [vmem:[%s1369_s0 + $0x28] sm:$0xff] }
 0x607   :  { %938 = vtanh.f32 %v287_v35 }
 0x60d   :  { %v939_v36 = vpop.eup %938 }
 0x60e   :  { %290 = vrot.lane.b32.xlu1 %v939_v36, %s1039_s18 }
 0x680   :  { %v291_v37 = vpop.permute.xlu1 %290 }
 0x681   :  { %v293_v38 = vmul.f32 %v291_v37, %v274_v31 }
 0x683   :  { %295 = vrot.lane.b32.xlu2 %v293_v38, %s1040_s19 }
 0x6dd   :  { %v296_v39 = vpop.permute.xlu2 %295 }
 0x6de   :  { %887 = vmatmul.msk.f32.vlgmr.msra.gmra.mxu2 %vm38_vm5, %v296_v39  ;;  %888 = vmatmul.msk.f32.vlgmr.msra.gmra.mxu3 %vm38_vm5, %v296_v39 }
 0x6df   :  { %655 = vmatpush.msra.mxu2 %v1087_v0  ;;  %675 = vmatpush.msra.mxu3 %v1098_v2 }
 0x6e1   :  { %656 = vmatpush.msra.mxu2 %v1092_v1  ;;  %676 = vmatpush.msra.mxu3 %v1103_v3 }
 0x6e3   :  { %657 = vmatpush.msra.mxu2 %v1109_v4  ;;  %677 = vmatpush.msra.mxu3 %v1117_v5 }
 0x6e5   :  { %658 = vmatpush.msra.mxu2 %v1123_v6  ;;  %678 = vmatpush.msra.mxu3 %v1131_v7 }
 0x761   :  { %v316_v41 = vpop.f32.mrf.mxu2  ;;  %v336_v0 = vpop.f32.mrf.mxu3 }
 0x762   :  { %v339_v2 = vsel %vm29_vm0, %v316_v41, %v336_v0 }
 0x763   :  { %v342_v1 = vadd.f32 %v889_v40, %v339_v2 }
 0x765   :  { %940 = vtanh.f32 %v342_v1  ;;  %v890_v4 = vmul.f32 -1.442695, %v342_v1 }
 0x767   :  { %942 = vpow2.f32 %v890_v4 }
 0x76b   :  { %v941_v3 = vpop.eup %940 }
 0x76c   :  { %365 = vrot.lane.b32.xlu0 %v941_v3, %s1039_s18 }
 0x76d   :  { %v943_v5 = vpop.eup %942 }
 0x76e   :  { %v346_v6 = vadd.f32 1.0, %v943_v5 }
 0x770   :  { %944 = vrcp.f32 %v346_v6  ;;  %v358_v46 = vand.u32 2147483648, %v346_v6  ;;  %vm352_vm15 = vweird.f32 %v346_v6  ;;  %v356_v47 = vand.u32 2147483647, %v346_v6 }
 0x772   :  { %v359_v49 = vor.u32 1.1754944e-38, %v358_v46  ;;  %vm357_vm2 = vcmp.eq.f32.partialorder %v356_v47, 8.507059e+37 }
 0x776   :  { %v945_v7 = vpop.eup %944 }
 0x777   :  { %v348_v42 = vmul.f32 %v945_v7, %v346_v6  ;;  %vm353_vm14 = vweird.f32 %v945_v7 }
 0x778   :  { %vm354_vm1 = vmor %vm352_vm15, %vm353_vm14 }
 0x779   :  { %v349_v43 = vsub.f32 1.0, %v348_v42 }
 0x77b   :  { %v350_v44 = vmul.f32 %v945_v7, %v349_v43 }
 0x77d   :  { %v351_v45 = vadd.f32 %v945_v7, %v350_v44 }
 0x77f   :  { %v355_v48 = vsel %vm354_vm1, %v945_v7, %v351_v45 }
 0x780   :  { %v360_v51 = vsel %vm357_vm2, %v359_v49, %v355_v48 }
 0x781   :  { %v363_v53 = vmul.f32 %v360_v51, %v287_v35 }
 0x7de   :  { %v366_v50 = vpop.permute.xlu0 %365 }
 0x7df   :  { %v368_v52 = vmul.f32 %v366_v50, %v360_v51 }
 0x7e1   :  { %370 = vrot.lane.b32.xlu1 %v368_v52, %s1040_s19 }
 0x853   :  { %v371_v54 = vpop.permute.xlu1 %370 }
 0x854   :  { %v373_v55 = vadd.f32 %v371_v54, %v363_v53  ;;  %v901_v53 = vld [vmem:[%s1369_s0 + $0x30] sm:$0xff] }
 0x856   :  { %946 = vtanh.f32 %v373_v55 }
 0x85c   :  { %v947_v56 = vpop.eup %946 }
 0x85d   :  { %376 = vrot.lane.b32.xlu2 %v947_v56, %s1039_s18 }
 0x8b7   :  { %v377_v57 = vpop.permute.xlu2 %376 }
 0x8b8   :  { %v379_v58 = vmul.f32 %v377_v57, %v360_v51 }
 0x8ba   :  { %381 = vrot.lane.b32.xlu0 %v379_v58, %s1040_s19 }
 0x92c   :  { %v382_v59 = vpop.permute.xlu0 %381 }
 0x92d   :  { %891 = vmatmul.msk.f32.vlgmr.msra.gmra.mxu0 %vm38_vm5, %v382_v59  ;;  %892 = vmatmul.msk.f32.vlgmr.msra.gmra.mxu1 %vm38_vm5, %v382_v59 }
 0x9aa   :  { %v402_v61 = vpop.f32.mrf.mxu0  ;;  %v422_v62 = vpop.f32.mrf.mxu1 }
 0x9ab   :  { %v425_v63 = vsel %vm29_vm0, %v402_v61, %v422_v62 }
 0x9ac   :  { %v428_v8 = vadd.f32 %v893_v60, %v425_v63 }
 0x9ae   :  { %948 = vtanh.f32 %v428_v8  ;;  %v894_v11 = vmul.f32 -1.442695, %v428_v8 }
 0x9b0   :  { %950 = vpow2.f32 %v894_v11 }
 0x9b4   :  { %v949_v9 = vpop.eup %948 }
 0x9b5   :  { %451 = vrot.lane.b32.xlu1 %v949_v9, %s1039_s18 }
 0x9b6   :  { %v951_v12 = vpop.eup %950 }
 0x9b7   :  { %v432_v13 = vadd.f32 1.0, %v951_v12 }
 0x9b9   :  { %952 = vrcp.f32 %v432_v13  ;;  %v444_v19 = vand.u32 2147483648, %v432_v13  ;;  %vm438_vm4 = vweird.f32 %v432_v13  ;;  %v442_v20 = vand.u32 2147483647, %v432_v13 }
 0x9bb   :  { %v445_v22 = vor.u32 1.1754944e-38, %v444_v19  ;;  %vm443_vm7 = vcmp.eq.f32.partialorder %v442_v20, 8.507059e+37 }
 0x9bf   :  { %v953_v14 = vpop.eup %952 }
 0x9c0   :  { %v434_v15 = vmul.f32 %v953_v14, %v432_v13  ;;  %vm439_vm3 = vweird.f32 %v953_v14 }
 0x9c1   :  { %vm440_vm6 = vmor %vm438_vm4, %vm439_vm3  ;;  %vm739_vm4 = vcmask 523264  }
 0x9c2   :  { %v435_v16 = vsub.f32 1.0, %v434_v15 }
 0x9c4   :  { %v436_v17 = vmul.f32 %v953_v14, %v435_v16 }
 0x9c6   :  { %v437_v18 = vadd.f32 %v953_v14, %v436_v17 }
 0x9c8   :  { %v441_v21 = vsel %vm440_vm6, %v953_v14, %v437_v18  ;;  %vm741_vm6 = vcmask 785408  }
 0x9c9   :  { %v446_v24 = vsel %vm443_vm7, %v445_v22, %v441_v21 }
 0x9ca   :  { %v449_v26 = vmul.f32 %v446_v24, %v373_v55 }
 0xa27   :  { %v452_v23 = vpop.permute.xlu1 %451 }
 0xa28   :  { %v454_v25 = vmul.f32 %v452_v23, %v446_v24 }
 0xa2a   :  { %456 = vrot.lane.b32.xlu2 %v454_v25, %s1040_s19 }
 0xa84   :  { %v457_v27 = vpop.permute.xlu2 %456 }
 0xa85   :  { %v459_v28 = vadd.f32 %v457_v27, %v449_v26  ;;  %v905_v26 = vld [vmem:[%s1369_s0 + $0x38] sm:$0xff] }
 0xa87   :  { %954 = vtanh.f32 %v459_v28 }
 0xa8d   :  { %v955_v29 = vpop.eup %954 }
 0xa8e   :  { %462 = vrot.lane.b32.xlu0 %v955_v29, %s1039_s18 }
 0xb00   :  { %v463_v30 = vpop.permute.xlu0 %462 }
 0xb01   :  { %v465_v31 = vmul.f32 %v463_v30, %v446_v24 }
 0xb03   :  { %467 = vrot.lane.b32.xlu1 %v465_v31, %s1040_s19 }
 0xb75   :  { %v468_v32 = vpop.permute.xlu1 %467 }
 0xb76   :  { %895 = vmatmul.msk.f32.vlgmr.msrb.gmra.mxu2 %vm38_vm5, %v468_v32  ;;  %896 = vmatmul.msk.f32.vlgmr.msrb.gmra.mxu3 %vm38_vm5, %v468_v32 }
 0xbf9   :  { %v488_v34 = vpop.f32.mrf.mxu2  ;;  %v508_v35 = vpop.f32.mrf.mxu3 }
 0xbfa   :  { %v511_v36 = vsel %vm29_vm0, %v488_v34, %v508_v35 }
 0xbfb   :  { %v514_v37 = vadd.f32 %v897_v33, %v511_v36 }
 0xbfd   :  { %956 = vtanh.f32 %v514_v37  ;;  %v898_v39 = vmul.f32 -1.442695, %v514_v37 }
 0xbff   :  { %958 = vpow2.f32 %v898_v39 }
 0xc03   :  { %v957_v38 = vpop.eup %956 }
 0xc04   :  { %537 = vrot.lane.b32.xlu2 %v957_v38, %s1039_s18 }
 0xc05   :  { %v959_v40 = vpop.eup %958 }
 0xc06   :  { %v518_v41 = vadd.f32 1.0, %v959_v40 }
 0xc08   :  { %960 = vrcp.f32 %v518_v41  ;;  %v530_v5 = vand.u32 2147483648, %v518_v41  ;;  %vm524_vm9 = vweird.f32 %v518_v41  ;;  %v528_v6 = vand.u32 2147483647, %v518_v41 }
 0xc0a   :  { %v531_v42 = vor.u32 1.1754944e-38, %v530_v5  ;;  %vm529_vm11 = vcmp.eq.f32.partialorder %v528_v6, 8.507059e+37 }
 0xc0e   :  { %v961_v0 = vpop.eup %960 }
 0xc0f   :  { %v520_v2 = vmul.f32 %v961_v0, %v518_v41  ;;  %vm525_vm8 = vweird.f32 %v961_v0 }
 0xc10   :  { %vm526_vm10 = vmor %vm524_vm9, %vm525_vm8 }
 0xc11   :  { %v521_v1 = vsub.f32 1.0, %v520_v2 }
 0xc13   :  { %v522_v3 = vmul.f32 %v961_v0, %v521_v1 }
 0xc15   :  { %v523_v4 = vadd.f32 %v961_v0, %v522_v3 }
 0xc17   :  { %v527_v7 = vsel %vm526_vm10, %v961_v0, %v523_v4 }
 0xc18   :  { %v532_v44 = vsel %vm529_vm11, %v531_v42, %v527_v7  ;;  %v758_v42 = vld [vmem:[%s1371_s2 + $0x78] sm:$0xff] }
 0xc19   :  { %v535_v46 = vmul.f32 %v532_v44, %v459_v28  ;;  %763 = vmatpush.msra.mxu0 %v758_v42 }
 0xc5e   :  { %v538_v43 = vpop.permute.xlu2 %537 }
 0xc5f   :  { %v540_v45 = vmul.f32 %v538_v43, %v532_v44  ;;  %v757_v43 = vld [vmem:[%s1371_s2 + $0x70] sm:$0xff] }
 0xc60   :  { %764 = vmatpush.msra.mxu0 %v757_v43 }
 0xc61   :  { %542 = vrot.lane.b32.xlu0 %v540_v45, %s1040_s19 }
 0xcd3   :  { %v543_v47 = vpop.permute.xlu0 %542 }
 0xcd4   :  { %v545_v48 = vadd.f32 %v543_v47, %v535_v46 }
 0xcd6   :  { %962 = vtanh.f32 %v545_v48 }
 0xcdc   :  { %v963_v49 = vpop.eup %962 }
 0xcdd   :  { %548 = vrot.lane.b32.xlu1 %v963_v49, %s1039_s18  ;;  %v755_v49 = vld [vmem:[%s1371_s2 + $0x60] sm:$0xff] }
 0xd4f   :  { %v549_v50 = vpop.permute.xlu1 %548 }
 0xd50   :  { %v551_v51 = vmul.f32 %v549_v50, %v532_v44  ;;  %v756_v44 = vld [vmem:[%s1371_s2 + $0x68] sm:$0xff]  ;;  %v754_v50 = vld [vmem:[%s1371_s2 + $0x58] sm:$0xff] }
 0xd51   :  { %765 = vmatpush.msra.mxu0 %v756_v44 }
 0xd52   :  { %553 = vrot.lane.b32.xlu2 %v551_v51, %s1040_s19  ;;  %v753_v51 = vld [vmem:[%s1371_s2 + $0x50] sm:$0xff] }
 0xd53   :  { %766 = vmatpush.msra.mxu0 %v755_v49 }
 0xd55   :  { %767 = vmatpush.msra.mxu0 %v754_v50 }
 0xd57   :  { %768 = vmatpush.msra.mxu0 %v753_v51 }
 0xdac   :  { %v554_v52 = vpop.permute.xlu2 %553 }
 0xdad   :  { %899 = vmatmul.msk.f32.vlgmr.msrb.gmra.mxu0 %vm38_vm5, %v554_v52  ;;  %900 = vmatmul.msk.f32.vlgmr.msrb.gmra.mxu1 %vm38_vm5, %v554_v52  ;;  %v752_v52 = vld [vmem:[%s1371_s2 + $0x48] sm:$0xff] }
 0xdae   :  { %769 = vmatpush.msra.mxu0 %v752_v52 }
 0xe2a   :  { %v574_v54 = vpop.f32.mrf.mxu0  ;;  %v594_v55 = vpop.f32.mrf.mxu1 }
 0xe2b   :  { %v597_v56 = vsel %vm29_vm0, %v574_v54, %v594_v55  ;;  %v750_v54 = vld [vmem:[%s1371_s2 + $0x38] sm:$0xff]  ;;  %v749_v55 = vld [vmem:[%s1371_s2 + $0x30] sm:$0xff] }
 0xe2c   :  { %v600_v57 = vadd.f32 %v901_v53, %v597_v56  ;;  %v751_v53 = vld [vmem:[%s1371_s2 + $0x40] sm:$0xff]  ;;  %v748_v56 = vld [vmem:[%s1371_s2 + $0x28] sm:$0xff] }
 0xe2d   :  { %770 = vmatpush.msra.mxu0 %v751_v53 }
 0xe2e   :  { %964 = vtanh.f32 %v600_v57  ;;  %v902_v59 = vmul.f32 -1.442695, %v600_v57  ;;  %v747_v57 = vld [vmem:[%s1371_s2 + $0x20] sm:$0xff] }
 0xe2f   :  { %771 = vmatpush.msra.mxu0 %v750_v54 }
 0xe30   :  { %966 = vpow2.f32 %v902_v59  ;;  %v745_v59 = vld [vmem:[%s1371_s2 + $0x10] sm:$0xff] }
 0xe31   :  { %772 = vmatpush.msra.mxu0 %v749_v55 }
 0xe33   :  { %773 = vmatpush.msra.mxu0 %v748_v56 }
 0xe34   :  { %v965_v58 = vpop.eup %964 }
 0xe35   :  { %623 = vrot.lane.b32.xlu0 %v965_v58, %s1039_s18  ;;  %v746_v58 = vld [vmem:[%s1371_s2 + $0x18] sm:$0xff]  ;;  %774 = vmatpush.msra.mxu0 %v747_v57 }
 0xe36   :  { %v967_v60 = vpop.eup %966 }
 0xe37   :  { %v604_v61 = vadd.f32 1.0, %v967_v60  ;;  %775 = vmatpush.msra.mxu0 %v746_v58  ;;  %v744_v60 = vld [vmem:[%s1371_s2 + $0x8] sm:$0xff] }
 0xe39   :  { %968 = vrcp.f32 %v604_v61  ;;  %v616_v12 = vand.u32 2147483648, %v604_v61  ;;  %vm610_vm13 = vweird.f32 %v604_v61  ;;  %v614_v13 = vand.u32 2147483647, %v604_v61  ;;  %776 = vmatpush.msra.mxu0 %v745_v59 }
 0xe3b   :  { %v617_v15 = vor.u32 1.1754944e-38, %v616_v12  ;;  %vm615_vm15 = vcmp.eq.f32.partialorder %v614_v13, 8.507059e+37  ;;  %777 = vmatpush.msra.mxu0 %v744_v60 }
 0xe3f   :  { %v969_v62 = vpop.eup %968 }
 0xe40   :  { %v606_v63 = vmul.f32 %v969_v62, %v604_v61  ;;  %vm611_vm12 = vweird.f32 %v969_v62  ;;  %v743_v61 = vld [vmem:[%s1371_s2] sm:$0xff] }
 0xe41   :  { %vm612_vm14 = vmor %vm610_vm13, %vm611_vm12  ;;  %778 = vmatpush.msra.mxu0 %v743_v61 }
 0xe42   :  { %v607_v8 = vsub.f32 1.0, %v606_v63  ;;  %v790_v63 = vld [vmem:[%s1373_s4 + $0x30] sm:$0xff] }
 0xe44   :  { %v608_v9 = vmul.f32 %v969_v62, %v607_v8  ;;  %v789_v8 = vld [vmem:[%s1373_s4 + $0x28] sm:$0xff] }
 0xe46   :  { %v609_v11 = vadd.f32 %v969_v62, %v608_v9 }
 0xe48   :  { %v613_v14 = vsel %vm612_vm14, %v969_v62, %v609_v11  ;;  %v791_v62 = vld [vmem:[%s1373_s4 + $0x38] sm:$0xff] }
 0xe49   :  { %v618_v17 = vsel %vm615_vm15, %v617_v15, %v613_v14  ;;  %807 = vmatpush.msra.mxu1 %v791_v62 }
 0xe4a   :  { %v621_v19 = vmul.f32 %v618_v17, %v545_v48 }
 0xe4b   :  { %808 = vmatpush.msra.mxu1 %v790_v63 }
 0xe4d   :  { %809 = vmatpush.msra.mxu1 %v789_v8 }
 0xea7   :  { %v624_v16 = vpop.permute.xlu0 %623 }
 0xea8   :  { %v626_v18 = vmul.f32 %v624_v16, %v618_v17 }
 0xeaa   :  { %628 = vrot.lane.b32.xlu1 %v626_v18, %s1040_s19  ;;  %v787_v18 = vld [vmem:[%s1373_s4 + $0x18] sm:$0xff] }
 0xf1c   :  { %v629_v20 = vpop.permute.xlu1 %628 }
 0xf1d   :  { %v631_v21 = vadd.f32 %v629_v20, %v621_v19  ;;  %v786_v19 = vld [vmem:[%s1373_s4 + $0x10] sm:$0xff]  ;;  %v785_v20 = vld [vmem:[%s1373_s4 + $0x8] sm:$0xff] }
 0xf1f   :  { %970 = vtanh.f32 %v631_v21 }
 0xf25   :  { %v971_v22 = vpop.eup %970 }
 0xf26   :  { %634 = vrot.lane.b32.xlu2 %v971_v22, %s1039_s18  ;;  %v914_v22 = vld [vmem:[%s1372_s3] ss:$0 sm:$0xff] }
 0xf80   :  { %v635_v23 = vpop.permute.xlu2 %634 }
 0xf81   :  { %v637_v24 = vmul.f32 %v635_v23, %v618_v17  ;;  %v788_v17 = vld [vmem:[%s1373_s4 + $0x20] sm:$0xff] }
 0xf82   :  { %810 = vmatpush.msra.mxu1 %v788_v17 }
 0xf83   :  { %639 = vrot.lane.b32.xlu0 %v637_v24, %s1040_s19 }
 0xf84   :  { %811 = vmatpush.msra.mxu1 %v787_v18 }
 0xf86   :  { %812 = vmatpush.msra.mxu1 %v786_v19 }
 0xf88   :  { %813 = vmatpush.msra.mxu1 %v785_v20 }
 0xff5   :  { %v640_v25 = vpop.permute.xlu0 %639 }
 0xff6   :  { %903 = vmatmul.msk.f32.vlgmr.msra.gmra.mxu2 %vm38_vm5, %v640_v25  ;;  %904 = vmatmul.msk.f32.vlgmr.msra.gmra.mxu3 %vm38_vm5, %v640_v25 }
0x1079   :  { %v660_v27 = vpop.f32.mrf.mxu2  ;;  %v680_v28 = vpop.f32.mrf.mxu3 }
0x107a   :  { %v683_v29 = vsel %vm29_vm0, %v660_v27, %v680_v28 }
0x107b   :  { %v686_v30 = vadd.f32 %v905_v26, %v683_v29  ;;  %v915_v26 = vld [vmem:[%s1374_s5] ss:$0 sm:$0xff]  ;;  %s853_s5 = sshll.u32 %s1375_s6, 4  ;;  %s862_s6 = sshll.u32 %s1043_s14, 4  ;;  %s854_s5 = int_to_ptr.hbm [resolvable:$true] %s853_s5  ;;  %s863_s6 = int_to_ptr.vmem [resolvable:$true] %s862_s6 }
0x107d   :  { %972 = vtanh.f32 %v686_v30  ;;  %v906_v32 = vmul.f32 -1.442695, %v686_v30 }
0x107f   :  { %974 = vpow2.f32 %v906_v32 }
0x1083   :  { %v973_v31 = vpop.eup %972 }
0x1084   :  { %709 = vrot.lane.b32.xlu1 %v973_v31, %s1039_s18 }
0x1085   :  { %v975_v33 = vpop.eup %974 }
0x1086   :  { %v690_v34 = vadd.f32 1.0, %v975_v33 }
0x1088   :  { %976 = vrcp.f32 %v690_v34  ;;  %v702_v40 = vand.u32 2147483648, %v690_v34  ;;  %vm696_vm2 = vweird.f32 %v690_v34  ;;  %v700_v10 = vand.u32 2147483647, %v690_v34 }
0x108a   :  { %v703_v0 = vor.u32 1.1754944e-38, %v702_v40  ;;  %vm701_vm3 = vcmp.eq.f32.partialorder %v700_v10, 8.507059e+37 }
0x108e   :  { %v977_v35 = vpop.eup %976 }
0x108f   :  { %v692_v36 = vmul.f32 %v977_v35, %v690_v34  ;;  %vm697_vm1 = vweird.f32 %v977_v35 }
0x1090   :  { %vm698_vm0 = vmor %vm696_vm2, %vm697_vm1 }
0x1091   :  { %v693_v37 = vsub.f32 1.0, %v692_v36 }
0x1093   :  { %v694_v38 = vmul.f32 %v977_v35, %v693_v37 }
0x1095   :  { %v695_v39 = vadd.f32 %v977_v35, %v694_v38 }
0x1097   :  { %v699_v41 = vsel %vm698_vm0, %v977_v35, %v695_v39 }
0x1098   :  { %v704_v1 = vsel %vm701_vm3, %v703_v0, %v699_v41 }
0x1099   :  { %v707_v4 = vmul.f32 %v704_v1, %v631_v21  ;;  %v784_v21 = vld [vmem:[%s1373_s4] sm:$0xff] }
0x109a   :  { %814 = vmatpush.msra.mxu1 %v784_v21 }
0x10f6   :  { %v710_v2 = vpop.permute.xlu1 %709 }
0x10f7   :  { %v712_v3 = vmul.f32 %v710_v2, %v704_v1 }
0x10f9   :  { %714 = vrot.lane.b32.xlu2 %v712_v3, %s1040_s19 }
0x1153   :  { %v715_v5 = vpop.permute.xlu2 %714 }
0x1154   :  { %v717_v6 = vadd.f32 %v715_v5, %v707_v4 }
0x1156   :  { %978 = vtanh.f32 %v717_v6 }
0x115c   :  { %v979_v7 = vpop.eup %978 }
0x115d   :  { %720 = vrot.lane.b32.xlu0 %v979_v7, %s1039_s18 }
0x11cf   :  { %v721_v45 = vpop.permute.xlu0 %720 }
0x11d0   :  { %v723_v46 = vmul.f32 %v721_v45, %v704_v1 }
0x11d2   :  { %725 = vrot.lane.b32.xlu1 %v723_v46, %s1040_s19  ;;  %v732_v47 = vrot.slane %v723_v46, 2  ;;  %v728_v48 = vrot.slane %v723_v46, 4  ;;  %v736_v14 = vrot.slane %v723_v46, 6 }
0x11d4   :  { %733 = vrot.lane.b32.xlu0 %v732_v47, %s1041_s16  ;;  %729 = vrot.lane.b32.xlu2 %v728_v48, %s1039_s18 }
0x122e   :  { %v730_v9 = vpop.permute.xlu2 %729 }
0x1244   :  { %v726_v11 = vpop.permute.xlu1 %725 }
0x1245   :  { %v738_v12 = vsel %vm38_vm5, %v726_v11, %v730_v9  ;;  %vm819_vm5 = vcmask 9216  }
0x1246   :  { %v734_v13 = vpop.permute.xlu0 %733 }
0x1247   :  { %v740_v15 = vsel %vm739_vm4, %v738_v12, %v734_v13 }
0x1248   :  { %v742_v16 = vsel %vm741_vm6, %v740_v15, %v736_v14 }
0x1249   :  { %779 = vmatmul.f32.vlgmr.msra.gmra.mxu0 %v742_v16 }
0x12c6   :  { %v780_v23 = vpop.f32.mrf.mxu0 }
0x12c7   :  { %v781_v24 = vadd.f32 %v914_v22, %v780_v23 }
0x12c9   :  { %980 = vtanh.f32 %v781_v24 }
0x12cf   :  { %v981_v25 = vpop.eup %980 }
0x12d0   :  { %907 = vmatmul.msk.f32.vlgmr.msra.gmra.mxu1 %vm739_vm4, %v981_v25 }
0x134d   :  { %v816_v27 = vpop.f32.mrf.mxu1 }
0x134e   :  { %v817_v28 = vadd.f32 %v915_v26, %v816_v27 }
0x1350   :  { %v821_v29 = vsel %vm819_vm5, %v817_v28, -inf  ;;  %820 = vst.msk [vmem:[#allocation2] sm:$0x3] %vm819_vm5, %v817_v28 }
0x1351   :  { %822 = vmax.xlane.f32.xlu1 %v821_v29  ;;  %856 = dma.vmem_to_hbm [thread:$0]  %s852_s13, 32, %s854_s5, [#allocation3]  }
0x13c4   :  { %v823_v30 = vpop.xlane.xlu1 %822 }
0x13c5   :  { %v824_v31 = vsub.f32 %v817_v28, %v823_v30 }
0x13c7   :  { %v825_v32 = vmul.f32 1.442695, %v824_v31 }
0x13c9   :  { %982 = vpow2.f32 %v825_v32 }
0x13cf   :  { %v983_v33 = vpop.eup %982 }
0x13d0   :  { %v827_v34 = vsel %vm819_vm5, %v983_v33, 0.0 }
0x13d1   :  { %828 = vadd.xlane.f32.xlu2 %v827_v34 }
0x1444   :  { %v829_v35 = vpop.xlane.xlu2 %828 }
0x1445   :  { %984 = vrcp.f32 %v829_v35  ;;  %v841_v39 = vand.u32 2147483648, %v829_v35  ;;  %v839_v10 = vand.u32 2147483647, %v829_v35  ;;  %vm835_vm8 = vweird.f32 %v829_v35 }
0x1447   :  { %v842_v0 = vor.u32 1.1754944e-38, %v841_v39  ;;  %vm840_vm10 = vcmp.eq.f32.partialorder %v839_v10, 8.507059e+37 }
0x144b   :  { %v985_v36 = vpop.eup %984 }
0x144c   :  { %v831_v37 = vmul.f32 %v985_v36, %v829_v35  ;;  %vm836_vm7 = vweird.f32 %v985_v36 }
0x144d   :  { %vm837_vm9 = vmor %vm835_vm8, %vm836_vm7 }
0x144e   :  { %v832_v38 = vsub.f32 1.0, %v831_v37 }
0x1450   :  { %v833_v40 = vmul.f32 %v985_v36, %v832_v38 }
0x1452   :  { %v834_v41 = vadd.f32 %v985_v36, %v833_v40 }
0x1454   :  { %v838_v2 = vsel %vm837_vm9, %v985_v36, %v834_v41 }
0x1455   :  { %v843_v1 = vsel %vm840_vm10, %v842_v0, %v838_v2 }
0x1456   :  { %v844_v3 = vmul.f32 %v983_v33, %v843_v1 }
0x1458   :  { %845 = vst.msk [vmem:[#allocation4] sm:$0x3] %vm819_vm5, %v844_v3 }
0x1459   :  { %867 = dma.vmem_to_hbm [thread:$0]  %s863_s6, 32, %s865_s1, [#allocation5]  }
0x145a   :  { %1034 = dma.done.wait [#allocation3], 32  }
0x145b   :  { %1035 = vsyncadd [#allocation3], 4294967264 }
0x145c   :  { %1036 = dma.done.wait [#allocation5], 32  }
0x145d   :  { %1037 = vsyncadd [#allocation5], 4294967264 }
0x145e   :  { %876 = vsyncpa [#allocation3], 1 }
0x145f   :  { %877 = vsyncpa [#allocation5], 1 }

</bundles_post_ra>
